<compile_context>
chip_gen: v5e
topology: v5e:2x2
jax: 0.10.0
libtpu: 0.0.40
codegen_flags: <defaults>
</compile_context>

<pallas_src>
import functools

import jax
import jax.numpy as jnp
import numpy as np
from jax import lax
from jax.experimental import pallas as pl
from jax.experimental.pallas import tpu as pltpu

NEG_MASK = -1.0e8      # matches the module's masked_fill value
NEG_EXCLUDE = -1.0e30  # excludes off-pattern / out-of-bounds entries from softmax


def _dot_attention_kernel(ctx_ref, umask_ref, sel_ref, hidT_ref, w_hc_ref,
                          w_ccT_ref, w_chT_ref,
                          scores_ref, z_ref, m_out_ref, l_out_ref,
                          qT_ref, m_ref, l_ref, acc_ref,
                          *, inv_temp, rows_per_step, total_rows, ragged):
    """Grid = (n_s,).  Per-step shapes:
         ctx_ref   [R, C]   (R = ts*B flat rows of the native [S,B,C] ctx)
         umask_ref [R, 1]   sel_ref [R, B] (0/1 row->batch-column selector)
         hidT_ref  [H, B]   w_hc_ref [M, H]  w_ccT_ref [C, M]  w_chT_ref [C, H]
         scores_ref[R, 1] (streamed)  z_ref [B, H]  m_out/l_out [1, B]
       scratch: qT [C, B] f32, m/l [1, B] f32, acc [B, C] f32."""
    si = pl.program_id(0)
    n_s = pl.num_programs(0)

    @pl.when(si == 0)
    def _init():
        # q^T = W_cc^T @ (W_hc @ hid^T) * (1/temperature) -- tiny, once per call.
        hmid = jnp.dot(w_hc_ref[...], hidT_ref[...],
                       preferred_element_type=jnp.float32)            # [M, B]
        qT = jnp.dot(w_ccT_ref[...], hmid,
                     preferred_element_type=jnp.float32)              # [C, B]
        qT_ref[...] = qT * inv_temp
        m_ref[...] = jnp.full(m_ref.shape, NEG_EXCLUDE, jnp.float32)
        l_ref[...] = jnp.zeros(l_ref.shape, jnp.float32)
        acc_ref[...] = jnp.zeros(acc_ref.shape, jnp.float32)

    ctx2 = ctx_ref[...]                                                # [R, C]
    if ragged:
        row = (lax.broadcasted_iota(jnp.int32, (rows_per_step, 1), 0)
               + si * rows_per_step)
        row_ok = row < total_rows                                      # [R, 1]
        # Out-of-bounds rows of the last tile contain undefined data; zero them
        # so the weighted-sum matmul below cannot be poisoned by NaN garbage.
        ctx2 = jnp.where(row_ok, ctx2, jnp.zeros_like(ctx2))

    qT = qT_ref[...]
    if ctx2.dtype != jnp.float32:
        qT = qT.astype(ctx2.dtype)                                     # cast at operand only
    sc = jnp.dot(ctx2, qT, preferred_element_type=jnp.float32)         # [R, B]  (MXU)

    # Flat row r is source position k = r // B of batch item b = r % B.  `sel`
    # keeps only column b for row r; everything else is excluded from softmax.
    sb = jnp.where(umask_ref[...] == 0.0, jnp.float32(NEG_MASK), sc)   # masked_fill
    sb = jnp.where(sel_ref[...] == 0.0, jnp.float32(NEG_EXCLUDE), sb)
    if ragged:
        sb = jnp.where(row_ok, sb, jnp.float32(NEG_EXCLUDE))

    # Raw per-position masked score (exactly one non-excluded entry per row),
    # streamed out; normalized to alpha by a tiny XLA epilogue.
    s_flat = jnp.max(sb, axis=1, keepdims=True)                        # [R, 1]
    scores_ref[...] = s_flat

    # Online (flash-style) softmax accumulation, per batch column.
    m_prev = m_ref[...]                                                # [1, B]
    m_new = jnp.maximum(m_prev, jnp.max(sb, axis=0, keepdims=True))
    corr = jnp.exp(m_prev - m_new)                                     # [1, B]
    p = jnp.exp(sb - m_new)                                            # [R, B]; 0 off-pattern
    l_ref[...] = corr * l_ref[...] + jnp.sum(p, axis=0, keepdims=True)
    p_op = p if ctx2.dtype == jnp.float32 else p.astype(ctx2.dtype)
    pv = jnp.dot(p_op.T, ctx2, preferred_element_type=jnp.float32)     # [B, C]  (MXU)
    acc_ref[...] = corr.T * acc_ref[...] + pv
    m_ref[...] = m_new

    @pl.when(si == n_s - 1)
    def _finalize():
        l = l_ref[...]                                                 # [1, B]
        weighted = acc_ref[...] * (1.0 / l).T                          # [B, C]
        z_ref[...] = jnp.dot(weighted, w_chT_ref[...],
                             preferred_element_type=jnp.float32
                             ).astype(z_ref.dtype)                     # [B, H]
        m_out_ref[...] = m_ref[...]
        l_out_ref[...] = l


def _pad2d_bytes(rows, cols, itemsize):
    """VMEM footprint of a 2-D buffer after (8, 128) tiling."""
    return (-(-rows // 8) * 8) * (-(-cols // 128) * 128) * itemsize


def _vmem_estimate(R, B, C, M, H, ctx_itemsize):
    est = 2 * _pad2d_bytes(R, C, ctx_itemsize)        # ctx double buffer
    est += 4 * _pad2d_bytes(R, 1, 4)                  # mask + raw-score buffers
    est += 2 * _pad2d_bytes(R, B, 4)                  # selector
    est += 2 * (_pad2d_bytes(M, H, 4) + _pad2d_bytes(C, M, 4)
                + _pad2d_bytes(C, H, 4) + _pad2d_bytes(H, B, 4))
    est += _pad2d_bytes(C, B, 4) + _pad2d_bytes(B, C, 4) + 4 * _pad2d_bytes(8, B, 4)
    return est


def dot_attention(hid, ctx, w_hc, w_cc, w_ch, ctx_mask=None, temperature=1.0,
                  *, block_s=1024, vmem_budget_bytes=36 << 20):
    """hid: [1, B, H] or [B, H]; ctx: [S, B, C] (native layout, f32 or bf16);
    ctx_mask: [S, B] or None.  w_hc: [M, H], w_cc: [M, C], w_ch: [H, C]
    (PyTorch nn.Linear weight layout).  Returns (alpha [S, B] f32, z [B, H] f32)."""
    if hid.ndim == 3:
        hid = hid[0]                                   # T == 1
    S, B, C = ctx.shape
    H = hid.shape[-1]
    M = w_hc.shape[0]

    # ---- choose the S tile; ctx is streamed as flat [ts*B, C] row blocks ----
    ts = S if S <= block_s else max(8, (block_s // 8) * 8)
    while True:
        est = _vmem_estimate(ts * B, B, C, M, H, jnp.dtype(ctx.dtype).itemsize)
        if est <= vmem_budget_bytes or ts <= 8:
            break
        ts = max(8, ((ts // 2) // 8) * 8)
    n_s = -(-S // ts)
    R = ts * B
    total_rows = S * B
    ragged = (n_s * ts) != S

    # ---- free / tiny host-side prep (ctx itself is NOT relaid out or copied) ----
    ctx_flat = ctx.reshape(total_rows, C)              # leading-dim merge: no data movement
    if ctx_mask is None:
        umask = jnp.ones((total_rows, 1), jnp.float32)
    else:
        umask = ctx_mask.astype(jnp.float32).reshape(total_rows, 1)
    sel = jnp.tile(jnp.eye(B, dtype=jnp.float32), (ts, 1))   # [R, B] row->batch selector
    hidT = jnp.asarray(hid).astype(jnp.float32).T             # [H, B]
    w_hc32 = jnp.asarray(w_hc).astype(jnp.float32)            # [M, H]
    w_ccT = jnp.asarray(w_cc).astype(jnp.float32).T           # [C, M]
    w_chT = jnp.asarray(w_ch).astype(jnp.float32).T           # [C, H]

    kernel = functools.partial(
        _dot_attention_kernel,
        inv_temp=1.0 / float(temperature),
        rows_per_step=R, total_rows=total_rows, ragged=ragged)

    grid_spec = pltpu.PrefetchScalarGridSpec(
        num_scalar_prefetch=0,
        grid=(n_s,),
        in_specs=[
            pl.BlockSpec((R, C), lambda si: (si, 0)),   # ctx stream (native layout)
            pl.BlockSpec((R, 1), lambda si: (si, 0)),   # mask stream
            pl.BlockSpec((R, B), lambda si: (0, 0)),    # selector (VMEM resident)
            pl.BlockSpec((H, B), lambda si: (0, 0)),    # hid^T   (resident)
            pl.BlockSpec((M, H), lambda si: (0, 0)),    # W_hc    (resident)
            pl.BlockSpec((C, M), lambda si: (0, 0)),    # W_cc^T  (resident)
            pl.BlockSpec((C, H), lambda si: (0, 0)),    # W_ch^T  (resident)
        ],
        out_specs=[
            pl.BlockSpec((R, 1), lambda si: (si, 0)),   # raw masked scores (streamed)
            pl.BlockSpec((B, H), lambda si: (0, 0)),    # z
            pl.BlockSpec((1, B), lambda si: (0, 0)),    # softmax max   m
            pl.BlockSpec((1, B), lambda si: (0, 0)),    # softmax denom l
        ],
        scratch_shapes=[
            pltpu.VMEM((C, B), jnp.float32),            # q^T (1/temperature folded in)
            pltpu.VMEM((1, B), jnp.float32),            # running max
            pltpu.VMEM((1, B), jnp.float32),            # running denom
            pltpu.VMEM((B, C), jnp.float32),            # weighted-ctx accumulator
        ],
    )

    scores_raw, z, m, l = pl.pallas_call(
        kernel,
        out_shape=(
            jax.ShapeDtypeStruct((n_s * R, 1), jnp.float32),
            jax.ShapeDtypeStruct((B, H), jnp.float32),
            jax.ShapeDtypeStruct((1, B), jnp.float32),
            jax.ShapeDtypeStruct((1, B), jnp.float32),
        ),
        grid_spec=grid_spec,
        compiler_params=pltpu.CompilerParams(
            dimension_semantics=("arbitrary",),
            vmem_limit_bytes=int(min(64 << 20, max(32 << 20, est + (8 << 20)))),
        ),
    )(ctx_flat, umask, sel, hidT, w_hc32, w_ccT, w_chT)

    # Tiny O(S*B) epilogue in XLA: normalize streamed raw scores into alpha.
    raw = scores_raw[:total_rows].reshape(S, B)
    alpha = jnp.exp(raw - m) / l
    return alpha, z


def _reference(hid, ctx, w_hc, w_cc, w_ch, ctx_mask, temperature):
    """Pure-JAX mirror of the PyTorch forward, for verification."""
    if hid.ndim == 3:
        hid = hid[0]
    ctx_ = jnp.einsum('sbc,mc->sbm', ctx, w_cc)            # ctx2ctx
    hid_ = jnp.einsum('bh,mh->bm', hid, w_hc)              # hid2ctx
    scores = jnp.einsum('bm,sbm->sb', hid_, ctx_) / temperature
    if ctx_mask is not None:
        scores = jnp.where(ctx_mask == 0.0, -100000000.0, scores)
    alpha = jax.nn.softmax(scores, axis=0)
    z = jnp.einsum('bc,hc->bh', jnp.sum(alpha[:, :, None] * ctx, axis=0), w_ch)
    return alpha, z


if __name__ == "__main__":
    # Module config: ctx_dim=C, hid_dim=H, att_bottleneck='ctx' -> mid_dim=C,
    # transform_ctx=True, ctx2hid=True (att_activ is unused in forward).
    S, B, C, H = 300, 4, 128, 64
    M = C
    temp = 1.5

    key = jax.random.PRNGKey(0)
    k_hid, k_ctx, k_hc, k_cc, k_ch = jax.random.split(key, 5)

    hid = jax.random.normal(k_hid, (1, B, H), dtype=jnp.float32)     # T = 1
    ctx = jax.random.normal(k_ctx, (S, B, C), dtype=jnp.float32)

    # nn.Linear-style init (uniform +-1/sqrt(in_features)).
    w_hc = jax.random.uniform(k_hc, (M, H), jnp.float32, -1.0, 1.0) / np.sqrt(H)
    w_cc = jax.random.uniform(k_cc, (M, C), jnp.float32, -1.0, 1.0) / np.sqrt(C)
    w_ch = jax.random.uniform(k_ch, (H, C), jnp.float32, -1.0, 1.0) / np.sqrt(C)

    # Mask with padded positions; column 2 is fully masked to exercise the
    # uniform-softmax (no-NaN) path that matches the reference.
    mask = jnp.ones((S, B), jnp.float32)
    mask = mask.at[S - 64:, 1].set(0.0).at[:7, 3].set(0.0)
    mask = mask.at[:, 2].set(0.0)

    alpha_ref, z_ref = _reference(hid, ctx, w_hc, w_cc, w_ch, mask, temp)

    # f32 path (ctx streamed once in its native layout).
    alpha, z = dot_attention(hid, ctx, w_hc, w_cc, w_ch, ctx_mask=mask,
                             temperature=temp)
    jax.block_until_ready((alpha, z))
    assert alpha.shape == (S, B) and z.shape == (B, H)
    np.testing.assert_allclose(np.asarray(alpha), np.asarray(alpha_ref),
                               rtol=2e-4, atol=2e-4)
    np.testing.assert_allclose(np.asarray(z), np.asarray(z_ref),
                               rtol=2e-4, atol=2e-4)

    # bf16 ctx stream (producer-provided bf16); softmax/accumulation stay f32.
    alpha_bf, z_bf = dot_attention(hid, ctx.astype(jnp.bfloat16), w_hc, w_cc, w_ch,
                                   ctx_mask=mask, temperature=temp)
    jax.block_until_ready((alpha_bf, z_bf))
    np.testing.assert_allclose(np.asarray(alpha_bf), np.asarray(alpha_ref),
                               rtol=1e-1, atol=1e-1)
    np.testing.assert_allclose(np.asarray(z_bf), np.asarray(z_ref),
                               rtol=1e-1, atol=1e-1)

    print("KERNEL_OK")
</pallas_src>

<mosaic_0001>
module attributes {stable_mosaic.version = 11 : i64} {
  func.func @_dot_attention_kernel(%arg0: i32, %arg1: memref<1200x128xf32, #tpu.memory_space<vmem>>, %arg2: memref<1200x1xf32, #tpu.memory_space<vmem>>, %arg3: memref<1200x4xf32, #tpu.memory_space<vmem>>, %arg4: memref<64x4xf32, #tpu.memory_space<vmem>>, %arg5: memref<128x64xf32, #tpu.memory_space<vmem>>, %arg6: memref<128x128xf32, #tpu.memory_space<vmem>>, %arg7: memref<128x64xf32, #tpu.memory_space<vmem>>, %arg8: memref<1200x1xf32, #tpu.memory_space<vmem>>, %arg9: memref<4x64xf32, #tpu.memory_space<vmem>>, %arg10: memref<1x4xf32, #tpu.memory_space<vmem>>, %arg11: memref<1x4xf32, #tpu.memory_space<vmem>>, %arg12: memref<128x4xf32, #tpu.memory_space<vmem>>, %arg13: memref<1x4xf32, #tpu.memory_space<vmem>>, %arg14: memref<1x4xf32, #tpu.memory_space<vmem>>, %arg15: memref<4x128xf32, #tpu.memory_space<vmem>>) attributes {dimension_semantics = [#tpu.dimension_semantics<arbitrary>], iteration_bounds = array<i64: 1>, scalar_prefetch = 0 : i64, scratch_operands = 4 : i64, tpu.core_type = #tpu.core_type<tc>, window_params = [{transform_indices = @transform_0, window_bounds = array<i64: 1200, 128>}, {transform_indices = @transform_1, window_bounds = array<i64: 1200, 1>}, {pipeline_mode = #tpu.pipeline_mode<synchronous>, transform_indices = @transform_2, window_bounds = array<i64: 1200, 4>}, {pipeline_mode = #tpu.pipeline_mode<synchronous>, transform_indices = @transform_3, window_bounds = array<i64: 64, 4>}, {pipeline_mode = #tpu.pipeline_mode<synchronous>, transform_indices = @transform_4, window_bounds = array<i64: 128, 64>}, {pipeline_mode = #tpu.pipeline_mode<synchronous>, transform_indices = @transform_5, window_bounds = array<i64: 128, 128>}, {pipeline_mode = #tpu.pipeline_mode<synchronous>, transform_indices = @transform_6, window_bounds = array<i64: 128, 64>}, {transform_indices = @transform_7, window_bounds = array<i64: 1200, 1>}, {pipeline_mode = #tpu.pipeline_mode<synchronous>, transform_indices = @transform_8, window_bounds = array<i64: 4, 64>}, {pipeline_mode = #tpu.pipeline_mode<synchronous>, transform_indices = @transform_9, window_bounds = array<i64: 1, 4>}, {pipeline_mode = #tpu.pipeline_mode<synchronous>, transform_indices = @transform_10, window_bounds = array<i64: 1, 4>}]} {
    %c0_i32 = arith.constant 0 : i32
    %0 = arith.cmpi eq, %arg0, %c0_i32 : i32
    %1 = arith.extui %0 : i1 to i32
    %c0_i32_0 = arith.constant 0 : i32
    %2 = arith.cmpi ne, %1, %c0_i32_0 : i32
    scf.if %2 {
      %c0_32 = arith.constant 0 : index
      %c0_33 = arith.constant 0 : index
      %48 = vector.load %arg5[%c0_32, %c0_33] : memref<128x64xf32, #tpu.memory_space<vmem>>, vector<128x64xf32>
      %c0_34 = arith.constant 0 : index
      %c0_35 = arith.constant 0 : index
      %49 = vector.load %arg4[%c0_34, %c0_35] : memref<64x4xf32, #tpu.memory_space<vmem>>, vector<64x4xf32>
      %cst_36 = arith.constant dense<0.000000e+00> : vector<128x4xf32>
      %50 = tpu.matmul %48, %49, %cst_36 {dimension_numbers = #tpu.dot_dimension_numbers<[1], [0], [0], [1], [0, 0, 1, 1], [], []>} : vector<128x64xf32>, vector<64x4xf32>, vector<128x4xf32> -> vector<128x4xf32>
      %c0_37 = arith.constant 0 : index
      %c0_38 = arith.constant 0 : index
      %51 = vector.load %arg6[%c0_37, %c0_38] : memref<128x128xf32, #tpu.memory_space<vmem>>, vector<128x128xf32>
      %cst_39 = arith.constant dense<0.000000e+00> : vector<128x4xf32>
      %52 = tpu.matmul %51, %50, %cst_39 {dimension_numbers = #tpu.dot_dimension_numbers<[1], [0], [0], [1], [0, 0, 1, 1], [], []>} : vector<128x128xf32>, vector<128x4xf32>, vector<128x4xf32> -> vector<128x4xf32>
      %cst_40 = arith.constant 0.666666686 : f32
      %53 = vector.broadcast %cst_40 : f32 to vector<128x4xf32>
      %54 = arith.mulf %52, %53 : vector<128x4xf32>
      %c0_41 = arith.constant 0 : index
      %c0_42 = arith.constant 0 : index
      %55 = vector.load %arg12[%c0_41, %c0_42] : memref<128x4xf32, #tpu.memory_space<vmem>>, vector<128x4xf32>
      tpu.vector_store %arg12[%c0_41, %c0_42], %54 {strides = array<i32>} : memref<128x4xf32, #tpu.memory_space<vmem>>, vector<128x4xf32>,
      %cst_43 = arith.constant -1.000000e+30 : f32
      %56 = vector.broadcast %cst_43 : f32 to vector<1x4xf32>
      %c0_44 = arith.constant 0 : index
      %c0_45 = arith.constant 0 : index
      %57 = vector.load %arg13[%c0_44, %c0_45] : memref<1x4xf32, #tpu.memory_space<vmem>>, vector<1x4xf32>
      tpu.vector_store %arg13[%c0_44, %c0_45], %56 {strides = array<i32>} : memref<1x4xf32, #tpu.memory_space<vmem>>, vector<1x4xf32>,
      %cst_46 = arith.constant 0.000000e+00 : f32
      %58 = vector.broadcast %cst_46 : f32 to vector<1x4xf32>
      %c0_47 = arith.constant 0 : index
      %c0_48 = arith.constant 0 : index
      %59 = vector.load %arg14[%c0_47, %c0_48] : memref<1x4xf32, #tpu.memory_space<vmem>>, vector<1x4xf32>
      tpu.vector_store %arg14[%c0_47, %c0_48], %58 {strides = array<i32>} : memref<1x4xf32, #tpu.memory_space<vmem>>, vector<1x4xf32>,
      %cst_49 = arith.constant 0.000000e+00 : f32
      %60 = vector.broadcast %cst_49 : f32 to vector<4x128xf32>
      %c0_50 = arith.constant 0 : index
      %c0_51 = arith.constant 0 : index
      %61 = vector.load %arg15[%c0_50, %c0_51] : memref<4x128xf32, #tpu.memory_space<vmem>>, vector<4x128xf32>
      tpu.vector_store %arg15[%c0_50, %c0_51], %60 {strides = array<i32>} : memref<4x128xf32, #tpu.memory_space<vmem>>, vector<4x128xf32>,
    } else {
    }
    %c0 = arith.constant 0 : index
    %c0_1 = arith.constant 0 : index
    %3 = vector.load %arg1[%c0, %c0_1] : memref<1200x128xf32, #tpu.memory_space<vmem>>, vector<1200x128xf32>
    %c0_2 = arith.constant 0 : index
    %c0_3 = arith.constant 0 : index
    %4 = vector.load %arg12[%c0_2, %c0_3] : memref<128x4xf32, #tpu.memory_space<vmem>>, vector<128x4xf32>
    %cst = arith.constant dense<0.000000e+00> : vector<1200x4xf32>
    %5 = tpu.matmul %3, %4, %cst {dimension_numbers = #tpu.dot_dimension_numbers<[1], [0], [0], [1], [0, 0, 1, 1], [], []>} : vector<1200x128xf32>, vector<128x4xf32>, vector<1200x4xf32> -> vector<1200x4xf32>
    %c0_4 = arith.constant 0 : index
    %c0_5 = arith.constant 0 : index
    %6 = vector.load %arg2[%c0_4, %c0_5] : memref<1200x1xf32, #tpu.memory_space<vmem>>, vector<1200x1xf32>
    %cst_6 = arith.constant 0.000000e+00 : f32
    %7 = vector.broadcast %cst_6 : f32 to vector<1200x1xf32>
    %8 = arith.cmpf oeq, %6, %7 : vector<1200x1xf32>
    %cst_7 = arith.constant -1.000000e+08 : f32
    %9 = vector.shape_cast %8 : vector<1200x1xi1> to vector<1200x1xi1>
    %10 = vector.broadcast %9 : vector<1200x1xi1> to vector<1200x4xi1>
    %11 = vector.broadcast %cst_7 : f32 to vector<1200x4xf32>
    %12 = arith.select %10, %11, %5 : vector<1200x4xi1>, vector<1200x4xf32>
    %c0_8 = arith.constant 0 : index
    %c0_9 = arith.constant 0 : index
    %13 = vector.load %arg3[%c0_8, %c0_9] : memref<1200x4xf32, #tpu.memory_space<vmem>>, vector<1200x4xf32>
    %cst_10 = arith.constant 0.000000e+00 : f32
    %14 = vector.broadcast %cst_10 : f32 to vector<1200x4xf32>
    %15 = arith.cmpf oeq, %13, %14 : vector<1200x4xf32>
    %cst_11 = arith.constant -1.000000e+30 : f32
    %16 = vector.broadcast %cst_11 : f32 to vector<1200x4xf32>
    %17 = arith.select %15, %16, %12 : vector<1200x4xi1>, vector<1200x4xf32>
    %cst_12 = arith.constant dense<0xFF800000> : vector<1200xf32>
    %18 = vector.multi_reduction <maximumf>, %17, %cst_12 [1] : vector<1200x4xf32> to vector<1200xf32>
    %19 = vector.shape_cast %18 : vector<1200xf32> to vector<1200x1xf32>
    %c0_13 = arith.constant 0 : index
    %c0_14 = arith.constant 0 : index
    %20 = vector.load %arg8[%c0_13, %c0_14] : memref<1200x1xf32, #tpu.memory_space<vmem>>, vector<1200x1xf32>
    tpu.vector_store %arg8[%c0_13, %c0_14], %19 {strides = array<i32>} : memref<1200x1xf32, #tpu.memory_space<vmem>>, vector<1200x1xf32>,
    %c0_15 = arith.constant 0 : index
    %c0_16 = arith.constant 0 : index
    %21 = vector.load %arg13[%c0_15, %c0_16] : memref<1x4xf32, #tpu.memory_space<vmem>>, vector<1x4xf32>
    %cst_17 = arith.constant dense<0xFF800000> : vector<4xf32>
    %22 = vector.multi_reduction <maximumf>, %17, %cst_17 [0] : vector<1200x4xf32> to vector<4xf32>
    %23 = vector.shape_cast %22 : vector<4xf32> to vector<1x4xf32>
    %24 = arith.maximumf %21, %23 : vector<1x4xf32>
    %25 = arith.subf %21, %24 : vector<1x4xf32>
    %26 = math.exp %25 : vector<1x4xf32>
    %27 = vector.broadcast %24 : vector<1x4xf32> to vector<1200x4xf32>
    %28 = arith.subf %17, %27 : vector<1200x4xf32>
    %29 = math.exp %28 : vector<1200x4xf32>
    %c0_18 = arith.constant 0 : index
    %c0_19 = arith.constant 0 : index
    %30 = vector.load %arg14[%c0_18, %c0_19] : memref<1x4xf32, #tpu.memory_space<vmem>>, vector<1x4xf32>
    %31 = arith.mulf %26, %30 : vector<1x4xf32>
    %cst_20 = arith.constant dense<0.000000e+00> : vector<4xf32>
    %32 = vector.multi_reduction <add>, %29, %cst_20 [0] : vector<1200x4xf32> to vector<4xf32>
    %33 = vector.shape_cast %32 : vector<4xf32> to vector<1x4xf32>
    %34 = arith.addf %31, %33 : vector<1x4xf32>
    %c0_21 = arith.constant 0 : index
    %c0_22 = arith.constant 0 : index
    %35 = vector.load %arg14[%c0_21, %c0_22] : memref<1x4xf32, #tpu.memory_space<vmem>>, vector<1x4xf32>
    tpu.vector_store %arg14[%c0_21, %c0_22], %34 {strides = array<i32>} : memref<1x4xf32, #tpu.memory_space<vmem>>, vector<1x4xf32>,
    %36 = tpu.transpose %29, [1, 0] : vector<1200x4xf32> -> vector<4x1200xf32>
    %cst_23 = arith.constant dense<0.000000e+00> : vector<4x128xf32>
    %37 = tpu.matmul %36, %3, %cst_23 {dimension_numbers = #tpu.dot_dimension_numbers<[1], [0], [0], [1], [0, 0, 1, 1], [], []>} : vector<4x1200xf32>, vector<1200x128xf32>, vector<4x128xf32> -> vector<4x128xf32>
    %38 = tpu.transpose %26, [1, 0] : vector<1x4xf32> -> vector<4x1xf32>
    %c0_24 = arith.constant 0 : index
    %c0_25 = arith.constant 0 : index
    %39 = vector.load %arg15[%c0_24, %c0_25] : memref<4x128xf32, #tpu.memory_space<vmem>>, vector<4x128xf32>
    %40 = vector.broadcast %38 : vector<4x1xf32> to vector<4x128xf32>
    %41 = arith.mulf %40, %39 : vector<4x128xf32>
    %42 = arith.addf %41, %37 : vector<4x128xf32>
    %c0_26 = arith.constant 0 : index
    %c0_27 = arith.constant 0 : index
    %43 = vector.load %arg15[%c0_26, %c0_27] : memref<4x128xf32, #tpu.memory_space<vmem>>, vector<4x128xf32>
    tpu.vector_store %arg15[%c0_26, %c0_27], %42 {strides = array<i32>} : memref<4x128xf32, #tpu.memory_space<vmem>>, vector<4x128xf32>,
    %c0_28 = arith.constant 0 : index
    %c0_29 = arith.constant 0 : index
    %44 = vector.load %arg13[%c0_28, %c0_29] : memref<1x4xf32, #tpu.memory_space<vmem>>, vector<1x4xf32>
    tpu.vector_store %arg13[%c0_28, %c0_29], %24 {strides = array<i32>} : memref<1x4xf32, #tpu.memory_space<vmem>>, vector<1x4xf32>,
    %c0_i32_30 = arith.constant 0 : i32
    %45 = arith.cmpi eq, %arg0, %c0_i32_30 : i32
    %46 = arith.extui %45 : i1 to i32
    %c0_i32_31 = arith.constant 0 : i32
    %47 = arith.cmpi ne, %46, %c0_i32_31 : i32
    scf.if %47 {
      %c0_32 = arith.constant 0 : index
      %c0_33 = arith.constant 0 : index
      %48 = vector.load %arg14[%c0_32, %c0_33] : memref<1x4xf32, #tpu.memory_space<vmem>>, vector<1x4xf32>
      %c0_34 = arith.constant 0 : index
      %c0_35 = arith.constant 0 : index
      %49 = vector.load %arg15[%c0_34, %c0_35] : memref<4x128xf32, #tpu.memory_space<vmem>>, vector<4x128xf32>
      %cst_36 = arith.constant 1.000000e+00 : f32
      %50 = vector.broadcast %cst_36 : f32 to vector<1x4xf32>
      %51 = arith.divf %50, %48 : vector<1x4xf32>
      %52 = tpu.transpose %51, [1, 0] : vector<1x4xf32> -> vector<4x1xf32>
      %53 = vector.broadcast %52 : vector<4x1xf32> to vector<4x128xf32>
      %54 = arith.mulf %49, %53 : vector<4x128xf32>
      %c0_37 = arith.constant 0 : index
      %c0_38 = arith.constant 0 : index
      %55 = vector.load %arg7[%c0_37, %c0_38] : memref<128x64xf32, #tpu.memory_space<vmem>>, vector<128x64xf32>
      %cst_39 = arith.constant dense<0.000000e+00> : vector<4x64xf32>
      %56 = tpu.matmul %54, %55, %cst_39 {dimension_numbers = #tpu.dot_dimension_numbers<[1], [0], [0], [1], [0, 0, 1, 1], [], []>} : vector<4x128xf32>, vector<128x64xf32>, vector<4x64xf32> -> vector<4x64xf32>
      %c0_40 = arith.constant 0 : index
      %c0_41 = arith.constant 0 : index
      %57 = vector.load %arg9[%c0_40, %c0_41] : memref<4x64xf32, #tpu.memory_space<vmem>>, vector<4x64xf32>
      tpu.vector_store %arg9[%c0_40, %c0_41], %56 {strides = array<i32>} : memref<4x64xf32, #tpu.memory_space<vmem>>, vector<4x64xf32>,
      %c0_42 = arith.constant 0 : index
      %c0_43 = arith.constant 0 : index
      %58 = vector.load %arg13[%c0_42, %c0_43] : memref<1x4xf32, #tpu.memory_space<vmem>>, vector<1x4xf32>
      %c0_44 = arith.constant 0 : index
      %c0_45 = arith.constant 0 : index
      %59 = vector.load %arg10[%c0_44, %c0_45] : memref<1x4xf32, #tpu.memory_space<vmem>>, vector<1x4xf32>
      tpu.vector_store %arg10[%c0_44, %c0_45], %58 {strides = array<i32>} : memref<1x4xf32, #tpu.memory_space<vmem>>, vector<1x4xf32>,
      %c0_46 = arith.constant 0 : index
      %c0_47 = arith.constant 0 : index
      %60 = vector.load %arg11[%c0_46, %c0_47] : memref<1x4xf32, #tpu.memory_space<vmem>>, vector<1x4xf32>
      tpu.vector_store %arg11[%c0_46, %c0_47], %48 {strides = array<i32>} : memref<1x4xf32, #tpu.memory_space<vmem>>, vector<1x4xf32>,
    } else {
    }
    return
  }
  func.func @transform_0(%arg0: i32) -> (i32, i32) {
    %c0_i32 = arith.constant 0 : i32
    %c0_i32_0 = arith.constant 0 : i32
    return %arg0, %c0_i32 : i32, i32
  }
  func.func @transform_1(%arg0: i32) -> (i32, i32) {
    %c0_i32 = arith.constant 0 : i32
    %c0_i32_0 = arith.constant 0 : i32
    return %arg0, %c0_i32 : i32, i32
  }
  func.func @transform_2(%arg0: i32) -> (i32, i32) {
    %c0_i32 = arith.constant 0 : i32
    %c0_i32_0 = arith.constant 0 : i32
    %c0_i32_1 = arith.constant 0 : i32
    return %c0_i32, %c0_i32_0 : i32, i32
  }
  func.func @transform_3(%arg0: i32) -> (i32, i32) {
    %c0_i32 = arith.constant 0 : i32
    %c0_i32_0 = arith.constant 0 : i32
    %c0_i32_1 = arith.constant 0 : i32
    return %c0_i32, %c0_i32_0 : i32, i32
  }
  func.func @transform_4(%arg0: i32) -> (i32, i32) {
    %c0_i32 = arith.constant 0 : i32
    %c0_i32_0 = arith.constant 0 : i32
    %c0_i32_1 = arith.constant 0 : i32
    return %c0_i32, %c0_i32_0 : i32, i32
  }
  func.func @transform_5(%arg0: i32) -> (i32, i32) {
    %c0_i32 = arith.constant 0 : i32
    %c0_i32_0 = arith.constant 0 : i32
    %c0_i32_1 = arith.constant 0 : i32
    return %c0_i32, %c0_i32_0 : i32, i32
  }
  func.func @transform_6(%arg0: i32) -> (i32, i32) {
    %c0_i32 = arith.constant 0 : i32
    %c0_i32_0 = arith.constant 0 : i32
    %c0_i32_1 = arith.constant 0 : i32
    return %c0_i32, %c0_i32_0 : i32, i32
  }
  func.func @transform_7(%arg0: i32) -> (i32, i32) {
    %c0_i32 = arith.constant 0 : i32
    %c0_i32_0 = arith.constant 0 : i32
    return %arg0, %c0_i32 : i32, i32
  }
  func.func @transform_8(%arg0: i32) -> (i32, i32) {
    %c0_i32 = arith.constant 0 : i32
    %c0_i32_0 = arith.constant 0 : i32
    %c0_i32_1 = arith.constant 0 : i32
    return %c0_i32, %c0_i32_0 : i32, i32
  }
  func.func @transform_9(%arg0: i32) -> (i32, i32) {
    %c0_i32 = arith.constant 0 : i32
    %c0_i32_0 = arith.constant 0 : i32
    %c0_i32_1 = arith.constant 0 : i32
    return %c0_i32, %c0_i32_0 : i32, i32
  }
  func.func @transform_10(%arg0: i32) -> (i32, i32) {
    %c0_i32 = arith.constant 0 : i32
    %c0_i32_0 = arith.constant 0 : i32
    %c0_i32_1 = arith.constant 0 : i32
    return %c0_i32, %c0_i32_0 : i32, i32
  }
}

</mosaic_0001>

<bundles_post_ra>
// kernel: tpu_custom_call.1
= control target key start
LH: loop header
LB: loop body
LE: loop exit
PB: predicated region body
PF: predicated region fallthrough
CT: control target
= control target key end

     0   :  { %16 = vsyncpa [#allocation7], 0  ;;  %v5567_v2 = vmov 0   ;;  %s10946_s0 = inlined_call_operand.vmem [shape: f32[1200,128], index: 0, kind: input, shape index: {}]   ;;  %s10947_s1 = inlined_call_operand.vmem [shape: f32[1200,1], index: 1, kind: input, shape index: {}]   ;;  %s10948_s2 = inlined_call_operand.vmem [shape: f32[1200,4], index: 2, kind: input, shape index: {}]   ;;  %s10949_s3 = inlined_call_operand.vmem [shape: f32[64,4], index: 3, kind: input, shape index: {}]   ;;  %s10950_s4 = inlined_call_operand.vmem [shape: f32[128,64], index: 4, kind: input, shape index: {}]   ;;  %s10951_s5 = inlined_call_operand.vmem [shape: f32[128,128], index: 5, kind: input, shape index: {}]   ;;  %s10952_s6 = inlined_call_operand.vmem [shape: f32[128,64], index: 6, kind: input, shape index: {}]   ;;  %s10953_s7 = inlined_call_operand.vmem [shape: f32[1200,1], index: 7, kind: output, shape index: {0}]   ;;  %s10954_s8 = inlined_call_operand.hbm [shape: f32[4,64], index: 8, kind: output, shape index: {1}]   ;;  %s10955_s9 = inlined_call_operand.hbm [shape: f32[1,4], index: 9, kind: output, shape index: {2}]   ;;  %s10956_s10 = inlined_call_operand.hbm [shape: f32[1,4], index: 10, kind: output, shape index: {3}]  }
   0x1   :  { %v59_v0 = vld [vmem:[%s10949_s3 + $0x38] sm:$0xff]  ;;  %v58_v1 = vld [vmem:[%s10949_s3 + $0x30] sm:$0xff]  ;;  %5005 = vset.pattern.permute.xlu1 %v5567_v2  ;;  %v57_v3 = vld [vmem:[%s10949_s3 + $0x28] sm:$0xff]  ;;  %5004 = vset.pattern.permute.xlu0 %v5567_v2 }
   0x2   :  { %117 = vmatpush.msra.mxu0 %v59_v0  ;;  %5006 = vset.pattern.permute.xlu2 %v5567_v2  ;;  %v56_v4 = vld [vmem:[%s10949_s3 + $0x20] sm:$0xff]  ;;  %v927_v5 = vld [vmem:[%s10947_s1 + $0x10] sm:$0xff]  ;;  %v55_v7 = vld [vmem:[%s10949_s3 + $0x18] sm:$0xff] }
   0x3   :  { %v925_v6 = vld [vmem:[%s10947_s1] sm:$0xff]  ;;  %vm1077_vm0 = vcmp.eq.f32.partialorder %v927_v5, 0.0  ;;  %v928_v10 = vld [vmem:[%s10947_s1 + $0x18] sm:$0xff]  ;;  %v926_v12 = vld [vmem:[%s10947_s1 + $0x8] sm:$0xff] }
   0x4   :  { %118 = vmatpush.msra.mxu0 %v58_v1  ;;  %vm1075_vm1 = vcmp.eq.f32.partialorder %v925_v6, 0.0  ;;  %v1227_v8 = vsel %vm1077_vm0, 1, %v5567_v2  ;;  %v929_v11 = vld [vmem:[%s10947_s1 + $0x20] sm:$0xff] }
   0x5   :  { %v1225_v9 = vsel %vm1075_vm1, 1, %v5567_v2  ;;  %1382 = vperm.xlu1 %5005, %v1227_v8   ;;  %vm1079_vm2 = vcmp.eq.f32.partialorder %v929_v11, 0.0 }
   0x6   :  { %119 = vmatpush.msra.mxu0 %v57_v3 }
   0x8   :  { %120 = vmatpush.msra.mxu0 %v56_v4 }
   0x9   :  { %17 = vsyncpa [#allocation9], 0  ;;  %v54_v13 = vld [vmem:[%s10949_s3 + $0x10] sm:$0xff]  ;;  %1376 = vperm.xlu0 %5004, %v1225_v9   ;;  %v1229_v14 = vsel %vm1079_vm2, 1, %v5567_v2  ;;  %vm1078_vm3 = vcmp.eq.f32.partialorder %v928_v10, 0.0  ;;  %v53_v15 = vld [vmem:[%s10949_s3 + $0x8] sm:$0xff] }
   0xa   :  { %121 = vmatpush.msra.mxu0 %v55_v7  ;;  %1388 = vperm.xlu2 %5006, %v1229_v14   ;;  %vm1076_vm4 = vcmp.eq.f32.partialorder %v926_v12, 0.0  ;;  %v930_v16 = vld [vmem:[%s10947_s1 + $0x28] sm:$0xff]  ;;  %v52_v17 = vld [vmem:[%s10949_s3] sm:$0xff]  ;;  %v1228_v18 = vsel %vm1078_vm3, 1, %v5567_v2  ;;  %vm60_vm6 = vcmask 523264   ;;  %v932_v21 = vld [vmem:[%s10947_s1 + $0x38] sm:$0xff] }
   0xb   :  { %vm1080_vm5 = vcmp.eq.f32.partialorder %v930_v16, 0.0  ;;  %v36_v19 = vld [vmem:[%s10950_s4] sm:$0xff]  ;;  %v1226_v20 = vsel %vm1076_vm4, 1, %v5567_v2  ;;  %v931_v23 = vld [vmem:[%s10947_s1 + $0x30] sm:$0xff]  ;;  %vm1082_vm7 = vcmp.eq.f32.partialorder %v932_v21, 0.0  ;;  %v37_v26 = vld [vmem:[%s10950_s4 + $0x8] sm:$0xff] }
   0xc   :  { %122 = vmatpush.msra.mxu0 %v54_v13  ;;  %v1230_v22 = vsel %vm1080_vm5, 1, %v5567_v2  ;;  %vm1081_vm8 = vcmp.eq.f32.partialorder %v931_v23, 0.0  ;;  %v933_v24 = vld [vmem:[%s10947_s1 + $0x40] sm:$0xff]  ;;  %v1232_v25 = vsel %vm1082_vm7, 1, %v5567_v2  ;;  %v935_v28 = vld [vmem:[%s10947_s1 + $0x50] sm:$0xff]  ;;  %v934_v30 = vld [vmem:[%s10947_s1 + $0x48] sm:$0xff] }
   0xd   :  { %1385 = vperm.xlu1 %5005, %v1228_v18   ;;  %vm1083_vm9 = vcmp.eq.f32.partialorder %v933_v24, 0.0  ;;  %v1231_v27 = vsel %vm1081_vm8, 1, %v5567_v2  ;;  %vm1085_vm10 = vcmp.eq.f32.partialorder %v935_v28, 0.0  ;;  %vm1084_vm11 = vcmp.eq.f32.partialorder %v934_v30, 0.0  ;;  %v936_v31 = vld [vmem:[%s10947_s1 + $0x58] sm:$0xff]  ;;  %v38_v33 = vld [vmem:[%s10950_s4 + $0x10] sm:$0xff] }
   0xe   :  { %123 = vmatpush.msra.mxu0 %v53_v15  ;;  %v1233_v29 = vsel %vm1083_vm9, 1, %v5567_v2  ;;  %v1235_v32 = vsel %vm1085_vm10, 1, %v5567_v2  ;;  %vm1086_vm12 = vcmp.eq.f32.partialorder %v936_v31, 0.0  ;;  %v1234_v34 = vsel %vm1084_vm11, 1, %v5567_v2  ;;  %v938_v35 = vld [vmem:[%s10947_s1 + $0x68] sm:$0xff]  ;;  %v937_v37 = vld [vmem:[%s10947_s1 + $0x60] sm:$0xff] }
   0xf   :  { %v1236_v36 = vsel %vm1086_vm12, 1, %v5567_v2  ;;  %vm1088_vm13 = vcmp.eq.f32.partialorder %v938_v35, 0.0  ;;  %vm1087_vm14 = vcmp.eq.f32.partialorder %v937_v37, 0.0  ;;  %v939_v38 = vld [vmem:[%s10947_s1 + $0x70] sm:$0xff]  ;;  %v39_v40 = vld [vmem:[%s10950_s4 + $0x18] sm:$0xff]  ;;  %v941_v42 = vld [vmem:[%s10947_s1 + $0x80] sm:$0xff] }
  0x10   :  { %124 = vmatpush.msra.mxu0 %v52_v17  ;;  %v1238_v39 = vsel %vm1088_vm13, 1, %v5567_v2  ;;  %vm1089_vm15 = vcmp.eq.f32.partialorder %v939_v38, 0.0  ;;  %v1237_v41 = vsel %vm1087_vm14, 1, %v5567_v2  ;;  %v940_v44 = vld [vmem:[%s10947_s1 + $0x78] sm:$0xff]  ;;  %vm1091_vm0 = vcmp.eq.f32.partialorder %v941_v42, 0.0  ;;  %v942_v45 = vld [vmem:[%s10947_s1 + $0x88] sm:$0xff] }
  0x11   :  { %4816 = vmatmul.msk.f32.vlgmr.msra.gmra.mxu0 %vm60_vm6, %v36_v19  ;;  %1379 = vperm.xlu0 %5004, %v1226_v20   ;;  %v1239_v43 = vsel %vm1089_vm15, 1, %v5567_v2  ;;  %vm1090_vm1 = vcmp.eq.f32.partialorder %v940_v44, 0.0  ;;  %v1241_v46 = vsel %vm1091_vm0, 1, %v5567_v2  ;;  %vm1092_vm2 = vcmp.eq.f32.partialorder %v942_v45, 0.0  ;;  %v40_v47 = vld [vmem:[%s10950_s4 + $0x20] sm:$0xff]  ;;  %v944_v49 = vld [vmem:[%s10947_s1 + $0x98] sm:$0xff] }
  0x12   :  { %1391 = vperm.xlu2 %5006, %v1230_v22   ;;  %v1240_v48 = vsel %vm1090_vm1, 1, %v5567_v2  ;;  %v1242_v50 = vsel %vm1092_vm2, 1, %v5567_v2  ;;  %v943_v51 = vld [vmem:[%s10947_s1 + $0x90] sm:$0xff]  ;;  %vm1094_vm3 = vcmp.eq.f32.partialorder %v944_v49, 0.0  ;;  %v945_v52 = vld [vmem:[%s10947_s1 + $0xa0] sm:$0xff]  ;;  %v41_v54 = vld [vmem:[%s10950_s4 + $0x28] sm:$0xff] }
  0x13   :  { %vm1093_vm4 = vcmp.eq.f32.partialorder %v943_v51, 0.0  ;;  %v1244_v53 = vsel %vm1094_vm3, 1, %v5567_v2  ;;  %vm1095_vm5 = vcmp.eq.f32.partialorder %v945_v52, 0.0  ;;  %v947_v56 = vld [vmem:[%s10947_s1 + $0xb0] sm:$0xff]  ;;  %v946_v58 = vld [vmem:[%s10947_s1 + $0xa8] sm:$0xff]  ;;  %v948_v59 = vld [vmem:[%s10947_s1 + $0xb8] sm:$0xff] }
  0x14   :  { %v1243_v55 = vsel %vm1093_vm4, 1, %v5567_v2  ;;  %v1245_v57 = vsel %vm1095_vm5, 1, %v5567_v2  ;;  %vm1097_vm7 = vcmp.eq.f32.partialorder %v947_v56, 0.0  ;;  %vm1096_vm8 = vcmp.eq.f32.partialorder %v946_v58, 0.0  ;;  %v42_v61 = vld [vmem:[%s10950_s4 + $0x30] sm:$0xff]  ;;  %v950_v63 = vld [vmem:[%s10947_s1 + $0xc8] sm:$0xff] }
  0x15   :  { %1397 = vperm.xlu1 %5005, %v1232_v25   ;;  %v1247_v60 = vsel %vm1097_vm7, 1, %v5567_v2  ;;  %vm1098_vm9 = vcmp.eq.f32.partialorder %v948_v59, 0.0  ;;  %v1246_v62 = vsel %vm1096_vm8, 1, %v5567_v2  ;;  %v949_v1 = vld [vmem:[%s10947_s1 + $0xc0] sm:$0xff]  ;;  %vm1100_vm10 = vcmp.eq.f32.partialorder %v950_v63, 0.0  ;;  %v951_v3 = vld [vmem:[%s10947_s1 + $0xd0] sm:$0xff] }
  0x16   :  { %v1248_v0 = vsel %vm1098_vm9, 1, %v5567_v2  ;;  %vm1099_vm11 = vcmp.eq.f32.partialorder %v949_v1, 0.0  ;;  %v1250_v4 = vsel %vm1100_vm10, 1, %v5567_v2  ;;  %vm1101_vm12 = vcmp.eq.f32.partialorder %v951_v3, 0.0  ;;  %v43_v5 = vld [vmem:[%s10950_s4 + $0x38] sm:$0xff]  ;;  %v953_v7 = vld [vmem:[%s10947_s1 + $0xe0] sm:$0xff] }
  0x17   :  { %v1249_v6 = vsel %vm1099_vm11, 1, %v5567_v2  ;;  %v1251_v8 = vsel %vm1101_vm12, 1, %v5567_v2  ;;  %v952_v9 = vld [vmem:[%s10947_s1 + $0xd8] sm:$0xff]  ;;  %vm1103_vm13 = vcmp.eq.f32.partialorder %v953_v7, 0.0  ;;  %v954_v10 = vld [vmem:[%s10947_s1 + $0xe8] sm:$0xff]  ;;  %v44_v12 = vld [vmem:[%s10950_s4 + $0x40] sm:$0xff] }
  0x18   :  { %vm1102_vm14 = vcmp.eq.f32.partialorder %v952_v9, 0.0  ;;  %v1253_v11 = vsel %vm1103_vm13, 1, %v5567_v2  ;;  %vm1104_vm15 = vcmp.eq.f32.partialorder %v954_v10, 0.0  ;;  %v956_v14 = vld [vmem:[%s10947_s1 + $0xf8] sm:$0xff]  ;;  %v955_v16 = vld [vmem:[%s10947_s1 + $0xf0] sm:$0xff]  ;;  %v957_v17 = vld [vmem:[%s10947_s1 + $0x100] sm:$0xff] }
  0x19   :  { %4817 = vmatmul.msk.f32.gmra.mxu0 %vm60_vm6, %v37_v26  ;;  %1394 = vperm.xlu0 %5004, %v1231_v27   ;;  %v1252_v13 = vsel %vm1102_vm14, 1, %v5567_v2  ;;  %v1254_v15 = vsel %vm1104_vm15, 1, %v5567_v2  ;;  %vm1106_vm0 = vcmp.eq.f32.partialorder %v956_v14, 0.0  ;;  %vm1105_vm1 = vcmp.eq.f32.partialorder %v955_v16, 0.0  ;;  %v45_v19 = vld [vmem:[%s10950_s4 + $0x48] sm:$0xff]  ;;  %v959_v21 = vld [vmem:[%s10947_s1 + $0x110] sm:$0xff] }
  0x1a   :  { %1400 = vperm.xlu2 %5006, %v1233_v29   ;;  %v1256_v18 = vsel %vm1106_vm0, 1, %v5567_v2  ;;  %vm1107_vm2 = vcmp.eq.f32.partialorder %v957_v17, 0.0  ;;  %v1255_v20 = vsel %vm1105_vm1, 1, %v5567_v2  ;;  %v958_v23 = vld [vmem:[%s10947_s1 + $0x108] sm:$0xff]  ;;  %vm1109_vm3 = vcmp.eq.f32.partialorder %v959_v21, 0.0  ;;  %v960_v24 = vld [vmem:[%s10947_s1 + $0x118] sm:$0xff] }
  0x1b   :  { %v1257_v22 = vsel %vm1107_vm2, 1, %v5567_v2  ;;  %vm1108_vm4 = vcmp.eq.f32.partialorder %v958_v23, 0.0  ;;  %v1259_v25 = vsel %vm1109_vm3, 1, %v5567_v2  ;;  %vm1110_vm5 = vcmp.eq.f32.partialorder %v960_v24, 0.0  ;;  %v46_v26 = vld [vmem:[%s10950_s4 + $0x50] sm:$0xff]  ;;  %v962_v28 = vld [vmem:[%s10947_s1 + $0x128] sm:$0xff] }
  0x1c   :  { %v1258_v27 = vsel %vm1108_vm4, 1, %v5567_v2  ;;  %v1260_v29 = vsel %vm1110_vm5, 1, %v5567_v2  ;;  %v961_v30 = vld [vmem:[%s10947_s1 + $0x120] sm:$0xff]  ;;  %vm1112_vm7 = vcmp.eq.f32.partialorder %v962_v28, 0.0  ;;  %v963_v31 = vld [vmem:[%s10947_s1 + $0x130] sm:$0xff]  ;;  %v964_v37 = vld [vmem:[%s10947_s1 + $0x138] sm:$0xff] }
  0x1d   :  { %1406 = vperm.xlu1 %5005, %v1235_v32   ;;  %vm1111_vm8 = vcmp.eq.f32.partialorder %v961_v30, 0.0  ;;  %v1262_v32 = vsel %vm1112_vm7, 1, %v5567_v2  ;;  %vm1113_vm9 = vcmp.eq.f32.partialorder %v963_v31, 0.0  ;;  %v965_v35 = vld [vmem:[%s10947_s1 + $0x140] sm:$0xff]  ;;  %vm1114_vm11 = vcmp.eq.f32.partialorder %v964_v37, 0.0  ;;  %v966_v38 = vld [vmem:[%s10947_s1 + $0x148] sm:$0xff] }
  0x1e   :  { %vm1115_vm10 = vcmp.eq.f32.partialorder %v965_v35, 0.0  ;;  %vm1116_vm12 = vcmp.eq.f32.partialorder %v966_v38, 0.0  ;;  %v968_v42 = vld [vmem:[%s10947_s1 + $0x158] sm:$0xff]  ;;  %v967_v44 = vld [vmem:[%s10947_s1 + $0x150] sm:$0xff]  ;;  %v969_v45 = vld [vmem:[%s10947_s1 + $0x160] sm:$0xff]  ;;  %s5570_s21 = smov [#allocation8]  }
  0x1f   :  { %vm1118_vm13 = vcmp.eq.f32.partialorder %v968_v42, 0.0  ;;  %vm1117_vm14 = vcmp.eq.f32.partialorder %v967_v44, 0.0  ;;  %vm1119_vm15 = vcmp.eq.f32.partialorder %v969_v45, 0.0  ;;  %v971_v49 = vld [vmem:[%s10947_s1 + $0x170] sm:$0xff]  ;;  %v970_v51 = vld [vmem:[%s10947_s1 + $0x168] sm:$0xff]  ;;  %v972_v52 = vld [vmem:[%s10947_s1 + $0x178] sm:$0xff] }
  0x20   :  { %vm1121_vm0 = vcmp.eq.f32.partialorder %v971_v49, 0.0  ;;  %vm1120_vm1 = vcmp.eq.f32.partialorder %v970_v51, 0.0  ;;  %vm1122_vm2 = vcmp.eq.f32.partialorder %v972_v52, 0.0  ;;  %v974_v56 = vld [vmem:[%s10947_s1 + $0x188] sm:$0xff]  ;;  %v973_v58 = vld [vmem:[%s10947_s1 + $0x180] sm:$0xff]  ;;  %v975_v59 = vld [vmem:[%s10947_s1 + $0x190] sm:$0xff] }
  0x21   :  { %4818 = vmatmul.msk.f32.gmra.mxu0 %vm60_vm6, %v38_v33  ;;  %1403 = vperm.xlu0 %5004, %v1234_v34   ;;  %v47_v33 = vld [vmem:[%s10950_s4 + $0x58] sm:$0xff]  ;;  %v1261_v34 = vsel %vm1111_vm8, 1, %v5567_v2  ;;  %vm1124_vm3 = vcmp.eq.f32.partialorder %v974_v56, 0.0  ;;  %vm1123_vm4 = vcmp.eq.f32.partialorder %v973_v58, 0.0  ;;  %vm1125_vm5 = vcmp.eq.f32.partialorder %v975_v59, 0.0  ;;  %v977_v63 = vld [vmem:[%s10947_s1 + $0x1a0] sm:$0xff] }
  0x22   :  { %1409 = vperm.xlu2 %5006, %v1236_v36   ;;  %v1263_v36 = vsel %vm1113_vm9, 1, %v5567_v2  ;;  %v976_v1 = vld [vmem:[%s10947_s1 + $0x198] sm:$0xff]  ;;  %vm1127_vm7 = vcmp.eq.f32.partialorder %v977_v63, 0.0  ;;  %v978_v3 = vld [vmem:[%s10947_s1 + $0x1a8] sm:$0xff]  ;;  %v979_v9 = vld [vmem:[%s10947_s1 + $0x1b0] sm:$0xff]  ;;  %s4783_s22 = sshll.u32 %s5570_s21, 4  ;;  %s4784_s22 = int_to_ptr.vmem [resolvable:$true] %s4783_s22 }
  0x23   :  { %vm1126_vm8 = vcmp.eq.f32.partialorder %v976_v1, 0.0  ;;  %vm1128_vm9 = vcmp.eq.f32.partialorder %v978_v3, 0.0  ;;  %v980_v7 = vld [vmem:[%s10947_s1 + $0x1b8] sm:$0xff]  ;;  %v981_v10 = vld [vmem:[%s10947_s1 + $0x1c0] sm:$0xff]  ;;  %v983_v14 = vld [vmem:[%s10947_s1 + $0x1d0] sm:$0xff]  ;;  %s5571_s3 = smov [#allocation10]  }
  0x24   :  { %v982_v16 = vld [vmem:[%s10947_s1 + $0x1c8] sm:$0xff]  ;;  %v984_v17 = vld [vmem:[%s10947_s1 + $0x1d8] sm:$0xff]  ;;  %v985_v23 = vld [vmem:[%s10947_s1 + $0x1e0] sm:$0xff]  ;;  %s4794_s25 = sshll.u32 %s5571_s3, 4  ;;  %s4795_s25 = int_to_ptr.vmem [resolvable:$true] %s4794_s25 }
  0x25   :  { %1415 = vperm.xlu1 %5005, %v1238_v39   ;;  %v1265_v39 = vsel %vm1115_vm10, 1, %v5567_v2  ;;  %vm1129_vm10 = vcmp.eq.f32.partialorder %v979_v9, 0.0  ;;  %v986_v21 = vld [vmem:[%s10947_s1 + $0x1e8] sm:$0xff]  ;;  %v987_v24 = vld [vmem:[%s10947_s1 + $0x1f0] sm:$0xff]  ;;  %v989_v28 = vld [vmem:[%s10947_s1 + $0x200] sm:$0xff] }
  0x26   :  { %v988_v30 = vld [vmem:[%s10947_s1 + $0x1f8] sm:$0xff]  ;;  %v990_v31 = vld [vmem:[%s10947_s1 + $0x208] sm:$0xff]  ;;  %v991_v37 = vld [vmem:[%s10947_s1 + $0x210] sm:$0xff] }
  0x27   :  { %v992_v35 = vld [vmem:[%s10947_s1 + $0x218] sm:$0xff]  ;;  %v993_v38 = vld [vmem:[%s10947_s1 + $0x220] sm:$0xff]  ;;  %v995_v42 = vld [vmem:[%s10947_s1 + $0x230] sm:$0xff] }
  0x28   :  { %v994_v44 = vld [vmem:[%s10947_s1 + $0x228] sm:$0xff]  ;;  %v996_v45 = vld [vmem:[%s10947_s1 + $0x238] sm:$0xff]  ;;  %v997_v51 = vld [vmem:[%s10947_s1 + $0x240] sm:$0xff] }
  0x29   :  { %4819 = vmatmul.msk.f32.gmra.mxu0 %vm60_vm6, %v39_v40  ;;  %1412 = vperm.xlu0 %5004, %v1237_v41   ;;  %v48_v40 = vld [vmem:[%s10950_s4 + $0x60] sm:$0xff]  ;;  %v1264_v41 = vsel %vm1114_vm11, 1, %v5567_v2  ;;  %vm1131_vm11 = vcmp.eq.f32.partialorder %v981_v10, 0.0  ;;  %v998_v49 = vld [vmem:[%s10947_s1 + $0x248] sm:$0xff]  ;;  %v999_v52 = vld [vmem:[%s10947_s1 + $0x250] sm:$0xff] }
  0x2a   :  { %1418 = vperm.xlu2 %5006, %v1239_v43   ;;  %v1266_v43 = vsel %vm1116_vm12, 1, %v5567_v2  ;;  %vm1133_vm12 = vcmp.eq.f32.partialorder %v983_v14, 0.0  ;;  %v1001_v56 = vld [vmem:[%s10947_s1 + $0x260] sm:$0xff]  ;;  %v1000_v58 = vld [vmem:[%s10947_s1 + $0x258] sm:$0xff]  ;;  %v1002_v59 = vld [vmem:[%s10947_s1 + $0x268] sm:$0xff] }
  0x2b   :  { %v1004_v63 = vld [vmem:[%s10947_s1 + $0x278] sm:$0xff]  ;;  %v1003_v1 = vld [vmem:[%s10947_s1 + $0x270] sm:$0xff]  ;;  %v1005_v3 = vld [vmem:[%s10947_s1 + $0x280] sm:$0xff] }
  0x2c   :  { %v1006_v10 = vld [vmem:[%s10947_s1 + $0x288] sm:$0xff] }
  0x2d   :  { %1424 = vperm.xlu1 %5005, %v1241_v46   ;;  %v1268_v46 = vsel %vm1118_vm13, 1, %v5567_v2  ;;  %vm1132_vm13 = vcmp.eq.f32.partialorder %v982_v16, 0.0  ;;  %v1010_v16 = vld [vmem:[%s10947_s1 + $0x2a8] sm:$0xff] }
  0x31   :  { %4820 = vmatmul.msk.f32.gmra.mxu0 %vm60_vm6, %v40_v47  ;;  %1421 = vperm.xlu0 %5004, %v1240_v48   ;;  %v49_v47 = vld [vmem:[%s10950_s4 + $0x68] sm:$0xff]  ;;  %v1267_v48 = vsel %vm1117_vm14, 1, %v5567_v2  ;;  %vm1134_vm14 = vcmp.eq.f32.partialorder %v984_v17, 0.0 }
  0x32   :  { %1427 = vperm.xlu2 %5006, %v1242_v50   ;;  %v1269_v50 = vsel %vm1119_vm15, 1, %v5567_v2  ;;  %vm1136_vm15 = vcmp.eq.f32.partialorder %v986_v21, 0.0 }
  0x35   :  { %1433 = vperm.xlu1 %5005, %v1244_v53   ;;  %v1271_v53 = vsel %vm1121_vm0, 1, %v5567_v2  ;;  %vm1135_vm0 = vcmp.eq.f32.partialorder %v985_v23, 0.0 }
  0x39   :  { %4821 = vmatmul.msk.f32.gmra.mxu0 %vm60_vm6, %v41_v54  ;;  %1430 = vperm.xlu0 %5004, %v1243_v55   ;;  %v50_v54 = vld [vmem:[%s10950_s4 + $0x70] sm:$0xff]  ;;  %v1270_v55 = vsel %vm1120_vm1, 1, %v5567_v2  ;;  %vm1137_vm1 = vcmp.eq.f32.partialorder %v987_v24, 0.0  ;;  %v1013_v24 = vld [vmem:[%s10947_s1 + $0x2c0] sm:$0xff] }
  0x3a   :  { %1436 = vperm.xlu2 %5006, %v1245_v57   ;;  %v1272_v57 = vsel %vm1122_vm2, 1, %v5567_v2  ;;  %vm1139_vm2 = vcmp.eq.f32.partialorder %v989_v28, 0.0  ;;  %v1014_v28 = vld [vmem:[%s10947_s1 + $0x2c8] sm:$0xff] }
  0x3d   :  { %1442 = vperm.xlu1 %5005, %v1247_v60   ;;  %v1274_v60 = vsel %vm1124_vm3, 1, %v5567_v2  ;;  %vm1138_vm3 = vcmp.eq.f32.partialorder %v988_v30, 0.0 }
  0x41   :  { %4822 = vmatmul.msk.f32.gmra.mxu0 %vm60_vm6, %v42_v61  ;;  %1439 = vperm.xlu0 %5004, %v1246_v62   ;;  %v51_v61 = vld [vmem:[%s10950_s4 + $0x78] sm:$0xff]  ;;  %v1273_v62 = vsel %vm1123_vm4, 1, %v5567_v2  ;;  %vm1140_vm4 = vcmp.eq.f32.partialorder %v990_v31, 0.0  ;;  %s4785_s4 = sshll.u32 %s10955_s9, 4  ;;  %s4786_s4 = int_to_ptr.hbm [resolvable:$true] %s4785_s4 }
  0x42   :  { %1445 = vperm.xlu2 %5006, %v1248_v0   ;;  %v1275_v0 = vsel %vm1125_vm5, 1, %v5567_v2  ;;  %vm1142_vm5 = vcmp.eq.f32.partialorder %v992_v35, 0.0  ;;  %v1015_v35 = vld [vmem:[%s10947_s1 + $0x2d0] sm:$0xff] }
  0x45   :  { %1451 = vperm.xlu1 %5005, %v1250_v4   ;;  %v1277_v4 = vsel %vm1127_vm7, 1, %v5567_v2  ;;  %vm1141_vm7 = vcmp.eq.f32.partialorder %v991_v37, 0.0 }
  0x49   :  { %4823 = vmatmul.msk.f32.gmra.mxu0 %vm60_vm6, %v43_v5  ;;  %1448 = vperm.xlu0 %5004, %v1249_v6   ;;  %v1276_v6 = vsel %vm1126_vm8, 1, %v5567_v2  ;;  %vm1143_vm8 = vcmp.eq.f32.partialorder %v993_v38, 0.0 }
  0x4a   :  { %1454 = vperm.xlu2 %5006, %v1251_v8   ;;  %v1278_v8 = vsel %vm1128_vm9, 1, %v5567_v2  ;;  %vm1145_vm9 = vcmp.eq.f32.partialorder %v995_v42, 0.0 }
  0x4d   :  { %1460 = vperm.xlu1 %5005, %v1253_v11  }
  0x51   :  { %4824 = vmatmul.msk.f32.gmra.mxu0 %vm60_vm6, %v44_v12  ;;  %1457 = vperm.xlu0 %5004, %v1252_v13   ;;  %v1279_v13 = vsel %vm1129_vm10, 1, %v5567_v2  ;;  %vm1146_vm10 = vcmp.eq.f32.partialorder %v996_v45, 0.0 }
  0x52   :  { %1463 = vperm.xlu2 %5006, %v1254_v15   ;;  %v1281_v15 = vsel %vm1131_vm11, 1, %v5567_v2  ;;  %vm1148_vm11 = vcmp.eq.f32.partialorder %v998_v49, 0.0  ;;  %v1022_v49 = vld [vmem:[%s10947_s1 + $0x308] sm:$0xff] }
  0x55   :  { %1469 = vperm.xlu1 %5005, %v1256_v18   ;;  %v1283_v18 = vsel %vm1133_vm12, 1, %v5567_v2  ;;  %vm1147_vm12 = vcmp.eq.f32.partialorder %v997_v51, 0.0  ;;  %v1021_v51 = vld [vmem:[%s10947_s1 + $0x300] sm:$0xff] }
  0x59   :  { %4825 = vmatmul.msk.f32.gmra.mxu0 %vm60_vm6, %v45_v19  ;;  %1466 = vperm.xlu0 %5004, %v1255_v20   ;;  %v1282_v20 = vsel %vm1132_vm13, 1, %v5567_v2  ;;  %vm1149_vm13 = vcmp.eq.f32.partialorder %v999_v52, 0.0  ;;  %v1023_v52 = vld [vmem:[%s10947_s1 + $0x310] sm:$0xff] }
  0x5a   :  { %1472 = vperm.xlu2 %5006, %v1257_v22   ;;  %v1284_v22 = vsel %vm1134_vm14, 1, %v5567_v2  ;;  %vm1151_vm14 = vcmp.eq.f32.partialorder %v1001_v56, 0.0 }
  0x5d   :  { %1478 = vperm.xlu1 %5005, %v1259_v25   ;;  %v1286_v25 = vsel %vm1136_vm15, 1, %v5567_v2  ;;  %vm1150_vm15 = vcmp.eq.f32.partialorder %v1000_v58, 0.0 }
  0x61   :  { %4826 = vmatmul.msk.f32.gmra.mxu0 %vm60_vm6, %v46_v26  ;;  %1475 = vperm.xlu0 %5004, %v1258_v27   ;;  %v1285_v27 = vsel %vm1135_vm0, 1, %v5567_v2  ;;  %vm1152_vm0 = vcmp.eq.f32.partialorder %v1002_v59, 0.0  ;;  %v1024_v59 = vld [vmem:[%s10947_s1 + $0x318] sm:$0xff] }
  0x62   :  { %1481 = vperm.xlu2 %5006, %v1260_v29   ;;  %v1287_v29 = vsel %vm1137_vm1, 1, %v5567_v2  ;;  %vm1154_vm1 = vcmp.eq.f32.partialorder %v1004_v63, 0.0 }
  0x65   :  { %1487 = vperm.xlu1 %5005, %v1262_v32   ;;  %v1289_v32 = vsel %vm1139_vm2, 1, %v5567_v2  ;;  %vm1153_vm2 = vcmp.eq.f32.partialorder %v1003_v1, 0.0 }
  0x69   :  { %4827 = vmatmul.msk.f32.gmra.mxu0 %vm60_vm6, %v47_v33  ;;  %1484 = vperm.xlu0 %5004, %v1261_v34   ;;  %v1288_v34 = vsel %vm1138_vm3, 1, %v5567_v2  ;;  %vm1155_vm3 = vcmp.eq.f32.partialorder %v1005_v3, 0.0  ;;  %v1027_v3 = vld [vmem:[%s10947_s1 + $0x330] sm:$0xff] }
  0x6a   :  { %1490 = vperm.xlu2 %5006, %v1263_v36   ;;  %v1290_v36 = vsel %vm1140_vm4, 1, %v5567_v2  ;;  %v1305_v9 = vsel %vm1155_vm3, 1, %v5567_v2  ;;  %vm1172_vm3 = vcmp.eq.f32.partialorder %v1022_v49, 0.0 }
  0x6d   :  { %1496 = vperm.xlu1 %5005, %v1265_v39   ;;  %v1292_v39 = vsel %vm1142_vm5, 1, %v5567_v2  ;;  %vm1156_vm5 = vcmp.eq.f32.partialorder %v1006_v10, 0.0  ;;  %v1030_v10 = vld [vmem:[%s10947_s1 + $0x348] sm:$0xff] }
  0x71   :  { %4828 = vmatmul.msk.f32.gmra.mxu0 %vm60_vm6, %v48_v40  ;;  %1493 = vperm.xlu0 %5004, %v1264_v41   ;;  %v1291_v41 = vsel %vm1141_vm7, 1, %v5567_v2 }
  0x72   :  { %1499 = vperm.xlu2 %5006, %v1266_v43   ;;  %v1293_v43 = vsel %vm1143_vm8, 1, %v5567_v2  ;;  %vm1160_vm8 = vcmp.eq.f32.partialorder %v1010_v16, 0.0  ;;  %v175_v16 = vld [vmem:[%s10951_s5 + $0x8] sm:$0xff] }
  0x73   :  { %v1310_v21 = vsel %vm1160_vm8, 1, %v5567_v2  ;;  %vm1174_vm8 = vcmp.eq.f32.partialorder %v1024_v59, 0.0 }
  0x74   :  { %v1324_v63 = vsel %vm1174_vm8, 1, %v5567_v2 }
  0x75   :  { %1505 = vperm.xlu1 %5005, %v1268_v46   ;;  %v1295_v46 = vsel %vm1145_vm9, 1, %v5567_v2 }
  0x79   :  { %4829 = vmatmul.msk.f32.gmra.mxu0 %vm60_vm6, %v49_v47  ;;  %1502 = vperm.xlu0 %5004, %v1267_v48  }
  0x7a   :  { %1508 = vperm.xlu2 %5006, %v1269_v50   ;;  %v1296_v50 = vsel %vm1146_vm10, 1, %v5567_v2  ;;  %vm1163_vm10 = vcmp.eq.f32.partialorder %v1013_v24, 0.0  ;;  %v176_v24 = vld [vmem:[%s10951_s5 + $0x10] sm:$0xff] }
  0x7d   :  { %1514 = vperm.xlu1 %5005, %v1271_v53   ;;  %v1298_v53 = vsel %vm1148_vm11, 1, %v5567_v2 }
  0x81   :  { %4830 = vmatmul.msk.f32.gmra.mxu0 %vm60_vm6, %v50_v54  ;;  %1511 = vperm.xlu0 %5004, %v1270_v55   ;;  %v1297_v55 = vsel %vm1147_vm12, 1, %v5567_v2  ;;  %vm1164_vm12 = vcmp.eq.f32.partialorder %v1014_v28, 0.0 }
  0x82   :  { %1517 = vperm.xlu2 %5006, %v1272_v57   ;;  %v1299_v57 = vsel %vm1149_vm13, 1, %v5567_v2 }
  0x85   :  { %1523 = vperm.xlu1 %5005, %v1274_v60   ;;  %v1301_v60 = vsel %vm1151_vm14, 1, %v5567_v2  ;;  %vm1165_vm14 = vcmp.eq.f32.partialorder %v1015_v35, 0.0  ;;  %v177_v35 = vld [vmem:[%s10951_s5 + $0x18] sm:$0xff] }
  0x89   :  { %4831 = vmatmul.msk.f32.gmra.mxu0 %vm60_vm6, %v51_v61  ;;  %1520 = vperm.xlu0 %5004, %v1273_v62   ;;  %vm1130_vm6 = vcmp.eq.f32.partialorder %v980_v7, 0.0  ;;  %v1300_v62 = vsel %vm1150_vm15, 1, %v5567_v2  ;;  %v1303_v7 = vsel %vm1153_vm2, 1, %v5567_v2 }
  0x8a   :  { %1526 = vperm.xlu2 %5006, %v1275_v0   ;;  %v1280_v11 = vsel %vm1130_vm6, 1, %v5567_v2  ;;  %vm1144_vm6 = vcmp.eq.f32.partialorder %v994_v44, 0.0  ;;  %v1302_v0 = vsel %vm1152_vm0, 1, %v5567_v2  ;;  %v1020_v44 = vld [vmem:[%s10947_s1 + $0x2f8] sm:$0xff] }
  0x8b   :  { %v1294_v48 = vsel %vm1144_vm6, 1, %v5567_v2  ;;  %vm1170_vm2 = vcmp.eq.f32.partialorder %v1020_v44, 0.0 }
  0x8d   :  { %1532 = vperm.xlu1 %5005, %v1277_v4   ;;  %v1304_v4 = vsel %vm1154_vm1, 1, %v5567_v2 }
  0x8e   :  { %v5938_v5 = vpop.f32.mrf.mxu0 }
  0x91   :  { %1529 = vperm.xlu0 %5004, %v1276_v6  }
  0x92   :  { %1535 = vperm.xlu2 %5006, %v1278_v8   ;;  %v1007_v8 = vld [vmem:[%s10947_s1 + $0x290] sm:$0xff] }
  0x93   :  { %vm1157_vm4 = vcmp.eq.f32.partialorder %v1007_v8, 0.0 }
  0x95   :  { %1541 = vperm.xlu1 %5005, %v1280_v11   ;;  %v1008_v11 = vld [vmem:[%s10947_s1 + $0x298] sm:$0xff] }
  0x96   :  { %v5952_v12 = vpop.f32.mrf.mxu0  ;;  %vm1158_vm7 = vcmp.eq.f32.partialorder %v1008_v11, 0.0 }
  0x97   :  { %v1308_v17 = vsel %vm1158_vm7, 1, %v5567_v2 }
  0x99   :  { %1538 = vperm.xlu0 %5004, %v1279_v13   ;;  %v1307_v13 = vsel %vm1157_vm4, 1, %v5567_v2  ;;  %vm1171_vm4 = vcmp.eq.f32.partialorder %v1021_v51, 0.0  ;;  %v1049_v51 = vld [vmem:[%s10947_s1 + $0x3e0] sm:$0xff] }
  0x9a   :  { %1544 = vperm.xlu2 %5006, %v1281_v15   ;;  %v1306_v15 = vsel %vm1156_vm5, 1, %v5567_v2  ;;  %vm1173_vm5 = vcmp.eq.f32.partialorder %v1023_v52, 0.0  ;;  %v1321_v56 = vsel %vm1171_vm4, 1, %v5567_v2  ;;  %v1048_v52 = vld [vmem:[%s10947_s1 + $0x3d8] sm:$0xff] }
  0x9b   :  { %v1323_v58 = vsel %vm1173_vm5, 1, %v5567_v2 }
  0x9d   :  { %1550 = vperm.xlu1 %5005, %v1283_v18   ;;  %v1009_v18 = vld [vmem:[%s10947_s1 + $0x2a0] sm:$0xff] }
  0x9e   :  { %v5966_v19 = vpop.f32.mrf.mxu0  ;;  %vm1159_vm9 = vcmp.eq.f32.partialorder %v1009_v18, 0.0  ;;  %v1038_v18 = vld [vmem:[%s10947_s1 + $0x388] sm:$0xff] }
  0x9f   :  { %v1309_v23 = vsel %vm1159_vm9, 1, %v5567_v2  ;;  %vm1188_vm4 = vcmp.eq.f32.partialorder %v1038_v18, 0.0 }
  0xa1   :  { %1547 = vperm.xlu0 %5004, %v1282_v20   ;;  %v1011_v20 = vld [vmem:[%s10947_s1 + $0x2b0] sm:$0xff] }
  0xa2   :  { %1553 = vperm.xlu2 %5006, %v1284_v22   ;;  %vm1161_vm6 = vcmp.eq.f32.partialorder %v1011_v20, 0.0 }
  0xa5   :  { %1559 = vperm.xlu1 %5005, %v1286_v25   ;;  %v1311_v25 = vsel %vm1161_vm6, 1, %v5567_v2 }
  0xa6   :  { %v5980_v26 = vpop.f32.mrf.mxu0 }
  0xa9   :  { %1556 = vperm.xlu0 %5004, %v1285_v27   ;;  %v1012_v27 = vld [vmem:[%s10947_s1 + $0x2b8] sm:$0xff] }
  0xaa   :  { %1562 = vperm.xlu2 %5006, %v1287_v29   ;;  %vm1162_vm11 = vcmp.eq.f32.partialorder %v1012_v27, 0.0  ;;  %v1313_v29 = vsel %vm1163_vm10, 1, %v5567_v2  ;;  %vm1177_vm10 = vcmp.eq.f32.partialorder %v1027_v3, 0.0  ;;  %v1041_v27 = vld [vmem:[%s10947_s1 + $0x3a0] sm:$0xff]  ;;  %v180_v3 = vld [vmem:[%s10951_s5 + $0x30] sm:$0xff] }
  0xab   :  { %v1312_v31 = vsel %vm1162_vm11, 1, %v5567_v2  ;;  %v1327_v8 = vsel %vm1177_vm10, 1, %v5567_v2  ;;  %vm1191_vm8 = vcmp.eq.f32.partialorder %v1041_v27, 0.0 }
  0xad   :  { %1568 = vperm.xlu1 %5005, %v1289_v32   ;;  %v1016_v32 = vld [vmem:[%s10947_s1 + $0x2d8] sm:$0xff] }
  0xae   :  { %v5994_v33 = vpop.f32.mrf.mxu0  ;;  %vm1166_vm13 = vcmp.eq.f32.partialorder %v1016_v32, 0.0  ;;  %v6242_v32 = vpop.permute.xlu2 %1388 }
  0xaf   :  { %v1316_v37 = vsel %vm1166_vm13, 1, %v5567_v2  ;;  %vm1180_vm13 = vcmp.eq.f32.partialorder %v1030_v10, 0.0  ;;  %v1053_v10 = vld [vmem:[%s10947_s1 + $0x400] sm:$0xff] }
  0xb0   :  { %v1330_v11 = vsel %vm1180_vm13, 1, %v5567_v2 }
  0xb1   :  { %1565 = vperm.xlu0 %5004, %v1288_v34   ;;  %v1314_v34 = vsel %vm1164_vm12, 1, %v5567_v2 }
  0xb2   :  { %1571 = vperm.xlu2 %5006, %v1290_v36   ;;  %v1017_v36 = vld [vmem:[%s10947_s1 + $0x2e0] sm:$0xff] }
  0xb3   :  { %vm1167_vm15 = vcmp.eq.f32.partialorder %v1017_v36, 0.0 }
  0xb4   :  { %v1317_v42 = vsel %vm1167_vm15, 1, %v5567_v2 }
  0xb5   :  { %1577 = vperm.xlu1 %5005, %v1292_v39   ;;  %v1315_v39 = vsel %vm1165_vm14, 1, %v5567_v2 }
  0xb6   :  { %v6008_v40 = vpop.f32.mrf.mxu0 }
  0xb9   :  { %1574 = vperm.xlu0 %5004, %v1291_v41   ;;  %v1019_v41 = vld [vmem:[%s10947_s1 + $0x2f0] sm:$0xff] }
  0xba   :  { %1580 = vperm.xlu2 %5006, %v1293_v43   ;;  %v1018_v43 = vld [vmem:[%s10947_s1 + $0x2e8] sm:$0xff]  ;;  %vm1169_vm0 = vcmp.eq.f32.partialorder %v1019_v41, 0.0 }
  0xbb   :  { %vm1168_vm1 = vcmp.eq.f32.partialorder %v1018_v43, 0.0  ;;  %v1319_v45 = vsel %vm1169_vm0, 1, %v5567_v2  ;;  %v1046_v41 = vld [vmem:[%s10947_s1 + $0x3c8] sm:$0xff] }
  0xbd   :  { %1586 = vperm.xlu1 %5005, %v1295_v46  }
  0xbe   :  { %v6022_v47 = vpop.f32.mrf.mxu0 }
  0xc1   :  { %1583 = vperm.xlu0 %5004, %v1294_v48   ;;  %v1318_v48 = vsel %vm1168_vm1, 1, %v5567_v2 }
  0xc2   :  { %1589 = vperm.xlu2 %5006, %v1296_v50   ;;  %v1320_v50 = vsel %vm1170_vm2, 1, %v5567_v2 }
  0xc5   :  { %1595 = vperm.xlu1 %5005, %v1298_v53   ;;  %v1322_v53 = vsel %vm1172_vm3, 1, %v5567_v2 }
  0xc6   :  { %v6036_v54 = vpop.f32.mrf.mxu0 }
  0xc9   :  { %1592 = vperm.xlu0 %5004, %v1297_v55  }
  0xca   :  { %1598 = vperm.xlu2 %5006, %v1299_v57   ;;  %v1025_v57 = vld [vmem:[%s10947_s1 + $0x320] sm:$0xff] }
  0xcb   :  { %vm1175_vm7 = vcmp.eq.f32.partialorder %v1025_v57, 0.0 }
  0xcd   :  { %1604 = vperm.xlu1 %5005, %v1301_v60   ;;  %v1026_v60 = vld [vmem:[%s10947_s1 + $0x328] sm:$0xff] }
  0xce   :  { %v6050_v61 = vpop.f32.mrf.mxu0  ;;  %vm1176_vm9 = vcmp.eq.f32.partialorder %v1026_v60, 0.0 }
  0xcf   :  { %v1326_v1 = vsel %vm1176_vm9, 1, %v5567_v2 }
  0xd1   :  { %1601 = vperm.xlu0 %5004, %v1300_v62   ;;  %v1325_v62 = vsel %vm1175_vm7, 1, %v5567_v2 }
  0xd2   :  { %1607 = vperm.xlu2 %5006, %v1302_v0   ;;  %v1028_v0 = vld [vmem:[%s10947_s1 + $0x338] sm:$0xff] }
  0xd3   :  { %vm1178_vm6 = vcmp.eq.f32.partialorder %v1028_v0, 0.0  ;;  %v1051_v0 = vld [vmem:[%s10947_s1 + $0x3f0] sm:$0xff] }
  0xd5   :  { %1613 = vperm.xlu1 %5005, %v1304_v4   ;;  %v1029_v4 = vld [vmem:[%s10947_s1 + $0x340] sm:$0xff] }
  0xd6   :  { %v6064_v6 = vpop.f32.mrf.mxu0  ;;  %vm1179_vm11 = vcmp.eq.f32.partialorder %v1029_v4, 0.0 }
  0xd9   :  { %1610 = vperm.xlu0 %5004, %v1303_v7   ;;  %v1328_v7 = vsel %vm1178_vm6, 1, %v5567_v2 }
  0xda   :  { %1616 = vperm.xlu2 %5006, %v1305_v9   ;;  %v1031_v9 = vld [vmem:[%s10947_s1 + $0x350] sm:$0xff] }
  0xdb   :  { %vm1181_vm12 = vcmp.eq.f32.partialorder %v1031_v9, 0.0 }
  0xdd   :  { %1622 = vperm.xlu1 %5005, %v1307_v13  }
  0xde   :  { %v6078_v14 = vpop.f32.mrf.mxu0 }
  0xe1   :  { %1619 = vperm.xlu0 %5004, %v1306_v15  }
  0xe2   :  { %1625 = vperm.xlu2 %5006, %v1308_v17  }
  0xe5   :  { %1631 = vperm.xlu1 %5005, %v1310_v21   ;;  %v1040_v21 = vld [vmem:[%s10947_s1 + $0x398] sm:$0xff] }
  0xe6   :  { %v6092_v22 = vpop.f32.mrf.mxu0  ;;  %vm1190_vm5 = vcmp.eq.f32.partialorder %v1040_v21, 0.0 }
  0xe9   :  { %1628 = vperm.xlu0 %5004, %v1309_v23   ;;  %v1039_v23 = vld [vmem:[%s10947_s1 + $0x390] sm:$0xff] }
  0xea   :  { %1634 = vperm.xlu2 %5006, %v1311_v25   ;;  %vm1189_vm7 = vcmp.eq.f32.partialorder %v1039_v23, 0.0  ;;  %v1340_v25 = vsel %vm1190_vm5, 1, %v5567_v2  ;;  %v1060_v23 = vld [vmem:[%s10947_s1 + $0x438] sm:$0xff] }
  0xeb   :  { %v1339_v28 = vsel %vm1189_vm7, 1, %v5567_v2 }
  0xed   :  { %1640 = vperm.xlu1 %5005, %v1313_v29   ;;  %v6236_v29 = vpop.permute.xlu0 %1376 }
  0xee   :  { %v162_v30 = vpop.f32.mrf.mxu0 }
  0xf1   :  { %1637 = vperm.xlu0 %5004, %v1312_v31   ;;  %v1341_v31 = vsel %vm1191_vm8, 1, %v5567_v2 }
  0xf2   :  { %1643 = vperm.xlu2 %5006, %v1314_v34   ;;  %v1042_v34 = vld [vmem:[%s10947_s1 + $0x3a8] sm:$0xff] }
  0xf3   :  { %vm1192_vm6 = vcmp.eq.f32.partialorder %v1042_v34, 0.0  ;;  %v1062_v34 = vld [vmem:[%s10947_s1 + $0x448] sm:$0xff] }
  0xf5   :  { %1649 = vperm.xlu1 %5005, %v1316_v37   ;;  %v1342_v37 = vsel %vm1192_vm6, 1, %v5567_v2  ;;  %v6264_v44 = vpop.permute.xlu0 %1379 }
  0xf6   :  { %v165_v38 = vpop.f32.mrf.mxu0 }
  0xf9   :  { %1646 = vperm.xlu0 %5004, %v1315_v39   ;;  %v6255_v39 = vpop.permute.xlu1 %1382 }
  0xfa   :  { %1652 = vperm.xlu2 %5006, %v1317_v42   ;;  %v1045_v42 = vld [vmem:[%s10947_s1 + $0x3c0] sm:$0xff] }
  0xfd   :  { %1658 = vperm.xlu1 %5005, %v1319_v45   ;;  %v6266_v45 = vpop.permute.xlu2 %1391  ;;  %v6288_v57 = vpop.permute.xlu0 %1394 }
  0xfe   :  { %v168_v46 = vpop.f32.mrf.mxu0 }
 0x101   :  { %1655 = vperm.xlu0 %5004, %v1318_v48  }
 0x102   :  { %1661 = vperm.xlu2 %5006, %v1320_v50   ;;  %v1047_v50 = vld [vmem:[%s10947_s1 + $0x3d0] sm:$0xff] }
 0x103   :  { %vm1197_vm13 = vcmp.eq.f32.partialorder %v1047_v50, 0.0  ;;  %v1067_v50 = vld [vmem:[%s10947_s1 + $0x470] sm:$0xff] }
 0x105   :  { %1667 = vperm.xlu1 %5005, %v1322_v53   ;;  %v1347_v53 = vsel %vm1197_vm13, 1, %v5567_v2 }
 0x106   :  { %v171_v55 = vpop.f32.mrf.mxu0 }
 0x107   :  { %190 = vmatpush.msra.mxu1 %v171_v55  ;;  %v6283_v55 = vpop.permute.xlu1 %1385 }
 0x109   :  { %191 = vmatpush.msra.mxu1 %v168_v46  ;;  %1664 = vperm.xlu0 %5004, %v1321_v56   ;;  %v178_v46 = vld [vmem:[%s10951_s5 + $0x20] sm:$0xff]  ;;  %v179_v56 = vld [vmem:[%s10951_s5 + $0x28] sm:$0xff] }
 0x10a   :  { %1670 = vperm.xlu2 %5006, %v1323_v58   ;;  %v6290_v58 = vpop.permute.xlu2 %1400 }
 0x10b   :  { %192 = vmatpush.msra.mxu1 %v165_v38  ;;  %v1044_v38 = vld [vmem:[%s10947_s1 + $0x3b8] sm:$0xff] }
 0x10c   :  { %vm1194_vm10 = vcmp.eq.f32.partialorder %v1044_v38, 0.0 }
 0x10d   :  { %193 = vmatpush.msra.mxu1 %v162_v30  ;;  %1676 = vperm.xlu1 %5005, %v1325_v62   ;;  %v1043_v30 = vld [vmem:[%s10947_s1 + $0x3b0] sm:$0xff]  ;;  %v1344_v43 = vsel %vm1194_vm10, 1, %v5567_v2  ;;  %v1050_v62 = vld [vmem:[%s10947_s1 + $0x3e8] sm:$0xff] }
 0x10e   :  { %vm1193_vm9 = vcmp.eq.f32.partialorder %v1043_v30, 0.0 }
 0x10f   :  { %194 = vmatpush.msra.mxu1 %v6092_v22  ;;  %v1338_v22 = vsel %vm1188_vm4, 1, %v5567_v2  ;;  %v1343_v36 = vsel %vm1193_vm9, 1, %v5567_v2  ;;  %v6307_v4 = vpop.permute.xlu1 %1397 }
 0x111   :  { %195 = vmatpush.msra.mxu1 %v6078_v14  ;;  %1673 = vperm.xlu0 %5004, %v1324_v63   ;;  %v1035_v14 = vld [vmem:[%s10947_s1 + $0x370] sm:$0xff]  ;;  %v1052_v63 = vld [vmem:[%s10947_s1 + $0x3f8] sm:$0xff] }
 0x112   :  { %1679 = vperm.xlu2 %5006, %v1326_v1   ;;  %vm1185_vm1 = vcmp.eq.f32.partialorder %v1035_v14, 0.0  ;;  %v6312_v9 = vpop.permute.xlu2 %1409 }
 0x113   :  { %196 = vmatpush.msra.mxu1 %v6064_v6  ;;  %v1329_v6 = vsel %vm1179_vm11, 1, %v5567_v2  ;;  %v1335_v15 = vsel %vm1185_vm1, 1, %v5567_v2  ;;  %vm1196_vm11 = vcmp.eq.f32.partialorder %v1046_v41, 0.0  ;;  %vm1202_vm1 = vcmp.eq.f32.partialorder %v1052_v63, 0.0  ;;  %v184_v41 = vld [vmem:[%s10951_s5 + $0x50] sm:$0xff] }
 0x114   :  { %v1346_v48 = vsel %vm1196_vm11, 1, %v5567_v2  ;;  %vm1210_vm11 = vcmp.eq.f32.partialorder %v1060_v23, 0.0 }
 0x115   :  { %197 = vmatpush.msra.mxu1 %v6050_v61  ;;  %1685 = vperm.xlu1 %5005, %v1328_v7   ;;  %v1032_v61 = vld [vmem:[%s10947_s1 + $0x358] sm:$0xff]  ;;  %v6309_v7 = vpop.permute.xlu0 %1403 }
 0x116   :  { %vm1182_vm14 = vcmp.eq.f32.partialorder %v1032_v61, 0.0  ;;  %v1054_v61 = vld [vmem:[%s10947_s1 + $0x408] sm:$0xff] }
 0x117   :  { %198 = vmatpush.msra.mxu1 %v6036_v54  ;;  %v1331_v54 = vsel %vm1181_vm12, 1, %v5567_v2  ;;  %vm1195_vm12 = vcmp.eq.f32.partialorder %v1045_v42, 0.0  ;;  %vm1204_vm5 = vcmp.eq.f32.partialorder %v1054_v61, 0.0 }
 0x118   :  { %v1345_v49 = vsel %vm1195_vm12, 1, %v5567_v2  ;;  %vm1212_vm12 = vcmp.eq.f32.partialorder %v1062_v34, 0.0 }
 0x119   :  { %199 = vmatpush.msra.mxu1 %v6022_v47  ;;  %1682 = vperm.xlu0 %5004, %v1327_v8   ;;  %v1034_v47 = vld [vmem:[%s10947_s1 + $0x368] sm:$0xff]  ;;  %v1352_v8 = vsel %vm1202_vm1, 1, %v5567_v2 }
 0x11a   :  { %1688 = vperm.xlu2 %5006, %v1329_v6   ;;  %vm1184_vm15 = vcmp.eq.f32.partialorder %v1034_v47, 0.0  ;;  %v181_v47 = vld [vmem:[%s10951_s5 + $0x38] sm:$0xff] }
 0x11b   :  { %200 = vmatpush.msra.mxu1 %v6008_v40  ;;  %v1332_v40 = vsel %vm1182_vm14, 1, %v5567_v2  ;;  %v1334_v13 = vsel %vm1184_vm15, 1, %v5567_v2  ;;  %vm1199_vm14 = vcmp.eq.f32.partialorder %v1049_v51, 0.0  ;;  %vm1198_vm15 = vcmp.eq.f32.partialorder %v1048_v52, 0.0  ;;  %v1066_v51 = vld [vmem:[%s10947_s1 + $0x468] sm:$0xff] }
 0x11c   :  { %v1349_v59 = vsel %vm1199_vm14, 1, %v5567_v2  ;;  %v1348_v60 = vsel %vm1198_vm15, 1, %v5567_v2  ;;  %vm1216_vm1 = vcmp.eq.f32.partialorder %v1066_v51, 0.0 }
 0x11d   :  { %201 = vmatpush.msra.mxu1 %v5994_v33  ;;  %1694 = vperm.xlu1 %5005, %v1331_v54   ;;  %v1033_v33 = vld [vmem:[%s10947_s1 + $0x360] sm:$0xff]  ;;  %v1055_v54 = vld [vmem:[%s10947_s1 + $0x410] sm:$0xff]  ;;  %v6335_v14 = vpop.permute.xlu0 %1412  ;;  %v1366_v63 = vsel %vm1216_vm1, 1, %v5567_v2 }
 0x11e   :  { %vm1183_vm0 = vcmp.eq.f32.partialorder %v1033_v33, 0.0  ;;  %vm1205_vm4 = vcmp.eq.f32.partialorder %v1055_v54, 0.0  ;;  %11206 = vst [vmem:[#allocation13_spill] sm:$0xff] %v6335_v14  ;;  %v336_v14 = vld [vmem:[%s10946_s0 + $0x160] sm:$0xff] }
 0x11f   :  { %202 = vmatpush.msra.mxu1 %v5980_v26  ;;  %v174_v26 = vld [vmem:[%s10951_s5] sm:$0xff]  ;;  %v1355_v33 = vsel %vm1205_vm4, 1, %v5567_v2 }
 0x121   :  { %203 = vmatpush.msra.mxu1 %v5966_v19  ;;  %1691 = vperm.xlu0 %5004, %v1330_v11   ;;  %v1333_v19 = vsel %vm1183_vm0, 1, %v5567_v2  ;;  %vm1200_vm0 = vcmp.eq.f32.partialorder %v1050_v62, 0.0 }
 0x122   :  { %1697 = vperm.xlu2 %5006, %v1332_v40   ;;  %v1350_v1 = vsel %vm1200_vm0, 1, %v5567_v2  ;;  %v6328_v40 = vpop.permute.xlu1 %1406  ;;  %vm1217_vm0 = vcmp.eq.f32.partialorder %v1067_v50, 0.0 }
 0x123   :  { %204 = vmatpush.msra.mxu1 %v5952_v12  ;;  %v1037_v12 = vld [vmem:[%s10947_s1 + $0x380] sm:$0xff] }
 0x124   :  { %vm1187_vm2 = vcmp.eq.f32.partialorder %v1037_v12, 0.0  ;;  %v6340_v12 = vpop.permute.xlu2 %1418 }
 0x125   :  { %205 = vmatpush.msra.mxu1 %v5938_v5  ;;  %1703 = vperm.xlu1 %5005, %v1334_v13   ;;  %v1036_v5 = vld [vmem:[%s10947_s1 + $0x378] sm:$0xff]  ;;  %v1337_v17 = vsel %vm1187_vm2, 1, %v5567_v2  ;;  %vm1201_vm2 = vcmp.eq.f32.partialorder %v1051_v0, 0.0  ;;  %11207 = vst [vmem:[#allocation14_spill] sm:$0xff] %v6340_v12 }
 0x126   :  { %206 = vmatmul.f32.vlgmr.msra.gmra.mxu1 %v174_v26  ;;  %vm1186_vm3 = vcmp.eq.f32.partialorder %v1036_v5, 0.0  ;;  %v1351_v6 = vsel %vm1201_vm2, 1, %v5567_v2  ;;  %v1354_v26 = vsel %vm1204_vm5, 1, %v5567_v2  ;;  %v1056_v13 = vld [vmem:[%s10947_s1 + $0x418] sm:$0xff] }
 0x127   :  { %v1336_v20 = vsel %vm1186_vm3, 1, %v5567_v2  ;;  %vm1203_vm3 = vcmp.eq.f32.partialorder %v1053_v10, 0.0  ;;  %vm1206_vm7 = vcmp.eq.f32.partialorder %v1056_v13, 0.0  ;;  %v1068_v0 = vld [vmem:[%s10947_s1 + $0x478] sm:$0xff] }
 0x128   :  { %v1353_v11 = vsel %vm1203_vm3, 1, %v5567_v2  ;;  %v1356_v5 = vsel %vm1206_vm7, 1, %v5567_v2  ;;  %vm1218_vm2 = vcmp.eq.f32.partialorder %v1068_v0, 0.0  ;;  %v1072_v13 = vld [vmem:[%s10947_s1 + $0x498] sm:$0xff] }
 0x129   :  { %1700 = vperm.xlu0 %5004, %v1333_v19   ;;  %v1058_v19 = vld [vmem:[%s10947_s1 + $0x428] sm:$0xff] }
 0x12a   :  { %1706 = vperm.xlu2 %5006, %v1335_v15   ;;  %v1057_v15 = vld [vmem:[%s10947_s1 + $0x420] sm:$0xff]  ;;  %vm1208_vm8 = vcmp.eq.f32.partialorder %v1058_v19, 0.0  ;;  %v6354_v21 = vpop.permute.xlu1 %1415 }
 0x12b   :  { %vm1207_vm9 = vcmp.eq.f32.partialorder %v1057_v15, 0.0  ;;  %11208 = vst [vmem:[#allocation15_spill] sm:$0xff] %v6354_v21  ;;  %v187_v15 = vld [vmem:[%s10951_s5 + $0x68] sm:$0xff] }
 0x12c   :  { %v1357_v18 = vsel %vm1207_vm9, 1, %v5567_v2  ;;  %v6365_v27 = vpop.permute.xlu2 %1427 }
 0x12d   :  { %1712 = vperm.xlu1 %5005, %v1337_v17   ;;  %v1358_v17 = vsel %vm1208_vm8, 1, %v5567_v2  ;;  %11210 = vst [vmem:[#allocation17_spill] sm:$0xff] %v6365_v27  ;;  %vm1222_vm8 = vcmp.eq.f32.partialorder %v1072_v13, 0.0  ;;  %v331_v27 = vld [vmem:[%s10946_s0 + $0x138] sm:$0xff] }
 0x12e   :  { %209 = vmatmul.f32.gmra.mxu1 %v175_v16  ;;  %v182_v16 = vld [vmem:[%s10951_s5 + $0x40] sm:$0xff] }
 0x131   :  { %1709 = vperm.xlu0 %5004, %v1336_v20   ;;  %v1059_v20 = vld [vmem:[%s10947_s1 + $0x430] sm:$0xff] }
 0x132   :  { %1715 = vperm.xlu2 %5006, %v1338_v22   ;;  %v1061_v22 = vld [vmem:[%s10947_s1 + $0x440] sm:$0xff]  ;;  %vm1209_vm6 = vcmp.eq.f32.partialorder %v1059_v20, 0.0  ;;  %v6382_v38 = vpop.permute.xlu1 %1424 }
 0x133   :  { %vm1211_vm10 = vcmp.eq.f32.partialorder %v1061_v22, 0.0  ;;  %11211 = vst [vmem:[#allocation18_spill] sm:$0xff] %v6382_v38  ;;  %v365_v38 = vld [vmem:[%s10946_s0 + $0x248] sm:$0xff] }
 0x134   :  { %v1361_v30 = vsel %vm1211_vm10, 1, %v5567_v2 }
 0x135   :  { %1721 = vperm.xlu1 %5005, %v1340_v25   ;;  %v6363_v25 = vpop.permute.xlu0 %1421 }
 0x136   :  { %212 = vmatmul.f32.gmra.mxu1 %v176_v24  ;;  %v1359_v24 = vsel %vm1209_vm6, 1, %v5567_v2  ;;  %11209 = vst [vmem:[#allocation16_spill] sm:$0xff] %v6363_v25  ;;  %vm271_vm6 = vcmask 31744   ;;  %v333_v25 = vld [vmem:[%s10946_s0 + $0x148] sm:$0xff] }
 0x139   :  { %1718 = vperm.xlu0 %5004, %v1339_v28   ;;  %v183_v28 = vld [vmem:[%s10951_s5 + $0x48] sm:$0xff] }
 0x13a   :  { %1724 = vperm.xlu2 %5006, %v1341_v31   ;;  %v1360_v31 = vsel %vm1210_vm11, 1, %v5567_v2  ;;  %vm1825_vm11 = vcmp.eq.s32.totalorder %v6236_v29, 1  ;;  %v430_v29 = vld [vmem:[%s10946_s0 + $0x450] sm:$0xff] }
 0x13d   :  { %1730 = vperm.xlu1 %5005, %v1343_v36   ;;  %v1063_v36 = vld [vmem:[%s10947_s1 + $0x450] sm:$0xff]  ;;  %v6387_v42 = vpop.permute.xlu0 %1430 }
 0x13e   :  { %215 = vmatmul.f32.gmra.mxu1 %v177_v35  ;;  %v1064_v35 = vld [vmem:[%s10947_s1 + $0x458] sm:$0xff]  ;;  %11212 = vst [vmem:[#allocation19_spill] sm:$0xff] %v6387_v42  ;;  %vm1213_vm14 = vcmp.eq.f32.partialorder %v1063_v36, 0.0 }
 0x13f   :  { %vm1214_vm13 = vcmp.eq.f32.partialorder %v1064_v35, 0.0 }
 0x141   :  { %1727 = vperm.xlu0 %5004, %v1342_v37   ;;  %v1362_v37 = vsel %vm1212_vm12, 1, %v5567_v2 }
 0x142   :  { %1733 = vperm.xlu2 %5006, %v1344_v43   ;;  %v6389_v43 = vpop.permute.xlu2 %1436 }
 0x143   :  { %11213 = vst [vmem:[#allocation20_spill] sm:$0xff] %v6389_v43 }
 0x145   :  { %1739 = vperm.xlu1 %5005, %v1346_v48   ;;  %v1363_v48 = vsel %vm1213_vm14, 1, %v5567_v2  ;;  %vm1826_vm14 = vcmp.eq.s32.totalorder %v6264_v44, 1 }
 0x146   :  { %218 = vmatmul.f32.gmra.mxu1 %v178_v46  ;;  %v1364_v46 = vsel %vm1214_vm13, 1, %v5567_v2 }
 0x149   :  { %1736 = vperm.xlu0 %5004, %v1345_v49   ;;  %v1065_v49 = vld [vmem:[%s10947_s1 + $0x460] sm:$0xff] }
 0x14a   :  { %1742 = vperm.xlu2 %5006, %v1347_v53   ;;  %vm1215_vm15 = vcmp.eq.f32.partialorder %v1065_v49, 0.0  ;;  %v185_v53 = vld [vmem:[%s10951_s5 + $0x58] sm:$0xff]  ;;  %v6411_v62 = vpop.permute.xlu2 %1445 }
 0x14b   :  { %v1365_v52 = vsel %vm1215_vm15, 1, %v5567_v2  ;;  %11216 = vst [vmem:[#allocation23_spill] sm:$0xff] %v6411_v62 }
 0x14d   :  { %1748 = vperm.xlu1 %5005, %v1349_v59   ;;  %v6408_v59 = vpop.permute.xlu0 %1439 }
 0x14e   :  { %221 = vmatmul.f32.gmra.mxu1 %v179_v56  ;;  %v6406_v56 = vpop.permute.xlu1 %1433  ;;  %11215 = vst [vmem:[#allocation22_spill] sm:$0xff] %v6408_v59  ;;  %v6611_v59 = vld [vmem:[%s10946_s0 + $0x8] sm:$0xff] }
 0x14f   :  { %11214 = vst [vmem:[#allocation21_spill] sm:$0xff] %v6406_v56  ;;  %v329_v56 = vld [vmem:[%s10946_s0 + $0x128] sm:$0xff] }
 0x151   :  { %1745 = vperm.xlu0 %5004, %v1348_v60   ;;  %v1367_v60 = vsel %vm1217_vm0, 1, %v5567_v2 }
 0x152   :  { %1751 = vperm.xlu2 %5006, %v1350_v1   ;;  %v1070_v1 = vld [vmem:[%s10947_s1 + $0x488] sm:$0xff] }
 0x153   :  { %vm1220_vm3 = vcmp.eq.f32.partialorder %v1070_v1, 0.0 }
 0x154   :  { %v1370_v54 = vsel %vm1220_vm3, 1, %v5567_v2 }
 0x155   :  { %1757 = vperm.xlu1 %5005, %v1352_v8   ;;  %v1368_v8 = vsel %vm1218_vm2, 1, %v5567_v2 }
 0x156   :  { %224 = vmatmul.f32.gmra.mxu1 %v180_v3  ;;  %v1069_v3 = vld [vmem:[%s10947_s1 + $0x480] sm:$0xff]  ;;  %v6427_v10 = vpop.permute.xlu1 %1442 }
 0x157   :  { %vm1219_vm4 = vcmp.eq.f32.partialorder %v1069_v3, 0.0  ;;  %11217 = vst [vmem:[#allocation24_spill] sm:$0xff] %v6427_v10 }
 0x158   :  { %v1369_v61 = vsel %vm1219_vm4, 1, %v5567_v2 }
 0x159   :  { %1754 = vperm.xlu0 %5004, %v1351_v6   ;;  %v186_v6 = vld [vmem:[%s10951_s5 + $0x60] sm:$0xff] }
 0x15a   :  { %1760 = vperm.xlu2 %5006, %v1353_v11   ;;  %v1071_v11 = vld [vmem:[%s10947_s1 + $0x490] sm:$0xff] }
 0x15b   :  { %vm1221_vm5 = vcmp.eq.f32.partialorder %v1071_v11, 0.0 }
 0x15c   :  { %v1371_v19 = vsel %vm1221_vm5, 1, %v5567_v2 }
 0x15d   :  { %1766 = vperm.xlu1 %5005, %v1355_v33   ;;  %v1073_v33 = vld [vmem:[%s10947_s1 + $0x4a0] sm:$0xff] }
 0x15e   :  { %227 = vmatmul.f32.gmra.mxu1 %v181_v47  ;;  %v6434_v47 = vpop.permute.xlu0 %1448  ;;  %vm1223_vm7 = vcmp.eq.f32.partialorder %v1073_v33, 0.0 }
 0x15f   :  { %11218 = vst [vmem:[#allocation25_spill] sm:$0xff] %v6434_v47 }
 0x161   :  { %1763 = vperm.xlu0 %5004, %v1354_v26   ;;  %v6439_v26 = vpop.permute.xlu2 %1454 }
 0x162   :  { %1769 = vperm.xlu2 %5006, %v1356_v5   ;;  %11219 = vst [vmem:[#allocation26_spill] sm:$0xff] %v6439_v26  ;;  %v1373_v5 = vsel %vm1223_vm7, 1, %v5567_v2 }
 0x165   :  { %1775 = vperm.xlu1 %5005, %v1358_v17   ;;  %v1074_v17 = vld [vmem:[%s10947_s1 + $0x4a8] sm:$0xff]  ;;  %s5572_s1 = smov [#allocation6]  }
 0x166   :  { %230 = vmatmul.f32.gmra.mxu1 %v182_v16  ;;  %v1372_v16 = vsel %vm1222_vm8, 1, %v5567_v2  ;;  %vm1224_vm9 = vcmp.eq.f32.partialorder %v1074_v17, 0.0  ;;  %v6456_v22 = vpop.permute.xlu0 %1457  ;;  %s4772_s24 = sshll.u32 %s5572_s1, 4  ;;  %s4773_s24 = int_to_ptr.vmem [resolvable:$true] %s4772_s24 }
 0x167   :  { %v1374_v20 = vsel %vm1224_vm9, 1, %v5567_v2  ;;  %11221 = vst [vmem:[#allocation28_spill] sm:$0xff] %v6456_v22 }
 0x169   :  { %1772 = vperm.xlu0 %5004, %v1357_v18   ;;  %v6453_v18 = vpop.permute.xlu1 %1451  ;;  %v6458_v23 = vpop.permute.xlu2 %1463 }
 0x16a   :  { %1778 = vperm.xlu2 %5006, %v1359_v24   ;;  %11220 = vst [vmem:[#allocation27_spill] sm:$0xff] %v6453_v18  ;;  %v188_v24 = vld [vmem:[%s10951_s5 + $0x70] sm:$0xff] }
 0x16b   :  { %11222 = vst [vmem:[#allocation29_spill] sm:$0xff] %v6458_v23 }
 0x16d   :  { %1784 = vperm.xlu1 %5005, %v1361_v30   ;;  %v189_v30 = vld [vmem:[%s10951_s5 + $0x78] sm:$0xff]  ;;  %s4796_s5 = sshll.u32 %s10956_s10, 4  ;;  %s4797_s5 = int_to_ptr.hbm [resolvable:$true] %s4796_s5 }
 0x16e   :  { %233 = vmatmul.f32.gmra.mxu1 %v183_v28 }
 0x171   :  { %1781 = vperm.xlu0 %5004, %v1360_v31   ;;  %v6463_v28 = vpop.permute.xlu1 %1460  ;;  %v6468_v31 = vpop.permute.xlu0 %1466 }
 0x172   :  { %1787 = vperm.xlu2 %5006, %v1362_v37   ;;  %11223 = vst [vmem:[#allocation30_spill] sm:$0xff] %v6463_v28  ;;  %v6470_v2 = vpop.permute.xlu2 %1472 }
 0x173   :  { %11224 = vst [vmem:[#allocation31_spill] sm:$0xff] %v6468_v31 }
 0x174   :  { %11225 = vst [vmem:[#allocation32_spill] sm:$0xff] %v6470_v2 }
 0x175   :  { %1793 = vperm.xlu1 %5005, %v1364_v46  }
 0x176   :  { %236 = vmatmul.f32.gmra.mxu1 %v184_v41 }
 0x179   :  { %1790 = vperm.xlu0 %5004, %v1363_v48   ;;  %v6472_v35 = vpop.permute.xlu1 %1469  ;;  %v6474_v37 = vpop.permute.xlu0 %1475 }
 0x17a   :  { %1796 = vperm.xlu2 %5006, %v1365_v52   ;;  %11226 = vst [vmem:[#allocation33_spill] sm:$0xff] %v6472_v35  ;;  %v6477_v41 = vpop.permute.xlu2 %1481 }
 0x17b   :  { %11227 = vst [vmem:[#allocation34_spill] sm:$0xff] %v6474_v37  ;;  %vm1860_vm12 = vcmp.eq.s32.totalorder %v6477_v41, 1  ;;  %v2126_v41 = vld [vmem:[%s10948_s2 + $0x8] sm:$0xff] }
 0x17c   :  { %vm2276_vm4 = vcmp.eq.f32.partialorder %v2126_v41, 0.0 }
 0x17d   :  { %1802 = vperm.xlu1 %5005, %v1367_v60  }
 0x17e   :  { %239 = vmatmul.f32.gmra.mxu1 %v185_v53 }
 0x181   :  { %1799 = vperm.xlu0 %5004, %v1366_v63   ;;  %v6479_v49 = vpop.permute.xlu1 %1478  ;;  %v6482_v50 = vpop.permute.xlu0 %1484 }
 0x182   :  { %1805 = vperm.xlu2 %5006, %v1368_v8   ;;  %11228 = vst [vmem:[#allocation35_spill] sm:$0xff] %v6479_v49  ;;  %v6484_v51 = vpop.permute.xlu2 %1490  ;;  %vm1861_vm15 = vcmp.eq.s32.totalorder %v6482_v50, 1 }
 0x185   :  { %1811 = vperm.xlu1 %5005, %v1370_v54  }
 0x186   :  { %242 = vmatmul.f32.gmra.mxu1 %v186_v6 }
 0x189   :  { %1808 = vperm.xlu0 %5004, %v1369_v61   ;;  %v6487_v60 = vpop.permute.xlu1 %1487  ;;  %v6489_v63 = vpop.permute.xlu0 %1493 }
 0x18a   :  { %1814 = vperm.xlu2 %5006, %v1371_v19   ;;  %v6491_v0 = vpop.permute.xlu2 %1499  ;;  %vm1862_vm7 = vcmp.eq.s32.totalorder %v6487_v60, 1 }
 0x18d   :  { %1820 = vperm.xlu1 %5005, %v1373_v5  }
 0x18e   :  { %245 = vmatmul.f32.gmra.mxu1 %v187_v15 }
 0x191   :  { %1817 = vperm.xlu0 %5004, %v1372_v16   ;;  %v6494_v8 = vpop.permute.xlu1 %1496  ;;  %v6496_v54 = vpop.permute.xlu0 %1502 }
 0x192   :  { %1823 = vperm.xlu2 %5006, %v1374_v20   ;;  %v6498_v11 = vpop.permute.xlu2 %1508 }
 0x196   :  { %248 = vmatmul.f32.gmra.mxu1 %v188_v24 }
 0x199   :  { %v6501_v13 = vpop.permute.xlu1 %1505  ;;  %v6503_v15 = vpop.permute.xlu0 %1511 }
 0x19a   :  { %v6506_v5 = vpop.permute.xlu2 %1517 }
 0x19b   :  { %11229 = vst [vmem:[#allocation36_spill] sm:$0xff] %v6506_v5 }
 0x19e   :  { %251 = vmatmul.f32.gmra.mxu1 %v189_v30 }
 0x1a1   :  { %v6508_v20 = vpop.permute.xlu1 %1514  ;;  %v6511_v24 = vpop.permute.xlu0 %1520 }
 0x1a2   :  { %11230 = vst [vmem:[#allocation37_spill] sm:$0xff] %v6511_v24  ;;  %v6513_v30 = vpop.permute.xlu2 %1526 }
 0x1a3   :  { %v207_v34 = vpop.f32.mrf.mxu1  ;;  %11231 = vst [vmem:[#allocation38_spill] sm:$0xff] %v6513_v30 }
 0x1a4   :  { %v255_v36 = vmul.f32 0.6666667, %v207_v34 }
 0x1a6   :  { %272 = vst.msk [vmem:[#allocation2] sm:$0xff] %vm271_vm6, %v255_v36 }
 0x1ab   :  { %v210_v46 = vpop.f32.mrf.mxu1 }
 0x1ac   :  { %v256_v48 = vmul.f32 0.6666667, %v210_v46  ;;  %v6516_v46 = vpop.permute.xlu1 %1523 }
 0x1ad   :  { %11232 = vst [vmem:[#allocation39_spill] sm:$0xff] %v6516_v46  ;;  %v442_v62 = vld [vmem:[#allocation2] sm:$0xff]  ;;  %v370_v46 = vld [vmem:[%s10946_s0 + $0x270] sm:$0xff] }
 0x1ae   :  { %273 = vst.msk [vmem:[#allocation2 + $0x8] sm:$0xff] %vm271_vm6, %v256_v48  ;;  %v6518_v48 = vpop.permute.xlu0 %1529 }
 0x1af   :  { %11233 = vst [vmem:[#allocation40_spill] sm:$0xff] %v6518_v48 }
 0x1b3   :  { %v213_v52 = vpop.f32.mrf.mxu1 }
 0x1b4   :  { %v257_v53 = vmul.f32 0.6666667, %v213_v52  ;;  %v6520_v52 = vpop.permute.xlu2 %1535 }
 0x1b5   :  { %11234 = vst [vmem:[#allocation41_spill] sm:$0xff] %v6520_v52 }
 0x1b6   :  { %274 = vst.msk [vmem:[#allocation2 + $0x10] sm:$0xff] %vm271_vm6, %v257_v53 }
 0x1bb   :  { %v216_v1 = vpop.f32.mrf.mxu1 }
 0x1bc   :  { %v258_v3 = vmul.f32 0.6666667, %v216_v1 }
 0x1be   :  { %275 = vst.msk [vmem:[#allocation2 + $0x18] sm:$0xff] %vm271_vm6, %v258_v3  ;;  %v6523_v3 = vpop.permute.xlu1 %1532 }
 0x1bf   :  { %11235 = vst [vmem:[#allocation42_spill] sm:$0xff] %v6523_v3  ;;  %v330_v3 = vld [vmem:[%s10946_s0 + $0x130] sm:$0xff] }
 0x1c3   :  { %v219_v6 = vpop.f32.mrf.mxu1 }
 0x1c4   :  { %v259_v61 = vmul.f32 0.6666667, %v219_v6 }
 0x1c6   :  { %276 = vst.msk [vmem:[#allocation2 + $0x20] sm:$0xff] %vm271_vm6, %v259_v61  ;;  %v6525_v61 = vpop.permute.xlu0 %1538 }
 0x1c7   :  { %11236 = vst [vmem:[#allocation43_spill] sm:$0xff] %v6525_v61  ;;  %v6635_v61 = vld [vmem:[%s10946_s0 + $0x10] sm:$0xff] }
 0x1cb   :  { %v222_v33 = vpop.f32.mrf.mxu1 }
 0x1cc   :  { %v260_v19 = vmul.f32 0.6666667, %v222_v33 }
 0x1ce   :  { %277 = vst.msk [vmem:[#allocation2 + $0x28] sm:$0xff] %vm271_vm6, %v260_v19  ;;  %v6527_v19 = vpop.permute.xlu2 %1544 }
 0x1cf   :  { %11237 = vst [vmem:[#allocation44_spill] sm:$0xff] %v6527_v19  ;;  %v328_v19 = vld [vmem:[%s10946_s0 + $0x120] sm:$0xff] }
 0x1d3   :  { %v225_v16 = vpop.f32.mrf.mxu1 }
 0x1d4   :  { %v261_v17 = vmul.f32 0.6666667, %v225_v16 }
 0x1d5   :  { %v447_v47 = vld [vmem:[#allocation2 + $0x28] sm:$0xff] }
 0x1d6   :  { %278 = vst.msk [vmem:[#allocation2 + $0x30] sm:$0xff] %vm271_vm6, %v261_v17  ;;  %v6530_v17 = vpop.permute.xlu1 %1541 }
 0x1d7   :  { %11238 = vst [vmem:[#allocation45_spill] sm:$0xff] %v6530_v17 }
 0x1db   :  { %v228_v34 = vpop.f32.mrf.mxu1 }
 0x1dc   :  { %v262_v36 = vmul.f32 0.6666667, %v228_v34 }
 0x1de   :  { %279 = vst.msk [vmem:[#allocation2 + $0x38] sm:$0xff] %vm271_vm6, %v262_v36  ;;  %v6532_v36 = vpop.permute.xlu0 %1547  ;;  %v6537_v37 = vpop.permute.xlu1 %1550 }
 0x1df   :  { %11239 = vst [vmem:[#allocation46_spill] sm:$0xff] %v6532_v36 }
 0x1e0   :  { %11241 = vst [vmem:[#allocation48_spill] sm:$0xff] %v6537_v37 }
 0x1e3   :  { %v231_v53 = vpop.f32.mrf.mxu1 }
 0x1e4   :  { %v263_v1 = vmul.f32 0.6666667, %v231_v53  ;;  %v6535_v53 = vpop.permute.xlu2 %1553 }
 0x1e5   :  { %11240 = vst [vmem:[#allocation47_spill] sm:$0xff] %v6535_v53 }
 0x1e6   :  { %280 = vst.msk [vmem:[#allocation2 + $0x40] sm:$0xff] %vm271_vm6, %v263_v1 }
 0x1eb   :  { %v234_v6 = vpop.f32.mrf.mxu1 }
 0x1ec   :  { %v264_v33 = vmul.f32 0.6666667, %v234_v6  ;;  %v6540_v6 = vpop.permute.xlu0 %1556  ;;  %v6542_v2 = vpop.permute.xlu2 %1562 }
 0x1ed   :  { %11242 = vst [vmem:[#allocation49_spill] sm:$0xff] %v6540_v6 }
 0x1ee   :  { %281 = vst.msk [vmem:[#allocation2 + $0x48] sm:$0xff] %vm271_vm6, %v264_v33 }
 0x1ef   :  { %11243 = vst [vmem:[#allocation50_spill] sm:$0xff] %v6542_v2 }
 0x1f3   :  { %v237_v16 = vpop.f32.mrf.mxu1 }
 0x1f4   :  { %v265_v34 = vmul.f32 0.6666667, %v237_v16  ;;  %v6545_v16 = vpop.permute.xlu1 %1559  ;;  %v6547_v31 = vpop.permute.xlu0 %1565 }
 0x1f5   :  { %11244 = vst [vmem:[#allocation51_spill] sm:$0xff] %v6545_v16 }
 0x1f6   :  { %282 = vst.msk [vmem:[#allocation2 + $0x50] sm:$0xff] %vm271_vm6, %v265_v34  ;;  %v6549_v34 = vpop.permute.xlu2 %1571 }
 0x1f7   :  { %11245 = vst [vmem:[#allocation52_spill] sm:$0xff] %v6547_v31 }
 0x1f8   :  { %11246 = vst [vmem:[#allocation53_spill] sm:$0xff] %v6549_v34 }
 0x1fb   :  { %v240_v1 = vpop.f32.mrf.mxu1 }
 0x1fc   :  { %v266_v49 = vmul.f32 0.6666667, %v240_v1  ;;  %v6552_v28 = vpop.permute.xlu1 %1568  ;;  %v6554_v22 = vpop.permute.xlu0 %1574 }
 0x1fd   :  { %11247 = vst [vmem:[#allocation54_spill] sm:$0xff] %v6552_v28  ;;  %v452_v28 = vld [vmem:[#allocation2 + $0x50] sm:$0xff] }
 0x1fe   :  { %283 = vst.msk [vmem:[#allocation2 + $0x58] sm:$0xff] %vm271_vm6, %v266_v49  ;;  %v6556_v26 = vpop.permute.xlu2 %1580 }
 0x1ff   :  { %11248 = vst [vmem:[#allocation55_spill] sm:$0xff] %v6554_v22  ;;  %vm1893_vm0 = vcmp.eq.s32.totalorder %v6556_v26, 1 }
 0x203   :  { %v243_v33 = vpop.f32.mrf.mxu1 }
 0x204   :  { %v267_v35 = vmul.f32 0.6666667, %v243_v33  ;;  %v6559_v33 = vpop.permute.xlu1 %1577  ;;  %v6561_v16 = vpop.permute.xlu0 %1583 }
 0x205   :  { %11249 = vst [vmem:[#allocation56_spill] sm:$0xff] %v6559_v33  ;;  %vm1894_vm8 = vcmp.eq.s32.totalorder %v6561_v16, 1  ;;  %v310_v16 = vld [vmem:[%s10946_s0 + $0x90] sm:$0xff] }
 0x206   :  { %284 = vst.msk [vmem:[#allocation2 + $0x60] sm:$0xff] %vm271_vm6, %v267_v35 }
 0x20b   :  { %v246_v23 = vpop.f32.mrf.mxu1 }
 0x20c   :  { %v268_v1 = vmul.f32 0.6666667, %v246_v23  ;;  %v6564_v23 = vpop.permute.xlu2 %1589  ;;  %v6568_v22 = vpop.permute.xlu0 %1592 }
 0x20e   :  { %285 = vst.msk [vmem:[#allocation2 + $0x68] sm:$0xff] %vm271_vm6, %v268_v1  ;;  %v6566_v1 = vpop.permute.xlu1 %1586 }
 0x213   :  { %v249_v49 = vpop.f32.mrf.mxu1 }
 0x214   :  { %v269_v2 = vmul.f32 0.6666667, %v249_v49  ;;  %v6574_v6 = vpop.permute.xlu0 %1601 }
 0x216   :  { %286 = vst.msk [vmem:[#allocation2 + $0x70] sm:$0xff] %vm271_vm6, %v269_v2  ;;  %v6570_v2 = vpop.permute.xlu2 %1598  ;;  %v6572_v33 = vpop.permute.xlu1 %1595 }
 0x21b   :  { %v252_v35 = vpop.f32.mrf.mxu1 }
 0x21c   :  { %v270_v31 = vmul.f32 0.6666667, %v252_v35  ;;  %v455_v35 = vld [vmem:[#allocation2 + $0x68] sm:$0xff]  ;;  %v6580_v53 = vpop.permute.xlu0 %1610 }
 0x21d   :  { %v456_v49 = vld [vmem:[#allocation2 + $0x70] sm:$0xff] }
 0x21e   :  { %287 = vst.msk [vmem:[#allocation2 + $0x78] sm:$0xff] %vm271_vm6, %v270_v31  ;;  %v454_v31 = vld [vmem:[#allocation2 + $0x60] sm:$0xff]  ;;  %v6578_v18 = vpop.permute.xlu1 %1604 }
 0x224   :  { %v6602_v36 = vpop.permute.xlu0 %1619 }
 0x225   :  { %v457_v34 = vld [vmem:[#allocation2 + $0x78] sm:$0xff]  ;;  %11251 = vst [vmem:[#allocation58_spill] sm:$0xff] %v6602_v36 }
 0x226   :  { %458 = vmatpush.msra.mxu0 %v457_v34  ;;  %4833 = vmatpush.msra.mxu1 %v457_v34  ;;  %v6584_v37 = vpop.permute.xlu1 %1613  ;;  %v6743_v36 = vld [vmem:[%s10946_s0 + $0x38] sm:$0xff] }
 0x227   :  { %4834 = vmatpush.msra.mxu2 %v457_v34  ;;  %4835 = vmatpush.msra.mxu3 %v457_v34  ;;  %v453_v34 = vld [vmem:[#allocation2 + $0x58] sm:$0xff] }
 0x228   :  { %459 = vmatpush.msra.mxu0 %v456_v49  ;;  %4836 = vmatpush.msra.mxu1 %v456_v49 }
 0x229   :  { %4837 = vmatpush.msra.mxu2 %v456_v49  ;;  %4838 = vmatpush.msra.mxu3 %v456_v49  ;;  %v451_v49 = vld [vmem:[#allocation2 + $0x48] sm:$0xff] }
 0x22a   :  { %460 = vmatpush.msra.mxu0 %v455_v35  ;;  %4839 = vmatpush.msra.mxu1 %v455_v35 }
 0x22b   :  { %4840 = vmatpush.msra.mxu2 %v455_v35  ;;  %4841 = vmatpush.msra.mxu3 %v455_v35  ;;  %v6576_v35 = vpop.permute.xlu2 %1607 }
 0x22c   :  { %461 = vmatpush.msra.mxu0 %v454_v31  ;;  %4842 = vmatpush.msra.mxu1 %v454_v31 }
 0x22d   :  { %4843 = vmatpush.msra.mxu2 %v454_v31  ;;  %4844 = vmatpush.msra.mxu3 %v454_v31  ;;  %v450_v31 = vld [vmem:[#allocation2 + $0x40] sm:$0xff] }
 0x22e   :  { %462 = vmatpush.msra.mxu0 %v453_v34  ;;  %4845 = vmatpush.msra.mxu1 %v453_v34  ;;  %v6624_v17 = vpop.permute.xlu1 %1622 }
 0x22f   :  { %4846 = vmatpush.msra.mxu2 %v453_v34  ;;  %4847 = vmatpush.msra.mxu3 %v453_v34  ;;  %v449_v34 = vld [vmem:[#allocation2 + $0x38] sm:$0xff]  ;;  %11253 = vst [vmem:[#allocation60_spill] sm:$0xff] %v6624_v17  ;;  %v334_v17 = vld [vmem:[%s10946_s0 + $0x150] sm:$0xff] }
 0x230   :  { %463 = vmatpush.msra.mxu0 %v452_v28  ;;  %4848 = vmatpush.msra.mxu1 %v452_v28 }
 0x231   :  { %4849 = vmatpush.msra.mxu2 %v452_v28  ;;  %4850 = vmatpush.msra.mxu3 %v452_v28  ;;  %v448_v28 = vld [vmem:[#allocation2 + $0x30] sm:$0xff] }
 0x232   :  { %464 = vmatpush.msra.mxu0 %v451_v49  ;;  %4851 = vmatpush.msra.mxu1 %v451_v49 }
 0x233   :  { %4852 = vmatpush.msra.mxu2 %v451_v49  ;;  %4853 = vmatpush.msra.mxu3 %v451_v49  ;;  %v446_v49 = vld [vmem:[#allocation2 + $0x20] sm:$0xff] }
 0x234   :  { %465 = vmatpush.msra.mxu0 %v450_v31  ;;  %4854 = vmatpush.msra.mxu1 %v450_v31 }
 0x235   :  { %4855 = vmatpush.msra.mxu2 %v450_v31  ;;  %4856 = vmatpush.msra.mxu3 %v450_v31  ;;  %v6582_v31 = vpop.permute.xlu2 %1616 }
 0x236   :  { %466 = vmatpush.msra.mxu0 %v449_v34  ;;  %4857 = vmatpush.msra.mxu1 %v449_v34  ;;  %11250 = vst [vmem:[#allocation57_spill] sm:$0xff] %v6582_v31  ;;  %v301_v31 = vld [vmem:[%s10946_s0 + $0x48] sm:$0xff] }
 0x237   :  { %4858 = vmatpush.msra.mxu2 %v449_v34  ;;  %4859 = vmatpush.msra.mxu3 %v449_v34  ;;  %v445_v34 = vld [vmem:[#allocation2 + $0x18] sm:$0xff] }
 0x238   :  { %467 = vmatpush.msra.mxu0 %v448_v28  ;;  %4860 = vmatpush.msra.mxu1 %v448_v28 }
 0x239   :  { %4861 = vmatpush.msra.mxu2 %v448_v28  ;;  %4862 = vmatpush.msra.mxu3 %v448_v28  ;;  %v444_v28 = vld [vmem:[#allocation2 + $0x10] sm:$0xff] }
 0x23a   :  { %468 = vmatpush.msra.mxu0 %v447_v47  ;;  %4863 = vmatpush.msra.mxu1 %v447_v47 }
 0x23b   :  { %4864 = vmatpush.msra.mxu2 %v447_v47  ;;  %4865 = vmatpush.msra.mxu3 %v447_v47  ;;  %v443_v47 = vld [vmem:[#allocation2 + $0x8] sm:$0xff] }
 0x23c   :  { %469 = vmatpush.msra.mxu0 %v446_v49  ;;  %4866 = vmatpush.msra.mxu1 %v446_v49 }
 0x23d   :  { %4867 = vmatpush.msra.mxu2 %v446_v49  ;;  %4868 = vmatpush.msra.mxu3 %v446_v49  ;;  %v6589_v49 = vld [vmem:[%s10946_s0] sm:$0xff]  ;;  %v6604_v10 = vpop.permute.xlu2 %1625 }
 0x23e   :  { %470 = vmatpush.msra.mxu0 %v445_v34  ;;  %4869 = vmatpush.msra.mxu1 %v445_v34  ;;  %11252 = vst [vmem:[#allocation59_spill] sm:$0xff] %v6604_v10  ;;  %v6722_v10 = vld [vmem:[%s10946_s0 + $0x30] sm:$0xff] }
 0x23f   :  { %4870 = vmatpush.msra.mxu2 %v445_v34  ;;  %4871 = vmatpush.msra.mxu3 %v445_v34  ;;  %v327_v34 = vld [vmem:[%s10946_s0 + $0x118] sm:$0xff] }
 0x240   :  { %471 = vmatpush.msra.mxu0 %v444_v28  ;;  %4872 = vmatpush.msra.mxu1 %v444_v28 }
 0x241   :  { %4873 = vmatpush.msra.mxu2 %v444_v28  ;;  %4874 = vmatpush.msra.mxu3 %v444_v28  ;;  %v6597_v28 = vld [vmem:[%s10946_s0 + $0x220] sm:$0xff] }
 0x242   :  { %472 = vmatpush.msra.mxu0 %v443_v47  ;;  %4875 = vmatpush.msra.mxu1 %v443_v47 }
 0x243   :  { %4876 = vmatpush.msra.mxu2 %v443_v47  ;;  %4877 = vmatpush.msra.mxu3 %v443_v47  ;;  %v414_v47 = vld [vmem:[%s10946_s0 + $0x3d0] sm:$0xff] }
 0x244   :  { %473 = vmatpush.msra.mxu0 %v442_v62  ;;  %4878 = vmatpush.msra.mxu1 %v442_v62 }
 0x245   :  { %4879 = vmatpush.msra.mxu2 %v442_v62  ;;  %4880 = vmatpush.msra.mxu3 %v442_v62  ;;  %v6619_v62 = vld [vmem:[%s10946_s0 + $0x228] sm:$0xff]  ;;  %v6630_v43 = vpop.permute.xlu2 %1634 }
 0x246   :  { %474 = vmatmul.f32.vlgmr.msra.gmra.mxu0 %v6589_v49  ;;  %579 = vmatmul.f32.vlgmr.msra.gmra.mxu1 %v327_v34  ;;  %v415_v34 = vld [vmem:[%s10946_s0 + $0x3d8] sm:$0xff]  ;;  %11255 = vst [vmem:[#allocation62_spill] sm:$0xff] %v6630_v43  ;;  %v6649_v43 = vpop.permute.xlu1 %1631 }
 0x247   :  { %678 = vmatmul.f32.vlgmr.msra.gmra.mxu2 %v6597_v28  ;;  %840 = vmatmul.f32.vlgmr.msra.gmra.mxu3 %v414_v47  ;;  %v6627_v47 = vpop.permute.xlu0 %1628  ;;  %11256 = vst [vmem:[#allocation63_spill] sm:$0xff] %v6649_v43  ;;  %v6681_v43 = vld [vmem:[%s10946_s0 + $0x20] sm:$0xff] }
 0x248   :  { %11254 = vst [vmem:[#allocation61_spill] sm:$0xff] %v6627_v47  ;;  %v6659_v47 = vld [vmem:[%s10946_s0 + $0x18] sm:$0xff] }
 0x24d   :  { %v6654_v52 = vpop.permute.xlu2 %1643 }
 0x24e   :  { %477 = vmatmul.f32.gmra.mxu0 %v6611_v59  ;;  %582 = vmatmul.f32.gmra.mxu1 %v328_v19  ;;  %v6643_v19 = vld [vmem:[%s10946_s0 + $0x230] sm:$0xff]  ;;  %11258 = vst [vmem:[#allocation65_spill] sm:$0xff] %v6654_v52  ;;  %v6674_v52 = vpop.permute.xlu1 %1640 }
 0x24f   :  { %681 = vmatmul.f32.gmra.mxu2 %v6619_v62  ;;  %843 = vmatmul.f32.gmra.mxu3 %v415_v34  ;;  %v416_v34 = vld [vmem:[%s10946_s0 + $0x3e0] sm:$0xff]  ;;  %v6652_v42 = vpop.permute.xlu0 %1637  ;;  %11259 = vst [vmem:[#allocation66_spill] sm:$0xff] %v6674_v52 }
 0x250   :  { %11257 = vst [vmem:[#allocation64_spill] sm:$0xff] %v6652_v42  ;;  %v332_v52 = vld [vmem:[%s10946_s0 + $0x140] sm:$0xff] }
 0x255   :  { %v6686_v48 = vpop.permute.xlu2 %1652 }
 0x256   :  { %480 = vmatmul.f32.gmra.mxu0 %v6635_v61  ;;  %585 = vmatmul.f32.gmra.mxu1 %v329_v56  ;;  %v6667_v56 = vld [vmem:[%s10946_s0 + $0x238] sm:$0xff]  ;;  %11261 = vst [vmem:[#allocation68_spill] sm:$0xff] %v6686_v48  ;;  %v6703_v48 = vld [vmem:[%s10946_s0 + $0x28] sm:$0xff] }
 0x257   :  { %684 = vmatmul.f32.gmra.mxu2 %v6643_v19  ;;  %846 = vmatmul.f32.gmra.mxu3 %v416_v34  ;;  %v417_v34 = vld [vmem:[%s10946_s0 + $0x3e8] sm:$0xff]  ;;  %v6676_v42 = vpop.permute.xlu0 %1646 }
 0x258   :  { %11260 = vst [vmem:[#allocation67_spill] sm:$0xff] %v6676_v42  ;;  %v6698_v42 = vpop.permute.xlu1 %1649 }
 0x259   :  { %11262 = vst [vmem:[#allocation69_spill] sm:$0xff] %v6698_v42 }
 0x25d   :  { %v6716_v42 = vpop.permute.xlu2 %1661 }
 0x25e   :  { %483 = vmatmul.f32.gmra.mxu0 %v6659_v47  ;;  %588 = vmatmul.f32.gmra.mxu1 %v330_v3  ;;  %v6691_v3 = vld [vmem:[%s10946_s0 + $0x240] sm:$0xff]  ;;  %11264 = vst [vmem:[#allocation71_spill] sm:$0xff] %v6716_v42 }
 0x25f   :  { %687 = vmatmul.f32.gmra.mxu2 %v6667_v56  ;;  %849 = vmatmul.f32.gmra.mxu3 %v417_v34  ;;  %v418_v34 = vld [vmem:[%s10946_s0 + $0x3f0] sm:$0xff]  ;;  %v420_v42 = vld [vmem:[%s10946_s0 + $0x400] sm:$0xff] }
 0x265   :  { %v6738_v30 = vpop.permute.xlu2 %1670 }
 0x266   :  { %486 = vmatmul.f32.gmra.mxu0 %v6681_v43  ;;  %591 = vmatmul.f32.gmra.mxu1 %v331_v27  ;;  %v419_v27 = vld [vmem:[%s10946_s0 + $0x3f8] sm:$0xff]  ;;  %11267 = vst [vmem:[#allocation74_spill] sm:$0xff] %v6738_v30 }
 0x267   :  { %690 = vmatmul.f32.gmra.mxu2 %v6691_v3  ;;  %852 = vmatmul.f32.gmra.mxu3 %v418_v34  ;;  %v6714_v34 = vpop.permute.xlu0 %1655  ;;  %v371_v30 = vld [vmem:[%s10946_s0 + $0x278] sm:$0xff] }
 0x268   :  { %11263 = vst [vmem:[#allocation70_spill] sm:$0xff] %v6714_v34  ;;  %v366_v34 = vld [vmem:[%s10946_s0 + $0x250] sm:$0xff]  ;;  %4504 = vmatpush.msra.mxu0 %v371_v30 }
 0x26a   :  { %4505 = vmatpush.msra.mxu0 %v370_v46 }
 0x26d   :  { %v6765_v12 = vpop.permute.xlu2 %1679 }
 0x26e   :  { %489 = vmatmul.f32.gmra.mxu0 %v6703_v48  ;;  %594 = vmatmul.f32.gmra.mxu1 %v332_v52  ;;  %v6733_v52 = vpop.permute.xlu1 %1658  ;;  %11270 = vst [vmem:[#allocation77_spill] sm:$0xff] %v6765_v12  ;;  %v422_v12 = vld [vmem:[%s10946_s0 + $0x410] sm:$0xff] }
 0x26f   :  { %693 = vmatmul.f32.gmra.mxu2 %v365_v38  ;;  %855 = vmatmul.f32.gmra.mxu3 %v419_v27  ;;  %11265 = vst [vmem:[#allocation72_spill] sm:$0xff] %v6733_v52  ;;  %v6736_v27 = vpop.permute.xlu0 %1664  ;;  %v367_v52 = vld [vmem:[%s10946_s0 + $0x258] sm:$0xff] }
 0x270   :  { %11266 = vst [vmem:[#allocation73_spill] sm:$0xff] %v6736_v27 }
 0x275   :  { %v6795_v5 = vpop.permute.xlu2 %1688 }
 0x276   :  { %492 = vmatmul.f32.gmra.mxu0 %v6722_v10  ;;  %597 = vmatmul.f32.gmra.mxu1 %v333_v25  ;;  %v421_v25 = vld [vmem:[%s10946_s0 + $0x408] sm:$0xff] }
 0x277   :  { %696 = vmatmul.f32.gmra.mxu2 %v366_v34  ;;  %858 = vmatmul.f32.gmra.mxu3 %v420_v42  ;;  %v6755_v42 = vpop.permute.xlu1 %1667  ;;  %v6760_v27 = vpop.permute.xlu0 %1673 }
 0x278   :  { %11268 = vst [vmem:[#allocation75_spill] sm:$0xff] %v6755_v42  ;;  %v368_v42 = vld [vmem:[%s10946_s0 + $0x260] sm:$0xff] }
 0x279   :  { %11269 = vst [vmem:[#allocation76_spill] sm:$0xff] %v6760_v27  ;;  %v369_v27 = vld [vmem:[%s10946_s0 + $0x268] sm:$0xff] }
 0x27a   :  { %4506 = vmatpush.msra.mxu0 %v369_v27 }
 0x27c   :  { %4507 = vmatpush.msra.mxu0 %v368_v42 }
 0x27e   :  { %495 = vmatmul.f32.gmra.mxu0 %v6743_v36  ;;  %600 = vmatmul.f32.gmra.mxu1 %v334_v17  ;;  %v6770_v17 = vld [vmem:[%s10946_s0 + $0x40] sm:$0xff] }
 0x27f   :  { %699 = vmatmul.f32.gmra.mxu2 %v367_v52  ;;  %861 = vmatmul.f32.gmra.mxu3 %v421_v25  ;;  %v335_v25 = vld [vmem:[%s10946_s0 + $0x158] sm:$0xff]  ;;  %v6785_v24 = vpop.permute.xlu1 %1676  ;;  %v6787_v21 = vpop.permute.xlu0 %1682 }
 0x280   :  { %4508 = vmatpush.msra.mxu0 %v367_v52 }
 0x282   :  { %4509 = vmatpush.msra.mxu0 %v366_v34  ;;  %v424_v34 = vld [vmem:[%s10946_s0 + $0x420] sm:$0xff] }
 0x284   :  { %4510 = vmatpush.msra.mxu0 %v365_v38  ;;  %v6815_v38 = vpop.permute.xlu2 %1697 }
 0x285   :  { %11271 = vst [vmem:[#allocation78_spill] sm:$0xff] %v6815_v38 }
 0x286   :  { %498 = vmatmul.f32.gmra.mxu0 %v6770_v17  ;;  %603 = vmatmul.f32.gmra.mxu1 %v335_v25  ;;  %v337_v25 = vld [vmem:[%s10946_s0 + $0x168] sm:$0xff] }
 0x287   :  { %702 = vmatmul.f32.gmra.mxu2 %v368_v42  ;;  %864 = vmatmul.f32.gmra.mxu3 %v422_v12  ;;  %v423_v12 = vld [vmem:[%s10946_s0 + $0x418] sm:$0xff]  ;;  %v6801_v52 = vpop.permute.xlu1 %1685  ;;  %v302_v42 = vld [vmem:[%s10946_s0 + $0x50] sm:$0xff] }
 0x288   :  { %4511 = vmatpush.msra.mxu0 %v6691_v3  ;;  %v6820_v3 = vld [vmem:[%s10946_s0 + $0x78] sm:$0xff] }
 0x289   :  { %4424 = vmatpush.msra.mxu3 %v6820_v3 }
 0x28a   :  { %4512 = vmatpush.msra.mxu0 %v6667_v56  ;;  %v306_v56 = vld [vmem:[%s10946_s0 + $0x70] sm:$0xff] }
 0x28b   :  { %4425 = vmatpush.msra.mxu3 %v306_v56 }
 0x28c   :  { %4513 = vmatpush.msra.mxu0 %v6643_v19  ;;  %v425_v19 = vld [vmem:[%s10946_s0 + $0x428] sm:$0xff]  ;;  %v6848_v38 = vpop.permute.xlu2 %1706 }
 0x28d   :  { %11273 = vst [vmem:[#allocation80_spill] sm:$0xff] %v6848_v38 }
 0x28e   :  { %501 = vmatmul.f32.gmra.mxu0 %v301_v31  ;;  %606 = vmatmul.f32.gmra.mxu1 %v336_v14  ;;  %v6813_v14 = vpop.permute.xlu0 %1691 }
 0x28f   :  { %705 = vmatmul.f32.gmra.mxu2 %v369_v27  ;;  %867 = vmatmul.f32.gmra.mxu3 %v423_v12  ;;  %v338_v27 = vld [vmem:[%s10946_s0 + $0x170] sm:$0xff]  ;;  %v305_v12 = vld [vmem:[%s10946_s0 + $0x68] sm:$0xff] }
 0x290   :  { %4514 = vmatpush.msra.mxu0 %v6619_v62  ;;  %4426 = vmatpush.msra.mxu3 %v305_v12  ;;  %v6841_v62 = vpop.permute.xlu1 %1694 }
 0x292   :  { %4515 = vmatpush.msra.mxu0 %v6597_v28  ;;  %v339_v28 = vld [vmem:[%s10946_s0 + $0x178] sm:$0xff] }
 0x294   :  { %v6863_v38 = vpop.permute.xlu2 %1715 }
 0x296   :  { %504 = vmatmul.f32.gmra.mxu0 %v302_v42  ;;  %609 = vmatmul.f32.gmra.mxu1 %v337_v25  ;;  %v6843_v25 = vpop.permute.xlu0 %1700 }
 0x297   :  { %708 = vmatmul.f32.gmra.mxu2 %v370_v46  ;;  %870 = vmatmul.f32.gmra.mxu3 %v424_v34  ;;  %v303_v46 = vld [vmem:[%s10946_s0 + $0x58] sm:$0xff]  ;;  %11272 = vst [vmem:[#allocation79_spill] sm:$0xff] %v6843_v25  ;;  %v304_v34 = vld [vmem:[%s10946_s0 + $0x60] sm:$0xff] }
 0x298   :  { %4427 = vmatpush.msra.mxu3 %v304_v34  ;;  %v340_v25 = vld [vmem:[%s10946_s0 + $0x180] sm:$0xff] }
 0x29a   :  { %4428 = vmatpush.msra.mxu3 %v303_v46 }
 0x29c   :  { %4429 = vmatpush.msra.mxu3 %v302_v42  ;;  %v373_v42 = vld [vmem:[%s10946_s0 + $0x288] sm:$0xff] }
 0x29e   :  { %507 = vmatmul.f32.gmra.mxu0 %v303_v46  ;;  %612 = vmatmul.f32.gmra.mxu1 %v338_v27  ;;  %v372_v27 = vld [vmem:[%s10946_s0 + $0x280] sm:$0xff]  ;;  %v6861_v46 = vpop.permute.xlu0 %1709 }
 0x29f   :  { %711 = vmatmul.f32.gmra.mxu2 %v371_v30  ;;  %873 = vmatmul.f32.gmra.mxu3 %v425_v19  ;;  %v426_v30 = vld [vmem:[%s10946_s0 + $0x430] sm:$0xff]  ;;  %v6859_v19 = vpop.permute.xlu1 %1703 }
 0x2a0   :  { %4430 = vmatpush.msra.mxu3 %v301_v31 }
 0x2a2   :  { %4431 = vmatpush.msra.mxu3 %v6770_v17 }
 0x2a4   :  { %4432 = vmatpush.msra.mxu3 %v6743_v36  ;;  %v374_v36 = vld [vmem:[%s10946_s0 + $0x290] sm:$0xff] }
 0x2a6   :  { %510 = vmatmul.f32.gmra.mxu0 %v304_v34  ;;  %615 = vmatmul.f32.gmra.mxu1 %v339_v28  ;;  %v427_v34 = vld [vmem:[%s10946_s0 + $0x438] sm:$0xff]  ;;  %v6880_v17 = vpop.permute.xlu0 %1718  ;;  %v341_v28 = vld [vmem:[%s10946_s0 + $0x188] sm:$0xff] }
 0x2a7   :  { %714 = vmatmul.f32.gmra.mxu2 %v372_v27  ;;  %876 = vmatmul.f32.gmra.mxu3 %v426_v30  ;;  %v6877_v31 = vpop.permute.xlu1 %1712  ;;  %v6885_v27 = vpop.permute.xlu2 %1724 }
 0x2a8   :  { %4433 = vmatpush.msra.mxu3 %v6722_v10  ;;  %11274 = vst [vmem:[#allocation81_spill] sm:$0xff] %v6885_v27  ;;  %v428_v10 = vld [vmem:[%s10946_s0 + $0x440] sm:$0xff] }
 0x2aa   :  { %4434 = vmatpush.msra.mxu3 %v6703_v48 }
 0x2ac   :  { %4435 = vmatpush.msra.mxu3 %v6681_v43  ;;  %v429_v43 = vld [vmem:[%s10946_s0 + $0x448] sm:$0xff] }
 0x2ae   :  { %513 = vmatmul.f32.gmra.mxu0 %v305_v12  ;;  %618 = vmatmul.f32.gmra.mxu1 %v340_v25  ;;  %v342_v12 = vld [vmem:[%s10946_s0 + $0x190] sm:$0xff]  ;;  %v375_v25 = vld [vmem:[%s10946_s0 + $0x298] sm:$0xff] }
 0x2af   :  { %717 = vmatmul.f32.gmra.mxu2 %v373_v42  ;;  %879 = vmatmul.f32.gmra.mxu3 %v427_v34  ;;  %v6896_v48 = vpop.permute.xlu1 %1721  ;;  %v308_v42 = vld [vmem:[%s10946_s0 + $0x80] sm:$0xff] }
 0x2b0   :  { %4436 = vmatpush.msra.mxu3 %v6659_v47  ;;  %11275 = vst [vmem:[#allocation82_spill] sm:$0xff] %v6896_v48  ;;  %v6910_v47 = vpop.permute.xlu2 %1733 }
 0x2b1   :  { %11276 = vst [vmem:[#allocation83_spill] sm:$0xff] %v6910_v47 }
 0x2b2   :  { %4437 = vmatpush.msra.mxu3 %v6635_v61  ;;  %v2125_v61 = vld [vmem:[%s10948_s2] sm:$0xff] }
 0x2b3   :  { %vm2275_vm10 = vcmp.eq.f32.partialorder %v2125_v61, 0.0 }
 0x2b4   :  { %4438 = vmatpush.msra.mxu3 %v6611_v59 }
 0x2b6   :  { %516 = vmatmul.f32.gmra.mxu0 %v306_v56  ;;  %621 = vmatmul.f32.gmra.mxu1 %v341_v28  ;;  %v6908_v56 = vpop.permute.xlu0 %1727  ;;  %v2160_v28 = vld [vmem:[%s10948_s2 + $0x118] sm:$0xff] }
 0x2b7   :  { %720 = vmatmul.f32.gmra.mxu2 %v374_v36  ;;  %882 = vmatmul.f32.gmra.mxu3 %v428_v10  ;;  %v6935_v36 = vpop.permute.xlu1 %1730  ;;  %vm2310_vm13 = vcmp.eq.f32.partialorder %v2160_v28, 0.0 }
 0x2b8   :  { %4439 = vmatpush.msra.mxu3 %v6589_v49  ;;  %v6930_v49 = vld [vmem:[%s10946_s0 + $0x2a0] sm:$0xff]  ;;  %11277 = vst [vmem:[#allocation84_spill] sm:$0xff] %v6935_v36 }
 0x2be   :  { %519 = vmatmul.f32.gmra.mxu0 %v6820_v3  ;;  %624 = vmatmul.f32.gmra.mxu1 %v342_v12  ;;  %v343_v3 = vld [vmem:[%s10946_s0 + $0x198] sm:$0xff]  ;;  %v2193_v12 = vld [vmem:[%s10948_s2 + $0x220] sm:$0xff]  ;;  %v6950_v61 = vpop.permute.xlu0 %1736 }
 0x2bf   :  { %723 = vmatmul.f32.gmra.mxu2 %v375_v25  ;;  %885 = vmatmul.f32.gmra.mxu3 %v429_v43  ;;  %v2247_v25 = vld [vmem:[%s10948_s2 + $0x3d0] sm:$0xff]  ;;  %11279 = vst [vmem:[#allocation86_spill] sm:$0xff] %v6950_v61  ;;  %vm2343_vm2 = vcmp.eq.f32.partialorder %v2193_v12, 0.0  ;;  %v6974_v12 = vld [vmem:[%s10946_s0 + $0x2a8] sm:$0xff] }
 0x2c0   :  { %vm2397_vm3 = vcmp.eq.f32.partialorder %v2247_v25, 0.0  ;;  %v431_v25 = vld [vmem:[%s10946_s0 + $0x458] sm:$0xff] }
 0x2c3   :  { %v475_v30 = vpop.f32.mrf.mxu0  ;;  %v580_v59 = vpop.f32.mrf.mxu1 }
 0x2c4   :  { %v1975_v34 = vsel %vm1825_vm11, -1e+08, %v475_v30  ;;  %v2010_v30 = vsel %vm1860_vm12, -1e+08, %v580_v59 }
 0x2c5   :  { %v6937_v10 = vsel %vm2275_vm10, -1e+30, %v1975_v34  ;;  %v6963_v59 = vsel %vm2310_vm13, -1e+30, %v2010_v30  ;;  %vm1827_vm13 = vcmp.eq.s32.totalorder %v6255_v39, 1  ;;  %v311_v39 = vld [vmem:[%s10946_s0 + $0x98] sm:$0xff] }
 0x2c6   :  { %11278 = vst [vmem:[#allocation85_spill] sm:$0xff] %v6937_v10  ;;  %522 = vmatmul.f32.gmra.mxu0 %v308_v42  ;;  %627 = vmatmul.f32.gmra.mxu1 %v343_v3  ;;  %v6948_v43 = vsel %vm271_vm6, %v6937_v10, -inf  ;;  %v2161_v42 = vld [vmem:[%s10948_s2 + $0x120] sm:$0xff]  ;;  %v1743_v3 = vpop.permute.xlu2 %1742 }
 0x2c7   :  { %726 = vmatmul.f32.gmra.mxu2 %v6930_v49  ;;  %888 = vmatmul.f32.gmra.mxu3 %v430_v29  ;;  %vm1947_vm1 = vcmp.eq.s32.totalorder %v1743_v3, 1  ;;  %11280 = vst [vmem:[#allocation87_spill] sm:$0xff] %v6963_v59  ;;  %v309_v29 = vld [vmem:[%s10946_s0 + $0x88] sm:$0xff]  ;;  %v344_v10 = vld [vmem:[%s10946_s0 + $0x1a0] sm:$0xff]  ;;  %vm2311_vm5 = vcmp.eq.f32.partialorder %v2161_v42, 0.0  ;;  %v1746_v42 = vpop.permute.xlu0 %1745 }
 0x2c8   :  { %2577 = vmax.xlane.f32.xlu0 %v6948_v43  ;;  %vm1948_vm10 = vcmp.eq.s32.totalorder %v1746_v42, 1 }
 0x2ca   :  { %v679_v34 = vpop.f32.mrf.mxu2  ;;  %v841_v28 = vpop.f32.mrf.mxu3 }
 0x2cb   :  { %v2043_v61 = vsel %vm1893_vm0, -1e+08, %v679_v34  ;;  %v2097_v47 = vsel %vm1947_vm1, -1e+08, %v841_v28  ;;  %v478_v26 = vpop.f32.mrf.mxu0  ;;  %v583_v3 = vpop.f32.mrf.mxu1  ;;  %v6987_v34 = vsel %vm271_vm6, %v6963_v59, -inf  ;;  %v345_v59 = vld [vmem:[%s10946_s0 + $0x1a8] sm:$0xff] }
 0x2cc   :  { %v6979_v30 = vsel %vm2343_vm2, -1e+30, %v2043_v61  ;;  %v6981_v36 = vsel %vm2397_vm3, -1e+30, %v2097_v47  ;;  %v1976_v27 = vsel %vm1826_vm14, -1e+08, %v478_v26 }
 0x2cd   :  { %11281 = vst [vmem:[#allocation88_spill] sm:$0xff] %v6979_v30  ;;  %v6991_v28 = vsel %vm271_vm6, %v6979_v30, -inf  ;;  %v2011_v48 = vsel %vm1861_vm15, -1e+08, %v583_v3  ;;  %v6998_v47 = vsel %vm2276_vm4, -1e+30, %v1976_v27  ;;  %v7006_v30 = vpop.permute.xlu1 %1739 }
 0x2ce   :  { %11282 = vst [vmem:[#allocation89_spill] sm:$0xff] %v6981_v36  ;;  %v3178_v61 = vmax.f32 %v6991_v28, %v6987_v34  ;;  %525 = vmatmul.f32.gmra.mxu0 %v309_v29  ;;  %630 = vmatmul.f32.gmra.mxu1 %v344_v10  ;;  %v7001_v44 = vsel %vm2311_vm5, -1e+30, %v2011_v48  ;;  %v2248_v26 = vld [vmem:[%s10948_s2 + $0x3d8] sm:$0xff]  ;;  %v7010_v50 = vsel %vm271_vm6, %v6981_v36, -inf  ;;  %v2194_v48 = vld [vmem:[%s10948_s2 + $0x228] sm:$0xff] }
 0x2cf   :  { %11283 = vst [vmem:[#allocation90_spill] sm:$0xff] %v6987_v34  ;;  %729 = vmatmul.f32.gmra.mxu2 %v6974_v12  ;;  %891 = vmatmul.f32.gmra.mxu3 %v431_v25  ;;  %v2684_v27 = vsel %vm271_vm6, %v7001_v44, -inf  ;;  %v2162_v10 = vld [vmem:[%s10948_s2 + $0x128] sm:$0xff]  ;;  %v7026_v29 = vsel %vm271_vm6, %v6998_v47, -inf  ;;  %vm2398_vm9 = vcmp.eq.f32.partialorder %v2248_v26, 0.0  ;;  %vm2344_vm11 = vcmp.eq.f32.partialorder %v2194_v48, 0.0 }
 0x2d0   :  { %11284 = vst [vmem:[#allocation91_spill] sm:$0xff] %v6991_v28  ;;  %v3180_v41 = vmax.f32 %v7010_v50, %v3178_v61  ;;  %2685 = vmax.xlane.f32.xlu2 %v2684_v27  ;;  %vm2312_vm12 = vcmp.eq.f32.partialorder %v2162_v10, 0.0  ;;  %v432_v48 = vld [vmem:[%s10946_s0 + $0x460] sm:$0xff]  ;;  %vm1863_vm14 = vcmp.eq.s32.totalorder %v6484_v51, 1  ;;  %vm1895_vm15 = vcmp.eq.s32.totalorder %v6566_v1, 1 }
 0x2d1   :  { %11285 = vst [vmem:[#allocation92_spill] sm:$0xff] %v6998_v47  ;;  %vm1828_vm5 = vcmp.eq.s32.totalorder %v6283_v55, 1  ;;  %v1752_v55 = vpop.permute.xlu2 %1751 }
 0x2d2   :  { %11286 = vst [vmem:[#allocation93_spill] sm:$0xff] %v7001_v44  ;;  %v3181_v3 = vmax.f32 %v7026_v29, %v3180_v41  ;;  %v682_v25 = vpop.f32.mrf.mxu2  ;;  %v844_v28 = vpop.f32.mrf.mxu3 }
 0x2d3   :  { %11287 = vst [vmem:[#allocation94_spill] sm:$0xff] %v7010_v50  ;;  %v2044_v34 = vsel %vm1894_vm8, -1e+08, %v682_v25  ;;  %v2098_v61 = vsel %vm1948_vm10, -1e+08, %v844_v28  ;;  %v481_v50 = vpop.f32.mrf.mxu0  ;;  %v586_v36 = vpop.f32.mrf.mxu1  ;;  %v7042_v28 = vld [vmem:[%s10946_s0 + $0x2b0] sm:$0xff] }
 0x2d4   :  { %11288 = vst [vmem:[#allocation95_spill] sm:$0xff] %v7026_v29  ;;  %v3179_v26 = vmax.f32 %v2684_v27, %v3181_v3  ;;  %v7035_v42 = vsel %vm2398_vm9, -1e+30, %v2098_v61  ;;  %v2012_v41 = vsel %vm1862_vm7, -1e+08, %v586_v36  ;;  %v2249_v36 = vld [vmem:[%s10948_s2 + $0x3e0] sm:$0xff] }
 0x2d5   :  { %11289 = vst [vmem:[#allocation96_spill] sm:$0xff] %v7035_v42  ;;  %v7047_v10 = vsel %vm2344_vm11, -1e+30, %v2044_v34  ;;  %v7049_v25 = vsel %vm2312_vm12, -1e+30, %v2012_v41  ;;  %v2127_v3 = vld [vmem:[%s10948_s2 + $0x10] sm:$0xff] }
 0x2d6   :  { %11290 = vst [vmem:[#allocation97_spill] sm:$0xff] %v7047_v10  ;;  %v3183_v27 = vmax.f32 %v3179_v26, %v6948_v43  ;;  %528 = vmatmul.f32.gmra.mxu0 %v310_v16  ;;  %633 = vmatmul.f32.gmra.mxu1 %v345_v59  ;;  %v2687_v60 = vsel %vm271_vm6, %v7049_v25, -inf  ;;  %v7062_v34 = vsel %vm271_vm6, %v7035_v42, -inf  ;;  %v2783_v43 = vsel %vm271_vm6, %v7047_v10, -inf  ;;  %v2163_v59 = vld [vmem:[%s10948_s2 + $0x130] sm:$0xff]  ;;  %v1749_v26 = vpop.permute.xlu1 %1748 }
 0x2d7   :  { %11291 = vst [vmem:[#allocation98_spill] sm:$0xff] %v7049_v25  ;;  %732 = vmatmul.f32.gmra.mxu2 %v7042_v28  ;;  %894 = vmatmul.f32.gmra.mxu3 %v432_v48  ;;  %v2195_v61 = vld [vmem:[%s10948_s2 + $0x230] sm:$0xff]  ;;  %v1977_v41 = vsel %vm1827_vm13, -1e+08, %v481_v50  ;;  %vm2399_vm0 = vcmp.eq.f32.partialorder %v2249_v36, 0.0  ;;  %vm2277_vm1 = vcmp.eq.f32.partialorder %v2127_v3, 0.0 }
 0x2d8   :  { %11292 = vst [vmem:[#allocation99_spill] sm:$0xff] %v7062_v34  ;;  %v3184_v16 = vmax.f32 %v7062_v34, %v3183_v27  ;;  %2784 = vmax.xlane.f32.xlu2 %v2783_v43  ;;  %2688 = vmax.xlane.f32.xlu0 %v2687_v60  ;;  %vm1949_vm2 = vcmp.eq.s32.totalorder %v1749_v26, 1  ;;  %vm2313_vm3 = vcmp.eq.f32.partialorder %v2163_v59, 0.0  ;;  %v346_v27 = vld [vmem:[%s10946_s0 + $0x1b0] sm:$0xff]  ;;  %vm2345_vm4 = vcmp.eq.f32.partialorder %v2195_v61, 0.0  ;;  %v433_v59 = vld [vmem:[%s10946_s0 + $0x468] sm:$0xff] }
 0x2d9   :  { %v2196_v3 = vld [vmem:[%s10948_s2 + $0x238] sm:$0xff]  ;;  %vm1829_vm8 = vcmp.eq.s32.totalorder %v6242_v32, 1  ;;  %vm1896_vm11 = vcmp.eq.s32.totalorder %v6564_v23, 1  ;;  %vm1950_vm12 = vcmp.eq.s32.totalorder %v1752_v55, 1  ;;  %v2251_v32 = vld [vmem:[%s10948_s2 + $0x3f0] sm:$0xff] }
 0x2da   :  { %v3182_v48 = vmax.f32 %v2783_v43, %v3184_v16  ;;  %v685_v29 = vpop.f32.mrf.mxu2  ;;  %v847_v42 = vpop.f32.mrf.mxu3  ;;  %v7086_v43 = vld [vmem:[%s10946_s0 + $0x2b8] sm:$0xff]  ;;  %vm2346_vm9 = vcmp.eq.f32.partialorder %v2196_v3, 0.0 }
 0x2db   :  { %v2045_v34 = vsel %vm1895_vm15, -1e+08, %v685_v29  ;;  %v2099_v1 = vsel %vm1949_vm2, -1e+08, %v847_v42  ;;  %v484_v10 = vpop.f32.mrf.mxu0  ;;  %v589_v50 = vpop.f32.mrf.mxu1  ;;  %v7097_v29 = vsel %vm2277_vm1, -1e+30, %v1977_v41 }
 0x2dc   :  { %v3186_v16 = vmax.f32 %v3182_v48, %v2687_v60  ;;  %v7092_v26 = vsel %vm2399_vm0, -1e+30, %v2099_v1  ;;  %v2013_v61 = vsel %vm1863_vm14, -1e+08, %v589_v50  ;;  %11294 = vst [vmem:[#allocation101_spill] sm:$0xff] %v7097_v29  ;;  %v2128_v60 = vld [vmem:[%s10948_s2 + $0x18] sm:$0xff] }
 0x2dd   :  { %11293 = vst [vmem:[#allocation100_spill] sm:$0xff] %v7092_v26  ;;  %v7101_v42 = vsel %vm271_vm6, %v7092_v26, -inf  ;;  %v7103_v44 = vsel %vm2313_vm3, -1e+30, %v2013_v61  ;;  %v7105_v25 = vsel %vm2345_vm4, -1e+30, %v2045_v34 }
 0x2de   :  { %11295 = vst [vmem:[#allocation102_spill] sm:$0xff] %v7101_v42  ;;  %v3187_v36 = vmax.f32 %v7101_v42, %v3186_v16  ;;  %v7113_v51 = vsel %vm271_vm6, %v7103_v44, -inf  ;;  %531 = vmatmul.f32.gmra.mxu0 %v311_v39  ;;  %636 = vmatmul.f32.gmra.mxu1 %v346_v27  ;;  %v2250_v34 = vld [vmem:[%s10948_s2 + $0x3e8] sm:$0xff]  ;;  %v2786_v41 = vsel %vm271_vm6, %v7105_v25, -inf  ;;  %v2582_v48 = vsel %vm271_vm6, %v7097_v29, -inf  ;;  %v2129_v39 = vld [vmem:[%s10948_s2 + $0x20] sm:$0xff] }
 0x2df   :  { %11296 = vst [vmem:[#allocation103_spill] sm:$0xff] %v7103_v44  ;;  %735 = vmatmul.f32.gmra.mxu2 %v7086_v43  ;;  %897 = vmatmul.f32.gmra.mxu3 %v433_v59  ;;  %v1978_v27 = vsel %vm1828_vm5, -1e+08, %v484_v10  ;;  %vm2278_vm7 = vcmp.eq.f32.partialorder %v2128_v60, 0.0  ;;  %vm2400_vm10 = vcmp.eq.f32.partialorder %v2250_v34, 0.0  ;;  %v312_v50 = vld [vmem:[%s10946_s0 + $0xa0] sm:$0xff] }
 0x2e0   :  { %11297 = vst [vmem:[#allocation104_spill] sm:$0xff] %v7105_v25  ;;  %v3188_v1 = vmax.f32 %v7113_v51, %v3187_v36  ;;  %2787 = vmax.xlane.f32.xlu0 %v2786_v41  ;;  %2583 = vmax.xlane.f32.xlu2 %v2582_v48  ;;  %v347_v61 = vld [vmem:[%s10946_s0 + $0x1b8] sm:$0xff]  ;;  %v7142_v36 = vld [vmem:[%s10946_s0 + $0x2c0] sm:$0xff]  ;;  %v434_v42 = vld [vmem:[%s10946_s0 + $0x470] sm:$0xff]  ;;  %vm2279_vm13 = vcmp.eq.f32.partialorder %v2129_v39, 0.0  ;;  %vm1864_vm14 = vcmp.eq.s32.totalorder %v6489_v63, 1 }
 0x2e1   :  { %11298 = vst [vmem:[#allocation105_spill] sm:$0xff] %v7113_v51  ;;  %v2164_v60 = vld [vmem:[%s10948_s2 + $0x138] sm:$0xff]  ;;  %v2130_v34 = vld [vmem:[%s10948_s2 + $0x28] sm:$0xff]  ;;  %vm1830_vm0 = vcmp.eq.s32.totalorder %v6266_v45, 1  ;;  %vm1865_vm1 = vcmp.eq.s32.totalorder %v6494_v8, 1  ;;  %vm2401_vm2 = vcmp.eq.f32.partialorder %v2251_v32, 0.0 }
 0x2e2   :  { %v3185_v59 = vmax.f32 %v2786_v41, %v3188_v1  ;;  %v688_v16 = vpop.f32.mrf.mxu2  ;;  %v850_v10 = vpop.f32.mrf.mxu3  ;;  %v7148_v1 = vsel %vm2278_vm7, -1e+30, %v1978_v27  ;;  %vm2314_vm15 = vcmp.eq.f32.partialorder %v2164_v60, 0.0  ;;  %vm2280_vm4 = vcmp.eq.f32.partialorder %v2130_v34, 0.0  ;;  %v2252_v8 = vld [vmem:[%s10948_s2 + $0x3f8] sm:$0xff]  ;;  %v2197_v32 = vld [vmem:[%s10948_s2 + $0x240] sm:$0xff] }
 0x2e3   :  { %v2046_v51 = vsel %vm1896_vm11, -1e+08, %v688_v16  ;;  %v2100_v23 = vsel %vm1950_vm12, -1e+08, %v850_v10  ;;  %v487_v55 = vpop.f32.mrf.mxu0  ;;  %v592_v41 = vpop.f32.mrf.mxu1  ;;  %11299 = vst [vmem:[#allocation106_spill] sm:$0xff] %v7148_v1  ;;  %vm1866_vm7 = vcmp.eq.s32.totalorder %v6491_v0, 1 }
 0x2e4   :  { %v3189_v26 = vmax.f32 %v3185_v59, %v2582_v48  ;;  %v7151_v25 = vsel %vm2346_vm9, -1e+30, %v2046_v51  ;;  %v7154_v44 = vsel %vm2400_vm10, -1e+30, %v2100_v23  ;;  %v1979_v47 = vsel %vm1829_vm8, -1e+08, %v487_v55 }
 0x2e5   :  { %11300 = vst [vmem:[#allocation107_spill] sm:$0xff] %v7151_v25  ;;  %v7160_v39 = vsel %vm271_vm6, %v7151_v25, -inf  ;;  %v7162_v16 = vsel %vm2279_vm13, -1e+30, %v1979_v47  ;;  %v7176_v47 = vsel %vm271_vm6, %v7154_v44, -inf  ;;  %v2165_v48 = vld [vmem:[%s10948_s2 + $0x140] sm:$0xff] }
 0x2e6   :  { %11301 = vst [vmem:[#allocation108_spill] sm:$0xff] %v7154_v44  ;;  %v3190_v3 = vmax.f32 %v7160_v39, %v3189_v26  ;;  %534 = vmatmul.f32.gmra.mxu0 %v312_v50  ;;  %639 = vmatmul.f32.gmra.mxu1 %v347_v61  ;;  %v2588_v51 = vsel %vm271_vm6, %v7162_v16, -inf  ;;  %v2585_v26 = vsel %vm271_vm6, %v7148_v1, -inf  ;;  %v2014_v27 = vsel %vm1864_vm14, -1e+08, %v592_v41  ;;  %v313_v61 = vld [vmem:[%s10946_s0 + $0xa8] sm:$0xff] }
 0x2e7   :  { %11302 = vst [vmem:[#allocation109_spill] sm:$0xff] %v7160_v39  ;;  %738 = vmatmul.f32.gmra.mxu2 %v7142_v36  ;;  %900 = vmatmul.f32.gmra.mxu3 %v434_v42  ;;  %v1755_v42 = vpop.permute.xlu0 %1754  ;;  %v348_v23 = vld [vmem:[%s10946_s0 + $0x1c0] sm:$0xff]  ;;  %vm2315_vm5 = vcmp.eq.f32.partialorder %v2165_v48, 0.0  ;;  %v7205_v34 = vsel %vm2314_vm15, -1e+30, %v2014_v27  ;;  %v7235_v27 = vpop.permute.xlu2 %1760  ;;  %vm1897_vm8 = vcmp.eq.s32.totalorder %v6568_v22, 1 }
 0x2e8   :  { %11303 = vst [vmem:[#allocation110_spill] sm:$0xff] %v7176_v47  ;;  %v3191_v63 = vmax.f32 %v7176_v47, %v3190_v3  ;;  %2586 = vmax.xlane.f32.xlu2 %v2585_v26  ;;  %2589 = vmax.xlane.f32.xlu0 %v2588_v51  ;;  %vm1951_vm3 = vcmp.eq.s32.totalorder %v1755_v42, 1  ;;  %v7199_v42 = vld [vmem:[%s10946_s0 + $0x2c8] sm:$0xff]  ;;  %vm1898_vm9 = vcmp.eq.s32.totalorder %v6572_v33, 1  ;;  %vm2402_vm10 = vcmp.eq.f32.partialorder %v2252_v8, 0.0 }
 0x2e9   :  { %11304 = vst [vmem:[#allocation111_spill] sm:$0xff] %v7205_v34  ;;  %vm2347_vm11 = vcmp.eq.f32.partialorder %v2197_v32, 0.0  ;;  %v349_v22 = vld [vmem:[%s10946_s0 + $0x1c8] sm:$0xff]  ;;  %v2199_v32 = vld [vmem:[%s10948_s2 + $0x250] sm:$0xff]  ;;  %vm1831_vm15 = vcmp.eq.s32.totalorder %v6288_v57, 1 }
 0x2ea   :  { %v3192_v50 = vmax.f32 %v2585_v26, %v3191_v63  ;;  %v691_v59 = vpop.f32.mrf.mxu2  ;;  %v853_v10 = vpop.f32.mrf.mxu3  ;;  %v435_v26 = vld [vmem:[%s10946_s0 + $0x478] sm:$0xff] }
 0x2eb   :  { %v2101_v55 = vsel %vm1951_vm3, -1e+08, %v853_v10  ;;  %v490_v41 = vpop.f32.mrf.mxu0  ;;  %v595_v3 = vpop.f32.mrf.mxu1 }
 0x2ec   :  { %v3193_v63 = vmax.f32 %v2588_v51, %v3192_v50  ;;  %v7208_v47 = vsel %vm2401_vm2, -1e+30, %v2101_v55  ;;  %v1980_v48 = vsel %vm1830_vm0, -1e+08, %v490_v41  ;;  %v2015_v10 = vsel %vm1865_vm1, -1e+08, %v595_v3  ;;  %v1758_v41 = vpop.permute.xlu1 %1757 }
 0x2ed   :  { %11305 = vst [vmem:[#allocation112_spill] sm:$0xff] %v7208_v47  ;;  %v7216_v39 = vsel %vm271_vm6, %v7208_v47, -inf  ;;  %v7218_v44 = vsel %vm2280_vm4, -1e+30, %v1980_v48  ;;  %v7220_v25 = vsel %vm2315_vm5, -1e+30, %v2015_v10 }
 0x2ee   :  { %11306 = vst [vmem:[#allocation113_spill] sm:$0xff] %v7216_v39  ;;  %v3194_v60 = vmax.f32 %v7216_v39, %v3193_v63  ;;  %v7225_v51 = vsel %vm271_vm6, %v7218_v44, -inf  ;;  %537 = vmatmul.f32.gmra.mxu0 %v313_v61  ;;  %642 = vmatmul.f32.gmra.mxu1 %v348_v23  ;;  %v2696_v45 = vsel %vm271_vm6, %v7220_v25, -inf  ;;  %v2693_v50 = vsel %vm271_vm6, %v7205_v34, -inf  ;;  %v2166_v61 = vld [vmem:[%s10948_s2 + $0x148] sm:$0xff]  ;;  %v314_v10 = vld [vmem:[%s10946_s0 + $0xb0] sm:$0xff] }
 0x2ef   :  { %11307 = vst [vmem:[#allocation114_spill] sm:$0xff] %v7220_v25  ;;  %741 = vmatmul.f32.gmra.mxu2 %v7199_v42  ;;  %903 = vmatmul.f32.gmra.mxu3 %v435_v26  ;;  %v2198_v23 = vld [vmem:[%s10948_s2 + $0x248] sm:$0xff]  ;;  %v2047_v3 = vsel %vm1897_vm8, -1e+08, %v691_v59  ;;  %vm1952_vm12 = vcmp.eq.s32.totalorder %v1758_v41, 1  ;;  %vm2316_vm13 = vcmp.eq.f32.partialorder %v2166_v61, 0.0  ;;  %v7308_v57 = vpop.permute.xlu2 %1769 }
 0x2f0   :  { %11308 = vst [vmem:[#allocation115_spill] sm:$0xff] %v7225_v51  ;;  %v3195_v55 = vmax.f32 %v7225_v51, %v3194_v60  ;;  %2694 = vmax.xlane.f32.xlu2 %v2693_v50  ;;  %2697 = vmax.xlane.f32.xlu0 %v2696_v45  ;;  %vm2348_vm14 = vcmp.eq.f32.partialorder %v2198_v23, 0.0  ;;  %v2253_v61 = vld [vmem:[%s10948_s2 + $0x400] sm:$0xff]  ;;  %vm1832_vm1 = vcmp.eq.s32.totalorder %v6307_v4, 1  ;;  %vm2349_vm2 = vcmp.eq.f32.partialorder %v2199_v32, 0.0  ;;  %v2254_v4 = vld [vmem:[%s10948_s2 + $0x408] sm:$0xff] }
 0x2f1   :  { %vm2403_vm3 = vcmp.eq.f32.partialorder %v2253_v61, 0.0  ;;  %vm1899_vm4 = vcmp.eq.s32.totalorder %v6570_v2, 1  ;;  %vm1953_vm5 = vcmp.eq.s32.totalorder %v7235_v27, 1  ;;  %vm1867_vm8 = vcmp.eq.s32.totalorder %v6496_v54, 1  ;;  %v2168_v54 = vld [vmem:[%s10948_s2 + $0x158] sm:$0xff] }
 0x2f2   :  { %v3196_v26 = vmax.f32 %v2693_v50, %v3195_v55  ;;  %v694_v63 = vpop.f32.mrf.mxu2  ;;  %v856_v48 = vpop.f32.mrf.mxu3  ;;  %v7259_v50 = vld [vmem:[%s10946_s0 + $0x2d0] sm:$0xff]  ;;  %v436_v55 = vld [vmem:[%s10946_s0 + $0x480] sm:$0xff] }
 0x2f3   :  { %v2048_v60 = vsel %vm1898_vm9, -1e+08, %v694_v63  ;;  %v2102_v33 = vsel %vm1952_vm12, -1e+08, %v856_v48  ;;  %v493_v39 = vpop.f32.mrf.mxu0  ;;  %v598_v59 = vpop.f32.mrf.mxu1  ;;  %v7270_v63 = vsel %vm2347_vm11, -1e+30, %v2047_v3 }
 0x2f4   :  { %v3197_v41 = vmax.f32 %v2696_v45, %v3196_v26  ;;  %v7265_v51 = vsel %vm2402_vm10, -1e+30, %v2102_v33  ;;  %v2016_v23 = vsel %vm1866_vm7, -1e+08, %v598_v59  ;;  %11310 = vst [vmem:[#allocation117_spill] sm:$0xff] %v7270_v63  ;;  %v7272_v48 = vpop.permute.xlu0 %1763  ;;  %v2131_v45 = vld [vmem:[%s10948_s2 + $0x30] sm:$0xff] }
 0x2f5   :  { %11309 = vst [vmem:[#allocation116_spill] sm:$0xff] %v7265_v51  ;;  %v7276_v47 = vsel %vm271_vm6, %v7265_v51, -inf  ;;  %v7279_v34 = vsel %vm2316_vm13, -1e+30, %v2016_v23  ;;  %v7281_v25 = vsel %vm2348_vm14, -1e+30, %v2048_v60 }
 0x2f6   :  { %11311 = vst [vmem:[#allocation118_spill] sm:$0xff] %v7276_v47  ;;  %v3198_v0 = vmax.f32 %v7276_v47, %v3197_v41  ;;  %v7289_v8 = vsel %vm271_vm6, %v7279_v34, -inf  ;;  %540 = vmatmul.f32.gmra.mxu0 %v314_v10  ;;  %645 = vmatmul.f32.gmra.mxu1 %v349_v22  ;;  %v2792_v3 = vsel %vm271_vm6, %v7270_v63, -inf  ;;  %v2795_v26 = vsel %vm271_vm6, %v7281_v25, -inf  ;;  %v2132_v10 = vld [vmem:[%s10948_s2 + $0x38] sm:$0xff]  ;;  %v350_v41 = vld [vmem:[%s10946_s0 + $0x1d0] sm:$0xff] }
 0x2f7   :  { %11312 = vst [vmem:[#allocation119_spill] sm:$0xff] %v7279_v34  ;;  %744 = vmatmul.f32.gmra.mxu2 %v7259_v50  ;;  %906 = vmatmul.f32.gmra.mxu3 %v436_v55  ;;  %v1981_v22 = vsel %vm1831_vm15, -1e+08, %v493_v39  ;;  %vm2281_vm0 = vcmp.eq.f32.partialorder %v2131_v45, 0.0  ;;  %v315_v33 = vld [vmem:[%s10946_s0 + $0xb8] sm:$0xff]  ;;  %vm2282_vm7 = vcmp.eq.f32.partialorder %v2132_v10, 0.0 }
 0x2f8   :  { %11313 = vst [vmem:[#allocation120_spill] sm:$0xff] %v7281_v25  ;;  %v3199_v60 = vmax.f32 %v7289_v8, %v3198_v0  ;;  %2793 = vmax.xlane.f32.xlu2 %v2792_v3  ;;  %2796 = vmax.xlane.f32.xlu0 %v2795_v26  ;;  %v7321_v23 = vld [vmem:[%s10946_s0 + $0x2d8] sm:$0xff]  ;;  %v437_v0 = vld [vmem:[%s10946_s0 + $0x488] sm:$0xff]  ;;  %v2167_v45 = vld [vmem:[%s10948_s2 + $0x150] sm:$0xff]  ;;  %vm1833_vm10 = vcmp.eq.s32.totalorder %v6290_v58, 1  ;;  %vm1868_vm11 = vcmp.eq.s32.totalorder %v6501_v13, 1 }
 0x2f9   :  { %11314 = vst [vmem:[#allocation121_spill] sm:$0xff] %v7289_v8  ;;  %vm2317_vm9 = vcmp.eq.f32.partialorder %v2167_v45, 0.0  ;;  %vm2404_vm12 = vcmp.eq.f32.partialorder %v2254_v4, 0.0  ;;  %vm1954_vm13 = vcmp.eq.s32.totalorder %v7272_v48, 1  ;;  %vm2318_vm15 = vcmp.eq.f32.partialorder %v2168_v54, 0.0  ;;  %v7411_v45 = vpop.permute.xlu2 %1778  ;;  %v2201_v54 = vld [vmem:[%s10948_s2 + $0x260] sm:$0xff] }
 0x2fa   :  { %v3200_v39 = vmax.f32 %v2792_v3, %v3199_v60  ;;  %v697_v59 = vpop.f32.mrf.mxu2  ;;  %v859_v55 = vpop.f32.mrf.mxu3  ;;  %v7327_v60 = vsel %vm2281_vm0, -1e+30, %v1981_v22  ;;  %vm1869_vm0 = vcmp.eq.s32.totalorder %v6498_v11, 1 }
 0x2fb   :  { %v2049_v2 = vsel %vm1899_vm4, -1e+08, %v697_v59  ;;  %v2103_v47 = vsel %vm1953_vm5, -1e+08, %v859_v55  ;;  %v496_v27 = vpop.f32.mrf.mxu0  ;;  %v601_v3 = vpop.f32.mrf.mxu1  ;;  %v316_v55 = vld [vmem:[%s10946_s0 + $0xc0] sm:$0xff] }
 0x2fc   :  { %v3201_v8 = vmax.f32 %v2795_v26, %v3200_v39  ;;  %v7330_v51 = vsel %vm2349_vm2, -1e+30, %v2049_v2  ;;  %v7333_v63 = vsel %vm2403_vm3, -1e+30, %v2103_v47  ;;  %v1982_v25 = vsel %vm1832_vm1, -1e+08, %v496_v27  ;;  %v7353_v61 = vpop.permute.xlu0 %1772 }
 0x2fd   :  { %11315 = vst [vmem:[#allocation122_spill] sm:$0xff] %v7330_v51  ;;  %v7339_v10 = vsel %vm271_vm6, %v7330_v51, -inf  ;;  %v7341_v59 = vsel %vm2282_vm7, -1e+30, %v1982_v25  ;;  %v7357_v25 = vsel %vm271_vm6, %v7333_v63, -inf  ;;  %v2133_v26 = vld [vmem:[%s10948_s2 + $0x40] sm:$0xff] }
 0x2fe   :  { %11316 = vst [vmem:[#allocation123_spill] sm:$0xff] %v7333_v63  ;;  %v3202_v32 = vmax.f32 %v7339_v10, %v3201_v8  ;;  %543 = vmatmul.f32.gmra.mxu0 %v315_v33  ;;  %648 = vmatmul.f32.gmra.mxu1 %v350_v41  ;;  %v2597_v47 = vsel %vm271_vm6, %v7341_v59, -inf  ;;  %v2594_v8 = vsel %vm271_vm6, %v7327_v60, -inf  ;;  %v2017_v33 = vsel %vm1867_vm8, -1e+08, %v601_v3  ;;  %v7372_v39 = vld [vmem:[%s10946_s0 + $0x2f8] sm:$0xff] }
 0x2ff   :  { %11317 = vst [vmem:[#allocation124_spill] sm:$0xff] %v7339_v10  ;;  %747 = vmatmul.f32.gmra.mxu2 %v7321_v23  ;;  %909 = vmatmul.f32.gmra.mxu3 %v437_v0  ;;  %vm2283_vm14 = vcmp.eq.f32.partialorder %v2133_v26, 0.0  ;;  %v351_v27 = vld [vmem:[%s10946_s0 + $0x1d8] sm:$0xff]  ;;  %v384_v3 = vld [vmem:[%s10946_s0 + $0x2e0] sm:$0xff]  ;;  %v7396_v10 = vsel %vm2317_vm9, -1e+30, %v2017_v33 }
 0x300   :  { %11318 = vst [vmem:[#allocation125_spill] sm:$0xff] %v7357_v25  ;;  %v3203_v22 = vmax.f32 %v7357_v25, %v3202_v32  ;;  %2595 = vmax.xlane.f32.xlu2 %v2594_v8  ;;  %2598 = vmax.xlane.f32.xlu0 %v2597_v47  ;;  %v7390_v32 = vld [vmem:[%s10946_s0 + $0x2f0] sm:$0xff]  ;;  %v7401_v63 = vld [vmem:[%s10946_s0 + $0x2e8] sm:$0xff]  ;;  %v2169_v26 = vld [vmem:[%s10948_s2 + $0x160] sm:$0xff]  ;;  %vm1900_vm1 = vcmp.eq.s32.totalorder %v6574_v6, 1  ;;  %vm1901_vm2 = vcmp.eq.s32.totalorder %v6578_v18, 1 }
 0x301   :  { %4524 = vmatpush.msra.mxu1 %v7372_v39  ;;  %vm2319_vm7 = vcmp.eq.f32.partialorder %v2169_v26, 0.0  ;;  %v317_v6 = vld [vmem:[%s10946_s0 + $0xc8] sm:$0xff]  ;;  %vm2351_vm8 = vcmp.eq.f32.partialorder %v2201_v54, 0.0  ;;  %vm1834_vm9 = vcmp.eq.s32.totalorder %v6309_v7, 1 }
 0x302   :  { %v3204_v41 = vmax.f32 %v2594_v8, %v3203_v22  ;;  %v700_v0 = vpop.f32.mrf.mxu2  ;;  %v862_v2 = vpop.f32.mrf.mxu3  ;;  %v438_v22 = vld [vmem:[%s10946_s0 + $0x490] sm:$0xff] }
 0x303   :  { %v2104_v25 = vsel %vm1954_vm13, -1e+08, %v862_v2  ;;  %v499_v48 = vpop.f32.mrf.mxu0  ;;  %v604_v8 = vpop.f32.mrf.mxu1  ;;  %4525 = vmatpush.msra.mxu1 %v7390_v32 }
 0x304   :  { %v3205_v51 = vmax.f32 %v2597_v47, %v3204_v41  ;;  %v7405_v34 = vsel %vm2404_vm12, -1e+30, %v2104_v25  ;;  %v1983_v2 = vsel %vm1833_vm10, -1e+08, %v499_v48  ;;  %v2018_v29 = vsel %vm1868_vm11, -1e+08, %v604_v8  ;;  %v1767_v41 = vpop.permute.xlu1 %1766 }
 0x305   :  { %11319 = vst [vmem:[#allocation126_spill] sm:$0xff] %v7405_v34  ;;  %v7415_v33 = vsel %vm271_vm6, %v7405_v34, -inf  ;;  %v7418_v1 = vsel %vm2283_vm14, -1e+30, %v1983_v2  ;;  %v7421_v47 = vsel %vm2318_vm15, -1e+30, %v2018_v29  ;;  %4526 = vmatpush.msra.mxu1 %v7401_v63 }
 0x306   :  { %11320 = vst [vmem:[#allocation127_spill] sm:$0xff] %v7415_v33  ;;  %v3209_v58 = vmax.f32 %v3205_v51, %v7415_v33  ;;  %v7427_v13 = vsel %vm271_vm6, %v7418_v1, -inf  ;;  %546 = vmatmul.f32.gmra.mxu0 %v316_v55  ;;  %651 = vmatmul.f32.gmra.mxu1 %v351_v27  ;;  %v2705_v4 = vsel %vm271_vm6, %v7421_v47, -inf  ;;  %v2255_v25 = vld [vmem:[%s10948_s2 + $0x410] sm:$0xff]  ;;  %v2200_v29 = vld [vmem:[%s10948_s2 + $0x258] sm:$0xff]  ;;  %v2702_v51 = vsel %vm271_vm6, %v7396_v10, -inf  ;;  %v7449_v27 = vpop.permute.xlu0 %1781 }
 0x307   :  { %11321 = vst [vmem:[#allocation128_spill] sm:$0xff] %v7427_v13  ;;  %750 = vmatmul.f32.gmra.mxu2 %v384_v3  ;;  %912 = vmatmul.f32.gmra.mxu3 %v438_v22  ;;  %v2050_v48 = vsel %vm1900_vm1, -1e+08, %v700_v0  ;;  %vm2405_vm3 = vcmp.eq.f32.partialorder %v2255_v25, 0.0  ;;  %vm2350_vm4 = vcmp.eq.f32.partialorder %v2200_v29, 0.0  ;;  %vm1955_vm5 = vcmp.eq.s32.totalorder %v1767_v41, 1  ;;  %v7493_v25 = vpop.permute.xlu2 %1787 }
 0x308   :  { %v3213_v55 = vmax.f32 %v3209_v58, %v7427_v13  ;;  %2703 = vmax.xlane.f32.xlu2 %v2702_v51  ;;  %2706 = vmax.xlane.f32.xlu0 %v2705_v4  ;;  %v352_v0 = vld [vmem:[%s10946_s0 + $0x1e0] sm:$0xff]  ;;  %vm1835_vm11 = vcmp.eq.s32.totalorder %v6328_v40, 1  ;;  %vm1902_vm14 = vcmp.eq.s32.totalorder %v6576_v35, 1  ;;  %vm1956_vm15 = vcmp.eq.s32.totalorder %v7308_v57, 1 }
 0x309   :  { %4527 = vmatpush.msra.mxu1 %v384_v3  ;;  %v439_v3 = vld [vmem:[%s10946_s0 + $0x498] sm:$0xff]  ;;  %vm1870_vm1 = vcmp.eq.s32.totalorder %v6503_v15, 1 }
 0x30a   :  { %v3217_v8 = vmax.f32 %v3213_v55, %v2702_v51  ;;  %v703_v22 = vpop.f32.mrf.mxu2  ;;  %v865_v2 = vpop.f32.mrf.mxu3  ;;  %v7467_v55 = vsel %vm2350_vm4, -1e+30, %v2050_v48  ;;  %v2135_v48 = vld [vmem:[%s10948_s2 + $0x50] sm:$0xff]  ;;  %vm1957_vm4 = vcmp.eq.s32.totalorder %v7353_v61, 1 }
 0x30b   :  { %v2051_v58 = vsel %vm1901_vm2, -1e+08, %v703_v22  ;;  %v2105_v33 = vsel %vm1955_vm5, -1e+08, %v865_v2  ;;  %v502_v18 = vpop.f32.mrf.mxu0  ;;  %v607_v13 = vpop.f32.mrf.mxu1  ;;  %4528 = vmatpush.msra.mxu1 %v7321_v23  ;;  %11323 = vst [vmem:[#allocation130_spill] sm:$0xff] %v7467_v55  ;;  %v2134_v23 = vld [vmem:[%s10948_s2 + $0x48] sm:$0xff] }
 0x30c   :  { %v3221_v51 = vmax.f32 %v3217_v8, %v2705_v4  ;;  %v7462_v26 = vsel %vm2405_vm3, -1e+30, %v2105_v33  ;;  %v2019_v54 = vsel %vm1869_vm0, -1e+08, %v607_v13  ;;  %v7475_v2 = vsel %vm2351_vm8, -1e+30, %v2051_v58 }
 0x30d   :  { %11322 = vst [vmem:[#allocation129_spill] sm:$0xff] %v7462_v26  ;;  %v7471_v41 = vsel %vm271_vm6, %v7462_v26, -inf  ;;  %v7473_v22 = vsel %vm2319_vm7, -1e+30, %v2019_v54  ;;  %4529 = vmatpush.msra.mxu1 %v7259_v50  ;;  %v2202_v13 = vld [vmem:[%s10948_s2 + $0x268] sm:$0xff]  ;;  %v2256_v4 = vld [vmem:[%s10948_s2 + $0x418] sm:$0xff] }
 0x30e   :  { %11324 = vst [vmem:[#allocation131_spill] sm:$0xff] %v7471_v41  ;;  %v3206_v11 = vmax.f32 %v7471_v41, %v3221_v51  ;;  %v7484_v33 = vsel %vm271_vm6, %v7473_v22, -inf  ;;  %549 = vmatmul.f32.gmra.mxu0 %v317_v6  ;;  %654 = vmatmul.f32.gmra.mxu1 %v352_v0  ;;  %v2801_v50 = vsel %vm271_vm6, %v7467_v55, -inf  ;;  %v2804_v29 = vsel %vm271_vm6, %v7475_v2, -inf  ;;  %v353_v0 = vld [vmem:[%s10946_s0 + $0x1e8] sm:$0xff]  ;;  %v354_v61 = vld [vmem:[%s10946_s0 + $0x1f0] sm:$0xff] }
 0x30f   :  { %11325 = vst [vmem:[#allocation132_spill] sm:$0xff] %v7475_v2  ;;  %753 = vmatmul.f32.gmra.mxu2 %v7401_v63  ;;  %915 = vmatmul.f32.gmra.mxu3 %v439_v3  ;;  %v1984_v8 = vsel %vm1834_vm9, -1e+08, %v502_v18  ;;  %vm2284_vm10 = vcmp.eq.f32.partialorder %v2134_v23, 0.0  ;;  %vm2352_vm12 = vcmp.eq.f32.partialorder %v2202_v13, 0.0  ;;  %vm2406_vm13 = vcmp.eq.f32.partialorder %v2256_v4, 0.0 }
 0x310   :  { %11326 = vst [vmem:[#allocation133_spill] sm:$0xff] %v7484_v33  ;;  %v3210_v6 = vmax.f32 %v3206_v11, %v7484_v33  ;;  %2802 = vmax.xlane.f32.xlu2 %v2801_v50  ;;  %2805 = vmax.xlane.f32.xlu0 %v2804_v29  ;;  %v318_v18 = vld [vmem:[%s10946_s0 + $0xd0] sm:$0xff]  ;;  %v440_v3 = vld [vmem:[%s10946_s0 + $0x4a0] sm:$0xff]  ;;  %vm2285_vm0 = vcmp.eq.f32.partialorder %v2135_v48, 0.0  ;;  %v7518_v54 = vsel %vm2284_vm10, -1e+30, %v1984_v8  ;;  %v7529_v48 = vpop.permute.xlu0 %1790 }
 0x311   :  { %4530 = vmatpush.msra.mxu1 %v7199_v42  ;;  %v2257_v4 = vld [vmem:[%s10948_s2 + $0x420] sm:$0xff]  ;;  %v2171_v8 = vld [vmem:[%s10948_s2 + $0x170] sm:$0xff]  ;;  %vm1836_vm3 = vcmp.eq.s32.totalorder %v6312_v9, 1  ;;  %vm1871_vm8 = vcmp.eq.s32.totalorder %v6508_v20, 1  ;;  %vm1904_vm10 = vcmp.eq.s32.totalorder %v6584_v37, 1  ;;  %v357_v33 = vld [vmem:[%s10946_s0 + $0x208] sm:$0xff] }
 0x312   :  { %v3214_v7 = vmax.f32 %v3210_v6, %v2801_v50  ;;  %v706_v63 = vpop.f32.mrf.mxu2  ;;  %v868_v58 = vpop.f32.mrf.mxu3  ;;  %vm2407_vm5 = vcmp.eq.f32.partialorder %v2257_v4, 0.0  ;;  %vm2321_vm9 = vcmp.eq.f32.partialorder %v2171_v8, 0.0  ;;  %v2258_v4 = vld [vmem:[%s10948_s2 + $0x428] sm:$0xff] }
 0x313   :  { %v2052_v42 = vsel %vm1902_vm14, -1e+08, %v706_v63  ;;  %v2106_v35 = vsel %vm1956_vm15, -1e+08, %v868_v58  ;;  %v505_v51 = vpop.f32.mrf.mxu0  ;;  %v610_v57 = vpop.f32.mrf.mxu1  ;;  %4531 = vmatpush.msra.mxu1 %v7142_v36  ;;  %v2170_v36 = vld [vmem:[%s10948_s2 + $0x168] sm:$0xff] }
 0x314   :  { %v3218_v11 = vmax.f32 %v3214_v7, %v2804_v29  ;;  %v7522_v50 = vsel %vm2352_vm12, -1e+30, %v2052_v42  ;;  %v7525_v6 = vsel %vm2406_vm13, -1e+30, %v2106_v35  ;;  %v1985_v41 = vsel %vm1835_vm11, -1e+08, %v505_v51 }
 0x315   :  { %11327 = vst [vmem:[#allocation134_spill] sm:$0xff] %v7522_v50  ;;  %v7533_v63 = vsel %vm271_vm6, %v7522_v50, -inf  ;;  %v7535_v23 = vsel %vm2285_vm0, -1e+30, %v1985_v41  ;;  %4532 = vmatpush.msra.mxu1 %v7086_v43  ;;  %v7550_v41 = vsel %vm271_vm6, %v7525_v6, -inf  ;;  %v2603_v43 = vsel %vm271_vm6, %v7518_v54, -inf }
 0x316   :  { %11328 = vst [vmem:[#allocation135_spill] sm:$0xff] %v7525_v6  ;;  %v3222_v13 = vmax.f32 %v3218_v11, %v7533_v63  ;;  %552 = vmatmul.f32.gmra.mxu0 %v318_v18  ;;  %657 = vmatmul.f32.gmra.mxu1 %v353_v0  ;;  %v2606_v40 = vsel %vm271_vm6, %v7535_v23, -inf  ;;  %v2136_v29 = vld [vmem:[%s10948_s2 + $0x58] sm:$0xff]  ;;  %v2020_v7 = vsel %vm1870_vm1, -1e+08, %v610_v57  ;;  %vm2320_vm2 = vcmp.eq.f32.partialorder %v2170_v36, 0.0 }
 0x317   :  { %11329 = vst [vmem:[#allocation136_spill] sm:$0xff] %v7533_v63  ;;  %756 = vmatmul.f32.gmra.mxu2 %v7390_v32  ;;  %918 = vmatmul.f32.gmra.mxu3 %v440_v3  ;;  %v7564_v32 = vpop.permute.xlu2 %1796  ;;  %vm2286_vm7 = vcmp.eq.f32.partialorder %v2136_v29, 0.0  ;;  %v319_v3 = vld [vmem:[%s10946_s0 + $0xd8] sm:$0xff]  ;;  %v7578_v57 = vsel %vm2320_vm2, -1e+30, %v2020_v7  ;;  %v2203_v29 = vld [vmem:[%s10948_s2 + $0x270] sm:$0xff] }
 0x318   :  { %11330 = vst [vmem:[#allocation137_spill] sm:$0xff] %v7550_v41  ;;  %v3226_v15 = vmax.f32 %v3222_v13, %v7550_v41  ;;  %2604 = vmax.xlane.f32.xlu2 %v2603_v43  ;;  %2607 = vmax.xlane.f32.xlu0 %v2606_v40  ;;  %v2711_v7 = vsel %vm271_vm6, %v7578_v57, -inf  ;;  %vm1903_vm11 = vcmp.eq.s32.totalorder %v6580_v53, 1  ;;  %vm2408_vm13 = vcmp.eq.f32.partialorder %v2258_v4, 0.0  ;;  %v320_v53 = vld [vmem:[%s10946_s0 + $0xe0] sm:$0xff]  ;;  %v5387_v4 = vld [vmem:[%s10946_s0 + $0x288] sm:$0xff] }
 0x319   :  { %4533 = vmatpush.msra.mxu1 %v7042_v28  ;;  %v441_v28 = vld [vmem:[%s10946_s0 + $0x4a8] sm:$0xff]  ;;  %vm2353_vm14 = vcmp.eq.f32.partialorder %v2203_v29, 0.0 }
 0x31a   :  { %v3230_v58 = vmax.f32 %v3226_v15, %v2603_v43  ;;  %v709_v18 = vpop.f32.mrf.mxu2  ;;  %v871_v0 = vpop.f32.mrf.mxu3 }
 0x31b   :  { %v2107_v42 = vsel %vm1957_vm4, -1e+08, %v871_v0  ;;  %v508_v35 = vpop.f32.mrf.mxu0  ;;  %v613_v51 = vpop.f32.mrf.mxu1  ;;  %4534 = vmatpush.msra.mxu1 %v6974_v12  ;;  %v2204_v0 = vld [vmem:[%s10948_s2 + $0x278] sm:$0xff] }
 0x31c   :  { %v3234_v20 = vmax.f32 %v3230_v58, %v2606_v40  ;;  %v7582_v11 = vsel %vm2407_vm5, -1e+30, %v2107_v42  ;;  %v1986_v13 = vsel %vm1836_vm3, -1e+08, %v508_v35  ;;  %v2021_v43 = vsel %vm1871_vm8, -1e+08, %v613_v51 }
 0x31d   :  { %11331 = vst [vmem:[#allocation138_spill] sm:$0xff] %v7582_v11  ;;  %v7588_v8 = vsel %vm271_vm6, %v7582_v11, -inf  ;;  %v7591_v15 = vsel %vm2286_vm7, -1e+30, %v1986_v13  ;;  %v7593_v36 = vsel %vm2321_vm9, -1e+30, %v2021_v43  ;;  %4535 = vmatpush.msra.mxu1 %v6930_v49  ;;  %v7609_v49 = vpop.permute.xlu0 %1799 }
 0x31e   :  { %11332 = vst [vmem:[#allocation139_spill] sm:$0xff] %v7588_v8  ;;  %v3238_v12 = vmax.f32 %v3234_v20, %v7588_v8  ;;  %v7599_v40 = vsel %vm271_vm6, %v7591_v15, -inf  ;;  %555 = vmatmul.f32.gmra.mxu0 %v319_v3  ;;  %660 = vmatmul.f32.gmra.mxu1 %v354_v61  ;;  %v2714_v9 = vsel %vm271_vm6, %v7593_v36, -inf  ;;  %v2172_v58 = vld [vmem:[%s10948_s2 + $0x178] sm:$0xff]  ;;  %v1776_v3 = vpop.permute.xlu1 %1775  ;;  %v11334_v20 = vld [vmem:[#allocation36_spill] sm:$0xff]  ;;  %vm2354_vm1 = vcmp.eq.f32.partialorder %v2204_v0, 0.0 }
 0x31f   :  { %11333 = vst [vmem:[#allocation140_spill] sm:$0xff] %v7599_v40  ;;  %759 = vmatmul.f32.gmra.mxu2 %v7372_v39  ;;  %921 = vmatmul.f32.gmra.mxu3 %v441_v28  ;;  %v2053_v39 = vsel %vm1903_vm11, -1e+08, %v709_v18  ;;  %vm1958_vm12 = vcmp.eq.s32.totalorder %v1776_v3, 1  ;;  %v5385_v35 = vld [vmem:[%s10946_s0 + $0x298] sm:$0xff]  ;;  %vm1872_vm15 = vcmp.eq.s32.totalorder %v11334_v20, 1  ;;  %v7647_v20 = vpop.permute.xlu2 %1805 }
 0x320   :  { %v3225_v42 = vmax.f32 %v7599_v40, %v3238_v12  ;;  %2712 = vmax.xlane.f32.xlu2 %v2711_v7  ;;  %2715 = vmax.xlane.f32.xlu0 %v2714_v9  ;;  %vm2322_vm0 = vcmp.eq.f32.partialorder %v2172_v58, 0.0  ;;  %v388_v3 = vld [vmem:[%s10946_s0 + $0x300] sm:$0xff]  ;;  %v2259_v0 = vld [vmem:[%s10948_s2 + $0x430] sm:$0xff]  ;;  %vm1959_vm8 = vcmp.eq.s32.totalorder %v7411_v45, 1 }
 0x321   :  { %4536 = vmatpush.msra.mxu1 %v5385_v35  ;;  %v2205_v58 = vld [vmem:[%s10948_s2 + $0x280] sm:$0xff]  ;;  %vm2409_vm7 = vcmp.eq.f32.partialorder %v2259_v0, 0.0  ;;  %v7714_v40 = vld [vmem:[%s10946_s0 + $0x210] sm:$0xff]  ;;  %v2260_v0 = vld [vmem:[%s10948_s2 + $0x438] sm:$0xff] }
 0x322   :  { %v3229_v51 = vmax.f32 %v3225_v42, %v2711_v7  ;;  %v712_v61 = vpop.f32.mrf.mxu2  ;;  %v874_v28 = vpop.f32.mrf.mxu3  ;;  %v355_v7 = vld [vmem:[%s10946_s0 + $0x1f8] sm:$0xff]  ;;  %v5386_v42 = vld [vmem:[%s10946_s0 + $0x290] sm:$0xff]  ;;  %vm2355_vm5 = vcmp.eq.f32.partialorder %v2205_v58, 0.0 }
 0x323   :  { %v2054_v18 = vsel %vm1904_vm10, -1e+08, %v712_v61  ;;  %v2108_v13 = vsel %vm1958_vm12, -1e+08, %v874_v28  ;;  %v511_v43 = vpop.f32.mrf.mxu0  ;;  %v616_v12 = vpop.f32.mrf.mxu1  ;;  %4537 = vmatpush.msra.mxu1 %v5386_v42  ;;  %v7645_v28 = vsel %vm2353_vm14, -1e+30, %v2053_v39 }
 0x324   :  { %v3233_v35 = vmax.f32 %v3229_v51, %v2714_v9  ;;  %v7642_v37 = vsel %vm2408_vm13, -1e+30, %v2108_v13  ;;  %v2022_v61 = vsel %vm1872_vm15, -1e+08, %v616_v12  ;;  %v7657_v41 = vsel %vm2354_vm1, -1e+30, %v2054_v18 }
 0x325   :  { %11335 = vst [vmem:[#allocation36_spill] sm:$0xff] %v7642_v37  ;;  %v7651_v8 = vsel %vm271_vm6, %v7642_v37, -inf  ;;  %v7654_v63 = vsel %vm2322_vm0, -1e+30, %v2022_v61  ;;  %v2137_v9 = vld [vmem:[%s10948_s2 + $0x60] sm:$0xff]  ;;  %4538 = vmatpush.msra.mxu1 %v5387_v4  ;;  %v11338_v51 = vld [vmem:[#allocation13_spill] sm:$0xff]  ;;  %v7694_v61 = vpop.permute.xlu0 %1808 }
 0x326   :  { %11336 = vst [vmem:[#allocation141_spill] sm:$0xff] %v7651_v8  ;;  %v3237_v29 = vmax.f32 %v3233_v35, %v7651_v8  ;;  %v7668_v39 = vsel %vm271_vm6, %v7654_v63, -inf  ;;  %558 = vmatmul.f32.gmra.mxu0 %v320_v53  ;;  %663 = vmatmul.f32.gmra.mxu1 %v355_v7  ;;  %vm1837_vm2 = vcmp.eq.s32.totalorder %v11338_v51, 1  ;;  %v2810_v18 = vsel %vm271_vm6, %v7645_v28, -inf  ;;  %v2138_v53 = vld [vmem:[%s10948_s2 + $0x68] sm:$0xff]  ;;  %v5388_v12 = vld [vmem:[%s10946_s0 + $0x280] sm:$0xff] }
 0x327   :  { %11337 = vst [vmem:[#allocation142_spill] sm:$0xff] %v7668_v39  ;;  %762 = vmatmul.f32.gmra.mxu2 %v388_v3  ;;  %v2813_v13 = vsel %vm271_vm6, %v7657_v41, -inf  ;;  %4539 = vmatpush.msra.mxu1 %v5388_v12  ;;  %v1987_v7 = vsel %vm1837_vm2, -1e+08, %v511_v43  ;;  %vm2287_vm3 = vcmp.eq.f32.partialorder %v2137_v9, 0.0  ;;  %v7691_v3 = vld [vmem:[%s10946_s0 + $0x218] sm:$0xff] }
 0x328   :  { %v3241_v42 = vmax.f32 %v3237_v29, %v7668_v39  ;;  %2811 = vmax.xlane.f32.xlu2 %v2810_v18  ;;  %2814 = vmax.xlane.f32.xlu0 %v2813_v13  ;;  %v11339_v35 = vld [vmem:[#allocation57_spill] sm:$0xff]  ;;  %v356_v4 = vld [vmem:[%s10946_s0 + $0x200] sm:$0xff]  ;;  %vm2288_vm10 = vcmp.eq.f32.partialorder %v2138_v53, 0.0  ;;  %v7719_v53 = vsel %vm2287_vm3, -1e+30, %v1987_v7  ;;  %v7743_v7 = vpop.permute.xlu2 %1814  ;;  %vm1960_vm13 = vcmp.eq.s32.totalorder %v7449_v27, 1 }
 0x329   :  { %vm1905_vm4 = vcmp.eq.s32.totalorder %v11339_v35, 1  ;;  %v321_v43 = vld [vmem:[%s10946_s0 + $0xe8] sm:$0xff]  ;;  %4516 = vmatpush.msra.mxu0 %v7691_v3  ;;  %v11340_v8 = vld [vmem:[#allocation15_spill] sm:$0xff]  ;;  %vm2410_vm14 = vcmp.eq.f32.partialorder %v2260_v0, 0.0  ;;  %v390_v27 = vld [vmem:[%s10946_s0 + $0x310] sm:$0xff] }
 0x32a   :  { %v3245_v29 = vmax.f32 %v3241_v42, %v2810_v18  ;;  %v715_v51 = vpop.f32.mrf.mxu2  ;;  %v877_v12 = vpop.f32.mrf.mxu3  ;;  %vm1838_vm9 = vcmp.eq.s32.totalorder %v11340_v8, 1  ;;  %v389_v39 = vld [vmem:[%s10946_s0 + $0x308] sm:$0xff]  ;;  %v2173_v9 = vld [vmem:[%s10948_s2 + $0x180] sm:$0xff] }
 0x32b   :  { %v2055_v18 = vsel %vm1905_vm4, -1e+08, %v715_v51  ;;  %v2109_v45 = vsel %vm1959_vm8, -1e+08, %v877_v12  ;;  %v514_v42 = vpop.f32.mrf.mxu0  ;;  %v619_v8 = vpop.f32.mrf.mxu1  ;;  %4517 = vmatpush.msra.mxu0 %v7714_v40  ;;  %v2174_v12 = vld [vmem:[%s10948_s2 + $0x188] sm:$0xff]  ;;  %vm2323_vm12 = vcmp.eq.f32.partialorder %v2173_v9, 0.0 }
 0x32c   :  { %v3249_v37 = vmax.f32 %v3245_v29, %v2813_v13  ;;  %v7723_v11 = vsel %vm2355_vm5, -1e+30, %v2055_v18  ;;  %v7726_v6 = vsel %vm2409_vm7, -1e+30, %v2109_v45  ;;  %v1988_v26 = vsel %vm1838_vm9, -1e+08, %v514_v42 }
 0x32d   :  { %11341 = vst [vmem:[#allocation13_spill] sm:$0xff] %v7723_v11  ;;  %v7730_v35 = vsel %vm271_vm6, %v7723_v11, -inf  ;;  %v7732_v51 = vsel %vm2288_vm10, -1e+30, %v1988_v26  ;;  %4518 = vmatpush.msra.mxu0 %v357_v33  ;;  %v7747_v26 = vsel %vm271_vm6, %v7726_v6, -inf  ;;  %v11345_v29 = vld [vmem:[#allocation37_spill] sm:$0xff] }
 0x32e   :  { %11342 = vst [vmem:[#allocation57_spill] sm:$0xff] %v7726_v6  ;;  %v3253_v13 = vmax.f32 %v3249_v37, %v7730_v35  ;;  %561 = vmatmul.f32.gmra.mxu0 %v321_v43  ;;  %666 = vmatmul.f32.gmra.mxu1 %v356_v4  ;;  %v2615_v58 = vsel %vm271_vm6, %v7732_v51, -inf  ;;  %vm1873_vm11 = vcmp.eq.s32.totalorder %v11345_v29, 1  ;;  %v2612_v37 = vsel %vm271_vm6, %v7719_v53, -inf  ;;  %v2139_v43 = vld [vmem:[%s10948_s2 + $0x70] sm:$0xff]  ;;  %v11347_v6 = vld [vmem:[#allocation39_spill] sm:$0xff] }
 0x32f   :  { %11343 = vst [vmem:[#allocation15_spill] sm:$0xff] %v7730_v35  ;;  %765 = vmatmul.f32.gmra.mxu2 %v389_v39  ;;  %4519 = vmatpush.msra.mxu0 %v356_v4  ;;  %v2023_v45 = vsel %vm1873_vm11, -1e+08, %v619_v8  ;;  %v11346_v39 = vld [vmem:[#allocation14_spill] sm:$0xff]  ;;  %vm2289_vm0 = vcmp.eq.f32.partialorder %v2139_v43, 0.0  ;;  %vm1874_vm1 = vcmp.eq.s32.totalorder %v11347_v6, 1 }
 0x330   :  { %11344 = vst [vmem:[#allocation143_spill] sm:$0xff] %v7747_v26  ;;  %v3242_v18 = vmax.f32 %v7747_v26, %v3253_v13  ;;  %2613 = vmax.xlane.f32.xlu2 %v2612_v37  ;;  %2616 = vmax.xlane.f32.xlu0 %v2615_v58  ;;  %vm1839_vm15 = vcmp.eq.s32.totalorder %v11346_v39, 1  ;;  %vm2324_vm2 = vcmp.eq.f32.partialorder %v2174_v12, 0.0  ;;  %v7762_v34 = vsel %vm2323_vm12, -1e+30, %v2023_v45  ;;  %v322_v9 = vld [vmem:[%s10946_s0 + $0xf0] sm:$0xff] }
 0x331   :  { %11348 = vst [vmem:[#allocation37_spill] sm:$0xff] %v7762_v34  ;;  %v2261_v39 = vld [vmem:[%s10948_s2 + $0x440] sm:$0xff]  ;;  %vm3026_vm11 = vcmask 7168  }
 0x332   :  { %v3246_v42 = vmax.f32 %v3242_v18, %v2612_v37  ;;  %v718_v29 = vpop.f32.mrf.mxu2  ;;  %v880_v35 = vpop.f32.mrf.mxu3  ;;  %vm2411_vm7 = vcmp.eq.f32.partialorder %v2261_v39, 0.0  ;;  %v2208_v39 = vld [vmem:[%s10948_s2 + $0x298] sm:$0xff] }
 0x333   :  { %v2110_v4 = vsel %vm1960_vm13, -1e+08, %v880_v35  ;;  %v517_v13 = vpop.f32.mrf.mxu0  ;;  %v622_v8 = vpop.f32.mrf.mxu1 }
 0x334   :  { %v7770_v37 = vpop.permute.xlu0 %1817  ;;  %v3250_v18 = vmax.f32 %v3246_v42, %v2615_v58  ;;  %v7773_v43 = vsel %vm2410_vm14, -1e+30, %v2110_v4  ;;  %v1989_v6 = vsel %vm1839_vm15, -1e+08, %v517_v13  ;;  %v2024_v35 = vsel %vm1874_vm1, -1e+08, %v622_v8 }
 0x335   :  { %11349 = vst [vmem:[#allocation14_spill] sm:$0xff] %v7773_v43  ;;  %v7779_v12 = vsel %vm271_vm6, %v7773_v43, -inf  ;;  %v7781_v45 = vsel %vm2289_vm0, -1e+30, %v1989_v6  ;;  %v7783_v26 = vsel %vm2324_vm2, -1e+30, %v2024_v35  ;;  %v7809_v6 = vpop.permute.xlu2 %1823 }
 0x336   :  { %11350 = vst [vmem:[#allocation39_spill] sm:$0xff] %v7779_v12  ;;  %v3254_v11 = vmax.f32 %v3250_v18, %v7779_v12  ;;  %v7788_v58 = vsel %vm271_vm6, %v7781_v45, -inf  ;;  %564 = vmatmul.f32.gmra.mxu0 %v322_v9  ;;  %669 = vmatmul.f32.gmra.mxu1 %v357_v33  ;;  %v2723_v0 = vsel %vm271_vm6, %v7783_v26, -inf  ;;  %v2206_v42 = vld [vmem:[%s10948_s2 + $0x288] sm:$0xff]  ;;  %v2720_v4 = vsel %vm271_vm6, %v7762_v34, -inf  ;;  %v2175_v13 = vld [vmem:[%s10948_s2 + $0x190] sm:$0xff]  ;;  %v1785_v9 = vpop.permute.xlu1 %1784 }
 0x337   :  { %11351 = vst [vmem:[#allocation144_spill] sm:$0xff] %v7783_v26  ;;  %768 = vmatmul.f32.gmra.mxu2 %v390_v27  ;;  %v11353_v33 = vld [vmem:[#allocation60_spill] sm:$0xff]  ;;  %v11354_v8 = vld [vmem:[#allocation58_spill] sm:$0xff]  ;;  %vm1961_vm5 = vcmp.eq.s32.totalorder %v1785_v9, 1  ;;  %vm2356_vm8 = vcmp.eq.f32.partialorder %v2206_v42, 0.0  ;;  %vm2325_vm10 = vcmp.eq.f32.partialorder %v2175_v13, 0.0 }
 0x338   :  { %11352 = vst [vmem:[#allocation145_spill] sm:$0xff] %v7788_v58  ;;  %vm1907_vm3 = vcmp.eq.s32.totalorder %v11353_v33, 1  ;;  %vm1906_vm4 = vcmp.eq.s32.totalorder %v11354_v8, 1  ;;  %v3258_v18 = vmax.f32 %v3254_v11, %v7788_v58  ;;  %2721 = vmax.xlane.f32.xlu2 %v2720_v4  ;;  %2724 = vmax.xlane.f32.xlu0 %v2723_v0  ;;  %v2207_v27 = vld [vmem:[%s10948_s2 + $0x290] sm:$0xff]  ;;  %v323_v11 = vld [vmem:[%s10946_s0 + $0xf8] sm:$0xff]  ;;  %v2262_v42 = vld [vmem:[%s10948_s2 + $0x448] sm:$0xff] }
 0x339   :  { %v2056_v35 = vsel %vm1906_vm4, -1e+08, %v718_v29  ;;  %v11355_v34 = vld [vmem:[#allocation38_spill] sm:$0xff]  ;;  %vm2357_vm12 = vcmp.eq.f32.partialorder %v2207_v27, 0.0  ;;  %vm2358_vm0 = vcmp.eq.f32.partialorder %v2208_v39, 0.0  ;;  %vm2412_vm1 = vcmp.eq.f32.partialorder %v2262_v42, 0.0 }
 0x33a   :  { %v3262_v12 = vmax.f32 %v3258_v18, %v2720_v4  ;;  %v721_v43 = vpop.f32.mrf.mxu2  ;;  %v883_v26 = vpop.f32.mrf.mxu3  ;;  %vm1875_vm9 = vcmp.eq.s32.totalorder %v11355_v34, 1  ;;  %v391_v4 = vld [vmem:[%s10946_s0 + $0x318] sm:$0xff]  ;;  %v7824_v2 = vsel %vm2356_vm8, -1e+30, %v2056_v35  ;;  %vm1962_vm2 = vcmp.eq.s32.totalorder %v7493_v25, 1 }
 0x33b   :  { %v2057_v8 = vsel %vm1907_vm3, -1e+08, %v721_v43  ;;  %v2111_v58 = vsel %vm1961_vm5, -1e+08, %v883_v26  ;;  %v520_v55 = vpop.f32.mrf.mxu0  ;;  %v625_v29 = vpop.f32.mrf.mxu1  ;;  %11357 = vst [vmem:[#allocation58_spill] sm:$0xff] %v7824_v2  ;;  %v2140_v26 = vld [vmem:[%s10948_s2 + $0x78] sm:$0xff] }
 0x33c   :  { %v3266_v9 = vmax.f32 %v3262_v12, %v2723_v0  ;;  %v7821_v34 = vsel %vm2411_vm7, -1e+30, %v2111_v58  ;;  %v2025_v18 = vsel %vm1875_vm9, -1e+08, %v625_v29  ;;  %v2578_v50 = vpop.xlane.xlu0 %2577  ;;  %v7846_v0 = vsel %vm2357_vm12, -1e+30, %v2057_v8 }
 0x33d   :  { %11356 = vst [vmem:[#allocation60_spill] sm:$0xff] %v7821_v34  ;;  %v7828_v43 = vsel %vm271_vm6, %v7821_v34, -inf  ;;  %v7834_v33 = vsel %vm2325_vm10, -1e+30, %v2025_v18  ;;  %v2819_v13 = vsel %vm271_vm6, %v7824_v2, -inf  ;;  %v2822_v27 = vsel %vm271_vm6, %v7846_v0, -inf }
 0x33e   :  { %11358 = vst [vmem:[#allocation38_spill] sm:$0xff] %v7828_v43  ;;  %v3270_v12 = vmax.f32 %v3266_v9, %v7828_v43  ;;  %v7843_v58 = vsel %vm271_vm6, %v7834_v33, -inf  ;;  %567 = vmatmul.f32.gmra.mxu0 %v323_v11  ;;  %672 = vmatmul.f32.gmra.mxu1 %v7714_v40  ;;  %v2141_v40 = vld [vmem:[%s10948_s2 + $0x80] sm:$0xff]  ;;  %vm2290_vm14 = vcmp.eq.f32.partialorder %v2140_v26, 0.0  ;;  %v11364_v18 = vld [vmem:[#allocation18_spill] sm:$0xff]  ;;  %vm1963_vm9 = vcmp.eq.s32.totalorder %v7529_v48, 1 }
 0x33f   :  { %11359 = vst [vmem:[#allocation146_spill] sm:$0xff] %v7834_v33  ;;  %771 = vmatmul.f32.gmra.mxu2 %v391_v4  ;;  %v11363_v8 = vld [vmem:[#allocation59_spill] sm:$0xff]  ;;  %vm1841_vm3 = vcmp.eq.s32.totalorder %v11364_v18, 1  ;;  %vm2291_vm4 = vcmp.eq.f32.partialorder %v2141_v40, 0.0  ;;  %v393_v33 = vld [vmem:[%s10946_s0 + $0x328] sm:$0xff] }
 0x340   :  { %3027 = vst.msk [vmem:[%s10953_s7] sm:$0xff] %vm3026_vm11, %v2578_v50  ;;  %v11362_v50 = vld [vmem:[#allocation16_spill] sm:$0xff]  ;;  %v3274_v11 = vmax.f32 %v3270_v12, %v7843_v58  ;;  %2820 = vmax.xlane.f32.xlu2 %v2819_v13  ;;  %2823 = vmax.xlane.f32.xlu0 %v2822_v27  ;;  %vm1908_vm15 = vcmp.eq.s32.totalorder %v11363_v8, 1 }
 0x341   :  { %11360 = vst [vmem:[#allocation147_spill] sm:$0xff] %v7843_v58  ;;  %vm1840_vm13 = vcmp.eq.s32.totalorder %v11362_v50, 1 }
 0x342   :  { %11361 = vst [vmem:[#allocation148_spill] sm:$0xff] %v7846_v0  ;;  %v1990_v35 = vsel %vm1840_vm13, -1e+08, %v520_v55  ;;  %v3257_v29 = vmax.f32 %v2819_v13, %v3274_v11  ;;  %v724_v4 = vpop.f32.mrf.mxu2  ;;  %v886_v9 = vpop.f32.mrf.mxu3  ;;  %v324_v55 = vld [vmem:[%s10946_s0 + $0x100] sm:$0xff] }
 0x343   :  { %v7869_v26 = vsel %vm2290_vm14, -1e+30, %v1990_v35  ;;  %v2058_v12 = vsel %vm1908_vm15, -1e+08, %v724_v4  ;;  %v2112_v50 = vsel %vm1962_vm2, -1e+08, %v886_v9  ;;  %v2686_v43 = vpop.xlane.xlu2 %2685  ;;  %v523_v8 = vpop.f32.mrf.mxu0 }
 0x344   :  { %v3261_v39 = vmax.f32 %v3257_v29, %v2822_v27  ;;  %v7871_v42 = vsel %vm2358_vm0, -1e+30, %v2058_v12  ;;  %v7873_v13 = vsel %vm2412_vm1, -1e+30, %v2112_v50  ;;  %3063 = vst.msk [vmem:[%s10953_s7 + $0x120] sm:$0xff] %vm3026_vm11, %v2686_v43  ;;  %v628_v25 = vpop.f32.mrf.mxu1  ;;  %v392_v35 = vld [vmem:[%s10946_s0 + $0x320] sm:$0xff] }
 0x345   :  { %11365 = vst [vmem:[#allocation16_spill] sm:$0xff] %v7871_v42  ;;  %v7884_v11 = vsel %vm271_vm6, %v7871_v42, -inf  ;;  %v1991_v4 = vsel %vm1841_vm3, -1e+08, %v523_v8  ;;  %v2176_v9 = vld [vmem:[%s10948_s2 + $0x198] sm:$0xff]  ;;  %v2263_v43 = vld [vmem:[%s10948_s2 + $0x450] sm:$0xff] }
 0x346   :  { %11366 = vst [vmem:[#allocation59_spill] sm:$0xff] %v7873_v13  ;;  %v3265_v27 = vmax.f32 %v3261_v39, %v7884_v11  ;;  %v7888_v29 = vsel %vm2291_vm4, -1e+30, %v1991_v4  ;;  %570 = vmatmul.f32.gmra.mxu0 %v324_v55  ;;  %675 = vmatmul.f32.gmra.mxu1 %v7691_v3  ;;  %v7899_v18 = vsel %vm271_vm6, %v7873_v13, -inf  ;;  %v2621_v40 = vsel %vm271_vm6, %v7869_v26, -inf  ;;  %v11370_v55 = vld [vmem:[#allocation40_spill] sm:$0xff] }
 0x347   :  { %11367 = vst [vmem:[#allocation18_spill] sm:$0xff] %v7884_v11  ;;  %774 = vmatmul.f32.gmra.mxu2 %v392_v35  ;;  %v2624_v12 = vsel %vm271_vm6, %v7888_v29, -inf  ;;  %vm1876_vm5 = vcmp.eq.s32.totalorder %v11370_v55, 1  ;;  %v2142_v3 = vld [vmem:[%s10948_s2 + $0x88] sm:$0xff]  ;;  %v2177_v8 = vld [vmem:[%s10948_s2 + $0x1a0] sm:$0xff]  ;;  %vm2326_vm7 = vcmp.eq.f32.partialorder %v2176_v9, 0.0 }
 0x348   :  { %11368 = vst [vmem:[#allocation149_spill] sm:$0xff] %v7888_v29  ;;  %v3269_v50 = vmax.f32 %v3265_v27, %v7899_v18  ;;  %2622 = vmax.xlane.f32.xlu2 %v2621_v40  ;;  %2625 = vmax.xlane.f32.xlu0 %v2624_v12  ;;  %v2026_v39 = vsel %vm1876_vm5, -1e+08, %v628_v25  ;;  %vm2413_vm8 = vcmp.eq.f32.partialorder %v2263_v43, 0.0  ;;  %v11371_v27 = vld [vmem:[#allocation17_spill] sm:$0xff]  ;;  %v11372_v55 = vld [vmem:[#allocation42_spill] sm:$0xff] }
 0x349   :  { %11369 = vst [vmem:[#allocation150_spill] sm:$0xff] %v7899_v18  ;;  %vm1842_vm10 = vcmp.eq.s32.totalorder %v11371_v27, 1  ;;  %vm1877_vm12 = vcmp.eq.s32.totalorder %v11372_v55, 1  ;;  %vm2292_vm13 = vcmp.eq.f32.partialorder %v2142_v3, 0.0  ;;  %vm2327_vm14 = vcmp.eq.f32.partialorder %v2177_v8, 0.0  ;;  %v325_v25 = vld [vmem:[%s10946_s0 + $0x108] sm:$0xff] }
 0x34a   :  { %v3273_v35 = vmax.f32 %v3269_v50, %v2621_v40  ;;  %v727_v4 = vpop.f32.mrf.mxu2  ;;  %v889_v11 = vpop.f32.mrf.mxu3  ;;  %v2209_v9 = vld [vmem:[%s10948_s2 + $0x2a0] sm:$0xff]  ;;  %v7922_v40 = vsel %vm2326_vm7, -1e+30, %v2026_v39  ;;  %v11378_v27 = vld [vmem:[#allocation61_spill] sm:$0xff] }
 0x34b   :  { %v2113_v18 = vsel %vm1963_vm9, -1e+08, %v889_v11  ;;  %v2785_v58 = vpop.xlane.xlu2 %2784  ;;  %v2689_v13 = vpop.xlane.xlu0 %2688  ;;  %11373 = vst [vmem:[#allocation40_spill] sm:$0xff] %v7922_v40  ;;  %vm1909_vm15 = vcmp.eq.s32.totalorder %v11378_v27, 1  ;;  %v2729_v3 = vsel %vm271_vm6, %v7922_v40, -inf  ;;  %v2178_v55 = vld [vmem:[%s10948_s2 + $0x1a8] sm:$0xff] }
 0x34c   :  { %v3207_v48 = vmax.f32 %v2624_v12, %v3273_v35  ;;  %v7925_v50 = vsel %vm2413_vm8, -1e+30, %v2113_v18  ;;  %3096 = vst.msk [vmem:[%s10953_s7 + $0x228] sm:$0xff] %vm3026_vm11, %v2785_v58  ;;  %v526_v11 = vpop.f32.mrf.mxu0  ;;  %v631_v34 = vpop.f32.mrf.mxu1  ;;  %v2264_v35 = vld [vmem:[%s10948_s2 + $0x458] sm:$0xff]  ;;  %vm2359_vm0 = vcmp.eq.f32.partialorder %v2209_v9, 0.0  ;;  %vm2328_vm7 = vcmp.eq.f32.partialorder %v2178_v55, 0.0 }
 0x34d   :  { %11374 = vst [vmem:[#allocation17_spill] sm:$0xff] %v7925_v50  ;;  %v7936_v29 = vsel %vm271_vm6, %v7925_v50, -inf  ;;  %v1992_v43 = vsel %vm1842_vm10, -1e+08, %v526_v11  ;;  %v2027_v58 = vsel %vm1877_vm12, -1e+08, %v631_v34 }
 0x34e   :  { %11375 = vst [vmem:[#allocation42_spill] sm:$0xff] %v7936_v29  ;;  %v3211_v18 = vmax.f32 %v3207_v48, %v7936_v29  ;;  %v7948_v12 = vsel %vm2292_vm13, -1e+30, %v1992_v43  ;;  %v7951_v39 = vsel %vm2327_vm14, -1e+30, %v2027_v58  ;;  %573 = vmatmul.f32.gmra.mxu0 %v325_v25  ;;  %v11380_v11 = vld [vmem:[#allocation63_spill] sm:$0xff]  ;;  %v1794_v43 = vpop.permute.xlu1 %1793 }
 0x34f   :  { %3064 = vst.msk [vmem:[%s10953_s7 + $0x128] sm:$0xff] %vm3026_vm11, %v2689_v13  ;;  %v2210_v13 = vld [vmem:[%s10948_s2 + $0x2a8] sm:$0xff]  ;;  %v7962_v34 = vsel %vm271_vm6, %v7948_v12, -inf  ;;  %777 = vmatmul.f32.gmra.mxu2 %v393_v33  ;;  %v2732_v8 = vsel %vm271_vm6, %v7951_v39, -inf  ;;  %v2059_v25 = vsel %vm1909_vm15, -1e+08, %v727_v4 }
 0x350   :  { %11376 = vst [vmem:[#allocation151_spill] sm:$0xff] %v7948_v12  ;;  %v3215_v48 = vmax.f32 %v3211_v18, %v7962_v34  ;;  %2730 = vmax.xlane.f32.xlu2 %v2729_v3  ;;  %2733 = vmax.xlane.f32.xlu0 %v2732_v8  ;;  %vm1910_vm1 = vcmp.eq.s32.totalorder %v11380_v11, 1  ;;  %vm2414_vm2 = vcmp.eq.f32.partialorder %v2264_v35, 0.0  ;;  %vm2360_vm3 = vcmp.eq.f32.partialorder %v2210_v13, 0.0  ;;  %v11381_v29 = vld [vmem:[#allocation41_spill] sm:$0xff] }
 0x351   :  { %11377 = vst [vmem:[#allocation152_spill] sm:$0xff] %v7951_v39  ;;  %vm1964_vm4 = vcmp.eq.s32.totalorder %v1794_v43, 1  ;;  %vm1878_vm5 = vcmp.eq.s32.totalorder %v11381_v29, 1  ;;  %v326_v4 = vld [vmem:[%s10946_s0 + $0x110] sm:$0xff]  ;;  %v7978_v11 = vsel %vm2359_vm0, -1e+30, %v2059_v25 }
 0x352   :  { %11379 = vst [vmem:[#allocation61_spill] sm:$0xff] %v7962_v34  ;;  %v3219_v33 = vmax.f32 %v3215_v48, %v2729_v3  ;;  %v730_v58 = vpop.f32.mrf.mxu2  ;;  %v892_v27 = vpop.f32.mrf.mxu3  ;;  %v394_v43 = vld [vmem:[%s10946_s0 + $0x330] sm:$0xff]  ;;  %v2828_v55 = vsel %vm271_vm6, %v7978_v11, -inf  ;;  %vm1965_vm14 = vcmp.eq.s32.totalorder %v7564_v32, 1 }
 0x353   :  { %v2060_v18 = vsel %vm1910_vm1, -1e+08, %v730_v58  ;;  %v2114_v34 = vsel %vm1964_vm4, -1e+08, %v892_v27  ;;  %v2788_v50 = vpop.xlane.xlu0 %2787  ;;  %v2584_v39 = vpop.xlane.xlu2 %2583  ;;  %11382 = vst [vmem:[#allocation63_spill] sm:$0xff] %v7978_v11  ;;  %v2211_v25 = vld [vmem:[%s10948_s2 + $0x2b0] sm:$0xff] }
 0x354   :  { %v3223_v35 = vmax.f32 %v3219_v33, %v2732_v8  ;;  %v7980_v40 = vsel %vm2414_vm2, -1e+30, %v2114_v34  ;;  %3097 = vst.msk [vmem:[%s10953_s7 + $0x230] sm:$0xff] %vm3026_vm11, %v2788_v50  ;;  %v529_v3 = vpop.f32.mrf.mxu0  ;;  %v634_v48 = vpop.f32.mrf.mxu1  ;;  %v7990_v58 = vsel %vm2360_vm3, -1e+30, %v2060_v18  ;;  %v2143_v50 = vld [vmem:[%s10948_s2 + $0x90] sm:$0xff] }
 0x355   :  { %11383 = vst [vmem:[#allocation41_spill] sm:$0xff] %v7980_v40  ;;  %v7994_v9 = vsel %vm271_vm6, %v7980_v40, -inf  ;;  %v2028_v34 = vsel %vm1878_vm5, -1e+08, %v634_v48  ;;  %v11387_v33 = vld [vmem:[#allocation19_spill] sm:$0xff]  ;;  %v2831_v27 = vsel %vm271_vm6, %v7990_v58, -inf }
 0x356   :  { %11384 = vst [vmem:[#allocation153_spill] sm:$0xff] %v7990_v58  ;;  %v3227_v13 = vmax.f32 %v3223_v35, %v7994_v9  ;;  %v8007_v8 = vsel %vm2328_vm7, -1e+30, %v2028_v34  ;;  %576 = vmatmul.f32.gmra.mxu0 %v326_v4  ;;  %vm1843_vm8 = vcmp.eq.s32.totalorder %v11387_v33, 1  ;;  %v2144_v4 = vld [vmem:[%s10948_s2 + $0x98] sm:$0xff]  ;;  %vm2293_vm9 = vcmp.eq.f32.partialorder %v2143_v50, 0.0 }
 0x357   :  { %11385 = vst [vmem:[#allocation154_spill] sm:$0xff] %v7994_v9  ;;  %v8018_v29 = vsel %vm271_vm6, %v8007_v8, -inf  ;;  %780 = vmatmul.f32.gmra.mxu2 %v394_v43  ;;  %v1993_v18 = vsel %vm1843_vm8, -1e+08, %v529_v3  ;;  %v11389_v48 = vld [vmem:[#allocation62_spill] sm:$0xff]  ;;  %vm2361_vm12 = vcmp.eq.f32.partialorder %v2211_v25, 0.0 }
 0x358   :  { %3029 = vst.msk [vmem:[%s10953_s7 + $0x10] sm:$0xff] %vm3026_vm11, %v2584_v39  ;;  %v2265_v39 = vld [vmem:[%s10948_s2 + $0x460] sm:$0xff]  ;;  %v3231_v35 = vmax.f32 %v3227_v13, %v8018_v29  ;;  %2829 = vmax.xlane.f32.xlu2 %v2828_v55  ;;  %2832 = vmax.xlane.f32.xlu0 %v2831_v27  ;;  %vm1911_vm10 = vcmp.eq.s32.totalorder %v11389_v48, 1  ;;  %v11390_v9 = vld [vmem:[#allocation21_spill] sm:$0xff]  ;;  %vm2294_vm0 = vcmp.eq.f32.partialorder %v2144_v4, 0.0  ;;  %vm1966_vm4 = vcmp.eq.s32.totalorder %v7609_v49, 1 }
 0x359   :  { %11386 = vst [vmem:[#allocation155_spill] sm:$0xff] %v8007_v8  ;;  %vm2415_vm13 = vcmp.eq.f32.partialorder %v2265_v39, 0.0  ;;  %vm1844_vm15 = vcmp.eq.s32.totalorder %v11390_v9, 1  ;;  %v8031_v40 = vsel %vm2293_vm9, -1e+30, %v1993_v18  ;;  %v395_v39 = vld [vmem:[%s10946_s0 + $0x338] sm:$0xff] }
 0x35a   :  { %11388 = vst [vmem:[#allocation19_spill] sm:$0xff] %v8018_v29  ;;  %v3235_v43 = vmax.f32 %v3231_v35, %v2828_v55  ;;  %v733_v34 = vpop.f32.mrf.mxu2  ;;  %v895_v33 = vpop.f32.mrf.mxu3  ;;  %v2179_v35 = vld [vmem:[%s10948_s2 + $0x1b0] sm:$0xff]  ;;  %v2630_v9 = vsel %vm271_vm6, %v8031_v40, -inf }
 0x35b   :  { %11391 = vst [vmem:[#allocation62_spill] sm:$0xff] %v8031_v40  ;;  %v2061_v3 = vsel %vm1911_vm10, -1e+08, %v733_v34  ;;  %v2115_v50 = vsel %vm1965_vm14, -1e+08, %v895_v33  ;;  %v2587_v8 = vpop.xlane.xlu2 %2586  ;;  %v2590_v13 = vpop.xlane.xlu0 %2589  ;;  %v11397_v33 = vld [vmem:[#allocation43_spill] sm:$0xff] }
 0x35c   :  { %v3239_v29 = vmax.f32 %v3235_v43, %v2831_v27  ;;  %v8033_v12 = vsel %vm2361_vm12, -1e+30, %v2061_v3  ;;  %v8035_v48 = vsel %vm2415_vm13, -1e+30, %v2115_v50  ;;  %3030 = vst.msk [vmem:[%s10953_s7 + $0x18] sm:$0xff] %vm3026_vm11, %v2587_v8  ;;  %v532_v32 = vpop.f32.mrf.mxu0  ;;  %v637_v25 = vpop.f32.mrf.mxu1  ;;  %v2266_v43 = vld [vmem:[%s10948_s2 + $0x468] sm:$0xff] }
 0x35d   :  { %11392 = vst [vmem:[#allocation21_spill] sm:$0xff] %v8033_v12  ;;  %v8046_v55 = vsel %vm271_vm6, %v8033_v12, -inf  ;;  %v1994_v27 = vsel %vm1844_vm15, -1e+08, %v532_v32  ;;  %v8066_v34 = vsel %vm271_vm6, %v8035_v48, -inf  ;;  %vm1879_vm1 = vcmp.eq.s32.totalorder %v11397_v33, 1 }
 0x35e   :  { %11393 = vst [vmem:[#allocation156_spill] sm:$0xff] %v8035_v48  ;;  %v3208_v8 = vmax.f32 %v8046_v55, %v3239_v29  ;;  %v8056_v18 = vsel %vm2294_vm0, -1e+30, %v1994_v27  ;;  %v2145_v3 = vld [vmem:[%s10948_s2 + $0xa0] sm:$0xff]  ;;  %v2180_v50 = vld [vmem:[%s10948_s2 + $0x1b8] sm:$0xff]  ;;  %vm2329_vm2 = vcmp.eq.f32.partialorder %v2179_v35, 0.0 }
 0x35f   :  { %11394 = vst [vmem:[#allocation157_spill] sm:$0xff] %v8046_v55  ;;  %783 = vmatmul.f32.gmra.mxu2 %v395_v39  ;;  %v2633_v29 = vsel %vm271_vm6, %v8056_v18, -inf  ;;  %vm2416_vm3 = vcmp.eq.f32.partialorder %v2266_v43, 0.0  ;;  %vm2295_vm7 = vcmp.eq.f32.partialorder %v2145_v3, 0.0  ;;  %v11399_v48 = vld [vmem:[#allocation45_spill] sm:$0xff]  ;;  %vm2330_vm9 = vcmp.eq.f32.partialorder %v2180_v50, 0.0 }
 0x360   :  { %3031 = vst.msk [vmem:[%s10953_s7 + $0x20] sm:$0xff] %vm3026_vm11, %v2590_v13  ;;  %v3212_v4 = vmax.f32 %v3208_v8, %v8066_v34  ;;  %2631 = vmax.xlane.f32.xlu2 %v2630_v9  ;;  %2634 = vmax.xlane.f32.xlu0 %v2633_v29  ;;  %v2029_v13 = vsel %vm1879_vm1, -1e+08, %v637_v25  ;;  %v11398_v8 = vld [vmem:[#allocation20_spill] sm:$0xff]  ;;  %vm1880_vm8 = vcmp.eq.s32.totalorder %v11399_v48, 1  ;;  %v2212_v25 = vld [vmem:[%s10948_s2 + $0x2b8] sm:$0xff] }
 0x361   :  { %11395 = vst [vmem:[#allocation158_spill] sm:$0xff] %v8056_v18  ;;  %vm1845_vm5 = vcmp.eq.s32.totalorder %v11398_v8, 1  ;;  %v8086_v35 = vsel %vm2329_vm2, -1e+30, %v2029_v13  ;;  %v396_v48 = vld [vmem:[%s10946_s0 + $0x340] sm:$0xff]  ;;  %vm2362_vm12 = vcmp.eq.f32.partialorder %v2212_v25, 0.0 }
 0x362   :  { %11396 = vst [vmem:[#allocation159_spill] sm:$0xff] %v8066_v34  ;;  %v3216_v32 = vmax.f32 %v3212_v4, %v2630_v9  ;;  %v736_v39 = vpop.f32.mrf.mxu2  ;;  %v898_v27 = vpop.f32.mrf.mxu3  ;;  %v2738_v3 = vsel %vm271_vm6, %v8086_v35, -inf }
 0x363   :  { %v2116_v33 = vsel %vm1966_vm4, -1e+08, %v898_v27  ;;  %v2695_v34 = vpop.xlane.xlu2 %2694  ;;  %v2698_v55 = vpop.xlane.xlu0 %2697  ;;  %11400 = vst [vmem:[#allocation43_spill] sm:$0xff] %v8086_v35 }
 0x364   :  { %v3220_v43 = vmax.f32 %v3216_v32, %v2633_v29  ;;  %v8088_v9 = vsel %vm2416_vm3, -1e+30, %v2116_v33  ;;  %3066 = vst.msk [vmem:[%s10953_s7 + $0x138] sm:$0xff] %vm3026_vm11, %v2695_v34  ;;  %v535_v49 = vpop.f32.mrf.mxu0  ;;  %v640_v4 = vpop.f32.mrf.mxu1  ;;  %v2267_v33 = vld [vmem:[%s10948_s2 + $0x470] sm:$0xff] }
 0x365   :  { %11401 = vst [vmem:[#allocation20_spill] sm:$0xff] %v8088_v9  ;;  %v8099_v50 = vsel %vm271_vm6, %v8088_v9, -inf  ;;  %v1995_v29 = vsel %vm1845_vm5, -1e+08, %v535_v49  ;;  %v2030_v13 = vsel %vm1880_vm8, -1e+08, %v640_v4 }
 0x366   :  { %11402 = vst [vmem:[#allocation45_spill] sm:$0xff] %v8099_v50  ;;  %v3224_v34 = vmax.f32 %v3220_v43, %v8099_v50  ;;  %v8109_v32 = vsel %vm2295_vm7, -1e+30, %v1995_v29  ;;  %v8111_v27 = vsel %vm2330_vm9, -1e+30, %v2030_v13  ;;  %v2213_v9 = vld [vmem:[%s10948_s2 + $0x2c0] sm:$0xff] }
 0x367   :  { %3067 = vst.msk [vmem:[%s10953_s7 + $0x140] sm:$0xff] %vm3026_vm11, %v2698_v55  ;;  %v11405_v55 = vld [vmem:[#allocation64_spill] sm:$0xff]  ;;  %v8122_v8 = vsel %vm271_vm6, %v8109_v32, -inf  ;;  %786 = vmatmul.f32.gmra.mxu2 %v396_v48  ;;  %v2741_v43 = vsel %vm271_vm6, %v8111_v27, -inf  ;;  %v11407_v13 = vld [vmem:[#allocation66_spill] sm:$0xff]  ;;  %vm2417_vm14 = vcmp.eq.f32.partialorder %v2267_v33, 0.0 }
 0x368   :  { %11403 = vst [vmem:[#allocation160_spill] sm:$0xff] %v8109_v32  ;;  %vm1912_vm10 = vcmp.eq.s32.totalorder %v11405_v55, 1  ;;  %v2181_v49 = vld [vmem:[%s10948_s2 + $0x1c0] sm:$0xff]  ;;  %v3228_v29 = vmax.f32 %v3224_v34, %v8122_v8  ;;  %2739 = vmax.xlane.f32.xlu2 %v2738_v3  ;;  %2742 = vmax.xlane.f32.xlu0 %v2741_v43  ;;  %vm1913_vm13 = vcmp.eq.s32.totalorder %v11407_v13, 1  ;;  %v1803_v55 = vpop.permute.xlu1 %1802  ;;  %vm2363_vm15 = vcmp.eq.f32.partialorder %v2213_v9, 0.0  ;;  %v11413_v13 = vld [vmem:[#allocation22_spill] sm:$0xff] }
 0x369   :  { %11404 = vst [vmem:[#allocation161_spill] sm:$0xff] %v8111_v27  ;;  %v2062_v4 = vsel %vm1912_vm10, -1e+08, %v736_v39  ;;  %vm1967_vm0 = vcmp.eq.s32.totalorder %v1803_v55, 1  ;;  %v11408_v27 = vld [vmem:[#allocation44_spill] sm:$0xff]  ;;  %vm2331_vm2 = vcmp.eq.f32.partialorder %v2181_v49, 0.0 }
 0x36a   :  { %11406 = vst [vmem:[#allocation64_spill] sm:$0xff] %v8122_v8  ;;  %v3232_v48 = vmax.f32 %v3228_v29, %v2738_v3  ;;  %v739_v50 = vpop.f32.mrf.mxu2  ;;  %v901_v35 = vpop.f32.mrf.mxu3  ;;  %vm1881_vm1 = vcmp.eq.s32.totalorder %v11408_v27, 1  ;;  %v8134_v34 = vsel %vm2362_vm12, -1e+30, %v2062_v4  ;;  %v397_v29 = vld [vmem:[%s10946_s0 + $0x348] sm:$0xff]  ;;  %vm1846_vm3 = vcmp.eq.s32.totalorder %v11413_v13, 1 }
 0x36b   :  { %v2063_v32 = vsel %vm1913_vm13, -1e+08, %v739_v50  ;;  %v2117_v18 = vsel %vm1967_vm0, -1e+08, %v901_v35  ;;  %v2794_v39 = vpop.xlane.xlu2 %2793  ;;  %v2797_v40 = vpop.xlane.xlu0 %2796  ;;  %11409 = vst [vmem:[#allocation66_spill] sm:$0xff] %v8134_v34  ;;  %v2214_v4 = vld [vmem:[%s10948_s2 + $0x2c8] sm:$0xff] }
 0x36c   :  { %v3236_v8 = vmax.f32 %v3232_v48, %v2741_v43  ;;  %v8136_v25 = vsel %vm2417_vm14, -1e+30, %v2117_v18  ;;  %3099 = vst.msk [vmem:[%s10953_s7 + $0x240] sm:$0xff] %vm3026_vm11, %v2794_v39  ;;  %v538_v33 = vpop.f32.mrf.mxu0  ;;  %v643_v3 = vpop.f32.mrf.mxu1  ;;  %v8146_v35 = vsel %vm2363_vm15, -1e+30, %v2063_v32  ;;  %v2146_v18 = vld [vmem:[%s10948_s2 + $0xa8] sm:$0xff] }
 0x36d   :  { %11410 = vst [vmem:[#allocation44_spill] sm:$0xff] %v8136_v25  ;;  %v8150_v50 = vsel %vm271_vm6, %v8136_v25, -inf  ;;  %v2031_v43 = vsel %vm1881_vm1, -1e+08, %v643_v3  ;;  %v2837_v27 = vsel %vm271_vm6, %v8134_v34, -inf  ;;  %v2147_v49 = vld [vmem:[%s10948_s2 + $0xb0] sm:$0xff] }
 0x36e   :  { %11411 = vst [vmem:[#allocation162_spill] sm:$0xff] %v8150_v50  ;;  %v3240_v9 = vmax.f32 %v3236_v8, %v8150_v50  ;;  %v8163_v32 = vsel %vm2331_vm2, -1e+30, %v2031_v43  ;;  %v2840_v8 = vsel %vm271_vm6, %v8146_v35, -inf  ;;  %v1996_v48 = vsel %vm1846_vm3, -1e+08, %v538_v33 }
 0x36f   :  { %3100 = vst.msk [vmem:[%s10953_s7 + $0x248] sm:$0xff] %vm3026_vm11, %v2797_v40  ;;  %v2268_v40 = vld [vmem:[%s10948_s2 + $0x478] sm:$0xff]  ;;  %v8174_v55 = vsel %vm271_vm6, %v8163_v32, -inf  ;;  %789 = vmatmul.f32.gmra.mxu2 %v397_v29  ;;  %vm2296_vm4 = vcmp.eq.f32.partialorder %v2146_v18, 0.0  ;;  %v11415_v3 = vld [vmem:[#allocation65_spill] sm:$0xff]  ;;  %vm2364_vm7 = vcmp.eq.f32.partialorder %v2214_v4, 0.0 }
 0x370   :  { %11412 = vst [vmem:[#allocation163_spill] sm:$0xff] %v8163_v32  ;;  %v3244_v39 = vmax.f32 %v3240_v9, %v8174_v55  ;;  %2838 = vmax.xlane.f32.xlu2 %v2837_v27  ;;  %2841 = vmax.xlane.f32.xlu0 %v2840_v8  ;;  %vm1914_vm5 = vcmp.eq.s32.totalorder %v11415_v3, 1  ;;  %vm2418_vm8 = vcmp.eq.f32.partialorder %v2268_v40, 0.0  ;;  %vm1968_vm9 = vcmp.eq.s32.totalorder %v7647_v20, 1  ;;  %v11416_v50 = vld [vmem:[#allocation24_spill] sm:$0xff]  ;;  %v398_v40 = vld [vmem:[%s10946_s0 + $0x350] sm:$0xff] }
 0x371   :  { %11414 = vst [vmem:[#allocation22_spill] sm:$0xff] %v8174_v55  ;;  %vm1847_vm10 = vcmp.eq.s32.totalorder %v11416_v50, 1  ;;  %vm2297_vm12 = vcmp.eq.f32.partialorder %v2147_v49, 0.0  ;;  %v8187_v25 = vsel %vm2296_vm4, -1e+30, %v1996_v48  ;;  %vm1969_vm0 = vcmp.eq.s32.totalorder %v7694_v61, 1 }
 0x372   :  { %v3248_v29 = vmax.f32 %v3244_v39, %v2837_v27  ;;  %v742_v43 = vpop.f32.mrf.mxu2  ;;  %v904_v13 = vpop.f32.mrf.mxu3  ;;  %11417 = vst [vmem:[#allocation65_spill] sm:$0xff] %v8187_v25  ;;  %v2182_v39 = vld [vmem:[%s10948_s2 + $0x1c8] sm:$0xff]  ;;  %v2639_v50 = vsel %vm271_vm6, %v8187_v25, -inf }
 0x373   :  { %v2064_v33 = vsel %vm1914_vm5, -1e+08, %v742_v43  ;;  %v2118_v18 = vsel %vm1968_vm9, -1e+08, %v904_v13  ;;  %v2596_v32 = vpop.xlane.xlu2 %2595  ;;  %v2599_v9 = vpop.xlane.xlu0 %2598  ;;  %v11422_v13 = vld [vmem:[#allocation46_spill] sm:$0xff]  ;;  %vm2332_vm14 = vcmp.eq.f32.partialorder %v2182_v39, 0.0 }
 0x374   :  { %v3252_v55 = vmax.f32 %v3248_v29, %v2840_v8  ;;  %v8189_v2 = vsel %vm2364_vm7, -1e+30, %v2064_v33  ;;  %v8191_v3 = vsel %vm2418_vm8, -1e+30, %v2118_v18  ;;  %3033 = vst.msk [vmem:[%s10953_s7 + $0x30] sm:$0xff] %vm3026_vm11, %v2596_v32  ;;  %v541_v20 = vpop.f32.mrf.mxu0  ;;  %v646_v4 = vpop.f32.mrf.mxu1  ;;  %v2269_v29 = vld [vmem:[%s10948_s2 + $0x480] sm:$0xff] }
 0x375   :  { %11418 = vst [vmem:[#allocation24_spill] sm:$0xff] %v8191_v3  ;;  %v8202_v27 = vsel %vm271_vm6, %v8189_v2, -inf  ;;  %v1997_v8 = vsel %vm1847_vm10, -1e+08, %v541_v20  ;;  %v8222_v43 = vsel %vm271_vm6, %v8191_v3, -inf  ;;  %vm1882_vm13 = vcmp.eq.s32.totalorder %v11422_v13, 1 }
 0x376   :  { %11419 = vst [vmem:[#allocation164_spill] sm:$0xff] %v8202_v27  ;;  %v3256_v32 = vmax.f32 %v3252_v55, %v8202_v27  ;;  %v8212_v48 = vsel %vm2297_vm12, -1e+30, %v1997_v8  ;;  %v2148_v33 = vld [vmem:[%s10948_s2 + $0xb8] sm:$0xff]  ;;  %v2183_v18 = vld [vmem:[%s10948_s2 + $0x1d0] sm:$0xff]  ;;  %vm2419_vm15 = vcmp.eq.f32.partialorder %v2269_v29, 0.0 }
 0x377   :  { %3034 = vst.msk [vmem:[%s10953_s7 + $0x38] sm:$0xff] %vm3026_vm11, %v2599_v9  ;;  %792 = vmatmul.f32.gmra.mxu2 %v398_v40  ;;  %v2642_v55 = vsel %vm271_vm6, %v8212_v48, -inf  ;;  %v2032_v9 = vsel %vm1882_vm13, -1e+08, %v646_v4  ;;  %vm2298_vm2 = vcmp.eq.f32.partialorder %v2148_v33, 0.0  ;;  %v11424_v3 = vld [vmem:[#allocation48_spill] sm:$0xff] }
 0x378   :  { %11420 = vst [vmem:[#allocation165_spill] sm:$0xff] %v8212_v48  ;;  %v3260_v49 = vmax.f32 %v3256_v32, %v8222_v43  ;;  %2640 = vmax.xlane.f32.xlu2 %v2639_v50  ;;  %2643 = vmax.xlane.f32.xlu0 %v2642_v55  ;;  %v11423_v32 = vld [vmem:[#allocation23_spill] sm:$0xff]  ;;  %vm1883_vm3 = vcmp.eq.s32.totalorder %v11424_v3, 1  ;;  %vm2333_vm4 = vcmp.eq.f32.partialorder %v2183_v18, 0.0  ;;  %v2215_v4 = vld [vmem:[%s10948_s2 + $0x2d0] sm:$0xff] }
 0x379   :  { %11421 = vst [vmem:[#allocation166_spill] sm:$0xff] %v8222_v43  ;;  %vm1848_vm1 = vcmp.eq.s32.totalorder %v11423_v32, 1  ;;  %v8242_v39 = vsel %vm2332_vm14, -1e+30, %v2032_v9  ;;  %v399_v3 = vld [vmem:[%s10946_s0 + $0x358] sm:$0xff]  ;;  %vm2365_vm7 = vcmp.eq.f32.partialorder %v2215_v4, 0.0 }
 0x37a   :  { %v3264_v20 = vmax.f32 %v3260_v49, %v2639_v50  ;;  %v745_v40 = vpop.f32.mrf.mxu2  ;;  %v907_v8 = vpop.f32.mrf.mxu3  ;;  %11425 = vst [vmem:[#allocation46_spill] sm:$0xff] %v8242_v39  ;;  %v2747_v33 = vsel %vm271_vm6, %v8242_v39, -inf }
 0x37b   :  { %v2119_v13 = vsel %vm1969_vm0, -1e+08, %v907_v8  ;;  %v2704_v43 = vpop.xlane.xlu2 %2703  ;;  %v2707_v27 = vpop.xlane.xlu0 %2706 }
 0x37c   :  { %v3268_v29 = vmax.f32 %v3264_v20, %v2642_v55  ;;  %v8244_v50 = vsel %vm2419_vm15, -1e+30, %v2119_v13  ;;  %3069 = vst.msk [vmem:[%s10953_s7 + $0x150] sm:$0xff] %vm3026_vm11, %v2704_v43  ;;  %v544_v61 = vpop.f32.mrf.mxu0  ;;  %v649_v49 = vpop.f32.mrf.mxu1  ;;  %v2270_v13 = vld [vmem:[%s10948_s2 + $0x488] sm:$0xff] }
 0x37d   :  { %11426 = vst [vmem:[#allocation23_spill] sm:$0xff] %v8244_v50  ;;  %v8255_v18 = vsel %vm271_vm6, %v8244_v50, -inf  ;;  %v1998_v55 = vsel %vm1848_vm1, -1e+08, %v544_v61  ;;  %v2033_v9 = vsel %vm1883_vm3, -1e+08, %v649_v49 }
 0x37e   :  { %11427 = vst [vmem:[#allocation48_spill] sm:$0xff] %v8255_v18  ;;  %v3272_v43 = vmax.f32 %v3268_v29, %v8255_v18  ;;  %v8265_v20 = vsel %vm2298_vm2, -1e+30, %v1998_v55  ;;  %v8267_v8 = vsel %vm2333_vm4, -1e+30, %v2033_v9  ;;  %v2216_v50 = vld [vmem:[%s10948_s2 + $0x2d8] sm:$0xff] }
 0x37f   :  { %3070 = vst.msk [vmem:[%s10953_s7 + $0x158] sm:$0xff] %vm3026_vm11, %v2707_v27  ;;  %v11430_v27 = vld [vmem:[#allocation67_spill] sm:$0xff]  ;;  %v8278_v32 = vsel %vm271_vm6, %v8265_v20, -inf  ;;  %795 = vmatmul.f32.gmra.mxu2 %v399_v3  ;;  %v2750_v29 = vsel %vm271_vm6, %v8267_v8, -inf  ;;  %v11432_v9 = vld [vmem:[#allocation69_spill] sm:$0xff]  ;;  %vm2420_vm9 = vcmp.eq.f32.partialorder %v2270_v13, 0.0 }
 0x380   :  { %11428 = vst [vmem:[#allocation167_spill] sm:$0xff] %v8265_v20  ;;  %vm1915_vm5 = vcmp.eq.s32.totalorder %v11430_v27, 1  ;;  %v2184_v61 = vld [vmem:[%s10948_s2 + $0x1d8] sm:$0xff]  ;;  %v3276_v55 = vmax.f32 %v3272_v43, %v8278_v32  ;;  %2748 = vmax.xlane.f32.xlu2 %v2747_v33  ;;  %2751 = vmax.xlane.f32.xlu0 %v2750_v29  ;;  %vm1916_vm8 = vcmp.eq.s32.totalorder %v11432_v9, 1  ;;  %v1812_v27 = vpop.permute.xlu1 %1811  ;;  %vm2366_vm10 = vcmp.eq.f32.partialorder %v2216_v50, 0.0  ;;  %v11437_v9 = vld [vmem:[#allocation25_spill] sm:$0xff] }
 0x381   :  { %11429 = vst [vmem:[#allocation168_spill] sm:$0xff] %v8267_v8  ;;  %v2065_v49 = vsel %vm1915_vm5, -1e+08, %v745_v40  ;;  %vm1970_vm12 = vcmp.eq.s32.totalorder %v1812_v27, 1  ;;  %v11433_v8 = vld [vmem:[#allocation47_spill] sm:$0xff]  ;;  %vm2334_vm14 = vcmp.eq.f32.partialorder %v2184_v61, 0.0 }
 0x382   :  { %11431 = vst [vmem:[#allocation67_spill] sm:$0xff] %v8278_v32  ;;  %v3277_v3 = vmax.f32 %v2747_v33, %v3276_v55  ;;  %v748_v18 = vpop.f32.mrf.mxu2  ;;  %v910_v39 = vpop.f32.mrf.mxu3  ;;  %vm1884_vm13 = vcmp.eq.s32.totalorder %v11433_v8, 1  ;;  %v8290_v43 = vsel %vm2365_vm7, -1e+30, %v2065_v49  ;;  %v400_v55 = vld [vmem:[%s10946_s0 + $0x360] sm:$0xff]  ;;  %vm1849_vm15 = vcmp.eq.s32.totalorder %v11437_v9, 1 }
 0x383   :  { %v2066_v20 = vsel %vm1916_vm8, -1e+08, %v748_v18  ;;  %v2120_v48 = vsel %vm1970_vm12, -1e+08, %v910_v39  ;;  %v2803_v40 = vpop.xlane.xlu2 %2802  ;;  %v2806_v25 = vpop.xlane.xlu0 %2805  ;;  %v2217_v49 = vld [vmem:[%s10948_s2 + $0x2e0] sm:$0xff]  ;;  %v2846_v8 = vsel %vm271_vm6, %v8290_v43, -inf }
 0x384   :  { %v3278_v32 = vmax.f32 %v2750_v29, %v3277_v3  ;;  %v8292_v4 = vsel %vm2420_vm9, -1e+30, %v2120_v48  ;;  %3102 = vst.msk [vmem:[%s10953_s7 + $0x258] sm:$0xff] %vm3026_vm11, %v2803_v40  ;;  %v547_v13 = vpop.f32.mrf.mxu0  ;;  %v652_v33 = vpop.f32.mrf.mxu1  ;;  %v8302_v39 = vsel %vm2366_vm10, -1e+30, %v2066_v20  ;;  %v2149_v48 = vld [vmem:[%s10948_s2 + $0xc0] sm:$0xff] }
 0x385   :  { %11434 = vst [vmem:[#allocation69_spill] sm:$0xff] %v8292_v4  ;;  %v8306_v18 = vsel %vm271_vm6, %v8292_v4, -inf  ;;  %v2034_v29 = vsel %vm1884_vm13, -1e+08, %v652_v33  ;;  %v2150_v61 = vld [vmem:[%s10948_s2 + $0xc8] sm:$0xff]  ;;  %vm2299_vm0 = vcmp.eq.f32.partialorder %v2149_v48, 0.0 }
 0x386   :  { %11435 = vst [vmem:[#allocation47_spill] sm:$0xff] %v8306_v18  ;;  %v3243_v50 = vmax.f32 %v8306_v18, %v3278_v32  ;;  %v8319_v20 = vsel %vm2334_vm14, -1e+30, %v2034_v29  ;;  %v2849_v32 = vsel %vm271_vm6, %v8302_v39, -inf  ;;  %v1999_v3 = vsel %vm1849_vm15, -1e+08, %v547_v13 }
 0x387   :  { %3103 = vst.msk [vmem:[%s10953_s7 + $0x260] sm:$0xff] %vm3026_vm11, %v2806_v25  ;;  %v2271_v25 = vld [vmem:[%s10948_s2 + $0x490] sm:$0xff]  ;;  %v8330_v27 = vsel %vm271_vm6, %v8319_v20, -inf  ;;  %798 = vmatmul.f32.gmra.mxu2 %v400_v55  ;;  %v11439_v33 = vld [vmem:[#allocation68_spill] sm:$0xff]  ;;  %vm2367_vm2 = vcmp.eq.f32.partialorder %v2217_v49, 0.0  ;;  %vm1971_vm4 = vcmp.eq.s32.totalorder %v7743_v7, 1 }
 0x388   :  { %11436 = vst [vmem:[#allocation169_spill] sm:$0xff] %v8319_v20  ;;  %v3247_v40 = vmax.f32 %v3243_v50, %v8330_v27  ;;  %2847 = vmax.xlane.f32.xlu2 %v2846_v8  ;;  %2850 = vmax.xlane.f32.xlu0 %v2849_v32  ;;  %vm1917_vm1 = vcmp.eq.s32.totalorder %v11439_v33, 1  ;;  %vm2421_vm3 = vcmp.eq.f32.partialorder %v2271_v25, 0.0  ;;  %v11440_v18 = vld [vmem:[#allocation27_spill] sm:$0xff]  ;;  %vm2300_vm7 = vcmp.eq.f32.partialorder %v2150_v61, 0.0  ;;  %v401_v25 = vld [vmem:[%s10946_s0 + $0x368] sm:$0xff] }
 0x389   :  { %11438 = vst [vmem:[#allocation25_spill] sm:$0xff] %v8330_v27  ;;  %vm1850_vm5 = vcmp.eq.s32.totalorder %v11440_v18, 1  ;;  %v8343_v20 = vsel %vm2299_vm0, -1e+30, %v1999_v3  ;;  %vm1972_vm12 = vcmp.eq.s32.totalorder %v7770_v37, 1 }
 0x38a   :  { %v3251_v55 = vmax.f32 %v3247_v40, %v2846_v8  ;;  %v751_v29 = vpop.f32.mrf.mxu2  ;;  %v913_v9 = vpop.f32.mrf.mxu3  ;;  %11441 = vst [vmem:[#allocation68_spill] sm:$0xff] %v8343_v20  ;;  %v2185_v40 = vld [vmem:[%s10948_s2 + $0x1e0] sm:$0xff]  ;;  %v2648_v18 = vsel %vm271_vm6, %v8343_v20, -inf }
 0x38b   :  { %v2067_v13 = vsel %vm1917_vm1, -1e+08, %v751_v29  ;;  %v2121_v48 = vsel %vm1971_vm4, -1e+08, %v913_v9  ;;  %v2605_v4 = vpop.xlane.xlu2 %2604  ;;  %v2608_v50 = vpop.xlane.xlu0 %2607  ;;  %v11446_v9 = vld [vmem:[#allocation49_spill] sm:$0xff]  ;;  %vm2335_vm9 = vcmp.eq.f32.partialorder %v2185_v40, 0.0 }
 0x38c   :  { %v3255_v27 = vmax.f32 %v3251_v55, %v2849_v32  ;;  %v8345_v0 = vsel %vm2367_vm2, -1e+30, %v2067_v13  ;;  %v8347_v33 = vsel %vm2421_vm3, -1e+30, %v2121_v48  ;;  %3036 = vst.msk [vmem:[%s10953_s7 + $0x48] sm:$0xff] %vm3026_vm11, %v2605_v4  ;;  %v550_v7 = vpop.f32.mrf.mxu0  ;;  %v655_v49 = vpop.f32.mrf.mxu1  ;;  %v2272_v55 = vld [vmem:[%s10948_s2 + $0x498] sm:$0xff] }
 0x38d   :  { %11442 = vst [vmem:[#allocation27_spill] sm:$0xff] %v8347_v33  ;;  %v8358_v8 = vsel %vm271_vm6, %v8345_v0, -inf  ;;  %v2000_v32 = vsel %vm1850_vm5, -1e+08, %v550_v7  ;;  %v8378_v29 = vsel %vm271_vm6, %v8347_v33, -inf  ;;  %vm1885_vm8 = vcmp.eq.s32.totalorder %v11446_v9, 1 }
 0x38e   :  { %11443 = vst [vmem:[#allocation170_spill] sm:$0xff] %v8358_v8  ;;  %v3259_v4 = vmax.f32 %v3255_v27, %v8358_v8  ;;  %v8368_v3 = vsel %vm2300_vm7, -1e+30, %v2000_v32  ;;  %v2151_v13 = vld [vmem:[%s10948_s2 + $0xd0] sm:$0xff]  ;;  %v2186_v48 = vld [vmem:[%s10948_s2 + $0x1e8] sm:$0xff]  ;;  %vm2422_vm10 = vcmp.eq.f32.partialorder %v2272_v55, 0.0 }
 0x38f   :  { %3037 = vst.msk [vmem:[%s10953_s7 + $0x50] sm:$0xff] %vm3026_vm11, %v2608_v50  ;;  %801 = vmatmul.f32.gmra.mxu2 %v401_v25  ;;  %v2651_v27 = vsel %vm271_vm6, %v8368_v3, -inf  ;;  %v2035_v50 = vsel %vm1885_vm8, -1e+08, %v655_v49  ;;  %vm2301_vm14 = vcmp.eq.f32.partialorder %v2151_v13, 0.0  ;;  %v11448_v33 = vld [vmem:[#allocation51_spill] sm:$0xff] }
 0x390   :  { %11444 = vst [vmem:[#allocation171_spill] sm:$0xff] %v8368_v3  ;;  %v3263_v61 = vmax.f32 %v3259_v4, %v8378_v29  ;;  %2649 = vmax.xlane.f32.xlu2 %v2648_v18  ;;  %2652 = vmax.xlane.f32.xlu0 %v2651_v27  ;;  %v11447_v4 = vld [vmem:[#allocation26_spill] sm:$0xff]  ;;  %vm1886_vm15 = vcmp.eq.s32.totalorder %v11448_v33, 1  ;;  %vm2336_vm0 = vcmp.eq.f32.partialorder %v2186_v48, 0.0  ;;  %v2218_v49 = vld [vmem:[%s10948_s2 + $0x2e8] sm:$0xff] }
 0x391   :  { %11445 = vst [vmem:[#allocation172_spill] sm:$0xff] %v8378_v29  ;;  %vm1851_vm13 = vcmp.eq.s32.totalorder %v11447_v4, 1  ;;  %v8398_v40 = vsel %vm2335_vm9, -1e+30, %v2035_v50  ;;  %v402_v33 = vld [vmem:[%s10946_s0 + $0x370] sm:$0xff]  ;;  %v1821_v4 = vpop.permute.xlu1 %1820  ;;  %vm2368_vm2 = vcmp.eq.f32.partialorder %v2218_v49, 0.0 }
 0x392   :  { %v3267_v7 = vmax.f32 %v3263_v61, %v2648_v18  ;;  %v754_v25 = vpop.f32.mrf.mxu2  ;;  %v916_v32 = vpop.f32.mrf.mxu3  ;;  %11449 = vst [vmem:[#allocation49_spill] sm:$0xff] %v8398_v40  ;;  %v2756_v13 = vsel %vm271_vm6, %v8398_v40, -inf  ;;  %vm1973_vm7 = vcmp.eq.s32.totalorder %v1821_v4, 1  ;;  %v2220_v4 = vld [vmem:[%s10948_s2 + $0x2f8] sm:$0xff] }
 0x393   :  { %v2122_v9 = vsel %vm1972_vm12, -1e+08, %v916_v32  ;;  %v2713_v29 = vpop.xlane.xlu2 %2712  ;;  %v2716_v8 = vpop.xlane.xlu0 %2715 }
 0x394   :  { %v3271_v55 = vmax.f32 %v3267_v7, %v2651_v27  ;;  %v8400_v18 = vsel %vm2422_vm10, -1e+30, %v2122_v9  ;;  %3072 = vst.msk [vmem:[%s10953_s7 + $0x168] sm:$0xff] %vm3026_vm11, %v2713_v29  ;;  %v553_v37 = vpop.f32.mrf.mxu0  ;;  %v658_v61 = vpop.f32.mrf.mxu1  ;;  %v2219_v9 = vld [vmem:[%s10948_s2 + $0x2f0] sm:$0xff] }
 0x395   :  { %11450 = vst [vmem:[#allocation26_spill] sm:$0xff] %v8400_v18  ;;  %v8411_v48 = vsel %vm271_vm6, %v8400_v18, -inf  ;;  %v2001_v27 = vsel %vm1851_vm13, -1e+08, %v553_v37  ;;  %v2036_v50 = vsel %vm1886_vm15, -1e+08, %v658_v61 }
 0x396   :  { %11451 = vst [vmem:[#allocation51_spill] sm:$0xff] %v8411_v48  ;;  %v3275_v29 = vmax.f32 %v3271_v55, %v8411_v48  ;;  %v8421_v7 = vsel %vm2301_vm14, -1e+30, %v2001_v27  ;;  %v8423_v32 = vsel %vm2336_vm0, -1e+30, %v2036_v50  ;;  %v2273_v18 = vld [vmem:[%s10948_s2 + $0x4a0] sm:$0xff] }
 0x397   :  { %3073 = vst.msk [vmem:[%s10953_s7 + $0x170] sm:$0xff] %vm3026_vm11, %v2716_v8  ;;  %v11454_v8 = vld [vmem:[#allocation70_spill] sm:$0xff]  ;;  %v8434_v37 = vsel %vm271_vm6, %v8421_v7, -inf  ;;  %804 = vmatmul.f32.gmra.mxu2 %v402_v33  ;;  %v2759_v55 = vsel %vm271_vm6, %v8423_v32, -inf  ;;  %vm2369_vm3 = vcmp.eq.f32.partialorder %v2219_v9, 0.0  ;;  %vm2423_vm4 = vcmp.eq.f32.partialorder %v2273_v18, 0.0 }
 0x398   :  { %11452 = vst [vmem:[#allocation173_spill] sm:$0xff] %v8421_v7  ;;  %vm1918_vm1 = vcmp.eq.s32.totalorder %v11454_v8, 1  ;;  %v2187_v61 = vld [vmem:[%s10948_s2 + $0x1f0] sm:$0xff]  ;;  %v3279_v50 = vmax.f32 %v3275_v29, %v8434_v37  ;;  %2757 = vmax.xlane.f32.xlu2 %v2756_v13  ;;  %2760 = vmax.xlane.f32.xlu0 %v2759_v55  ;;  %v11456_v8 = vld [vmem:[#allocation72_spill] sm:$0xff]  ;;  %vm2370_vm14 = vcmp.eq.f32.partialorder %v2220_v4, 0.0  ;;  %vm1974_vm0 = vcmp.eq.s32.totalorder %v7809_v6, 1 }
 0x399   :  { %11453 = vst [vmem:[#allocation174_spill] sm:$0xff] %v8423_v32  ;;  %v2068_v27 = vsel %vm1918_vm1, -1e+08, %v754_v25  ;;  %vm1919_vm5 = vcmp.eq.s32.totalorder %v11456_v8, 1  ;;  %vm2337_vm8 = vcmp.eq.f32.partialorder %v2187_v61, 0.0  ;;  %v2153_v8 = vld [vmem:[%s10948_s2 + $0xe0] sm:$0xff] }
 0x39a   :  { %11455 = vst [vmem:[#allocation70_spill] sm:$0xff] %v8434_v37  ;;  %v3280_v33 = vmax.f32 %v2756_v13, %v3279_v50  ;;  %v757_v48 = vpop.f32.mrf.mxu2  ;;  %v919_v40 = vpop.f32.mrf.mxu3  ;;  %v8445_v42 = vsel %vm2368_vm2, -1e+30, %v2068_v27  ;;  %v2274_v13 = vld [vmem:[%s10948_s2 + $0x4a8] sm:$0xff]  ;;  %vm2303_vm2 = vcmp.eq.f32.partialorder %v2153_v8, 0.0 }
 0x39b   :  { %v2069_v32 = vsel %vm1919_vm5, -1e+08, %v757_v48  ;;  %v2123_v7 = vsel %vm1973_vm7, -1e+08, %v919_v40  ;;  %v2812_v3 = vpop.xlane.xlu2 %2811  ;;  %v2815_v20 = vpop.xlane.xlu0 %2814  ;;  %v403_v40 = vld [vmem:[%s10946_s0 + $0x378] sm:$0xff]  ;;  %v2855_v50 = vsel %vm271_vm6, %v8445_v42, -inf }
 0x39c   :  { %v3281_v25 = vmax.f32 %v2759_v55, %v3280_v33  ;;  %v8447_v29 = vsel %vm2369_vm3, -1e+30, %v2069_v32  ;;  %v8449_v37 = vsel %vm2423_vm4, -1e+30, %v2123_v7  ;;  %3105 = vst.msk [vmem:[%s10953_s7 + $0x270] sm:$0xff] %vm3026_vm11, %v2812_v3  ;;  %v556_v49 = vpop.f32.mrf.mxu0  ;;  %v661_v18 = vpop.f32.mrf.mxu1  ;;  %v2152_v7 = vld [vmem:[%s10948_s2 + $0xd8] sm:$0xff] }
 0x39d   :  { %11457 = vst [vmem:[#allocation72_spill] sm:$0xff] %v8449_v37  ;;  %v8460_v48 = vsel %vm271_vm6, %v8447_v29, -inf  ;;  %v11459_v3 = vld [vmem:[#allocation50_spill] sm:$0xff]  ;;  %v11461_v55 = vld [vmem:[#allocation28_spill] sm:$0xff]  ;;  %vm2302_vm12 = vcmp.eq.f32.partialorder %v2152_v7, 0.0  ;;  %vm2424_vm15 = vcmp.eq.f32.partialorder %v2274_v13, 0.0 }
 0x39e   :  { %11458 = vst [vmem:[#allocation175_spill] sm:$0xff] %v8460_v48  ;;  %vm1887_vm9 = vcmp.eq.s32.totalorder %v11459_v3, 1  ;;  %v3282_v32 = vmax.f32 %v8460_v48, %v3281_v25  ;;  %vm1852_vm10 = vcmp.eq.s32.totalorder %v11461_v55, 1  ;;  %v11465_v55 = vld [vmem:[#allocation30_spill] sm:$0xff]  ;;  %v11471_v8 = vld [vmem:[#allocation52_spill] sm:$0xff] }
 0x39f   :  { %3106 = vst.msk [vmem:[%s10953_s7 + $0x278] sm:$0xff] %vm3026_vm11, %v2815_v20  ;;  %v2037_v9 = vsel %vm1887_vm9, -1e+08, %v661_v18  ;;  %v8479_v20 = vsel %vm271_vm6, %v8449_v37, -inf  ;;  %807 = vmatmul.f32.gmra.mxu2 %v403_v40  ;;  %v2002_v25 = vsel %vm1852_vm10, -1e+08, %v556_v49 }
 0x3a0   :  { %11460 = vst [vmem:[#allocation50_spill] sm:$0xff] %v8479_v20  ;;  %v8483_v27 = vsel %vm2337_vm8, -1e+30, %v2037_v9  ;;  %v3283_v33 = vmax.f32 %v8479_v20, %v3282_v32  ;;  %2856 = vmax.xlane.f32.xlu2 %v2855_v50  ;;  %v11463_v18 = vld [vmem:[#allocation71_spill] sm:$0xff]  ;;  %vm1853_vm1 = vcmp.eq.s32.totalorder %v11465_v55, 1  ;;  %vm1888_vm3 = vcmp.eq.s32.totalorder %v11471_v8, 1 }
 0x3a1   :  { %11462 = vst [vmem:[#allocation28_spill] sm:$0xff] %v8483_v27  ;;  %vm1920_vm13 = vcmp.eq.s32.totalorder %v11463_v18, 1  ;;  %v8494_v61 = vsel %vm271_vm6, %v8483_v27, -inf  ;;  %v8499_v49 = vsel %vm2302_vm12, -1e+30, %v2002_v25 }
 0x3a2   :  { %11464 = vst [vmem:[#allocation71_spill] sm:$0xff] %v8494_v61  ;;  %v3284_v40 = vmax.f32 %v8494_v61, %v3283_v33  ;;  %v760_v3 = vpop.f32.mrf.mxu2  ;;  %v922_v9 = vpop.f32.mrf.mxu3  ;;  %v404_v33 = vld [vmem:[%s10946_s0 + $0x380] sm:$0xff] }
 0x3a3   :  { %11466 = vst [vmem:[#allocation30_spill] sm:$0xff] %v8499_v49  ;;  %v2070_v7 = vsel %vm1920_vm13, -1e+08, %v760_v3  ;;  %v2124_v32 = vsel %vm1974_vm0, -1e+08, %v922_v9  ;;  %v2614_v18 = vpop.xlane.xlu2 %2613  ;;  %v2617_v20 = vpop.xlane.xlu0 %2616  ;;  %v2188_v9 = vld [vmem:[%s10948_s2 + $0x1f8] sm:$0xff] }
 0x3a4   :  { %v3285_v48 = vmax.f32 %v2855_v50, %v3284_v40  ;;  %v8501_v27 = vsel %vm2370_vm14, -1e+30, %v2070_v7  ;;  %v8503_v4 = vsel %vm2424_vm15, -1e+30, %v2124_v32  ;;  %3039 = vst.msk [vmem:[%s10953_s7 + $0x60] sm:$0xff] %vm3026_vm11, %v2614_v18  ;;  %v559_v6 = vpop.f32.mrf.mxu0  ;;  %v664_v13 = vpop.f32.mrf.mxu1  ;;  %v2154_v32 = vld [vmem:[%s10948_s2 + $0xe8] sm:$0xff] }
 0x3a5   :  { %11467 = vst [vmem:[#allocation176_spill] sm:$0xff] %v8503_v4  ;;  %v8514_v25 = vsel %vm271_vm6, %v8501_v27, -inf  ;;  %v2003_v50 = vsel %vm1853_vm1, -1e+08, %v559_v6  ;;  %v8531_v7 = vsel %vm271_vm6, %v8503_v4, -inf  ;;  %v2189_v18 = vld [vmem:[%s10948_s2 + $0x200] sm:$0xff] }
 0x3a6   :  { %11468 = vst [vmem:[#allocation177_spill] sm:$0xff] %v8514_v25  ;;  %v3286_v40 = vmax.f32 %v8514_v25, %v3285_v48  ;;  %v8524_v3 = vsel %vm2303_vm2, -1e+30, %v2003_v50  ;;  %v2038_v6 = vsel %vm1888_vm3, -1e+08, %v664_v13  ;;  %vm2338_vm4 = vcmp.eq.f32.partialorder %v2188_v9, 0.0 }
 0x3a7   :  { %3040 = vst.msk [vmem:[%s10953_s7 + $0x68] sm:$0xff] %vm3026_vm11, %v2617_v20  ;;  %810 = vmatmul.f32.gmra.mxu2 %v404_v33  ;;  %v2657_v20 = vsel %vm271_vm6, %v8499_v49, -inf  ;;  %v2660_v55 = vsel %vm271_vm6, %v8524_v3, -inf  ;;  %vm2304_vm5 = vcmp.eq.f32.partialorder %v2154_v32, 0.0  ;;  %vm2339_vm7 = vcmp.eq.f32.partialorder %v2189_v18, 0.0  ;;  %v11473_v4 = vld [vmem:[#allocation29_spill] sm:$0xff] }
 0x3a8   :  { %11469 = vst [vmem:[#allocation178_spill] sm:$0xff] %v8524_v3  ;;  %v3287_v48 = vmax.f32 %v8531_v7, %v3286_v40  ;;  %2658 = vmax.xlane.f32.xlu2 %v2657_v20  ;;  %2661 = vmax.xlane.f32.xlu0 %v2660_v55  ;;  %v8545_v40 = vsel %vm2338_vm4, -1e+30, %v2038_v6  ;;  %vm1854_vm8 = vcmp.eq.s32.totalorder %v11473_v4, 1  ;;  %v11474_v13 = vld [vmem:[#allocation54_spill] sm:$0xff]  ;;  %v405_v9 = vld [vmem:[%s10946_s0 + $0x388] sm:$0xff] }
 0x3a9   :  { %11470 = vst [vmem:[#allocation179_spill] sm:$0xff] %v8531_v7  ;;  %vm1889_vm9 = vcmp.eq.s32.totalorder %v11474_v13, 1  ;;  %v2222_v4 = vld [vmem:[%s10948_s2 + $0x308] sm:$0xff]  ;;  %v2221_v32 = vld [vmem:[%s10948_s2 + $0x300] sm:$0xff] }
 0x3aa   :  { %v3288_v33 = vmax.f32 %v2657_v20, %v3287_v48  ;;  %v763_v50 = vpop.f32.mrf.mxu2  ;;  %11472 = vst [vmem:[#allocation52_spill] sm:$0xff] %v8545_v40  ;;  %vm2372_vm12 = vcmp.eq.f32.partialorder %v2222_v4, 0.0  ;;  %vm2371_vm13 = vcmp.eq.f32.partialorder %v2221_v32, 0.0  ;;  %v11479_v49 = vld [vmem:[#allocation53_spill] sm:$0xff] }
 0x3ab   :  { %v2722_v25 = vpop.xlane.xlu2 %2721  ;;  %v2725_v61 = vpop.xlane.xlu0 %2724  ;;  %vm1890_vm15 = vcmp.eq.s32.totalorder %v11479_v49, 1  ;;  %v406_v32 = vld [vmem:[%s10946_s0 + $0x390] sm:$0xff] }
 0x3ac   :  { %v3289_v8 = vmax.f32 %v2660_v55, %v3288_v33  ;;  %3075 = vst.msk [vmem:[%s10953_s7 + $0x180] sm:$0xff] %vm3026_vm11, %v2722_v25  ;;  %v562_v7 = vpop.f32.mrf.mxu0  ;;  %v667_v37 = vpop.f32.mrf.mxu1  ;;  %v2190_v33 = vld [vmem:[%s10948_s2 + $0x208] sm:$0xff] }
 0x3ad   :  { %3076 = vst.msk [vmem:[%s10953_s7 + $0x188] sm:$0xff] %vm3026_vm11, %v2725_v61  ;;  %v2004_v20 = vsel %vm1854_vm8, -1e+08, %v562_v7  ;;  %v2039_v55 = vsel %vm1889_vm9, -1e+08, %v667_v37  ;;  %v2765_v37 = vsel %vm271_vm6, %v8545_v40, -inf }
 0x3ae   :  { %v8560_v48 = vsel %vm2304_vm5, -1e+30, %v2004_v20  ;;  %v8562_v25 = vsel %vm2339_vm7, -1e+30, %v2039_v55  ;;  %v11477_v7 = vld [vmem:[#allocation73_spill] sm:$0xff]  ;;  %vm2340_vm0 = vcmp.eq.f32.partialorder %v2190_v33, 0.0 }
 0x3af   :  { %11475 = vst [vmem:[#allocation29_spill] sm:$0xff] %v8560_v48  ;;  %v8572_v18 = vsel %vm271_vm6, %v8560_v48, -inf  ;;  %813 = vmatmul.f32.gmra.mxu2 %v405_v9  ;;  %v2768_v61 = vsel %vm271_vm6, %v8562_v25, -inf  ;;  %vm1921_vm10 = vcmp.eq.s32.totalorder %v11477_v7, 1  ;;  %v11478_v9 = vld [vmem:[#allocation75_spill] sm:$0xff]  ;;  %v2223_v33 = vld [vmem:[%s10948_s2 + $0x310] sm:$0xff] }
 0x3b0   :  { %11476 = vst [vmem:[#allocation54_spill] sm:$0xff] %v8572_v18  ;;  %v3290_v6 = vmax.f32 %v8572_v18, %v3289_v8  ;;  %2766 = vmax.xlane.f32.xlu2 %v2765_v37  ;;  %2769 = vmax.xlane.f32.xlu0 %v2768_v61  ;;  %v2071_v13 = vsel %vm1921_vm10, -1e+08, %v763_v50  ;;  %vm1922_vm14 = vcmp.eq.s32.totalorder %v11478_v9, 1  ;;  %v11484_v9 = vld [vmem:[#allocation31_spill] sm:$0xff]  ;;  %vm2373_vm3 = vcmp.eq.f32.partialorder %v2223_v33, 0.0 }
 0x3b1   :  { %vm1855_vm1 = vcmp.eq.s32.totalorder %v11484_v9, 1 }
 0x3b2   :  { %v3291_v20 = vmax.f32 %v2765_v37, %v3290_v6  ;;  %v766_v55 = vpop.f32.mrf.mxu2  ;;  %v8594_v37 = vsel %vm2371_vm13, -1e+30, %v2071_v13 }
 0x3b3   :  { %v2072_v40 = vsel %vm1922_vm14, -1e+08, %v766_v55  ;;  %v2821_v48 = vpop.xlane.xlu2 %2820  ;;  %v2824_v3 = vpop.xlane.xlu0 %2823  ;;  %11481 = vst [vmem:[#allocation75_spill] sm:$0xff] %v8594_v37  ;;  %v2156_v55 = vld [vmem:[%s10948_s2 + $0xf8] sm:$0xff] }
 0x3b4   :  { %v3292_v8 = vmax.f32 %v2768_v61, %v3291_v20  ;;  %v8585_v7 = vsel %vm2372_vm12, -1e+30, %v2072_v40  ;;  %3108 = vst.msk [vmem:[%s10953_s7 + $0x288] sm:$0xff] %vm3026_vm11, %v2821_v48  ;;  %v565_v50 = vpop.f32.mrf.mxu0  ;;  %v670_v4 = vpop.f32.mrf.mxu1  ;;  %v2155_v61 = vld [vmem:[%s10948_s2 + $0xf0] sm:$0xff]  ;;  %vm2306_vm7 = vcmp.eq.f32.partialorder %v2156_v55, 0.0 }
 0x3b5   :  { %11480 = vst [vmem:[#allocation73_spill] sm:$0xff] %v8585_v7  ;;  %v8598_v49 = vsel %vm271_vm6, %v8585_v7, -inf  ;;  %v2040_v40 = vsel %vm1890_vm15, -1e+08, %v670_v4  ;;  %vm2305_vm2 = vcmp.eq.f32.partialorder %v2155_v61, 0.0 }
 0x3b6   :  { %11482 = vst [vmem:[#allocation53_spill] sm:$0xff] %v8598_v49  ;;  %v3296_v48 = vmax.f32 %v3292_v8, %v8598_v49  ;;  %v8608_v6 = vsel %vm2340_vm0, -1e+30, %v2040_v40  ;;  %v2005_v8 = vsel %vm1855_vm1, -1e+08, %v565_v50  ;;  %v11485_v49 = vld [vmem:[#allocation74_spill] sm:$0xff] }
 0x3b7   :  { %3109 = vst.msk [vmem:[%s10953_s7 + $0x290] sm:$0xff] %vm3026_vm11, %v2824_v3  ;;  %v8615_v13 = vsel %vm271_vm6, %v8608_v6, -inf  ;;  %816 = vmatmul.f32.gmra.mxu2 %v406_v32  ;;  %v2864_v3 = vsel %vm271_vm6, %v8594_v37, -inf  ;;  %vm1923_vm4 = vcmp.eq.s32.totalorder %v11485_v49, 1  ;;  %v11486_v37 = vld [vmem:[#allocation33_spill] sm:$0xff]  ;;  %v407_v49 = vld [vmem:[%s10946_s0 + $0x398] sm:$0xff] }
 0x3b8   :  { %11483 = vst [vmem:[#allocation180_spill] sm:$0xff] %v8615_v13  ;;  %v3300_v20 = vmax.f32 %v3296_v48, %v8615_v13  ;;  %2865 = vmax.xlane.f32.xlu2 %v2864_v3  ;;  %vm1856_vm5 = vcmp.eq.s32.totalorder %v11486_v37, 1  ;;  %v8626_v9 = vsel %vm2305_vm2, -1e+30, %v2005_v8  ;;  %vm1925_vm2 = vcmp.eq.s32.totalorder %v6785_v24, 1 }
 0x3b9   :  { %11487 = vst [vmem:[#allocation31_spill] sm:$0xff] %v8626_v9  ;;  %v2666_v55 = vsel %vm271_vm6, %v8626_v9, -inf  ;;  %v11493_v9 = vld [vmem:[#allocation56_spill] sm:$0xff] }
 0x3ba   :  { %v3304_v4 = vmax.f32 %v3300_v20, %v2864_v3  ;;  %v769_v40 = vpop.f32.mrf.mxu2  ;;  %vm1892_vm14 = vcmp.eq.s32.totalorder %v11493_v9, 1  ;;  %v2225_v9 = vld [vmem:[%s10948_s2 + $0x320] sm:$0xff] }
 0x3bb   :  { %v2073_v32 = vsel %vm1923_vm4, -1e+08, %v769_v40  ;;  %v2623_v18 = vpop.xlane.xlu2 %2622  ;;  %v2626_v7 = vpop.xlane.xlu0 %2625  ;;  %v11491_v40 = vld [vmem:[#allocation55_spill] sm:$0xff]  ;;  %vm2375_vm1 = vcmp.eq.f32.partialorder %v2225_v9, 0.0  ;;  %v2226_v9 = vld [vmem:[%s10948_s2 + $0x328] sm:$0xff] }
 0x3bc   :  { %v8628_v48 = vsel %vm2373_vm3, -1e+30, %v2073_v32  ;;  %3042 = vst.msk [vmem:[%s10953_s7 + $0x78] sm:$0xff] %vm3026_vm11, %v2623_v18  ;;  %v568_v50 = vpop.f32.mrf.mxu0  ;;  %v673_v61 = vpop.f32.mrf.mxu1  ;;  %v2191_v18 = vld [vmem:[%s10948_s2 + $0x210] sm:$0xff]  ;;  %vm1891_vm8 = vcmp.eq.s32.totalorder %v11491_v40, 1 }
 0x3bd   :  { %11488 = vst [vmem:[#allocation74_spill] sm:$0xff] %v8628_v48  ;;  %v8639_v33 = vsel %vm271_vm6, %v8628_v48, -inf  ;;  %v2006_v37 = vsel %vm1856_vm5, -1e+08, %v568_v50  ;;  %v2041_v50 = vsel %vm1891_vm8, -1e+08, %v673_v61 }
 0x3be   :  { %11489 = vst [vmem:[#allocation33_spill] sm:$0xff] %v8639_v33  ;;  %v3308_v3 = vmax.f32 %v3304_v4, %v8639_v33  ;;  %v8646_v20 = vsel %vm2306_vm7, -1e+30, %v2006_v37  ;;  %v2192_v4 = vld [vmem:[%s10948_s2 + $0x218] sm:$0xff]  ;;  %vm2341_vm9 = vcmp.eq.f32.partialorder %v2191_v18, 0.0  ;;  %v408_v61 = vld [vmem:[%s10946_s0 + $0x3a0] sm:$0xff] }
 0x3bf   :  { %3043 = vst.msk [vmem:[%s10953_s7 + $0x80] sm:$0xff] %vm3026_vm11, %v2626_v7  ;;  %819 = vmatmul.f32.gmra.mxu2 %v407_v49  ;;  %v2669_v8 = vsel %vm271_vm6, %v8646_v20, -inf  ;;  %v2157_v7 = vld [vmem:[%s10948_s2 + $0x100] sm:$0xff]  ;;  %vm2342_vm12 = vcmp.eq.f32.partialorder %v2192_v4, 0.0  ;;  %v8662_v40 = vsel %vm2341_vm9, -1e+30, %v2041_v50 }
 0x3c0   :  { %11490 = vst [vmem:[#allocation181_spill] sm:$0xff] %v8646_v20  ;;  %v3312_v32 = vmax.f32 %v3308_v3, %v2666_v55  ;;  %2667 = vmax.xlane.f32.xlu2 %v2666_v55  ;;  %2670 = vmax.xlane.f32.xlu0 %v2669_v8  ;;  %vm2307_vm10 = vcmp.eq.f32.partialorder %v2157_v7, 0.0  ;;  %v11492_v55 = vld [vmem:[#allocation32_spill] sm:$0xff]  ;;  %vm2376_vm5 = vcmp.eq.f32.partialorder %v2226_v9, 0.0 }
 0x3c1   :  { %vm1857_vm13 = vcmp.eq.s32.totalorder %v11492_v55, 1  ;;  %v11495_v50 = vld [vmem:[#allocation76_spill] sm:$0xff] }
 0x3c2   :  { %v3316_v49 = vmax.f32 %v3312_v32, %v2669_v8  ;;  %v772_v37 = vpop.f32.mrf.mxu2  ;;  %vm1924_vm15 = vcmp.eq.s32.totalorder %v11495_v50, 1 }
 0x3c3   :  { %v2731_v33 = vpop.xlane.xlu2 %2730  ;;  %v2734_v13 = vpop.xlane.xlu0 %2733  ;;  %v2074_v55 = vsel %vm1924_vm15, -1e+08, %v772_v37  ;;  %v409_v37 = vld [vmem:[%s10946_s0 + $0x3a8] sm:$0xff]  ;;  %vm1929_vm15 = vcmp.eq.s32.totalorder %v6795_v5, 1 }
 0x3c4   :  { %3078 = vst.msk [vmem:[%s10953_s7 + $0x198] sm:$0xff] %vm3026_vm11, %v2731_v33  ;;  %v571_v3 = vpop.f32.mrf.mxu0  ;;  %v676_v20 = vpop.f32.mrf.mxu1  ;;  %v2224_v33 = vld [vmem:[%s10948_s2 + $0x318] sm:$0xff] }
 0x3c5   :  { %3079 = vst.msk [vmem:[%s10953_s7 + $0x1a0] sm:$0xff] %vm3026_vm11, %v2734_v13  ;;  %v2007_v18 = vsel %vm1857_vm13, -1e+08, %v571_v3  ;;  %v2042_v8 = vsel %vm1892_vm14, -1e+08, %v676_v20  ;;  %v2774_v13 = vsel %vm271_vm6, %v8662_v40, -inf }
 0x3c6   :  { %v8680_v32 = vsel %vm2307_vm10, -1e+30, %v2007_v18  ;;  %v8682_v7 = vsel %vm2342_vm12, -1e+30, %v2042_v8  ;;  %vm2374_vm0 = vcmp.eq.f32.partialorder %v2224_v33, 0.0  ;;  %vm1927_vm12 = vcmp.eq.s32.totalorder %v6787_v21, 1 }
 0x3c7   :  { %v8689_v4 = vsel %vm271_vm6, %v8680_v32, -inf  ;;  %822 = vmatmul.f32.gmra.mxu2 %v408_v61  ;;  %v2777_v20 = vsel %vm271_vm6, %v8682_v7, -inf  ;;  %v8698_v58 = vsel %vm2374_vm0, -1e+30, %v2074_v55  ;;  %v11500_v55 = vld [vmem:[#allocation77_spill] sm:$0xff]  ;;  %vm1928_vm13 = vcmp.eq.s32.totalorder %v6801_v52, 1 }
 0x3c8   :  { %11494 = vst [vmem:[#allocation55_spill] sm:$0xff] %v8689_v4  ;;  %v3320_v3 = vmax.f32 %v3316_v49, %v8689_v4  ;;  %2775 = vmax.xlane.f32.xlu2 %v2774_v13  ;;  %2778 = vmax.xlane.f32.xlu0 %v2777_v20  ;;  %vm1926_vm7 = vcmp.eq.s32.totalorder %v11500_v55, 1  ;;  %v413_v52 = vld [vmem:[%s10946_s0 + $0x3c8] sm:$0xff] }
 0x3c9   :  { %11496 = vst [vmem:[#allocation32_spill] sm:$0xff] %v8698_v58 }
 0x3ca   :  { %v3293_v18 = vmax.f32 %v2774_v13, %v3320_v3  ;;  %v775_v8 = vpop.f32.mrf.mxu2  ;;  %v2873_v13 = vsel %vm271_vm6, %v8698_v58, -inf }
 0x3cb   :  { %v2075_v61 = vsel %vm1925_vm2, -1e+08, %v775_v8  ;;  %v2830_v48 = vpop.xlane.xlu2 %2829  ;;  %v2833_v11 = vpop.xlane.xlu0 %2832  ;;  %vm1930_vm2 = vcmp.eq.s32.totalorder %v6813_v14, 1 }
 0x3cc   :  { %v3297_v12 = vmax.f32 %v3293_v18, %v2777_v20  ;;  %v8700_v34 = vsel %vm2375_vm1, -1e+30, %v2075_v61  ;;  %3111 = vst.msk [vmem:[%s10953_s7 + $0x2a0] sm:$0xff] %vm3026_vm11, %v2830_v48  ;;  %v574_v49 = vpop.f32.mrf.mxu0  ;;  %v2158_v48 = vld [vmem:[%s10948_s2 + $0x108] sm:$0xff]  ;;  %v11499_v20 = vld [vmem:[#allocation34_spill] sm:$0xff] }
 0x3cd   :  { %11497 = vst [vmem:[#allocation56_spill] sm:$0xff] %v8700_v34  ;;  %v8711_v24 = vsel %vm271_vm6, %v8700_v34, -inf  ;;  %vm1858_vm3 = vcmp.eq.s32.totalorder %v11499_v20, 1  ;;  %vm2308_vm4 = vcmp.eq.f32.partialorder %v2158_v48, 0.0  ;;  %v410_v48 = vld [vmem:[%s10946_s0 + $0x3b0] sm:$0xff] }
 0x3ce   :  { %11498 = vst [vmem:[#allocation76_spill] sm:$0xff] %v8711_v24  ;;  %v3301_v33 = vmax.f32 %v3297_v12, %v8711_v24  ;;  %v2159_v12 = vld [vmem:[%s10948_s2 + $0x110] sm:$0xff] }
 0x3cf   :  { %3112 = vst.msk [vmem:[%s10953_s7 + $0x2a8] sm:$0xff] %vm3026_vm11, %v2833_v11  ;;  %825 = vmatmul.f32.gmra.mxu2 %v409_v37  ;;  %v2008_v11 = vsel %vm1858_vm3, -1e+08, %v574_v49  ;;  %v11501_v37 = vld [vmem:[#allocation35_spill] sm:$0xff]  ;;  %vm2309_vm9 = vcmp.eq.f32.partialorder %v2159_v12, 0.0  ;;  %vm1931_vm3 = vcmp.eq.s32.totalorder %v6841_v62, 1 }
 0x3d0   :  { %v3305_v50 = vmax.f32 %v3301_v33, %v2873_v13  ;;  %2874 = vmax.xlane.f32.xlu2 %v2873_v13  ;;  %vm1859_vm8 = vcmp.eq.s32.totalorder %v11501_v37, 1  ;;  %v8732_v24 = vsel %vm2308_vm4, -1e+30, %v2008_v11  ;;  %v2227_v11 = vld [vmem:[%s10948_s2 + $0x330] sm:$0xff] }
 0x3d1   :  { %vm2377_vm10 = vcmp.eq.f32.partialorder %v2227_v11, 0.0 }
 0x3d2   :  { %v778_v3 = vpop.f32.mrf.mxu2 }
 0x3d3   :  { %v2076_v18 = vsel %vm1926_vm7, -1e+08, %v778_v3  ;;  %v2632_v8 = vpop.xlane.xlu2 %2631  ;;  %v2635_v61 = vpop.xlane.xlu0 %2634  ;;  %v2675_v3 = vsel %vm271_vm6, %v8732_v24, -inf }
 0x3d4   :  { %v8734_v33 = vsel %vm2376_vm5, -1e+30, %v2076_v18  ;;  %3045 = vst.msk [vmem:[%s10953_s7 + $0x90] sm:$0xff] %vm3026_vm11, %v2632_v8  ;;  %v577_v49 = vpop.f32.mrf.mxu0 }
 0x3d5   :  { %11502 = vst [vmem:[#allocation34_spill] sm:$0xff] %v8734_v33  ;;  %v8745_v9 = vsel %vm271_vm6, %v8734_v33, -inf  ;;  %v2009_v13 = vsel %vm1859_vm8, -1e+08, %v577_v49 }
 0x3d6   :  { %11503 = vst [vmem:[#allocation77_spill] sm:$0xff] %v8745_v9  ;;  %v3309_v20 = vmax.f32 %v3305_v50, %v8745_v9  ;;  %v8752_v12 = vsel %vm2309_vm9, -1e+30, %v2009_v13 }
 0x3d7   :  { %3046 = vst.msk [vmem:[%s10953_s7 + $0x98] sm:$0xff] %vm3026_vm11, %v2635_v61  ;;  %828 = vmatmul.f32.gmra.mxu2 %v410_v48  ;;  %v2678_v55 = vsel %vm271_vm6, %v8752_v12, -inf  ;;  %v411_v48 = vld [vmem:[%s10946_s0 + $0x3b8] sm:$0xff] }
 0x3d8   :  { %v3313_v18 = vmax.f32 %v3309_v20, %v2675_v3  ;;  %2676 = vmax.xlane.f32.xlu2 %v2675_v3  ;;  %2679 = vmax.xlane.f32.xlu0 %v2678_v55 }
 0x3da   :  { %v3317_v8 = vmax.f32 %v3313_v18, %v2678_v55  ;;  %v781_v61 = vpop.f32.mrf.mxu2  ;;  %v412_v18 = vld [vmem:[%s10946_s0 + $0x3c0] sm:$0xff] }
 0x3db   :  { %v2077_v50 = vsel %vm1927_vm12, -1e+08, %v781_v61  ;;  %v2740_v37 = vpop.xlane.xlu2 %2739  ;;  %v2743_v49 = vpop.xlane.xlu0 %2742  ;;  %v2229_v61 = vld [vmem:[%s10948_s2 + $0x340] sm:$0xff]  ;;  %vm1936_vm12 = vcmp.eq.s32.totalorder %v6861_v46, 1 }
 0x3dc   :  { %v8762_v13 = vsel %vm2377_vm10, -1e+30, %v2077_v50  ;;  %3081 = vst.msk [vmem:[%s10953_s7 + $0x1b0] sm:$0xff] %vm3026_vm11, %v2740_v37  ;;  %vm2379_vm0 = vcmp.eq.f32.partialorder %v2229_v61, 0.0 }
 0x3dd   :  { %11504 = vst [vmem:[#allocation35_spill] sm:$0xff] %v8762_v13  ;;  %v2882_v21 = vsel %vm271_vm6, %v8762_v13, -inf }
 0x3de   :  { %3082 = vst.msk [vmem:[%s10953_s7 + $0x1b8] sm:$0xff] %vm3026_vm11, %v2743_v49  ;;  %v3321_v20 = vmax.f32 %v3317_v8, %v2882_v21  ;;  %v2228_v8 = vld [vmem:[%s10948_s2 + $0x338] sm:$0xff] }
 0x3df   :  { %831 = vmatmul.f32.gmra.mxu2 %v411_v48  ;;  %vm2378_vm14 = vcmp.eq.f32.partialorder %v2228_v8, 0.0 }
 0x3e0   :  { %2883 = vmax.xlane.f32.xlu2 %v2882_v21 }
 0x3e2   :  { %v784_v11 = vpop.f32.mrf.mxu2 }
 0x3e3   :  { %v2839_v3 = vpop.xlane.xlu2 %2838  ;;  %v2842_v55 = vpop.xlane.xlu0 %2841  ;;  %v2078_v50 = vsel %vm1928_vm13, -1e+08, %v784_v11  ;;  %v2230_v11 = vld [vmem:[%s10948_s2 + $0x348] sm:$0xff] }
 0x3e4   :  { %3114 = vst.msk [vmem:[%s10953_s7 + $0x2b8] sm:$0xff] %vm3026_vm11, %v2839_v3  ;;  %v8796_v3 = vsel %vm2378_vm14, -1e+30, %v2078_v50  ;;  %vm2380_vm1 = vcmp.eq.f32.partialorder %v2230_v11, 0.0  ;;  %vm1939_vm14 = vcmp.eq.s32.totalorder %v6880_v17, 1 }
 0x3e5   :  { %3115 = vst.msk [vmem:[%s10953_s7 + $0x2c0] sm:$0xff] %vm3026_vm11, %v2842_v55  ;;  %v8816_v55 = vsel %vm271_vm6, %v8796_v3, -inf }
 0x3e6   :  { %11505 = vst [vmem:[#allocation182_spill] sm:$0xff] %v8796_v3  ;;  %v3325_v8 = vmax.f32 %v8816_v55, %v3321_v20 }
 0x3e7   :  { %834 = vmatmul.f32.gmra.mxu2 %v412_v18  ;;  %11506 = vst [vmem:[#allocation183_spill] sm:$0xff] %v8816_v55 }
 0x3ea   :  { %v787_v37 = vpop.f32.mrf.mxu2 }
 0x3eb   :  { %v2079_v49 = vsel %vm1929_vm15, -1e+08, %v787_v37  ;;  %v2641_v48 = vpop.xlane.xlu2 %2640  ;;  %v2644_v21 = vpop.xlane.xlu0 %2643  ;;  %vm288_vm15 = vcmask 24576  }
 0x3ec   :  { %3048 = vst.msk [vmem:[%s10953_s7 + $0xa8] sm:$0xff] %vm3026_vm11, %v2641_v48  ;;  %v8809_v5 = vsel %vm2379_vm0, -1e+30, %v2079_v49 }
 0x3ed   :  { %3049 = vst.msk [vmem:[%s10953_s7 + $0xb0] sm:$0xff] %vm3026_vm11, %v2644_v21  ;;  %v8820_v18 = vsel %vm271_vm6, %v8809_v5, -inf }
 0x3ee   :  { %11507 = vst [vmem:[#allocation184_spill] sm:$0xff] %v8820_v18  ;;  %v3294_v48 = vmax.f32 %v8820_v18, %v3325_v8 }
 0x3ef   :  { %837 = vmatmul.f32.gmra.mxu2 %v413_v52 }
 0x3f2   :  { %v790_v61 = vpop.f32.mrf.mxu2 }
 0x3f3   :  { %v2080_v50 = vsel %vm1930_vm2, -1e+08, %v790_v61  ;;  %v2749_v37 = vpop.xlane.xlu2 %2748  ;;  %v2752_v49 = vpop.xlane.xlu0 %2751  ;;  %v2231_v61 = vld [vmem:[%s10948_s2 + $0x350] sm:$0xff]  ;;  %vm1934_vm2 = vcmp.eq.s32.totalorder %v6859_v19, 1 }
 0x3f4   :  { %v8825_v21 = vsel %vm2380_vm1, -1e+30, %v2080_v50  ;;  %3084 = vst.msk [vmem:[%s10953_s7 + $0x1c8] sm:$0xff] %vm3026_vm11, %v2749_v37  ;;  %v2232_v50 = vld [vmem:[%s10948_s2 + $0x358] sm:$0xff]  ;;  %vm2381_vm4 = vcmp.eq.f32.partialorder %v2231_v61, 0.0  ;;  %vm1942_vm1 = vcmp.eq.s32.totalorder %v6908_v56, 1 }
 0x3f5   :  { %3085 = vst.msk [vmem:[%s10953_s7 + $0x1d0] sm:$0xff] %vm3026_vm11, %v2752_v49  ;;  %v2891_v14 = vsel %vm271_vm6, %v8825_v21, -inf  ;;  %vm2382_vm7 = vcmp.eq.f32.partialorder %v2232_v50, 0.0 }
 0x3f6   :  { %v3298_v20 = vmax.f32 %v3294_v48, %v2891_v14  ;;  %2892 = vmax.xlane.f32.xlu2 %v2891_v14  ;;  %v11508_v48 = vld [vmem:[#allocation78_spill] sm:$0xff] }
 0x3f7   :  { %vm1932_vm5 = vcmp.eq.s32.totalorder %v11508_v48, 1  ;;  %v11511_v48 = vld [vmem:[#allocation79_spill] sm:$0xff] }
 0x3f8   :  { %vm1933_vm9 = vcmp.eq.s32.totalorder %v11511_v48, 1 }
 0x3fa   :  { %v793_v52 = vpop.f32.mrf.mxu2 }
 0x3fb   :  { %v2848_v11 = vpop.xlane.xlu2 %2847  ;;  %v2851_v8 = vpop.xlane.xlu0 %2850  ;;  %v2081_v37 = vsel %vm1931_vm3, -1e+08, %v793_v52  ;;  %v2233_v52 = vld [vmem:[%s10948_s2 + $0x360] sm:$0xff] }
 0x3fc   :  { %3117 = vst.msk [vmem:[%s10953_s7 + $0x2d0] sm:$0xff] %vm3026_vm11, %v2848_v11  ;;  %vm2383_vm8 = vcmp.eq.f32.partialorder %v2233_v52, 0.0 }
 0x3fd   :  { %3118 = vst.msk [vmem:[%s10953_s7 + $0x2d8] sm:$0xff] %vm3026_vm11, %v2851_v8  ;;  %v8853_v8 = vsel %vm2381_vm4, -1e+30, %v2081_v37 }
 0x3fe   :  { %v8870_v61 = vsel %vm271_vm6, %v8853_v8, -inf }
 0x3ff   :  { %11509 = vst [vmem:[#allocation78_spill] sm:$0xff] %v8870_v61  ;;  %v3302_v37 = vmax.f32 %v3298_v20, %v8870_v61 }
 0x402   :  { %v796_v49 = vpop.f32.mrf.mxu2 }
 0x403   :  { %v2082_v14 = vsel %vm1932_vm5, -1e+08, %v796_v49  ;;  %v2650_v11 = vpop.xlane.xlu2 %2649  ;;  %v2653_v18 = vpop.xlane.xlu0 %2652 }
 0x404   :  { %3051 = vst.msk [vmem:[%s10953_s7 + $0xc0] sm:$0xff] %vm3026_vm11, %v2650_v11  ;;  %v8863_v62 = vsel %vm2382_vm7, -1e+30, %v2082_v14  ;;  %vm1937_vm7 = vcmp.eq.s32.totalorder %v6877_v31, 1 }
 0x405   :  { %3052 = vst.msk [vmem:[%s10953_s7 + $0xc8] sm:$0xff] %vm3026_vm11, %v2653_v18  ;;  %v8874_v50 = vsel %vm271_vm6, %v8863_v62, -inf }
 0x406   :  { %11510 = vst [vmem:[#allocation185_spill] sm:$0xff] %v8874_v50  ;;  %v3306_v9 = vmax.f32 %v3302_v37, %v8874_v50 }
 0x40a   :  { %v799_v49 = vpop.f32.mrf.mxu2 }
 0x40b   :  { %v2083_v18 = vsel %vm1933_vm9, -1e+08, %v799_v49  ;;  %v2758_v14 = vpop.xlane.xlu2 %2757  ;;  %v2761_v11 = vpop.xlane.xlu0 %2760  ;;  %vm1938_vm9 = vcmp.eq.s32.totalorder %v6863_v38, 1  ;;  %v11517_v38 = vld [vmem:[#allocation82_spill] sm:$0xff] }
 0x40c   :  { %v8879_v55 = vsel %vm2383_vm8, -1e+30, %v2083_v18  ;;  %3087 = vst.msk [vmem:[%s10953_s7 + $0x1e0] sm:$0xff] %vm3026_vm11, %v2758_v14 }
 0x40d   :  { %3088 = vst.msk [vmem:[%s10953_s7 + $0x1e8] sm:$0xff] %vm3026_vm11, %v2761_v11  ;;  %v2900_v20 = vsel %vm271_vm6, %v8879_v55, -inf }
 0x40e   :  { %v8891_v52 = vmax.f32 %v3306_v9, %v2900_v20  ;;  %2901 = vmax.xlane.f32.xlu2 %v2900_v20  ;;  %v2236_v9 = vld [vmem:[%s10948_s2 + $0x378] sm:$0xff] }
 0x40f   :  { %vm2386_vm10 = vcmp.eq.f32.partialorder %v2236_v9, 0.0 }
 0x412   :  { %v802_v49 = vpop.f32.mrf.mxu2 }
 0x413   :  { %v2857_v37 = vpop.xlane.xlu2 %2856 }
 0x414   :  { %3120 = vst.msk [vmem:[%s10953_s7 + $0x2e8] sm:$0xff] %vm3026_vm11, %v2857_v37 }
 0x41a   :  { %v8897_v48 = vpop.f32.mrf.mxu2 }
 0x41b   :  { %v2659_v18 = vpop.xlane.xlu2 %2658  ;;  %v2662_v14 = vpop.xlane.xlu0 %2661 }
 0x41c   :  { %3054 = vst.msk [vmem:[%s10953_s7 + $0xd8] sm:$0xff] %vm3026_vm11, %v2659_v18 }
 0x41d   :  { %3055 = vst.msk [vmem:[%s10953_s7 + $0xe0] sm:$0xff] %vm3026_vm11, %v2662_v14 }
 0x422   :  { %v808_v11 = vpop.f32.mrf.mxu2 }
 0x423   :  { %v2086_v20 = vsel %vm1936_vm12, -1e+08, %v808_v11  ;;  %v2767_v37 = vpop.xlane.xlu2 %2766  ;;  %v2770_v50 = vpop.xlane.xlu0 %2769  ;;  %vm1940_vm12 = vcmp.eq.s32.totalorder %v11517_v38, 1 }
 0x424   :  { %v8911_v61 = vsel %vm2386_vm10, -1e+30, %v2086_v20  ;;  %3090 = vst.msk [vmem:[%s10953_s7 + $0x1f8] sm:$0xff] %vm3026_vm11, %v2767_v37 }
 0x425   :  { %3091 = vst.msk [vmem:[%s10953_s7 + $0x200] sm:$0xff] %vm3026_vm11, %v2770_v50  ;;  %v8923_v18 = vsel %vm271_vm6, %v8911_v61, -inf  ;;  %v2239_v50 = vld [vmem:[%s10948_s2 + $0x390] sm:$0xff] }
 0x426   :  { %2910 = vmax.xlane.f32.xlu2 %v8923_v18  ;;  %vm2389_vm13 = vcmp.eq.f32.partialorder %v2239_v50, 0.0 }
 0x42a   :  { %v811_v46 = vpop.f32.mrf.mxu2 }
 0x42b   :  { %v2866_v14 = vpop.xlane.xlu2 %2865 }
 0x42c   :  { %3123 = vst.msk [vmem:[%s10953_s7 + $0x300] sm:$0xff] %vm3026_vm11, %v2866_v14 }
 0x432   :  { %v814_v9 = vpop.f32.mrf.mxu2 }
 0x433   :  { %v2668_v11 = vpop.xlane.xlu2 %2667  ;;  %v2671_v20 = vpop.xlane.xlu0 %2670 }
 0x434   :  { %3057 = vst.msk [vmem:[%s10953_s7 + $0xf0] sm:$0xff] %vm3026_vm11, %v2668_v11 }
 0x435   :  { %3058 = vst.msk [vmem:[%s10953_s7 + $0xf8] sm:$0xff] %vm3026_vm11, %v2671_v20 }
 0x43a   :  { %v817_v37 = vpop.f32.mrf.mxu2 }
 0x43b   :  { %v2089_v14 = vsel %vm1939_vm14, -1e+08, %v817_v37  ;;  %v2776_v4 = vpop.xlane.xlu2 %2775  ;;  %v2779_v58 = vpop.xlane.xlu0 %2778 }
 0x43c   :  { %v8942_v34 = vsel %vm2389_vm13, -1e+30, %v2089_v14  ;;  %3093 = vst.msk [vmem:[%s10953_s7 + $0x210] sm:$0xff] %vm3026_vm11, %v2776_v4  ;;  %v5568_v14 = vmov -1e+30  }
 0x43d   :  { %11512 = vst [vmem:[#allocation79_spill] sm:$0xff] %v8942_v34  ;;  %v8954_v11 = vsel %vm271_vm6, %v8942_v34, -inf }
 0x43e   :  { %3094 = vst.msk [vmem:[%s10953_s7 + $0x218] sm:$0xff] %vm3026_vm11, %v2779_v58  ;;  %2919 = vmax.xlane.f32.xlu2 %v8954_v11  ;;  %v2242_v58 = vld [vmem:[%s10948_s2 + $0x3a8] sm:$0xff] }
 0x43f   :  { %289 = vst.msk [vmem:[#allocation3] sm:$0x1] %vm288_vm15, %v5568_v14  ;;  %vm2392_vm0 = vcmp.eq.f32.partialorder %v2242_v58, 0.0  ;;  %v2084_v58 = vsel %vm1934_vm2, -1e+08, %v802_v49  ;;  %v2238_v49 = vld [vmem:[%s10948_s2 + $0x388] sm:$0xff] }
 0x440   :  { %vm2388_vm10 = vcmp.eq.f32.partialorder %v2238_v49, 0.0 }
 0x442   :  { %v820_v17 = vpop.f32.mrf.mxu2 }
 0x443   :  { %v2875_v20 = vpop.xlane.xlu2 %2874 }
 0x444   :  { %3126 = vst.msk [vmem:[%s10953_s7 + $0x318] sm:$0xff] %vm3026_vm11, %v2875_v20  ;;  %v2234_v20 = vld [vmem:[%s10948_s2 + $0x368] sm:$0xff] }
 0x445   :  { %vm2384_vm3 = vcmp.eq.f32.partialorder %v2234_v20, 0.0 }
 0x446   :  { %v8994_v14 = vsel %vm2384_vm3, -1e+30, %v2084_v58  ;;  %v2088_v58 = vsel %vm1938_vm9, -1e+08, %v814_v9  ;;  %v2241_v9 = vld [vmem:[%s10948_s2 + $0x3a0] sm:$0xff]  ;;  %vm1946_vm9 = vcmp.eq.s32.totalorder %v7006_v30, 1 }
 0x44a   :  { %v823_v50 = vpop.f32.mrf.mxu2 }
 0x44b   :  { %v2677_v4 = vpop.xlane.xlu2 %2676  ;;  %v2680_v37 = vpop.xlane.xlu0 %2679 }
 0x44c   :  { %3060 = vst.msk [vmem:[%s10953_s7 + $0x108] sm:$0xff] %vm3026_vm11, %v2677_v4 }
 0x44d   :  { %3061 = vst.msk [vmem:[%s10953_s7 + $0x110] sm:$0xff] %vm3026_vm11, %v2680_v37  ;;  %v2235_v37 = vld [vmem:[%s10948_s2 + $0x370] sm:$0xff] }
 0x44e   :  { %vm2385_vm5 = vcmp.eq.f32.partialorder %v2235_v37, 0.0 }
 0x452   :  { %v826_v34 = vpop.f32.mrf.mxu2 }
 0x453   :  { %v2092_v4 = vsel %vm1942_vm1, -1e+08, %v826_v34  ;;  %v2884_v33 = vpop.xlane.xlu2 %2883  ;;  %v11514_v34 = vld [vmem:[#allocation80_spill] sm:$0xff] }
 0x454   :  { %v8981_v13 = vsel %vm2392_vm0, -1e+30, %v2092_v4  ;;  %3129 = vst.msk [vmem:[%s10953_s7 + $0x330] sm:$0xff] %vm3026_vm11, %v2884_v33  ;;  %vm1935_vm4 = vcmp.eq.s32.totalorder %v11514_v34, 1  ;;  %v2237_v4 = vld [vmem:[%s10948_s2 + $0x380] sm:$0xff]  ;;  %v9007_v34 = vsel %vm271_vm6, %v8994_v14, -inf }
 0x455   :  { %11513 = vst [vmem:[#allocation186_spill] sm:$0xff] %v8981_v13  ;;  %v8989_v56 = vsel %vm271_vm6, %v8981_v13, -inf  ;;  %v2085_v19 = vsel %vm1935_vm4, -1e+08, %v8897_v48  ;;  %v2087_v48 = vsel %vm1937_vm7, -1e+08, %v811_v46  ;;  %v3314_v31 = vmax.f32 %v8891_v52, %v9007_v34 }
 0x456   :  { %2928 = vmax.xlane.f32.xlu2 %v8989_v56  ;;  %v8999_v33 = vsel %vm2385_vm5, -1e+30, %v2085_v19  ;;  %11515 = vst [vmem:[#allocation80_spill] sm:$0xff] %v9007_v34  ;;  %vm2387_vm8 = vcmp.eq.f32.partialorder %v2237_v4, 0.0  ;;  %v2240_v13 = vld [vmem:[%s10948_s2 + $0x398] sm:$0xff]  ;;  %v11519_v34 = vld [vmem:[#allocation81_spill] sm:$0xff] }
 0x457   :  { %v9012_v37 = vsel %vm271_vm6, %v8999_v33, -inf  ;;  %v9016_v19 = vsel %vm2387_vm8, -1e+30, %v2087_v48  ;;  %v9022_v4 = vsel %vm2388_vm10, -1e+30, %v2088_v58  ;;  %vm2390_vm13 = vcmp.eq.f32.partialorder %v2240_v13, 0.0 }
 0x458   :  { %11516 = vst [vmem:[#allocation187_spill] sm:$0xff] %v9012_v37  ;;  %v3318_v46 = vmax.f32 %v3314_v31, %v9012_v37  ;;  %v9030_v49 = vsel %vm271_vm6, %v9016_v19, -inf  ;;  %v2090_v52 = vsel %vm1940_vm12, -1e+08, %v820_v17  ;;  %vm1941_vm14 = vcmp.eq.s32.totalorder %v11519_v34, 1  ;;  %v2243_v17 = vld [vmem:[%s10948_s2 + $0x3b0] sm:$0xff] }
 0x459   :  { %11518 = vst [vmem:[#allocation82_spill] sm:$0xff] %v9030_v49  ;;  %v9036_v58 = vsel %vm271_vm6, %v9022_v4, -inf  ;;  %v2091_v31 = vsel %vm1941_vm14, -1e+08, %v823_v50  ;;  %vm2391_vm0 = vcmp.eq.f32.partialorder %v2241_v9, 0.0  ;;  %v11522_v34 = vld [vmem:[#allocation84_spill] sm:$0xff] }
 0x45a   :  { %v829_v20 = vpop.f32.mrf.mxu2  ;;  %v3322_v48 = vmax.f32 %v3318_v46, %v8923_v18  ;;  %11520 = vst [vmem:[#allocation81_spill] sm:$0xff] %v9036_v58  ;;  %v9039_v37 = vsel %vm2390_vm13, -1e+30, %v2090_v52  ;;  %v9045_v18 = vsel %vm2391_vm0, -1e+30, %v2091_v31  ;;  %vm1943_vm1 = vcmp.eq.s32.totalorder %v11522_v34, 1 }
 0x45b   :  { %11521 = vst [vmem:[#allocation188_spill] sm:$0xff] %v9039_v37  ;;  %v2244_v46 = vld [vmem:[%s10948_s2 + $0x3b8] sm:$0xff]  ;;  %v9053_v50 = vsel %vm271_vm6, %v9039_v37, -inf  ;;  %v2093_v9 = vsel %vm1943_vm1, -1e+08, %v829_v20  ;;  %vm2393_vm2 = vcmp.eq.f32.partialorder %v2243_v17, 0.0 }
 0x45c   :  { %v3295_v38 = vmax.f32 %v9030_v49, %v3322_v48  ;;  %11523 = vst [vmem:[#allocation84_spill] sm:$0xff] %v9053_v50  ;;  %v11524_v48 = vld [vmem:[#allocation83_spill] sm:$0xff]  ;;  %vm2394_vm4 = vcmp.eq.f32.partialorder %v2244_v46, 0.0  ;;  %v9065_v37 = vsel %vm2393_vm2, -1e+30, %v2093_v9  ;;  %v11527_v20 = vld [vmem:[#allocation86_spill] sm:$0xff] }
 0x45d   :  { %vm1944_vm3 = vcmp.eq.s32.totalorder %v11524_v48, 1  ;;  %v2245_v31 = vld [vmem:[%s10948_s2 + $0x3c0] sm:$0xff]  ;;  %11526 = vst [vmem:[#allocation189_spill] sm:$0xff] %v9065_v37  ;;  %vm1945_vm5 = vcmp.eq.s32.totalorder %v11527_v20, 1  ;;  %vm4760_vm14 = vcmask 519168  }
 0x45e   :  { %v3299_v13 = vmax.f32 %v3295_v38, %v9036_v58  ;;  %v9062_v38 = vsel %vm271_vm6, %v9045_v18, -inf  ;;  %vm2395_vm7 = vcmp.eq.f32.partialorder %v2245_v31, 0.0 }
 0x45f   :  { %11525 = vst [vmem:[#allocation83_spill] sm:$0xff] %v9062_v38 }
 0x460   :  { %v3303_v52 = vmax.f32 %v3299_v13, %v8954_v11 }
 0x462   :  { %v832_v3 = vpop.f32.mrf.mxu2  ;;  %v3307_v49 = vmax.f32 %v3303_v52, %v9053_v50 }
 0x463   :  { %v2094_v34 = vsel %vm1944_vm3, -1e+08, %v832_v3  ;;  %v9077_v3 = vsel %vm271_vm6, %v9065_v37, -inf }
 0x464   :  { %v3311_v13 = vmax.f32 %v3307_v49, %v9062_v38  ;;  %v9073_v48 = vsel %vm2394_vm4, -1e+30, %v2094_v34  ;;  %11529 = vst [vmem:[#allocation190_spill] sm:$0xff] %v9077_v3 }
 0x465   :  { %11528 = vst [vmem:[#allocation86_spill] sm:$0xff] %v9073_v48  ;;  %v9087_v52 = vsel %vm271_vm6, %v9073_v48, -inf }
 0x466   :  { %v3315_v46 = vmax.f32 %v3311_v13, %v8989_v56  ;;  %11531 = vst [vmem:[#allocation192_spill] sm:$0xff] %v9087_v52 }
 0x468   :  { %v3319_v49 = vmax.f32 %v3315_v46, %v9077_v3 }
 0x469   :  { %v2893_v58 = vpop.xlane.xlu2 %2892 }
 0x46a   :  { %3132 = vst.msk [vmem:[%s10953_s7 + $0x348] sm:$0xff] %vm3026_vm11, %v2893_v58  ;;  %v835_v11 = vpop.f32.mrf.mxu2  ;;  %v2246_v58 = vld [vmem:[%s10948_s2 + $0x3c8] sm:$0xff]  ;;  %v3323_v34 = vmax.f32 %v3319_v49, %v9087_v52  ;;  %v9104_v49 = vld [vmem:[#allocation3] sm:$0x1] }
 0x46b   :  { %v2095_v17 = vsel %vm1945_vm5, -1e+08, %v835_v11  ;;  %vm2396_vm8 = vcmp.eq.f32.partialorder %v2246_v58, 0.0  ;;  %11535 = vst [vmem:[#allocation196_spill] sm:$0xff] %v9104_v49 }
 0x46c   :  { %v9080_v9 = vsel %vm2395_vm7, -1e+30, %v2095_v17 }
 0x46d   :  { %11530 = vst [vmem:[#allocation191_spill] sm:$0xff] %v9080_v9  ;;  %v9092_v31 = vsel %vm271_vm6, %v9080_v9, -inf }
 0x46e   :  { %11532 = vst [vmem:[#allocation193_spill] sm:$0xff] %v9092_v31  ;;  %v3324_v20 = vmax.f32 %v9092_v31, %v3323_v34 }
 0x472   :  { %v838_v56 = vpop.f32.mrf.mxu2 }
 0x473   :  { %v2096_v11 = vsel %vm1946_vm9, -1e+08, %v838_v56 }
 0x474   :  { %v9097_v17 = vsel %vm2396_vm8, -1e+30, %v2096_v11 }
 0x475   :  { %11533 = vst [vmem:[#allocation194_spill] sm:$0xff] %v9097_v17  ;;  %v9101_v13 = vsel %vm271_vm6, %v9097_v17, -inf }
 0x476   :  { %11534 = vst [vmem:[#allocation195_spill] sm:$0xff] %v9101_v13  ;;  %v3326_v46 = vmax.f32 %v3324_v20, %v9101_v13 }
 0x478   :  { %v3327_v38 = vrot.slane %v3326_v46, 4 }
 0x47a   :  { %v3328_v3 = vmax.f32 %v3326_v46, %v3327_v38 }
 0x47c   :  { %v3329_v50 = vrot.slane %v3328_v3, 2 }
 0x47e   :  { %v3330_v58 = vmax.f32 %v3328_v3, %v3329_v50 }
 0x480   :  { %v3331_v9 = vrot.slane %v3330_v58, 1 }
 0x482   :  { %v3332_v52 = vmax.f32 %v3330_v58, %v3331_v9 }
 0x484   :  { %v9107_v30 = vmax.f32 %v9104_v49, %v3332_v52 }
 0x486   :  { %11536 = vst [vmem:[#allocation197_spill] sm:$0xff] %v9107_v30  ;;  %v9112_v34 = vperm.slane %v9107_v30, 0 }
 0x487   :  { %4665 = vst.msk [vmem:[#allocation3] sm:$0x1] %vm288_vm15, %v9107_v30 }
 0x488   :  { %v3355_v56 = vsub.f32 %v7869_v26, %v9112_v34  ;;  %v3354_v38 = vsub.f32 %v7781_v45, %v9112_v34  ;;  %v3353_v50 = vsub.f32 %v7732_v51, %v9112_v34  ;;  %v3352_v9 = vsub.f32 %v7719_v53, %v9112_v34 }
 0x489   :  { %v3351_v11 = vsub.f32 %v7591_v15, %v9112_v34  ;;  %v3350_v46 = vsub.f32 %v7535_v23, %v9112_v34  ;;  %v3349_v45 = vsub.f32 %v7518_v54, %v9112_v34  ;;  %v3348_v53 = vsub.f32 %v7418_v1, %v9112_v34 }
 0x48a   :  { %v3520_v3 = vmul.f32 1.442695, %v3355_v56  ;;  %v3518_v52 = vmul.f32 1.442695, %v3354_v38  ;;  %v3516_v20 = vmul.f32 1.442695, %v3353_v50  ;;  %v3347_v23 = vsub.f32 %v7341_v59, %v9112_v34 }
 0x48b   :  { %v3514_v26 = vmul.f32 1.442695, %v3352_v9  ;;  %v3512_v58 = vmul.f32 1.442695, %v3351_v11  ;;  %v3510_v56 = vmul.f32 1.442695, %v3350_v46  ;;  %v3346_v50 = vsub.f32 %v7327_v60, %v9112_v34 }
 0x48c   :  { %5081 = vpow2.f32 %v3520_v3  ;;  %v3508_v38 = vmul.f32 1.442695, %v3349_v45  ;;  %v3506_v3 = vmul.f32 1.442695, %v3348_v53  ;;  %v3345_v9 = vsub.f32 %v7218_v44, %v9112_v34  ;;  %v11537_v46 = vld [vmem:[#allocation106_spill] sm:$0xff] }
 0x48d   :  { %5083 = vpow2.f32 %v3518_v52  ;;  %v3504_v52 = vmul.f32 1.442695, %v3347_v23  ;;  %v3344_v11 = vsub.f32 %v7162_v16, %v9112_v34  ;;  %v11539_v23 = vld [vmem:[#allocation92_spill] sm:$0xff] }
 0x48e   :  { %5085 = vpow2.f32 %v3516_v20  ;;  %v3502_v20 = vmul.f32 1.442695, %v3346_v50  ;;  %v3500_v45 = vmul.f32 1.442695, %v3345_v9  ;;  %v11540_v9 = vld [vmem:[#allocation85_spill] sm:$0xff] }
 0x48f   :  { %5087 = vpow2.f32 %v3514_v26  ;;  %v3343_v26 = vsub.f32 %v11537_v46, %v9112_v34 }
 0x490   :  { %5089 = vpow2.f32 %v3512_v58  ;;  %v11538_v58 = vld [vmem:[#allocation101_spill] sm:$0xff] }
 0x491   :  { %5091 = vpow2.f32 %v3510_v56  ;;  %v3342_v53 = vsub.f32 %v11538_v58, %v9112_v34  ;;  %v3498_v56 = vmul.f32 1.442695, %v3344_v11  ;;  %v3496_v50 = vmul.f32 1.442695, %v3343_v26 }
 0x492   :  { %v9128_v51 = vpop.eup %5081  ;;  %5093 = vpow2.f32 %v3508_v38  ;;  %v3341_v38 = vsub.f32 %v11539_v23, %v9112_v34  ;;  %v3387_v58 = vsub.f32 %v7654_v63, %v9112_v34  ;;  %v3386_v23 = vsub.f32 %v7593_v36, %v9112_v34 }
 0x493   :  { %4944 = vmatpush.lsf.msrb.mxu3 %v9128_v51  ;;  %v9133_v15 = vpop.eup %5083  ;;  %5095 = vpow2.f32 %v3506_v3  ;;  %v3494_v46 = vmul.f32 1.442695, %v3342_v53 }
 0x494   :  { %v9138_v54 = vpop.eup %5085  ;;  %5097 = vpow2.f32 %v3504_v52  ;;  %v3340_v52 = vsub.f32 %v11540_v9, %v9112_v34  ;;  %v3582_v9 = vmul.f32 1.442695, %v3386_v23 }
 0x495   :  { %4945 = vmatpush.lsf.msrb.mxu3 %v9133_v15  ;;  %v9143_v1 = vpop.eup %5087  ;;  %5099 = vpow2.f32 %v3502_v20  ;;  %v3492_v20 = vmul.f32 1.442695, %v3341_v38  ;;  %v3584_v38 = vmul.f32 1.442695, %v3387_v58 }
 0x496   :  { %v9148_v59 = vpop.eup %5089  ;;  %5101 = vpow2.f32 %v3500_v45  ;;  %v3490_v45 = vmul.f32 1.442695, %v3340_v52  ;;  %v3383_v52 = vsub.f32 %v7421_v47, %v9112_v34 }
 0x497   :  { %4946 = vmatpush.lsf.msrb.mxu3 %v9138_v54  ;;  %v9153_v60 = vpop.eup %5091  ;;  %5103 = vpow2.f32 %v3498_v56  ;;  %v3385_v56 = vsub.f32 %v7578_v57, %v9112_v34 }
 0x498   :  { %v9158_v44 = vpop.eup %5093  ;;  %5105 = vpow2.f32 %v3496_v50  ;;  %v3384_v50 = vsub.f32 %v7473_v22, %v9112_v34  ;;  %v3576_v13 = vmul.f32 1.442695, %v3383_v52 }
 0x499   :  { %4947 = vmatpush.lsf.msrb.mxu3 %v9143_v1  ;;  %v9163_v16 = vpop.eup %5095  ;;  %5107 = vpow2.f32 %v3494_v46  ;;  %v3580_v46 = vmul.f32 1.442695, %v3385_v56  ;;  %v11543_v56 = vld [vmem:[#allocation114_spill] sm:$0xff] }
 0x49a   :  { %v9168_v3 = vpop.eup %5097  ;;  %5109 = vpow2.f32 %v3492_v20  ;;  %v3382_v20 = vsub.f32 %v7396_v10, %v9112_v34  ;;  %v3578_v58 = vmul.f32 1.442695, %v3384_v50 }
 0x49b   :  { %4948 = vmatpush.lsf.msrb.mxu3 %v9148_v59  ;;  %v9173_v11 = vpop.eup %5099  ;;  %5111 = vpow2.f32 %v3490_v45  ;;  %v11541_v45 = vld [vmem:[#allocation119_spill] sm:$0xff] }
 0x49c   :  { %v9178_v26 = vpop.eup %5101  ;;  %5113 = vpow2.f32 %v3584_v38  ;;  %v3381_v23 = vsub.f32 %v11541_v45, %v9112_v34  ;;  %v3380_v38 = vsub.f32 %v11543_v56, %v9112_v34  ;;  %v3574_v10 = vmul.f32 1.442695, %v3382_v20 }
 0x49d   :  { %4949 = vmatpush.lsf.msrb.mxu3 %v9153_v60  ;;  %v9183_v53 = vpop.eup %5103  ;;  %5115 = vpow2.f32 %v3582_v9  ;;  %v11545_v9 = vld [vmem:[#allocation111_spill] sm:$0xff] }
 0x49e   :  { %v9188_v63 = vpop.eup %5105  ;;  %5117 = vpow2.f32 %v3580_v46  ;;  %v3379_v31 = vsub.f32 %v11545_v9, %v9112_v34  ;;  %v3572_v45 = vmul.f32 1.442695, %v3381_v23  ;;  %v11547_v46 = vld [vmem:[#allocation103_spill] sm:$0xff]  ;;  %v3570_v49 = vmul.f32 1.442695, %v3380_v38  ;;  %v11551_v23 = vld [vmem:[#allocation93_spill] sm:$0xff] }
 0x49f   :  { %4950 = vmatpush.lsf.msrb.mxu3 %v9158_v44  ;;  %v9193_v36 = vpop.eup %5107  ;;  %5119 = vpow2.f32 %v3578_v58  ;;  %v3378_v17 = vsub.f32 %v11547_v46, %v9112_v34  ;;  %v11549_v58 = vld [vmem:[#allocation98_spill] sm:$0xff]  ;;  %v3376_v9 = vsub.f32 %v11551_v23, %v9112_v34 }
 0x4a0   :  { %v9198_v57 = vpop.eup %5109  ;;  %5121 = vpow2.f32 %v3576_v13  ;;  %v3377_v56 = vsub.f32 %v11549_v58, %v9112_v34  ;;  %v3568_v30 = vmul.f32 1.442695, %v3379_v31 }
 0x4a1   :  { %4951 = vmatpush.lsf.msrb.mxu3 %v9163_v16  ;;  %v9203_v22 = vpop.eup %5111  ;;  %5123 = vpow2.f32 %v3574_v10  ;;  %v11553_v10 = vld [vmem:[#allocation87_spill] sm:$0xff]  ;;  %v3562_v58 = vmul.f32 1.442695, %v3376_v9 }
 0x4a2   :  { %v9208_v47 = vpop.eup %5113  ;;  %5125 = vpow2.f32 %v3572_v45  ;;  %v3375_v46 = vsub.f32 %v11553_v10, %v9112_v34  ;;  %v3374_v45 = vsub.f32 %v8752_v12, %v9112_v34  ;;  %v3419_v12 = vsub.f32 %v7657_v41, %v9112_v34 }
 0x4a3   :  { %4952 = vmatpush.lsf.msrb.mxu3 %v9168_v3  ;;  %11542 = vst [vmem:[#allocation106_spill] sm:$0xff] %v9208_v47  ;;  %v9213_v50 = vpop.eup %5115  ;;  %5127 = vpow2.f32 %v3570_v49  ;;  %v3373_v49 = vsub.f32 %v8732_v24, %v9112_v34  ;;  %v3418_v24 = vsub.f32 %v7645_v28, %v9112_v34 }
 0x4a4   :  { %11544 = vst [vmem:[#allocation101_spill] sm:$0xff] %v9213_v50  ;;  %v9218_v52 = vpop.eup %5117  ;;  %5129 = vpow2.f32 %v3568_v30  ;;  %v3560_v23 = vmul.f32 1.442695, %v3375_v46  ;;  %v3558_v10 = vmul.f32 1.442695, %v3374_v45 }
 0x4a5   :  { %4953 = vmatpush.lsf.msrb.mxu3 %v9173_v11  ;;  %11546 = vst [vmem:[#allocation92_spill] sm:$0xff] %v9218_v52  ;;  %v9223_v20 = vpop.eup %5119  ;;  %v3556_v9 = vmul.f32 1.442695, %v3373_v49  ;;  %v11556_v49 = vld [vmem:[#allocation132_spill] sm:$0xff]  ;;  %v3646_v48 = vmul.f32 1.442695, %v3418_v24 }
 0x4a6   :  { %11548 = vst [vmem:[#allocation85_spill] sm:$0xff] %v9223_v20  ;;  %v9228_v13 = vpop.eup %5121 }
 0x4a7   :  { %4954 = vmatpush.lsf.msrb.mxu3 %v9178_v26  ;;  %11550 = vst [vmem:[#allocation119_spill] sm:$0xff] %v9228_v13  ;;  %v9233_v38 = vpop.eup %5123 }
 0x4a8   :  { %11552 = vst [vmem:[#allocation114_spill] sm:$0xff] %v9233_v38  ;;  %v9238_v31 = vpop.eup %5125 }
 0x4a9   :  { %4955 = vmatpush.lsf.msrb.mxu3 %v9183_v53  ;;  %11554 = vst [vmem:[#allocation111_spill] sm:$0xff] %v9238_v31 }
 0x4ab   :  { %4956 = vmatpush.lsf.msrb.mxu3 %v9188_v63 }
 0x4ad   :  { %4957 = vmatpush.lsf.msrb.mxu3 %v9193_v36 }
 0x4af   :  { %4958 = vmatpush.lsf.msrb.mxu3 %v9198_v57 }
 0x4b1   :  { %4959 = vmatpush.lsf.msrb.mxu3 %v9203_v22 }
 0x4b2   :  { %4960 = vllmr.1.mxu3 }
 0x4b4   :  { %4962 = vmatpush.lsf.msrb.mxu3 %v9208_v47  ;;  %v3566_v47 = vmul.f32 1.442695, %v3378_v17  ;;  %v9243_v17 = vpop.eup %5127 }
 0x4b5   :  { %v9248_v30 = vpop.eup %5129 }
 0x4b6   :  { %4963 = vmatpush.lsf.msrb.mxu3 %v9213_v50  ;;  %v3564_v50 = vmul.f32 1.442695, %v3377_v56  ;;  %5131 = vpow2.f32 %v3566_v47  ;;  %v3372_v56 = vsub.f32 %v8680_v32, %v9112_v34  ;;  %v11555_v32 = vld [vmem:[#allocation134_spill] sm:$0xff] }
 0x4b7   :  { %v3417_v45 = vsub.f32 %v11555_v32, %v9112_v34 }
 0x4b8   :  { %4964 = vmatpush.lsf.msrb.mxu3 %v9218_v52  ;;  %5133 = vpow2.f32 %v3564_v50  ;;  %v3554_v46 = vmul.f32 1.442695, %v3372_v56  ;;  %v11557_v56 = vld [vmem:[#allocation130_spill] sm:$0xff] }
 0x4b9   :  { %5135 = vpow2.f32 %v3562_v58  ;;  %v3648_v58 = vmul.f32 1.442695, %v3419_v12  ;;  %v3644_v52 = vmul.f32 1.442695, %v3417_v45 }
 0x4ba   :  { %4965 = vmatpush.lsf.msrb.mxu3 %v9223_v20  ;;  %5137 = vpow2.f32 %v3560_v23  ;;  %v3416_v23 = vsub.f32 %v11556_v49, %v9112_v34 }
 0x4bb   :  { %5139 = vpow2.f32 %v3558_v10  ;;  %v3415_v10 = vsub.f32 %v11557_v56, %v9112_v34  ;;  %v11561_v56 = vld [vmem:[#allocation117_spill] sm:$0xff] }
 0x4bc   :  { %4966 = vmatpush.lsf.msrb.mxu3 %v9228_v13  ;;  %v9255_v47 = vpop.eup %5131  ;;  %5141 = vpow2.f32 %v3556_v9  ;;  %v11558_v9 = vld [vmem:[#allocation122_spill] sm:$0xff]  ;;  %v3642_v20 = vmul.f32 1.442695, %v3416_v23 }
 0x4bd   :  { %5143 = vpow2.f32 %v3554_v46  ;;  %v3414_v32 = vsub.f32 %v11558_v9, %v9112_v34  ;;  %v11559_v46 = vld [vmem:[#allocation120_spill] sm:$0xff]  ;;  %v3640_v13 = vmul.f32 1.442695, %v3415_v10  ;;  %v3412_v9 = vsub.f32 %v11561_v56, %v9112_v34 }
 0x4be   :  { %4967 = vmatpush.lsf.msrb.mxu3 %v9233_v38  ;;  %v9260_v50 = vpop.eup %5133  ;;  %5145 = vpow2.f32 %v3648_v58  ;;  %v3413_v49 = vsub.f32 %v11559_v46, %v9112_v34  ;;  %v3435_v10 = vsub.f32 %v8501_v27, %v9112_v34  ;;  %v5390_v27 = vld [vmem:[%s10946_s0 + $0xf0] sm:$0xff] }
 0x4bf   :  { %v9265_v41 = vpop.eup %5135  ;;  %5147 = vpow2.f32 %v3646_v48  ;;  %v3638_v23 = vmul.f32 1.442695, %v3414_v32  ;;  %v11562_v48 = vld [vmem:[#allocation107_spill] sm:$0xff]  ;;  %v3634_v37 = vmul.f32 1.442695, %v3412_v9  ;;  %v5391_v9 = vld [vmem:[%s10946_s0 + $0xe8] sm:$0xff] }
 0x4c0   :  { %4968 = vmatpush.lsf.msrb.mxu3 %v9238_v31  ;;  %v9270_v28 = vpop.eup %5137  ;;  %5149 = vpow2.f32 %v3644_v52  ;;  %v3411_v38 = vsub.f32 %v11562_v48, %v9112_v34  ;;  %v3636_v46 = vmul.f32 1.442695, %v3413_v49  ;;  %v5389_v32 = vld [vmem:[%s10946_s0 + $0xf8] sm:$0xff] }
 0x4c1   :  { %v9275_v12 = vpop.eup %5139  ;;  %5151 = vpow2.f32 %v3642_v20  ;;  %v11564_v20 = vld [vmem:[#allocation104_spill] sm:$0xff] }
 0x4c2   :  { %4969 = vmatpush.lsf.msrb.mxu3 %v9243_v17  ;;  %v9280_v24 = vpop.eup %5141  ;;  %5153 = vpow2.f32 %v3640_v13  ;;  %v3410_v56 = vsub.f32 %v11564_v20, %v9112_v34  ;;  %v11565_v13 = vld [vmem:[#allocation97_spill] sm:$0xff] }
 0x4c3   :  { %v9285_v45 = vpop.eup %5143  ;;  %5155 = vpow2.f32 %v3638_v23  ;;  %v3409_v49 = vsub.f32 %v11565_v13, %v9112_v34  ;;  %v11566_v23 = vld [vmem:[#allocation88_spill] sm:$0xff]  ;;  %v3432_v13 = vsub.f32 %v8345_v0, %v9112_v34  ;;  %v3431_v0 = vsub.f32 %v8302_v39, %v9112_v34 }
 0x4c4   :  { %4970 = vmatpush.lsf.msrb.mxu3 %v9248_v30  ;;  %v9287_v58 = vpop.eup %5145  ;;  %5157 = vpow2.f32 %v3636_v46  ;;  %v3630_v31 = vmul.f32 1.442695, %v3410_v56  ;;  %v5392_v56 = vld [vmem:[%s10946_s0 + $0xe0] sm:$0xff] }
 0x4c5   :  { %11560 = vst [vmem:[#allocation103_spill] sm:$0xff] %v9287_v58  ;;  %4887 = vmatpush.lsf.msrb.mxu0 %v9287_v58  ;;  %v9295_v52 = vpop.eup %5147  ;;  %v3434_v58 = vsub.f32 %v8447_v29, %v9112_v34  ;;  %v3680_v29 = vmul.f32 1.442695, %v3435_v10  ;;  %5159 = vpow2.f32 %v3634_v37  ;;  %v3407_v10 = vsub.f32 %v8682_v7, %v9112_v34 }
 0x4c6   :  { %4971 = vmatpush.lsf.msrb.mxu3 %v9255_v47  ;;  %11563 = vst [vmem:[#allocation98_spill] sm:$0xff] %v9295_v52  ;;  %v9305_v48 = vpop.eup %5149  ;;  %v3628_v46 = vmul.f32 1.442695, %v3409_v49  ;;  %v5393_v49 = vld [vmem:[%s10946_s0 + $0xd8] sm:$0xff]  ;;  %v3674_v39 = vmul.f32 1.442695, %v3432_v13 }
 0x4c7   :  { %4888 = vmatpush.lsf.msrb.mxu0 %v9295_v52  ;;  %v9315_v20 = vpop.eup %5151  ;;  %v3433_v52 = vsub.f32 %v8445_v42, %v9112_v34  ;;  %v3678_v42 = vmul.f32 1.442695, %v3434_v58  ;;  %v3406_v58 = vsub.f32 %v8662_v40, %v9112_v34  ;;  %v3624_v40 = vmul.f32 1.442695, %v3407_v10  ;;  %v5395_v10 = vld [vmem:[%s10946_s0 + $0xc8] sm:$0xff] }
 0x4c8   :  { %4972 = vmatpush.lsf.msrb.mxu3 %v9260_v50 }
 0x4c9   :  { %4889 = vmatpush.lsf.msrb.mxu0 %v9305_v48  ;;  %v3676_v37 = vmul.f32 1.442695, %v3433_v52  ;;  %v3405_v52 = vsub.f32 %v8608_v6, %v9112_v34  ;;  %v3404_v6 = vsub.f32 %v8562_v25, %v9112_v34  ;;  %v11568_v25 = vld [vmem:[#allocation66_spill] sm:$0xff] }
 0x4ca   :  { %4973 = vmatpush.lsf.msrb.mxu3 %v9265_v41 }
 0x4cb   :  { %4890 = vmatpush.lsf.msrb.mxu0 %v9315_v20 }
 0x4cc   :  { %4974 = vmatpush.lsf.msrb.mxu3 %v9270_v28 }
 0x4ce   :  { %4975 = vmatpush.lsf.msrb.mxu3 %v9275_v12 }
 0x4d0   :  { %4976 = vmatpush.lsf.msrb.mxu3 %v9280_v24 }
 0x4d2   :  { %4977 = vmatpush.lsf.msrb.mxu3 %v9285_v45 }
 0x4d3   :  { %4961 = vmatmul.lmr.bf16.vlgmr.msra.gmra.1.mxu3 }
 0x4d4   :  { %4444 = vmatpush.msra.mxu3 %v5389_v32  ;;  %v3632_v32 = vmul.f32 1.442695, %v3411_v38  ;;  %v9325_v38 = vpop.eup %5153 }
 0x4d5   :  { %4891 = vmatpush.lsf.msrb.mxu0 %v9325_v38 }
 0x4d6   :  { %4445 = vmatpush.msra.mxu3 %v5390_v27  ;;  %v3408_v27 = vsub.f32 %v11566_v23, %v9112_v34  ;;  %5161 = vpow2.f32 %v3632_v32  ;;  %v3430_v23 = vsub.f32 %v8290_v43, %v9112_v34  ;;  %v3672_v43 = vmul.f32 1.442695, %v3431_v0 }
 0x4d7   :  { %5163 = vpow2.f32 %v3680_v29 }
 0x4d8   :  { %4446 = vmatpush.msra.mxu3 %v5391_v9  ;;  %v9335_v9 = vpop.eup %5155  ;;  %v3626_v7 = vmul.f32 1.442695, %v3408_v27  ;;  %5165 = vpow2.f32 %v3630_v31  ;;  %v5394_v31 = vld [vmem:[%s10946_s0 + $0xd0] sm:$0xff]  ;;  %v3429_v27 = vsub.f32 %v8189_v2, %v9112_v34  ;;  %v3428_v2 = vsub.f32 %v8146_v35, %v9112_v34  ;;  %v5396_v35 = vld [vmem:[%s10946_s0 + $0xc0] sm:$0xff] }
 0x4d9   :  { %4892 = vmatpush.lsf.msrb.mxu0 %v9335_v9  ;;  %v9345_v32 = vpop.eup %5157  ;;  %5167 = vpow2.f32 %v3678_v42  ;;  %v3622_v42 = vmul.f32 1.442695, %v3406_v58  ;;  %v3620_v58 = vmul.f32 1.442695, %v3405_v52 }
 0x4da   :  { %4978 = vllmr.1.mxu3  ;;  %5169 = vpow2.f32 %v3628_v46  ;;  %v9355_v29 = vpop.eup %5159 }
 0x4db   :  { %4447 = vmatpush.msra.mxu3 %v5392_v56  ;;  %4893 = vmatpush.lsf.msrb.mxu0 %v9345_v32  ;;  %5171 = vpow2.f32 %v3676_v37  ;;  %v3670_v56 = vmul.f32 1.442695, %v3430_v23  ;;  %v3427_v37 = vsub.f32 %v11568_v25, %v9112_v34 }
 0x4dc   :  { %v9359_v13 = vpop.eup %5161  ;;  %5173 = vpow2.f32 %v3626_v7 }
 0x4dd   :  { %4448 = vmatpush.msra.mxu3 %v5393_v49  ;;  %4894 = vmatpush.lsf.msrb.mxu0 %v9355_v29  ;;  %v9367_v46 = vpop.eup %5163  ;;  %5175 = vpow2.f32 %v3674_v39  ;;  %v3451_v49 = vsub.f32 %v8911_v61, %v9112_v34  ;;  %v11570_v39 = vld [vmem:[#allocation21_spill] sm:$0xff]  ;;  %v3450_v61 = vsub.f32 %v8999_v33, %v9112_v34  ;;  %v3449_v33 = vsub.f32 %v8994_v14, %v9112_v34 }
 0x4de   :  { %11567 = vst [vmem:[#allocation93_spill] sm:$0xff] %v9367_v46  ;;  %v9371_v0 = vpop.eup %5165  ;;  %5177 = vpow2.f32 %v3624_v40  ;;  %4911 = vmatpush.lsf.msrb.mxu1 %v9367_v46  ;;  %v3426_v52 = vsub.f32 %v11570_v39, %v9112_v34  ;;  %v3618_v40 = vmul.f32 1.442695, %v3404_v6  ;;  %v11572_v6 = vld [vmem:[#allocation153_spill] sm:$0xff]  ;;  %v3448_v14 = vsub.f32 %v8879_v55, %v9112_v34 }
 0x4df   :  { %4449 = vmatpush.msra.mxu3 %v5394_v31  ;;  %4895 = vmatpush.lsf.msrb.mxu0 %v9359_v13  ;;  %v9377_v7 = vpop.eup %5167  ;;  %v3668_v31 = vmul.f32 1.442695, %v3429_v27  ;;  %5179 = vpow2.f32 %v3672_v43  ;;  %v3666_v27 = vmul.f32 1.442695, %v3428_v2  ;;  %v5397_v43 = vld [vmem:[%s10946_s0 + $0xb8] sm:$0xff] }
 0x4e0   :  { %11569 = vst [vmem:[#allocation87_spill] sm:$0xff] %v9377_v7  ;;  %v9384_v23 = vpop.eup %5169  ;;  %5181 = vpow2.f32 %v3622_v42  ;;  %4912 = vmatpush.lsf.msrb.mxu1 %v9377_v7  ;;  %v3425_v42 = vsub.f32 %v11572_v6, %v9112_v34  ;;  %v3712_v2 = vmul.f32 1.442695, %v3451_v49  ;;  %v3662_v6 = vmul.f32 1.442695, %v3426_v52  ;;  %v11576_v52 = vld [vmem:[#allocation16_spill] sm:$0xff] }
 0x4e1   :  { %4450 = vmatpush.msra.mxu3 %v5395_v10  ;;  %4896 = vmatpush.lsf.msrb.mxu0 %v9371_v0  ;;  %v9390_v10 = vpop.eup %5171  ;;  %5183 = vpow2.f32 %v3670_v56  ;;  %v5398_v56 = vld [vmem:[%s10946_s0 + $0xb0] sm:$0xff]  ;;  %v3710_v49 = vmul.f32 1.442695, %v3450_v61  ;;  %v3708_v61 = vmul.f32 1.442695, %v3449_v33 }
 0x4e2   :  { %11571 = vst [vmem:[#allocation134_spill] sm:$0xff] %v9390_v10  ;;  %v9397_v25 = vpop.eup %5173  ;;  %5185 = vpow2.f32 %v3620_v58  ;;  %4913 = vmatpush.lsf.msrb.mxu1 %v9390_v10  ;;  %v3660_v7 = vmul.f32 1.442695, %v3425_v42 }
 0x4e3   :  { %4451 = vmatpush.msra.mxu3 %v5396_v35  ;;  %v3664_v35 = vmul.f32 1.442695, %v3427_v37  ;;  %4897 = vmatpush.lsf.msrb.mxu0 %v9384_v23  ;;  %v9403_v39 = vpop.eup %5175  ;;  %5187 = vpow2.f32 %v3668_v31  ;;  %v11574_v37 = vld [vmem:[#allocation63_spill] sm:$0xff]  ;;  %v5399_v31 = vld [vmem:[%s10946_s0 + $0xa8] sm:$0xff] }
 0x4e4   :  { %11573 = vst [vmem:[#allocation132_spill] sm:$0xff] %v9403_v39  ;;  %v3424_v58 = vsub.f32 %v11574_v37, %v9112_v34  ;;  %5189 = vpow2.f32 %v3618_v40  ;;  %4914 = vmatpush.lsf.msrb.mxu1 %v9403_v39  ;;  %v3423_v40 = vsub.f32 %v11576_v52, %v9112_v34  ;;  %v3447_v37 = vsub.f32 %v8863_v62, %v9112_v34  ;;  %v5400_v62 = vld [vmem:[%s10946_s0 + $0xa0] sm:$0xff] }
 0x4e5   :  { %4452 = vmatpush.msra.mxu3 %v5397_v43  ;;  %v9410_v43 = vpop.eup %5177  ;;  %4898 = vmatpush.lsf.msrb.mxu0 %v9397_v25  ;;  %5191 = vpow2.f32 %v3666_v27  ;;  %v3792_v27 = vsel %vm271_vm6, %v9203_v22, 0.0 }
 0x4e6   :  { %v9416_v46 = vpop.eup %5179  ;;  %5193 = vpow2.f32 %v3664_v35  ;;  %v11578_v35 = vld [vmem:[#allocation148_spill] sm:$0xff]  ;;  %v3658_v10 = vmul.f32 1.442695, %v3424_v58  ;;  %v5401_v58 = vld [vmem:[%s10946_s0 + $0x98] sm:$0xff] }
 0x4e7   :  { %4453 = vmatpush.msra.mxu3 %v5398_v56  ;;  %11575 = vst [vmem:[#allocation130_spill] sm:$0xff] %v9416_v46  ;;  %v9423_v56 = vpop.eup %5181  ;;  %4915 = vmatpush.lsf.msrb.mxu1 %v9416_v46  ;;  %5195 = vpow2.f32 %v3712_v2  ;;  %v3422_v52 = vsub.f32 %v11578_v35, %v9112_v34  ;;  %v3706_v2 = vmul.f32 1.442695, %v3448_v14  ;;  %v3656_v35 = vmul.f32 1.442695, %v3423_v40  ;;  %v5402_v40 = vld [vmem:[%s10946_s0 + $0x90] sm:$0xff] }
 0x4e8   :  { %4899 = vmatpush.lsf.msrb.mxu0 %v9410_v43  ;;  %v9431_v55 = vpop.eup %5183  ;;  %5197 = vpow2.f32 %v3662_v6  ;;  %v3704_v14 = vmul.f32 1.442695, %v3447_v37 }
 0x4e9   :  { %4454 = vmatpush.msra.mxu3 %v5399_v31  ;;  %11577 = vst [vmem:[#allocation122_spill] sm:$0xff] %v9431_v55  ;;  %v3793_v31 = vsel %vm271_vm6, %v9198_v57, 0.0  ;;  %v9440_v42 = vpop.eup %5185  ;;  %4916 = vmatpush.lsf.msrb.mxu1 %v9431_v55  ;;  %v3446_v57 = vsub.f32 %v8853_v8, %v9112_v34  ;;  %5199 = vpow2.f32 %v3710_v49  ;;  %v3797_v49 = vsel %vm271_vm6, %v9188_v63, 0.0 }
 0x4ea   :  { %v3794_v33 = vadd.f32 %v3793_v31, %v3792_v27  ;;  %4900 = vmatpush.lsf.msrb.mxu0 %v9423_v56  ;;  %v9446_v22 = vpop.eup %5187  ;;  %v11580_v27 = vld [vmem:[#allocation58_spill] sm:$0xff]  ;;  %5201 = vpow2.f32 %v3660_v7  ;;  %v3444_v63 = vsub.f32 %v8809_v5, %v9112_v34 }
 0x4eb   :  { %4455 = vmatpush.msra.mxu3 %v5400_v62  ;;  %11579 = vst [vmem:[#allocation120_spill] sm:$0xff] %v9446_v22  ;;  %v3795_v62 = vsel %vm271_vm6, %v9193_v36, 0.0  ;;  %v9455_v6 = vpop.eup %5189  ;;  %v3421_v31 = vsub.f32 %v11580_v27, %v9112_v34  ;;  %4917 = vmatpush.lsf.msrb.mxu1 %v9446_v22  ;;  %v3445_v36 = vsub.f32 %v8825_v21, %v9112_v34  ;;  %5203 = vpow2.f32 %v3708_v61 }
 0x4ec   :  { %v3796_v39 = vadd.f32 %v3795_v62, %v3794_v33  ;;  %4901 = vmatpush.lsf.msrb.mxu0 %v9440_v42  ;;  %v9461_v8 = vpop.eup %5191  ;;  %v11583_v33 = vld [vmem:[#allocation13_spill] sm:$0xff]  ;;  %5205 = vpow2.f32 %v3658_v10  ;;  %v3702_v37 = vmul.f32 1.442695, %v3446_v57  ;;  %v3799_v61 = vsel %vm271_vm6, %v9183_v53, 0.0  ;;  %v11587_v57 = vld [vmem:[#allocation182_spill] sm:$0xff] }
 0x4ed   :  { %4456 = vmatpush.msra.mxu3 %v5401_v58  ;;  %11581 = vst [vmem:[#allocation117_spill] sm:$0xff] %v9461_v8  ;;  %v9470_v7 = vpop.eup %5193  ;;  %v3420_v62 = vsub.f32 %v11583_v33, %v9112_v34  ;;  %v3654_v58 = vmul.f32 1.442695, %v3422_v52  ;;  %4918 = vmatpush.lsf.msrb.mxu1 %v9461_v8  ;;  %5207 = vpow2.f32 %v3706_v2  ;;  %v5403_v52 = vld [vmem:[%s10946_s0 + $0x88] sm:$0xff]  ;;  %v3443_v53 = vsub.f32 %v11587_v57, %v9112_v34  ;;  %v11635_v8 = vld [vmem:[#allocation146_spill] sm:$0xff] }
 0x4ee   :  { %11582 = vst [vmem:[#allocation107_spill] sm:$0xff] %v9470_v7  ;;  %v3798_v27 = vadd.f32 %v3797_v49, %v3796_v39  ;;  %4902 = vmatpush.lsf.msrb.mxu0 %v9455_v6  ;;  %v9476_v21 = vpop.eup %5195  ;;  %v3652_v39 = vmul.f32 1.442695, %v3421_v31  ;;  %5209 = vpow2.f32 %v3656_v35  ;;  %v3700_v2 = vmul.f32 1.442695, %v3445_v36  ;;  %v5404_v31 = vld [vmem:[%s10946_s0 + $0x80] sm:$0xff] }
 0x4ef   :  { %4457 = vmatpush.msra.mxu3 %v5402_v40  ;;  %11584 = vst [vmem:[#allocation104_spill] sm:$0xff] %v9476_v21  ;;  %4903 = vllmr.1.mxu0  ;;  %v9485_v10 = vpop.eup %5197  ;;  %5211 = vpow2.f32 %v3704_v14  ;;  %v3801_v40 = vsel %vm271_vm6, %v9178_v26, 0.0  ;;  %v3650_v33 = vmul.f32 1.442695, %v3420_v62  ;;  %v11590_v36 = vld [vmem:[#allocation35_spill] sm:$0xff] }
 0x4f0   :  { %11585 = vst [vmem:[#allocation97_spill] sm:$0xff] %v9485_v10  ;;  %v3800_v49 = vadd.f32 %v3799_v61, %v3798_v27  ;;  %4919 = vmatpush.lsf.msrb.mxu1 %v9470_v7  ;;  %v9489_v5 = vpop.eup %5199  ;;  %5213 = vpow2.f32 %v3654_v58  ;;  %v3442_v14 = vsub.f32 %v11590_v36, %v9112_v34  ;;  %v3698_v26 = vmul.f32 1.442695, %v3444_v63  ;;  %v2902_v36 = vpop.xlane.xlu2 %2901 }
 0x4f1   :  { %4458 = vmatpush.msra.mxu3 %v5403_v52  ;;  %11586 = vst [vmem:[#allocation88_spill] sm:$0xff] %v9489_v5  ;;  %v9498_v35 = vpop.eup %5201  ;;  %5215 = vpow2.f32 %v3702_v37  ;;  %v3803_v52 = vsel %vm271_vm6, %v9173_v11, 0.0  ;;  %v3805_v63 = vsel %vm271_vm6, %v9168_v3, 0.0  ;;  %v11593_v11 = vld [vmem:[#allocation149_spill] sm:$0xff]  ;;  %v3807_v3 = vsel %vm271_vm6, %v9163_v16, 0.0 }
 0x4f2   :  { %11588 = vst [vmem:[#allocation66_spill] sm:$0xff] %v9498_v35  ;;  %v3802_v27 = vadd.f32 %v3801_v40, %v3800_v49  ;;  %4920 = vmatpush.lsf.msrb.mxu1 %v9485_v10  ;;  %v9502_v61 = vpop.eup %5203  ;;  %5217 = vpow2.f32 %v3652_v39  ;;  %v11592_v49 = vld [vmem:[#allocation34_spill] sm:$0xff]  ;;  %v3356_v39 = vsub.f32 %v11593_v11, %v9112_v34  ;;  %v3390_v7 = vsub.f32 %v11635_v8, %v9112_v34  ;;  %v5412_v8 = vld [vmem:[%s10946_s0 + $0x3c0] sm:$0xff] }
 0x4f3   :  { %4980 = vmatpush.lsf.msrb.mxu3 %v9476_v21  ;;  %11589 = vst [vmem:[#allocation21_spill] sm:$0xff] %v9502_v61  ;;  %v9508_v57 = vpop.eup %5205  ;;  %v3441_v40 = vsub.f32 %v11592_v49, %v9112_v34  ;;  %5219 = vpow2.f32 %v3700_v2  ;;  %v3694_v49 = vmul.f32 1.442695, %v3442_v14 }
 0x4f4   :  { %v3804_v62 = vadd.f32 %v3803_v52, %v3802_v27  ;;  %4921 = vmatpush.lsf.msrb.mxu1 %v9498_v35  ;;  %v9512_v58 = vpop.eup %5207  ;;  %5221 = vpow2.f32 %v3650_v33  ;;  %3135 = vst.msk [vmem:[%s10953_s7 + $0x360] sm:$0xff] %vm3026_vm11, %v2902_v36  ;;  %v3809_v36 = vsel %vm271_vm6, %v9158_v44, 0.0  ;;  %v3811_v44 = vsel %vm271_vm6, %v9153_v60, 0.0  ;;  %v11643_v35 = vld [vmem:[#allocation27_spill] sm:$0xff] }
 0x4f5   :  { %4459 = vmatpush.msra.mxu3 %v5404_v31  ;;  %11591 = vst [vmem:[#allocation153_spill] sm:$0xff] %v9512_v58  ;;  %v3696_v31 = vmul.f32 1.442695, %v3443_v53  ;;  %v9518_v37 = vpop.eup %5209  ;;  %v11595_v53 = vld [vmem:[#allocation56_spill] sm:$0xff]  ;;  %5223 = vpow2.f32 %v3698_v26  ;;  %v3813_v60 = vsel %vm271_vm6, %v9148_v59, 0.0  ;;  %v3815_v59 = vsel %vm271_vm6, %v9143_v1, 0.0 }
 0x4f6   :  { %v3806_v27 = vadd.f32 %v3805_v63, %v3804_v62  ;;  %4922 = vmatpush.lsf.msrb.mxu1 %v9508_v57  ;;  %v9524_v52 = vpop.eup %5211  ;;  %v3440_v2 = vsub.f32 %v11595_v53, %v9112_v34  ;;  %v11596_v62 = vld [vmem:[#allocation151_spill] sm:$0xff]  ;;  %v11598_v26 = vld [vmem:[#allocation32_spill] sm:$0xff]  ;;  %v3692_v53 = vmul.f32 1.442695, %v3441_v40 }
 0x4f7   :  { %4981 = vmatpush.lsf.msrb.mxu3 %v9489_v5  ;;  %11594 = vst [vmem:[#allocation63_spill] sm:$0xff] %v9524_v52  ;;  %v9534_v33 = vpop.eup %5213  ;;  %v3357_v63 = vsub.f32 %v11596_v62, %v9112_v34  ;;  %v3439_v16 = vsub.f32 %v11598_v26, %v9112_v34  ;;  %5225 = vpow2.f32 %v3696_v31  ;;  %v11599_v5 = vld [vmem:[#allocation62_spill] sm:$0xff] }
 0x4f8   :  { %v3808_v11 = vadd.f32 %v3807_v3, %v3806_v27  ;;  %4923 = vmatpush.lsf.msrb.mxu1 %v9518_v37  ;;  %v9540_v14 = vpop.eup %5215  ;;  %v3358_v62 = vsub.f32 %v11599_v5, %v9112_v34  ;;  %v3522_v27 = vmul.f32 1.442695, %v3356_v39  ;;  %v11601_v26 = vld [vmem:[#allocation74_spill] sm:$0xff]  ;;  %v3690_v31 = vmul.f32 1.442695, %v3440_v2 }
 0x4f9   :  { %4982 = vmatpush.lsf.msrb.mxu3 %v9502_v61  ;;  %11597 = vst [vmem:[#allocation16_spill] sm:$0xff] %v9540_v14  ;;  %v9546_v21 = vpop.eup %5217  ;;  %v3438_v40 = vsub.f32 %v11601_v26, %v9112_v34  ;;  %5227 = vpow2.f32 %v3694_v49  ;;  %v11602_v5 = vld [vmem:[#allocation158_spill] sm:$0xff]  ;;  %v11604_v26 = vld [vmem:[#allocation73_spill] sm:$0xff]  ;;  %v3688_v49 = vmul.f32 1.442695, %v3439_v16 }
 0x4fa   :  { %v3810_v3 = vadd.f32 %v3809_v36, %v3808_v11  ;;  %4924 = vmatpush.lsf.msrb.mxu1 %v9534_v33  ;;  %v9552_v61 = vpop.eup %5219  ;;  %v3359_v39 = vsub.f32 %v11602_v5, %v9112_v34  ;;  %v3524_v11 = vmul.f32 1.442695, %v3357_v63  ;;  %v3437_v2 = vsub.f32 %v11604_v26, %v9112_v34  ;;  %v11607_v5 = vld [vmem:[#allocation75_spill] sm:$0xff] }
 0x4fb   :  { %4983 = vmatpush.lsf.msrb.mxu3 %v9512_v58  ;;  %11600 = vst [vmem:[#allocation148_spill] sm:$0xff] %v9552_v61  ;;  %v9558_v58 = vpop.eup %5221  ;;  %5229 = vpow2.f32 %v3692_v53  ;;  %v3526_v63 = vmul.f32 1.442695, %v3358_v62  ;;  %v3436_v26 = vsub.f32 %v11607_v5, %v9112_v34  ;;  %v3686_v16 = vmul.f32 1.442695, %v3438_v40 }
 0x4fc   :  { %v3812_v36 = vadd.f32 %v3811_v44, %v3810_v3  ;;  %4925 = vmatpush.lsf.msrb.mxu1 %v9546_v21  ;;  %5231 = vpow2.f32 %v3522_v27  ;;  %v3528_v62 = vmul.f32 1.442695, %v3359_v39  ;;  %v3817_v40 = vsel %vm271_vm6, %v9138_v54, 0.0 }
 0x4fd   :  { %4984 = vmatpush.lsf.msrb.mxu3 %v9524_v52  ;;  %v9564_v52 = vpop.eup %5223  ;;  %5233 = vpow2.f32 %v3690_v31  ;;  %v11610_v31 = vld [vmem:[#allocation165_spill] sm:$0xff]  ;;  %v3682_v39 = vmul.f32 1.442695, %v3436_v26 }
 0x4fe   :  { %11603 = vst [vmem:[#allocation58_spill] sm:$0xff] %v9564_v52  ;;  %v3814_v3 = vadd.f32 %v3813_v60, %v3812_v36  ;;  %4926 = vmatpush.lsf.msrb.mxu1 %v9558_v58  ;;  %v9574_v44 = vpop.eup %5225  ;;  %5235 = vpow2.f32 %v3524_v11  ;;  %v3684_v60 = vmul.f32 1.442695, %v3437_v2  ;;  %v3362_v5 = vsub.f32 %v11610_v31, %v9112_v34 }
 0x4ff   :  { %4985 = vmatpush.lsf.msrb.mxu3 %v9540_v14  ;;  %v11605_v14 = vld [vmem:[#allocation160_spill] sm:$0xff]  ;;  %11606 = vst [vmem:[#allocation13_spill] sm:$0xff] %v9574_v44  ;;  %4927 = vllmr.1.mxu1  ;;  %v9583_v36 = vpop.eup %5227  ;;  %5237 = vpow2.f32 %v3688_v49  ;;  %v11612_v49 = vld [vmem:[#allocation167_spill] sm:$0xff] }
 0x500   :  { %v3360_v46 = vsub.f32 %v11605_v14, %v9112_v34  ;;  %v11608_v14 = vld [vmem:[#allocation65_spill] sm:$0xff]  ;;  %v3816_v27 = vadd.f32 %v3815_v59, %v3814_v3  ;;  %11609 = vst [vmem:[#allocation182_spill] sm:$0xff] %v9583_v36  ;;  %5239 = vpow2.f32 %v3526_v63  ;;  %v3819_v3 = vsel %vm271_vm6, %v9133_v15, 0.0  ;;  %v11614_v15 = vld [vmem:[#allocation68_spill] sm:$0xff] }
 0x501   :  { %4986 = vmatpush.lsf.msrb.mxu3 %v9552_v61  ;;  %v3361_v53 = vsub.f32 %v11608_v14, %v9112_v34  ;;  %v9590_v11 = vpop.eup %5229  ;;  %5241 = vpow2.f32 %v3686_v16  ;;  %v3363_v54 = vsub.f32 %v11612_v49, %v9112_v34  ;;  %v3821_v63 = vsel %vm271_vm6, %v9128_v51, 0.0  ;;  %v11616_v51 = vld [vmem:[#allocation171_spill] sm:$0xff] }
 0x502   :  { %v3530_v1 = vmul.f32 1.442695, %v3360_v46  ;;  %v3818_v61 = vadd.f32 %v3817_v40, %v3816_v27  ;;  %11611 = vst [vmem:[#allocation35_spill] sm:$0xff] %v9590_v11  ;;  %v9594_v2 = vpop.eup %5231  ;;  %5243 = vpow2.f32 %v3528_v62  ;;  %v3364_v16 = vsub.f32 %v11614_v15, %v9112_v34 }
 0x503   :  { %4987 = vmatpush.lsf.msrb.mxu3 %v9564_v52  ;;  %v3532_v59 = vmul.f32 1.442695, %v3361_v53  ;;  %v9599_v46 = vpop.eup %5233  ;;  %5245 = vpow2.f32 %v3684_v60  ;;  %v3534_v27 = vmul.f32 1.442695, %v3362_v5  ;;  %v3365_v60 = vsub.f32 %v11616_v51, %v9112_v34 }
 0x504   :  { %v3820_v14 = vadd.f32 %v3819_v3, %v3818_v61  ;;  %11613 = vst [vmem:[#allocation34_spill] sm:$0xff] %v9599_v46  ;;  %v9603_v26 = vpop.eup %5235  ;;  %5247 = vpow2.f32 %v3530_v1  ;;  %v3823_v61 = vsel %vm271_vm6, %v9594_v2, 0.0  ;;  %v3536_v31 = vmul.f32 1.442695, %v3363_v54  ;;  %v11618_v1 = vld [vmem:[#allocation173_spill] sm:$0xff] }
 0x505   :  { %4988 = vmatpush.lsf.msrb.mxu3 %v9574_v44  ;;  %v9608_v53 = vpop.eup %5237  ;;  %5249 = vpow2.f32 %v3682_v39  ;;  %v3366_v49 = vsub.f32 %v11618_v1, %v9112_v34  ;;  %v3825_v39 = vsel %vm271_vm6, %v9603_v26, 0.0  ;;  %v3538_v51 = vmul.f32 1.442695, %v3364_v16  ;;  %v4762_v1 = vld [vmem:[#allocation3] sm:$0x1] }
 0x506   :  { %v3822_v40 = vadd.f32 %v3821_v63, %v3820_v14  ;;  %11615 = vst [vmem:[#allocation149_spill] sm:$0xff] %v9608_v53  ;;  %v9612_v62 = vpop.eup %5239  ;;  %5251 = vpow2.f32 %v3532_v59  ;;  %v11619_v63 = vld [vmem:[#allocation30_spill] sm:$0xff]  ;;  %v11621_v44 = vld [vmem:[#allocation123_spill] sm:$0xff] }
 0x507   :  { %4989 = vmatpush.lsf.msrb.mxu3 %v9583_v36  ;;  %v9617_v5 = vpop.eup %5241  ;;  %v3367_v15 = vsub.f32 %v11619_v63, %v9112_v34  ;;  %5253 = vpow2.f32 %v3534_v27  ;;  %v3468_v36 = vsub.f32 %v11621_v44, %v9112_v34  ;;  %v3540_v27 = vmul.f32 1.442695, %v3365_v60  ;;  %4763 = vst.msk [vmem:[#allocation8] sm:$0x1] %vm288_vm15, %v4762_v1  ;;  %v11624_v44 = vld [vmem:[#allocation37_spill] sm:$0xff] }
 0x508   :  { %v3824_v3 = vadd.f32 %v3823_v61, %v3822_v40  ;;  %11617 = vst [vmem:[#allocation56_spill] sm:$0xff] %v9617_v5  ;;  %v9623_v14 = vpop.eup %5243  ;;  %v3452_v40 = vsub.f32 %v9016_v19, %v9112_v34  ;;  %v3827_v61 = vsel %vm271_vm6, %v9612_v62, 0.0  ;;  %5255 = vpow2.f32 %v3536_v31  ;;  %v11623_v19 = vld [vmem:[#allocation178_spill] sm:$0xff]  ;;  %4788 = dma.vmem_to_hbm [thread:$0]  %s4784_s22, 16, %s4786_s4, [#allocation9]  }
 0x509   :  { %4990 = vmatpush.lsf.msrb.mxu3 %v9590_v11  ;;  %v9628_v54 = vpop.eup %5245  ;;  %v3542_v63 = vmul.f32 1.442695, %v3366_v49  ;;  %v3829_v11 = vsel %vm271_vm6, %v9623_v14, 0.0  ;;  %v3388_v31 = vsub.f32 %v11624_v44, %v9112_v34  ;;  %5257 = vpow2.f32 %v3538_v51  ;;  %v11626_v51 = vld [vmem:[#allocation31_spill] sm:$0xff] }
 0x50a   :  { %v3826_v59 = vadd.f32 %v3825_v39, %v3824_v3  ;;  %11620 = vst [vmem:[#allocation151_spill] sm:$0xff] %v9628_v54  ;;  %v9634_v52 = vpop.eup %5247  ;;  %v3368_v39 = vsub.f32 %v11623_v19, %v9112_v34  ;;  %v3544_v60 = vmul.f32 1.442695, %v3367_v15  ;;  %v3714_v1 = vmul.f32 1.442695, %v3452_v40  ;;  %v11625_v19 = vld [vmem:[#allocation29_spill] sm:$0xff] }
 0x50b   :  { %4991 = vmatpush.lsf.msrb.mxu3 %v9599_v46  ;;  %v9640_v3 = vpop.eup %5249  ;;  %v3369_v44 = vsub.f32 %v11625_v19, %v9112_v34  ;;  %5259 = vpow2.f32 %v3540_v27  ;;  %v3746_v15 = vmul.f32 1.442695, %v3468_v36  ;;  %v3370_v40 = vsub.f32 %v11626_v51, %v9112_v34  ;;  %v11627_v27 = vld [vmem:[#allocation181_spill] sm:$0xff] }
 0x50c   :  { %v3828_v16 = vadd.f32 %v3827_v61, %v3826_v59  ;;  %11622 = vst [vmem:[#allocation32_spill] sm:$0xff] %v9640_v3  ;;  %v9646_v46 = vpop.eup %5251  ;;  %v2911_v61 = vpop.xlane.xlu2 %2910  ;;  %5261 = vpow2.f32 %v3542_v63  ;;  %v3371_v36 = vsub.f32 %v11627_v27, %v9112_v34  ;;  %v3453_v63 = vsub.f32 %v9022_v4, %v9112_v34  ;;  %v5406_v19 = vld [vmem:[%s10946_s0 + $0x3f0] sm:$0xff] }
 0x50d   :  { %4992 = vmatpush.lsf.msrb.mxu3 %v9608_v53  ;;  %v3831_v53 = vsel %vm271_vm6, %v9634_v52, 0.0  ;;  %3138 = vst.msk [vmem:[%s10953_s7 + $0x378] sm:$0xff] %vm3026_vm11, %v2911_v61  ;;  %v9657_v49 = vpop.eup %5253  ;;  %v5405_v61 = vld [vmem:[%s10946_s0 + $0x3f8] sm:$0xff]  ;;  %5263 = vpow2.f32 %v3544_v60  ;;  %v3548_v60 = vmul.f32 1.442695, %v3369_v44 }
 0x50e   :  { %v3830_v59 = vadd.f32 %v3829_v11, %v3828_v16  ;;  %v3546_v16 = vmul.f32 1.442695, %v3368_v39  ;;  %5265 = vpow2.f32 %v3714_v1  ;;  %v3835_v39 = vsel %vm271_vm6, %v9657_v49, 0.0  ;;  %v5407_v1 = vld [vmem:[%s10946_s0 + $0x3e8] sm:$0xff] }
 0x50f   :  { %4993 = vmatpush.lsf.msrb.mxu3 %v9617_v5  ;;  %v3833_v5 = vsel %vm271_vm6, %v9646_v46, 0.0  ;;  %5267 = vpow2.f32 %v3746_v15  ;;  %v3552_v55 = vmul.f32 1.442695, %v3371_v36 }
 0x510   :  { %v3832_v11 = vadd.f32 %v3831_v53, %v3830_v59  ;;  %4904 = vmatmul.lmr.bf16.vlgmr.msra.gmra.1.mxu0  ;;  %v3586_v53 = vmul.f32 1.442695, %v3388_v31  ;;  %5269 = vpow2.f32 %v3546_v16  ;;  %v3550_v31 = vmul.f32 1.442695, %v3370_v40 }
 0x511   :  { %4994 = vmatpush.lsf.msrb.mxu3 %v9628_v54  ;;  %4564 = vmatpush.msra.mxu0 %v5405_v61  ;;  %v9668_v54 = vpop.eup %5255  ;;  %v11628_v61 = vld [vmem:[#allocation126_spill] sm:$0xff]  ;;  %v3716_v16 = vmul.f32 1.442695, %v3453_v63 }
 0x512   :  { %v3834_v59 = vadd.f32 %v3833_v5, %v3832_v11  ;;  %v9679_v51 = vpop.eup %5257  ;;  %v3469_v27 = vsub.f32 %v11628_v61, %v9112_v34  ;;  %v3837_v4 = vsel %vm271_vm6, %v9668_v54, 0.0  ;;  %5271 = vpow2.f32 %v3586_v53  ;;  %v5409_v53 = vld [vmem:[%s10946_s0 + $0x3d8] sm:$0xff] }
 0x513   :  { %4995 = vmatpush.lsf.msrb.mxu3 %v9640_v3  ;;  %4565 = vmatpush.msra.mxu0 %v5406_v19  ;;  %v9688_v11 = vpop.eup %5259  ;;  %v11629_v19 = vld [vmem:[#allocation144_spill] sm:$0xff]  ;;  %v3839_v40 = vsel %vm271_vm6, %v9679_v51, 0.0  ;;  %5273 = vpow2.f32 %v3548_v60 }
 0x514   :  { %v3836_v5 = vadd.f32 %v3835_v39, %v3834_v59  ;;  %v3389_v3 = vsub.f32 %v11629_v19, %v9112_v34  ;;  %v9692_v15 = vpop.eup %5261  ;;  %v5408_v59 = vld [vmem:[%s10946_s0 + $0x3e0] sm:$0xff]  ;;  %v3748_v61 = vmul.f32 1.442695, %v3469_v27  ;;  %5275 = vpow2.f32 %v3550_v31 }
 0x515   :  { %4566 = vmatpush.msra.mxu0 %v5407_v1  ;;  %v9699_v39 = vpop.eup %5263  ;;  %v3841_v36 = vsel %vm271_vm6, %v9688_v11, 0.0  ;;  %5277 = vpow2.f32 %v3552_v55  ;;  %v3843_v31 = vsel %vm271_vm6, %v9692_v15, 0.0  ;;  %v11634_v55 = vld [vmem:[#allocation129_spill] sm:$0xff] }
 0x516   :  { %v3838_v44 = vadd.f32 %v3837_v4, %v3836_v5  ;;  %v9701_v19 = vpop.eup %5265  ;;  %v11632_v5 = vld [vmem:[#allocation79_spill] sm:$0xff]  ;;  %v3588_v60 = vmul.f32 1.442695, %v3389_v3  ;;  %5279 = vpow2.f32 %v3716_v16  ;;  %v3470_v3 = vsub.f32 %v11634_v55, %v9112_v34  ;;  %v11636_v55 = vld [vmem:[#allocation69_spill] sm:$0xff] }
 0x517   :  { %4567 = vmatpush.msra.mxu0 %v5408_v59  ;;  %11630 = vst [vmem:[#allocation62_spill] sm:$0xff] %v9701_v19  ;;  %v9708_v63 = vpop.eup %5267  ;;  %v3454_v4 = vsub.f32 %v11632_v5, %v9112_v34  ;;  %5281 = vpow2.f32 %v3748_v61  ;;  %v3845_v16 = vsel %vm271_vm6, %v9699_v39, 0.0 }
 0x518   :  { %v3840_v1 = vadd.f32 %v3839_v40, %v3838_v44  ;;  %11631 = vst [vmem:[#allocation74_spill] sm:$0xff] %v9708_v63  ;;  %v9712_v44 = vpop.eup %5269  ;;  %v11633_v40 = vld [vmem:[#allocation23_spill] sm:$0xff]  ;;  %v5044_v5 = vpack.i.bf16 %v9708_v63, %v9701_v19  ;;  %5283 = vpow2.f32 %v3588_v60  ;;  %v3485_v63 = vsub.f32 %v11636_v55, %v9112_v34 }
 0x519   :  { %4568 = vmatpush.msra.mxu0 %v5409_v53  ;;  %v3484_v59 = vsub.f32 %v11633_v40, %v9112_v34  ;;  %v5410_v53 = vld [vmem:[%s10946_s0 + $0x3d0] sm:$0xff]  ;;  %v9721_v22 = vpop.eup %5271  ;;  %v5411_v40 = vld [vmem:[%s10946_s0 + $0x3c8] sm:$0xff]  ;;  %v3718_v61 = vmul.f32 1.442695, %v3454_v4  ;;  %v3750_v60 = vmul.f32 1.442695, %v3470_v3 }
 0x51a   :  { %v3842_v27 = vadd.f32 %v3841_v36, %v3840_v1  ;;  %5045 = vxpose.xlu0.b32.start [1/16] (narrow) %v5044_v5, 8  ;;  %v11639_v5 = vld [vmem:[#allocation188_spill] sm:$0xff]  ;;  %v3590_v19 = vmul.f32 1.442695, %v3390_v7  ;;  %v11640_v7 = vld [vmem:[#allocation135_spill] sm:$0xff] }
 0x51b   :  { %4569 = vmatpush.msra.mxu0 %v5410_v53  ;;  %v3778_v36 = vmul.f32 1.442695, %v3484_v59  ;;  %v9732_v53 = vpop.eup %5273  ;;  %v3847_v59 = vsel %vm271_vm6, %v9712_v44, 0.0 }
 0x51c   :  { %v3844_v1 = vadd.f32 %v3843_v31, %v3842_v27  ;;  %v9736_v31 = vpop.eup %5275  ;;  %v3849_v55 = vsel %vm271_vm6, %v9732_v53, 0.0 }
 0x51d   :  { %4570 = vmatpush.msra.mxu0 %v5411_v40  ;;  %5285 = vpow2.f32 %v3778_v36  ;;  %v5007_v40 = vpack.i.bf16 %v9721_v22, %v9594_v2  ;;  %v9747_v4 = vpop.eup %5277  ;;  %v5413_v2 = vld [vmem:[%s10946_s0 + $0x478] sm:$0xff] }
 0x51e   :  { %v3846_v27 = vadd.f32 %v3845_v16, %v3844_v1  ;;  %11637 = vst [vmem:[#allocation158_spill] sm:$0xff] %v9747_v4  ;;  %v9749_v16 = vpop.eup %5279  ;;  %5287 = vpow2.f32 %v3718_v61  ;;  %v5416_v61 = vld [vmem:[%s10946_s0 + $0x3b0] sm:$0xff] }
 0x51f   :  { %4571 = vmatpush.msra.mxu0 %v5412_v8  ;;  %5008 = vxpose.xlu2.b32.start [1/16] (narrow) %v5007_v40, 8  ;;  %v9756_v36 = vpop.eup %5281  ;;  %v3455_v8 = vsub.f32 %v11639_v5, %v9112_v34  ;;  %v3780_v40 = vmul.f32 1.442695, %v3485_v63  ;;  %5289 = vpow2.f32 %v3750_v60  ;;  %v5569_v5 = vmov 0.0   ;;  %v11642_v60 = vld [vmem:[#allocation40_spill] sm:$0xff] }
 0x520   :  { %v3848_v1 = vadd.f32 %v3847_v59, %v3846_v27  ;;  %4928 = vmatmul.lmr.bf16.vlgmr.msra.gmra.1.mxu1  ;;  %11638 = vst [vmem:[#allocation73_spill] sm:$0xff] %v9756_v36  ;;  %v5414_v27 = vld [vmem:[%s10946_s0 + $0x3b8] sm:$0xff]  ;;  %v3851_v59 = vsel %vm271_vm6, %v9736_v31, 0.0  ;;  %v9768_v10 = vpop.eup %5283  ;;  %5291 = vpow2.f32 %v3590_v19 }
 0x521   :  { %4584 = vmatpush.msra.mxu1 %v5413_v2  ;;  %4572 = vmatpush.msra.mxu0 %v5414_v27  ;;  %v5415_v2 = vld [vmem:[%s10946_s0 + $0x470] sm:$0xff]  ;;  %290 = vst.msk [vmem:[#allocation4] sm:$0x1] %vm288_vm15, %v5569_v5  ;;  %v3853_v27 = vsel %vm271_vm6, %v9747_v4, 0.0  ;;  %v3855_v4 = vsel %vm271_vm6, %v9285_v45, 0.0  ;;  %5293 = vpow2.f32 %v3780_v40  ;;  %v5009_v19 = vpack.i.bf16 %v9768_v10, %v9603_v26  ;;  %v2920_v40 = vpop.xlane.xlu2 %2919  ;;  %v5420_v26 = vld [vmem:[%s10946_s0 + $0x3a0] sm:$0xff] }
 0x522   :  { %v3850_v3 = vadd.f32 %v3849_v55, %v3848_v1  ;;  %v3471_v1 = vsub.f32 %v11640_v7, %v9112_v34  ;;  %291 = vst [vmem:[#allocation5] sm:$0xf] %v5569_v5 }
 0x523   :  { %4585 = vmatpush.msra.mxu1 %v5415_v2  ;;  %4573 = vmatpush.msra.mxu0 %v5416_v61  ;;  %v9776_v63 = vpop.eup %5285  ;;  %v5046_v2 = vpack.i.bf16 %v9756_v36, %v9749_v16  ;;  %v5417_v61 = vld [vmem:[%s10946_s0 + $0x468] sm:$0xff]  ;;  %v3486_v36 = vsub.f32 %v11643_v35, %v9112_v34  ;;  %v3857_v35 = vsel %vm271_vm6, %v9280_v24, 0.0  ;;  %3141 = vst.msk [vmem:[%s10953_s7 + $0x390] sm:$0xff] %vm3026_vm11, %v2920_v40  ;;  %v5421_v24 = vld [vmem:[%s10946_s0 + $0x458] sm:$0xff] }
 0x524   :  { %v3852_v55 = vadd.f32 %v3851_v59, %v3850_v3  ;;  %11641 = vst [vmem:[#allocation160_spill] sm:$0xff] %v9776_v63  ;;  %v3391_v3 = vsub.f32 %v11642_v60, %v9112_v34  ;;  %v3720_v59 = vmul.f32 1.442695, %v3455_v8  ;;  %4388 = vxpose.xlu1.b32.start [1/6] (short) (narrow) %v9776_v63, 8  ;;  %v5418_v8 = vld [vmem:[%s10946_s0 + $0x3a8] sm:$0xff]  ;;  %v9800_v45 = vpop.eup %5287 }
 0x525   :  { %4586 = vmatpush.msra.mxu1 %v5417_v61  ;;  %5047 = vxpose.xlu0.b32.cont [2/16] (narrow) %v5046_v2, 8  ;;  %v9807_v2 = vpop.eup %5289  ;;  %v3782_v61 = vmul.f32 1.442695, %v3486_v36 }
 0x526   :  { %v3854_v7 = vadd.f32 %v3853_v27, %v3852_v55  ;;  %4574 = vmatpush.msra.mxu0 %v5418_v8  ;;  %v3752_v55 = vmul.f32 1.442695, %v3471_v1  ;;  %v5419_v27 = vld [vmem:[%s10946_s0 + $0x460] sm:$0xff]  ;;  %v3592_v1 = vmul.f32 1.442695, %v3391_v3  ;;  %5295 = vpow2.f32 %v3720_v59  ;;  %v9823_v3 = vpop.eup %5291  ;;  %v5423_v59 = vld [vmem:[%s10946_s0 + $0x450] sm:$0xff] }
 0x527   :  { %4587 = vmatpush.msra.mxu1 %v5419_v27  ;;  %5010 = vxpose.xlu2.b32.cont [2/16] (narrow) %v5009_v19, 8  ;;  %v11644_v19 = vld [vmem:[#allocation138_spill] sm:$0xff]  ;;  %v9830_v27 = vpop.eup %5293  ;;  %v5048_v36 = vpack.i.bf16 %v9807_v2, %v9800_v45 }
 0x528   :  { %v3856_v5 = vadd.f32 %v3855_v4, %v3854_v7  ;;  %4575 = vmatpush.msra.mxu0 %v5420_v26  ;;  %v3456_v4 = vsub.f32 %v9045_v18, %v9112_v34  ;;  %v3859_v7 = vsel %vm271_vm6, %v9275_v12, 0.0  ;;  %v5422_v18 = vld [vmem:[%s10946_s0 + $0x398] sm:$0xff]  ;;  %v3472_v8 = vsub.f32 %v11644_v19, %v9112_v34  ;;  %11645 = vst [vmem:[#allocation75_spill] sm:$0xff] %v9830_v27 }
 0x529   :  { %4588 = vmatpush.msra.mxu1 %v5421_v24  ;;  %5297 = vpow2.f32 %v3752_v55  ;;  %v3861_v12 = vsel %vm271_vm6, %v9270_v28, 0.0  ;;  %v11646_v55 = vld [vmem:[#allocation152_spill] sm:$0xff]  ;;  %v3863_v24 = vsel %vm271_vm6, %v9265_v41, 0.0 }
 0x52a   :  { %v3858_v60 = vadd.f32 %v3857_v35, %v3856_v5  ;;  %4576 = vmatpush.msra.mxu0 %v5422_v18  ;;  %v5424_v35 = vld [vmem:[%s10946_s0 + $0x390] sm:$0xff]  ;;  %v3392_v40 = vsub.f32 %v11646_v55, %v9112_v34  ;;  %5299 = vpow2.f32 %v3592_v1  ;;  %v3722_v26 = vmul.f32 1.442695, %v3456_v4  ;;  %v5425_v28 = vld [vmem:[%s10946_s0 + $0x448] sm:$0xff] }
 0x52b   :  { %4589 = vmatpush.msra.mxu1 %v5423_v59  ;;  %5301 = vpow2.f32 %v3782_v61  ;;  %v5011_v1 = vpack.i.bf16 %v9823_v3, %v9612_v62  ;;  %v5426_v4 = vld [vmem:[%s10946_s0 + $0x388] sm:$0xff]  ;;  %v3754_v19 = vmul.f32 1.442695, %v3472_v8  ;;  %v5427_v59 = vld [vmem:[%s10946_s0 + $0x440] sm:$0xff]  ;;  %v3865_v61 = vsel %vm271_vm6, %v9260_v50, 0.0  ;;  %v11649_v8 = vld [vmem:[#allocation186_spill] sm:$0xff] }
 0x52c   :  { %v3860_v5 = vadd.f32 %v3859_v7, %v3858_v60  ;;  %4577 = vmatpush.msra.mxu0 %v5424_v35  ;;  %4389 = vxpose.xlu1.b32.cont [2/6] (short) (narrow) %v9830_v27, 8  ;;  %v11647_v7 = vld [vmem:[#allocation26_spill] sm:$0xff]  ;;  %v9857_v41 = vpop.eup %5295  ;;  %v5428_v62 = vld [vmem:[%s10946_s0 + $0x380] sm:$0xff]  ;;  %v3594_v35 = vmul.f32 1.442695, %v3392_v40  ;;  %5303 = vpow2.f32 %v3722_v26  ;;  %v3867_v50 = vsel %vm271_vm6, %v9255_v47, 0.0 }
 0x52d   :  { %4590 = vmatpush.msra.mxu1 %v5425_v28  ;;  %v3487_v18 = vsub.f32 %v11647_v7, %v9112_v34  ;;  %5049 = vxpose.xlu0.b32.cont [3/16] (narrow) %v5048_v36, 8  ;;  %v3457_v36 = vsub.f32 %v11649_v8, %v9112_v34  ;;  %v11650_v7 = vld [vmem:[#allocation36_spill] sm:$0xff]  ;;  %5305 = vpow2.f32 %v3754_v19  ;;  %v5430_v40 = vld [vmem:[%s10946_s0 + $0x430] sm:$0xff]  ;;  %v3869_v26 = vsel %vm271_vm6, %v9248_v30, 0.0 }
 0x52e   :  { %v3862_v60 = vadd.f32 %v3861_v12, %v3860_v5  ;;  %4578 = vmatpush.msra.mxu0 %v5426_v4  ;;  %5307 = vpow2.f32 %v3594_v35  ;;  %v3871_v8 = vsel %vm271_vm6, %v9243_v17, 0.0  ;;  %v11653_v30 = vld [vmem:[#allocation72_spill] sm:$0xff] }
 0x52f   :  { %4591 = vmatpush.msra.mxu1 %v5427_v59  ;;  %5012 = vxpose.xlu2.b32.cont [3/16] (narrow) %v5011_v1, 8  ;;  %v9864_v12 = vpop.eup %5297  ;;  %v3784_v28 = vmul.f32 1.442695, %v3487_v18  ;;  %v3473_v1 = vsub.f32 %v11650_v7, %v9112_v34  ;;  %v11652_v18 = vld [vmem:[#allocation155_spill] sm:$0xff] }
 0x530   :  { %v3864_v5 = vadd.f32 %v3863_v24, %v3862_v60  ;;  %4579 = vmatpush.msra.mxu0 %v5428_v62  ;;  %11648 = vst [vmem:[#allocation65_spill] sm:$0xff] %v9864_v12  ;;  %v5429_v60 = vld [vmem:[%s10946_s0 + $0x438] sm:$0xff]  ;;  %v9873_v24 = vpop.eup %5299  ;;  %v5050_v47 = vpack.i.bf16 %v9864_v12, %v9857_v41  ;;  %v3393_v59 = vsub.f32 %v11652_v18, %v9112_v34  ;;  %v5431_v62 = vld [vmem:[%s10946_s0 + $0x428] sm:$0xff] }
 0x531   :  { %4592 = vmatpush.msra.mxu1 %v5429_v60  ;;  %5309 = vpow2.f32 %v3784_v28  ;;  %v5013_v35 = vpack.i.bf16 %v9873_v24, %v9623_v14  ;;  %v11656_v28 = vld [vmem:[#allocation189_spill] sm:$0xff]  ;;  %v11657_v18 = vld [vmem:[#allocation114_spill] sm:$0xff] }
 0x532   :  { %v3866_v55 = vadd.f32 %v3865_v61, %v3864_v5  ;;  %v9880_v5 = vpop.eup %5301  ;;  %v3724_v61 = vmul.f32 1.442695, %v3457_v36  ;;  %v3756_v36 = vmul.f32 1.442695, %v3473_v1  ;;  %v5433_v1 = vld [vmem:[%s10946_s0 + $0x418] sm:$0xff] }
 0x533   :  { %4593 = vmatpush.msra.mxu1 %v5430_v40  ;;  %11651 = vst [vmem:[#allocation165_spill] sm:$0xff] %v9880_v5  ;;  %v9901_v7 = vpop.eup %5303 }
 0x534   :  { %v3868_v4 = vadd.f32 %v3867_v50, %v3866_v55  ;;  %4390 = vxpose.xlu1.b32.cont [3/6] (short) (narrow) %v9880_v5, 8  ;;  %v3488_v55 = vsub.f32 %v11653_v30, %v9112_v34  ;;  %v5432_v50 = vld [vmem:[%s10946_s0 + $0x420] sm:$0xff]  ;;  %v9905_v40 = vpop.eup %5305  ;;  %5311 = vpow2.f32 %v3724_v61  ;;  %v11658_v30 = vld [vmem:[#allocation57_spill] sm:$0xff]  ;;  %v11669_v5 = vld [vmem:[#allocation14_spill] sm:$0xff] }
 0x535   :  { %4594 = vmatpush.msra.mxu1 %v5431_v62  ;;  %5051 = vxpose.xlu0.b32.cont [4/16] (narrow) %v5050_v47, 8  ;;  %11655 = vst [vmem:[#allocation167_spill] sm:$0xff] %v9905_v40  ;;  %v3596_v47 = vmul.f32 1.442695, %v3393_v59  ;;  %5313 = vpow2.f32 %v3756_v36  ;;  %v5434_v59 = vld [vmem:[%s10946_s0 + $0x410] sm:$0xff]  ;;  %v3475_v27 = vsub.f32 %v11669_v5, %v9112_v34  ;;  %v3887_v5 = vsel %vm271_vm6, %v9721_v22, 0.0 }
 0x536   :  { %v3870_v19 = vadd.f32 %v3869_v26, %v3868_v4  ;;  %v11654_v4 = vld [vmem:[#allocation111_spill] sm:$0xff]  ;;  %v3458_v26 = vsub.f32 %v11656_v28, %v9112_v34  ;;  %v3786_v62 = vmul.f32 1.442695, %v3488_v55  ;;  %v5052_v55 = vpack.i.bf16 %v9905_v40, %v9901_v7 }
 0x537   :  { %4595 = vmatpush.msra.mxu1 %v5432_v50  ;;  %v3873_v17 = vsel %vm271_vm6, %v11654_v4, 0.0  ;;  %5014 = vxpose.xlu2.b32.cont [4/16] (narrow) %v5013_v35, 8  ;;  %v3474_v35 = vsub.f32 %v11658_v30, %v9112_v34  ;;  %v11660_v4 = vld [vmem:[#allocation119_spill] sm:$0xff]  ;;  %5315 = vpow2.f32 %v3596_v47  ;;  %v11663_v30 = vld [vmem:[#allocation176_spill] sm:$0xff]  ;;  %v3889_v22 = vsel %vm271_vm6, %v9768_v10, 0.0 }
 0x538   :  { %v3872_v60 = vadd.f32 %v3871_v8, %v3870_v19  ;;  %v3875_v19 = vsel %vm271_vm6, %v11657_v18, 0.0  ;;  %v9914_v8 = vpop.eup %5307  ;;  %v3877_v61 = vsel %vm271_vm6, %v11660_v4, 0.0  ;;  %v11662_v18 = vld [vmem:[#allocation85_spill] sm:$0xff]  ;;  %5317 = vpow2.f32 %v3786_v62  ;;  %v5436_v4 = vld [vmem:[%s10946_s0 + $0x400] sm:$0xff] }
 0x539   :  { %4596 = vmatpush.msra.mxu1 %v5433_v1  ;;  %v3726_v1 = vmul.f32 1.442695, %v3458_v26  ;;  %v5015_v47 = vpack.i.bf16 %v9914_v8, %v9634_v52  ;;  %v3758_v26 = vmul.f32 1.442695, %v3474_v35  ;;  %v11666_v62 = vld [vmem:[#allocation161_spill] sm:$0xff]  ;;  %v11667_v52 = vld [vmem:[#allocation86_spill] sm:$0xff] }
 0x53a   :  { %v3874_v14 = vadd.f32 %v3873_v17, %v3872_v60  ;;  %v9921_v60 = vpop.eup %5309  ;;  %v11661_v17 = vld [vmem:[#allocation43_spill] sm:$0xff]  ;;  %v3459_v35 = vsub.f32 %v11667_v52, %v9112_v34  ;;  %v11679_v10 = vld [vmem:[#allocation60_spill] sm:$0xff] }
 0x53b   :  { %4597 = vmatpush.msra.mxu1 %v5434_v59  ;;  %11659 = vst [vmem:[#allocation68_spill] sm:$0xff] %v9921_v60  ;;  %v3394_v28 = vsub.f32 %v11661_v17, %v9112_v34  ;;  %v3489_v59 = vsub.f32 %v11663_v30, %v9112_v34  ;;  %v11664_v17 = vld [vmem:[#allocation92_spill] sm:$0xff]  ;;  %5319 = vpow2.f32 %v3726_v1 }
 0x53c   :  { %v3876_v50 = vadd.f32 %v3875_v19, %v3874_v14  ;;  %4391 = vxpose.xlu1.b32.cont [4/6] (short) (narrow) %v9921_v60, 8  ;;  %v5435_v14 = vld [vmem:[%s10946_s0 + $0x408] sm:$0xff]  ;;  %v3879_v19 = vsel %vm271_vm6, %v11662_v18, 0.0  ;;  %v2929_v18 = vpop.xlane.xlu2 %2928  ;;  %5321 = vpow2.f32 %v3758_v26 }
 0x53d   :  { %4598 = vmatpush.msra.mxu1 %v5435_v14  ;;  %5053 = vxpose.xlu0.b32.cont [5/16] (narrow) %v5052_v55, 8  ;;  %v3881_v14 = vsel %vm271_vm6, %v11664_v17, 0.0  ;;  %v3395_v55 = vsub.f32 %v11666_v62, %v9112_v34  ;;  %3144 = vst.msk [vmem:[%s10953_s7 + $0x3a8] sm:$0xff] %vm3026_vm11, %v2929_v18  ;;  %v3788_v17 = vmul.f32 1.442695, %v3489_v59 }
 0x53e   :  { %v3878_v36 = vadd.f32 %v3877_v61, %v3876_v50  ;;  %v9942_v61 = vpop.eup %5311  ;;  %v3728_v59 = vmul.f32 1.442695, %v3459_v35  ;;  %v11676_v35 = vld [vmem:[#allocation168_spill] sm:$0xff] }
 0x53f   :  { %4599 = vmatpush.msra.mxu1 %v5436_v4  ;;  %5016 = vxpose.xlu2.b32.cont [5/16] (narrow) %v5015_v47, 8  ;;  %v9946_v30 = vpop.eup %5313  ;;  %v11668_v4 = vld [vmem:[#allocation101_spill] sm:$0xff]  ;;  %v3600_v18 = vmul.f32 1.442695, %v3395_v55 }
 0x540   :  { %v3880_v50 = vadd.f32 %v3879_v19, %v3878_v36  ;;  %11665 = vst [vmem:[#allocation171_spill] sm:$0xff] %v9946_v30  ;;  %v3598_v36 = vmul.f32 1.442695, %v3394_v28  ;;  %v3883_v47 = vsel %vm271_vm6, %v11668_v4, 0.0  ;;  %v5316_v60 = vpop.eup %5315  ;;  %v11671_v28 = vld [vmem:[#allocation163_spill] sm:$0xff]  ;;  %v5054_v1 = vpack.i.bf16 %v9946_v30, %v9942_v61 }
 0x541   :  { %v9960_v63 = vpop.eup %5317  ;;  %v5017_v26 = vpack.i.bf16 %v5316_v60, %v9646_v46  ;;  %v3760_v30 = vmul.f32 1.442695, %v3475_v27  ;;  %v11677_v46 = vld [vmem:[#allocation169_spill] sm:$0xff]  ;;  %v11678_v27 = vld [vmem:[#allocation191_spill] sm:$0xff] }
 0x542   :  { %v3882_v19 = vadd.f32 %v3881_v14, %v3880_v50  ;;  %11670 = vst [vmem:[#allocation173_spill] sm:$0xff] %v9960_v63  ;;  %v3396_v50 = vsub.f32 %v11671_v28, %v9112_v34  ;;  %v11672_v14 = vld [vmem:[#allocation106_spill] sm:$0xff]  ;;  %5323 = vpow2.f32 %v3598_v36  ;;  %v9976_v55 = vpop.eup %5319 }
 0x543   :  { %v3885_v52 = vsel %vm271_vm6, %v11672_v14, 0.0  ;;  %5325 = vpow2.f32 %v3788_v17  ;;  %v11675_v14 = vld [vmem:[#allocation46_spill] sm:$0xff]  ;;  %v9982_v17 = vpop.eup %5321 }
 0x544   :  { %v3884_v62 = vadd.f32 %v3883_v47, %v3882_v19  ;;  %4392 = vxpose.xlu1.b32.cont [5/6] (short) (narrow) %v9960_v63, 8  ;;  %v11673_v19 = vld [vmem:[#allocation197_spill] sm:$0xff]  ;;  %v11674_v47 = vld [vmem:[#allocation196_spill] sm:$0xff]  ;;  %v3397_v40 = vsub.f32 %v11675_v14, %v9112_v34  ;;  %5327 = vpow2.f32 %v3600_v18 }
 0x545   :  { %5055 = vxpose.xlu0.b32.cont [6/16] (narrow) %v5054_v1, 8  ;;  %v3334_v28 = vsub.f32 %v11674_v47, %v11673_v19  ;;  %v3602_v1 = vmul.f32 1.442695, %v3396_v50  ;;  %5329 = vpow2.f32 %v3728_v59  ;;  %v3893_v50 = vsel %vm271_vm6, %v9873_v24, 0.0 }
 0x546   :  { %v3886_v4 = vadd.f32 %v3885_v52, %v3884_v62  ;;  %v3398_v62 = vsub.f32 %v11676_v35, %v9112_v34  ;;  %v3399_v52 = vsub.f32 %v11677_v46, %v9112_v34  ;;  %v3604_v35 = vmul.f32 1.442695, %v3397_v40  ;;  %v11681_v46 = vld [vmem:[#allocation174_spill] sm:$0xff] }
 0x547   :  { %5018 = vxpose.xlu2.b32.cont [6/16] (narrow) %v5017_v26, 8  ;;  %v3335_v47 = vmul.f32 1.442695, %v3334_v28  ;;  %v3476_v26 = vsub.f32 %v11679_v10, %v9112_v34  ;;  %5331 = vpow2.f32 %v3760_v30  ;;  %v5056_v59 = vpack.i.bf16 %v9982_v17, %v9976_v55 }
 0x548   :  { %v3888_v36 = vadd.f32 %v3887_v5, %v3886_v4  ;;  %v3460_v4 = vsub.f32 %v11678_v27, %v9112_v34  ;;  %v3891_v5 = vsel %vm271_vm6, %v9823_v3, 0.0  ;;  %v5324_v14 = vpop.eup %5323  ;;  %v3606_v18 = vmul.f32 1.442695, %v3398_v62 }
 0x549   :  { %v9992_v12 = vpop.eup %5325  ;;  %5333 = vpow2.f32 %v3602_v1  ;;  %v3608_v28 = vmul.f32 1.442695, %v3399_v52  ;;  %v3895_v30 = vsel %vm271_vm6, %v9914_v8, 0.0  ;;  %v5019_v62 = vpack.i.bf16 %v5324_v14, %v9657_v49  ;;  %v11683_v49 = vld [vmem:[#allocation52_spill] sm:$0xff] }
 0x54a   :  { %v3890_v19 = vadd.f32 %v3889_v22, %v3888_v36  ;;  %v11680_v36 = vld [vmem:[#allocation49_spill] sm:$0xff]  ;;  %v3730_v40 = vmul.f32 1.442695, %v3460_v4  ;;  %5335 = vpow2.f32 %v3335_v47  ;;  %v5328_v24 = vpop.eup %5327  ;;  %v3762_v27 = vmul.f32 1.442695, %v3476_v26  ;;  %v11684_v26 = vld [vmem:[#allocation194_spill] sm:$0xff] }
 0x54b   :  { %v3400_v3 = vsub.f32 %v11680_v36, %v9112_v34  ;;  %5337 = vpow2.f32 %v3604_v35  ;;  %v10006_v1 = vpop.eup %5329  ;;  %v3897_v4 = vsel %vm271_vm6, %v5316_v60, 0.0  ;;  %v3403_v47 = vsub.f32 %v11683_v49, %v9112_v34 }
 0x54c   :  { %v3892_v63 = vadd.f32 %v3891_v5, %v3890_v19  ;;  %4393 = vxpose.xlu1.b32.end [6/6] (short) (narrow) %v9992_v12, 8  ;;  %v3401_v19 = vsub.f32 %v11681_v46, %v9112_v34  ;;  %5339 = vpow2.f32 %v3606_v18  ;;  %v3461_v35 = vsub.f32 %v11684_v26, %v9112_v34  ;;  %v11685_v18 = vld [vmem:[#allocation59_spill] sm:$0xff] }
 0x54d   :  { %5057 = vxpose.xlu0.b32.cont [7/16] (narrow) %v5056_v59, 8  ;;  %v10011_v8 = vpop.eup %5331  ;;  %5341 = vpow2.f32 %v3608_v28  ;;  %v3610_v10 = vmul.f32 1.442695, %v3400_v3  ;;  %v3899_v59 = vsel %vm271_vm6, %v5324_v14, 0.0  ;;  %v3901_v28 = vsel %vm271_vm6, %v5328_v24, 0.0 }
 0x54e   :  { %v3894_v22 = vadd.f32 %v3893_v50, %v3892_v63  ;;  %v11682_v63 = vld [vmem:[#allocation28_spill] sm:$0xff]  ;;  %5343 = vpow2.f32 %v3730_v40  ;;  %v3612_v60 = vmul.f32 1.442695, %v3401_v19  ;;  %v5058_v3 = vpack.i.bf16 %v10011_v8, %v10006_v1 }
 0x54f   :  { %v3402_v52 = vsub.f32 %v11682_v63, %v9112_v34  ;;  %5020 = vxpose.xlu2.b32.cont [7/16] (narrow) %v5019_v62, 8  ;;  %v5334_v36 = vpop.eup %5333  ;;  %5345 = vpow2.f32 %v3762_v27  ;;  %v3616_v40 = vmul.f32 1.442695, %v3403_v47  ;;  %v5021_v27 = vpack.i.bf16 %v5328_v24, %v9668_v54 }
 0x550   :  { %v3896_v5 = vadd.f32 %v3895_v30, %v3894_v22  ;;  %v3477_v22 = vsub.f32 %v11685_v18, %v9112_v34  ;;  %v10020_v62 = vpop.eup %5335  ;;  %5347 = vpow2.f32 %v3610_v10  ;;  %v3903_v19 = vsel %vm271_vm6, %v5334_v36, 0.0 }
 0x551   :  { %11686 = vst [vmem:[#allocation30_spill] sm:$0xff] %v10020_v62  ;;  %v3614_v46 = vmul.f32 1.442695, %v3402_v52  ;;  %5349 = vpow2.f32 %v3612_v60 }
 0x552   :  { %v3898_v50 = vadd.f32 %v3897_v4, %v3896_v5  ;;  %v5338_v5 = vpop.eup %5337  ;;  %v3732_v4 = vmul.f32 1.442695, %v3461_v35  ;;  %v3764_v49 = vmul.f32 1.442695, %v3477_v22  ;;  %v11688_v22 = vld [vmem:[#allocation17_spill] sm:$0xff] }
 0x553   :  { %v10026_v14 = vpop.eup %5339  ;;  %5351 = vpow2.f32 %v3614_v46  ;;  %v3905_v47 = vsel %vm271_vm6, %v5338_v5, 0.0  ;;  %v3478_v60 = vsub.f32 %v11688_v22, %v9112_v34 }
 0x554   :  { %v3900_v30 = vadd.f32 %v3899_v59, %v3898_v50  ;;  %4624 = vxpose.xlu1.b32.start.end [1/1] (short) (narrow) %v10020_v62, 8  ;;  %v10030_v52 = vpop.eup %5341  ;;  %5353 = vpow2.f32 %v3616_v40  ;;  %v11687_v59 = vld [vmem:[#allocation89_spill] sm:$0xff]  ;;  %v3907_v54 = vsel %vm271_vm6, %v10026_v14, 0.0 }
 0x555   :  { %5059 = vxpose.xlu0.b32.cont [8/16] (narrow) %v5058_v3, 8  ;;  %v10032_v26 = vpop.eup %5343  ;;  %v3462_v18 = vsub.f32 %v11687_v59, %v9112_v34  ;;  %5355 = vpow2.f32 %v3732_v4  ;;  %v3909_v46 = vsel %vm271_vm6, %v10030_v52, 0.0 }
 0x556   :  { %v3902_v63 = vadd.f32 %v3901_v28, %v3900_v30  ;;  %v10035_v10 = vpop.eup %5345  ;;  %5357 = vpow2.f32 %v3764_v49 }
 0x557   :  { %5022 = vxpose.xlu2.b32.cont [8/16] (narrow) %v5021_v27, 8  ;;  %v10041_v24 = vpop.eup %5347  ;;  %v5060_v28 = vpack.i.bf16 %v10035_v10, %v10032_v26  ;;  %v3734_v4 = vmul.f32 1.442695, %v3462_v18  ;;  %v5023_v27 = vpack.i.bf16 %v5334_v36, %v9679_v51  ;;  %v11689_v18 = vld [vmem:[#allocation96_spill] sm:$0xff]  ;;  %v11690_v36 = vld [vmem:[#allocation41_spill] sm:$0xff] }
 0x558   :  { %v3904_v50 = vadd.f32 %v3903_v19, %v3902_v63  ;;  %v10049_v3 = vpop.eup %5349  ;;  %v3911_v19 = vsel %vm271_vm6, %v10041_v24, 0.0 }
 0x559   :  { %v10051_v63 = vpop.eup %5351  ;;  %v3913_v59 = vsel %vm271_vm6, %v10049_v3, 0.0  ;;  %5359 = vpow2.f32 %v3734_v4  ;;  %v5025_v4 = vpack.i.bf16 %v5338_v5, %v9688_v11  ;;  %v11692_v11 = vld [vmem:[#allocation156_spill] sm:$0xff] }
 0x55a   :  { %v3906_v35 = vadd.f32 %v3905_v47, %v3904_v50  ;;  %v10056_v49 = vpop.eup %5353  ;;  %v3766_v50 = vmul.f32 1.442695, %v3478_v60  ;;  %v3915_v51 = vsel %vm271_vm6, %v10051_v63, 0.0  ;;  %v3479_v60 = vsub.f32 %v11690_v36, %v9112_v34  ;;  %v11691_v36 = vld [vmem:[#allocation100_spill] sm:$0xff] }
 0x55b   :  { %v3480_v5 = vsub.f32 %v11692_v11, %v9112_v34 }
 0x55c   :  { %v3908_v30 = vadd.f32 %v3907_v54, %v3906_v35  ;;  %v10058_v35 = vpop.eup %5355  ;;  %5361 = vpow2.f32 %v3766_v50  ;;  %v3921_v50 = vsel %vm271_vm6, %v9440_v42, 0.0 }
 0x55d   :  { %5061 = vxpose.xlu0.b32.cont [9/16] (narrow) %v5060_v28, 8  ;;  %v10062_v54 = vpop.eup %5357  ;;  %v3917_v28 = vsel %vm271_vm6, %v10056_v49, 0.0 }
 0x55e   :  { %v3910_v40 = vadd.f32 %v3909_v46, %v3908_v30  ;;  %v3463_v30 = vsub.f32 %v11689_v18, %v9112_v34 }
 0x55f   :  { %5024 = vxpose.xlu2.b32.cont [9/16] (narrow) %v5023_v27, 8  ;;  %v10077_v62 = vpop.eup %5359 }
 0x560   :  { %v3912_v47 = vadd.f32 %v3911_v19, %v3910_v40  ;;  %v5062_v40 = vpack.i.bf16 %v10062_v54, %v10058_v35  ;;  %v3736_v27 = vmul.f32 1.442695, %v3463_v30  ;;  %v3464_v30 = vsub.f32 %v11691_v36, %v9112_v34 }
 0x562   :  { %v3914_v22 = vadd.f32 %v3913_v59, %v3912_v47  ;;  %v3919_v47 = vsel %vm271_vm6, %v9455_v6, 0.0  ;;  %v3768_v59 = vmul.f32 1.442695, %v3479_v60  ;;  %5363 = vpow2.f32 %v3736_v27 }
 0x563   :  { %v3923_v6 = vsel %vm271_vm6, %v9423_v56, 0.0  ;;  %v5027_v56 = vpack.i.bf16 %v10026_v14, %v9692_v15  ;;  %v3770_v27 = vmul.f32 1.442695, %v3480_v5  ;;  %v11694_v15 = vld [vmem:[#allocation20_spill] sm:$0xff]  ;;  %v3935_v5 = vsel %vm271_vm6, %v9355_v29, 0.0 }
 0x564   :  { %v3916_v46 = vadd.f32 %v3915_v51, %v3914_v22  ;;  %v10081_v22 = vpop.eup %5361  ;;  %5365 = vpow2.f32 %v3768_v59  ;;  %v3929_v59 = vsel %vm271_vm6, %v9384_v23, 0.0  ;;  %v3481_v14 = vsub.f32 %v11694_v15, %v9112_v34 }
 0x565   :  { %5063 = vxpose.xlu0.b32.cont [10/16] (narrow) %v5062_v40, 8  ;;  %v5064_v42 = vpack.i.bf16 %v10081_v22, %v10077_v62  ;;  %v3738_v40 = vmul.f32 1.442695, %v3464_v30  ;;  %v3933_v30 = vsel %vm271_vm6, %v9359_v13, 0.0  ;;  %v3939_v29 = vsel %vm271_vm6, %v9335_v9, 0.0 }
 0x566   :  { %v3918_v19 = vadd.f32 %v3917_v28, %v3916_v46  ;;  %v3925_v46 = vsel %vm271_vm6, %v9410_v43, 0.0  ;;  %v5031_v9 = vpack.i.bf16 %v10041_v24, %v9712_v44  ;;  %v11699_v44 = vld [vmem:[#allocation24_spill] sm:$0xff] }
 0x567   :  { %5026 = vxpose.xlu2.b32.cont [10/16] (narrow) %v5025_v4, 8  ;;  %5367 = vpow2.f32 %v3738_v40  ;;  %v3483_v24 = vsub.f32 %v11699_v44, %v9112_v34 }
 0x568   :  { %v3920_v18 = vadd.f32 %v3919_v47, %v3918_v19  ;;  %v3927_v19 = vsel %vm271_vm6, %v9397_v25, 0.0  ;;  %v10097_v4 = vpop.eup %5363  ;;  %v3931_v25 = vsel %vm271_vm6, %v9371_v0, 0.0  ;;  %5369 = vpow2.f32 %v3770_v27 }
 0x569   :  { %v5029_v0 = vpack.i.bf16 %v10030_v52, %v9699_v39  ;;  %v11696_v39 = vld [vmem:[#allocation44_spill] sm:$0xff] }
 0x56a   :  { %v3922_v51 = vadd.f32 %v3921_v50, %v3920_v18  ;;  %v10101_v43 = vpop.eup %5365  ;;  %v11693_v50 = vld [vmem:[#allocation108_spill] sm:$0xff]  ;;  %v3482_v52 = vsub.f32 %v11696_v39, %v9112_v34 }
 0x56b   :  { %v5066_v23 = vpack.i.bf16 %v10101_v43, %v10097_v4 }
 0x56c   :  { %v3924_v60 = vadd.f32 %v3923_v6, %v3922_v51  ;;  %v3465_v51 = vsub.f32 %v11693_v50, %v9112_v34  ;;  %v3943_v50 = vsel %vm271_vm6, %v9315_v20, 0.0  ;;  %v11698_v20 = vld [vmem:[#allocation98_spill] sm:$0xff] }
 0x56d   :  { %5065 = vxpose.xlu0.b32.cont [11/16] (narrow) %v5064_v42, 8  ;;  %v10117_v42 = vpop.eup %5367 }
 0x56e   :  { %v3926_v28 = vadd.f32 %v3925_v46, %v3924_v60  ;;  %v3740_v11 = vmul.f32 1.442695, %v3465_v51  ;;  %v3772_v60 = vmul.f32 1.442695, %v3481_v14  ;;  %v10121_v13 = vpop.eup %5369  ;;  %v3774_v51 = vmul.f32 1.442695, %v3482_v52 }
 0x56f   :  { %5028 = vxpose.xlu2.b32.cont [11/16] (narrow) %v5027_v56, 8  ;;  %v3945_v14 = vsel %vm271_vm6, %v9305_v48, 0.0 }
 0x570   :  { %v3928_v47 = vadd.f32 %v3927_v19, %v3926_v28  ;;  %v3937_v28 = vsel %vm271_vm6, %v9345_v32, 0.0  ;;  %v11695_v19 = vld [vmem:[#allocation112_spill] sm:$0xff]  ;;  %5371 = vpow2.f32 %v3740_v11  ;;  %v5068_v32 = vpack.i.bf16 %v10121_v13, %v10117_v42 }
 0x571   :  { %v3466_v56 = vsub.f32 %v11695_v19, %v9112_v34  ;;  %5373 = vpow2.f32 %v3772_v60  ;;  %v3776_v19 = vmul.f32 1.442695, %v3483_v24  ;;  %v11706_v24 = vld [vmem:[#allocation120_spill] sm:$0xff] }
 0x572   :  { %v3930_v18 = vadd.f32 %v3929_v59, %v3928_v47  ;;  %v3941_v47 = vsel %vm271_vm6, %v9325_v38, 0.0 }
 0x574   :  { %v3932_v36 = vadd.f32 %v3931_v25, %v3930_v18  ;;  %v3742_v18 = vmul.f32 1.442695, %v3466_v56 }
 0x575   :  { %5067 = vxpose.xlu0.b32.cont [12/16] (narrow) %v5066_v23, 8 }
 0x576   :  { %v3934_v6 = vadd.f32 %v3933_v30, %v3932_v36  ;;  %v10137_v15 = vpop.eup %5371  ;;  %v11697_v30 = vld [vmem:[#allocation116_spill] sm:$0xff]  ;;  %5375 = vpow2.f32 %v3742_v18 }
 0x577   :  { %5030 = vxpose.xlu2.b32.cont [12/16] (narrow) %v5029_v0, 8  ;;  %v10141_v38 = vpop.eup %5373  ;;  %v3467_v23 = vsub.f32 %v11697_v30, %v9112_v34  ;;  %5377 = vpow2.f32 %v3774_v51  ;;  %v11702_v51 = vld [vmem:[#allocation97_spill] sm:$0xff] }
 0x578   :  { %v3936_v46 = vadd.f32 %v3935_v5, %v3934_v6  ;;  %v3947_v6 = vsel %vm271_vm6, %v11698_v20, 0.0  ;;  %v11700_v5 = vld [vmem:[#allocation103_spill] sm:$0xff]  ;;  %v5070_v48 = vpack.i.bf16 %v10141_v38, %v10137_v15  ;;  %v11704_v30 = vld [vmem:[#allocation117_spill] sm:$0xff]  ;;  %v11705_v20 = vld [vmem:[#allocation158_spill] sm:$0xff] }
 0x579   :  { %v3949_v0 = vsel %vm271_vm6, %v11700_v5, 0.0 }
 0x57a   :  { %v3938_v40 = vadd.f32 %v3937_v28, %v3936_v46  ;;  %v3744_v46 = vmul.f32 1.442695, %v3467_v23  ;;  %v3951_v28 = vsel %vm271_vm6, %v9558_v58, 0.0  ;;  %v3967_v23 = vsel %vm271_vm6, %v11704_v30, 0.0 }
 0x57c   :  { %v3940_v27 = vadd.f32 %v3939_v29, %v3938_v40  ;;  %v5033_v40 = vpack.i.bf16 %v10049_v3, %v9732_v53  ;;  %v10157_v34 = vpop.eup %5375  ;;  %v3953_v29 = vsel %vm271_vm6, %v9546_v21, 0.0  ;;  %5379 = vpow2.f32 %v3744_v46  ;;  %v11708_v46 = vld [vmem:[#allocation130_spill] sm:$0xff] }
 0x57d   :  { %5069 = vxpose.xlu0.b32.cont [13/16] (narrow) %v5068_v32, 8  ;;  %v10161_v39 = vpop.eup %5377  ;;  %5381 = vpow2.f32 %v3776_v19  ;;  %v3957_v53 = vsel %vm271_vm6, %v9518_v37, 0.0  ;;  %v3959_v21 = vsel %vm271_vm6, %v9508_v57, 0.0  ;;  %v5035_v32 = vpack.i.bf16 %v10051_v63, %v9736_v31  ;;  %v11709_v19 = vld [vmem:[#allocation132_spill] sm:$0xff] }
 0x57e   :  { %v3942_v59 = vadd.f32 %v3941_v47, %v3940_v27  ;;  %v3955_v27 = vsel %vm271_vm6, %v9534_v33, 0.0  ;;  %v5072_v3 = vpack.i.bf16 %v10161_v39, %v10157_v34  ;;  %v11701_v33 = vld [vmem:[#allocation66_spill] sm:$0xff] }
 0x57f   :  { %5032 = vxpose.xlu2.b32.cont [13/16] (narrow) %v5031_v9, 8 }
 0x580   :  { %v3944_v25 = vadd.f32 %v3943_v50, %v3942_v59  ;;  %v3961_v50 = vsel %vm271_vm6, %v11701_v33, 0.0 }
 0x582   :  { %v3946_v36 = vadd.f32 %v3945_v14, %v3944_v25  ;;  %v10173_v18 = vpop.eup %5379  ;;  %v3963_v25 = vsel %vm271_vm6, %v11702_v51, 0.0 }
 0x583   :  { %v10177_v9 = vpop.eup %5381 }
 0x584   :  { %v3948_v11 = vadd.f32 %v3947_v6, %v3946_v36  ;;  %v11703_v36 = vld [vmem:[#allocation107_spill] sm:$0xff]  ;;  %v5074_v31 = vpack.i.bf16 %v10177_v9, %v10173_v18  ;;  %v5037_v6 = vpack.i.bf16 %v10056_v49, %v11705_v20 }
 0x585   :  { %5071 = vxpose.xlu0.b32.cont [14/16] (narrow) %v5070_v48, 8  ;;  %v3965_v57 = vsel %vm271_vm6, %v11703_v36, 0.0 }
 0x586   :  { %v3950_v60 = vadd.f32 %v3949_v0, %v3948_v11  ;;  %v3969_v11 = vsel %vm271_vm6, %v11706_v24, 0.0  ;;  %v11707_v0 = vld [vmem:[#allocation122_spill] sm:$0xff] }
 0x587   :  { %5034 = vxpose.xlu2.b32.cont [14/16] (narrow) %v5033_v40, 8  ;;  %v3971_v48 = vsel %vm271_vm6, %v11707_v0, 0.0 }
 0x588   :  { %v3952_v56 = vadd.f32 %v3951_v28, %v3950_v60  ;;  %v3973_v28 = vsel %vm271_vm6, %v11708_v46, 0.0 }
 0x58a   :  { %v3954_v52 = vadd.f32 %v3953_v29, %v3952_v56  ;;  %v3975_v56 = vsel %vm271_vm6, %v11709_v19, 0.0  ;;  %v11722_v19 = vld [vmem:[#allocation58_spill] sm:$0xff] }
 0x58c   :  { %v3956_v58 = vadd.f32 %v3955_v27, %v3954_v52  ;;  %v11710_v52 = vld [vmem:[#allocation134_spill] sm:$0xff] }
 0x58d   :  { %5073 = vxpose.xlu0.b32.cont [15/16] (narrow) %v5072_v3, 8  ;;  %v3977_v49 = vsel %vm271_vm6, %v11710_v52, 0.0  ;;  %v11723_v52 = vld [vmem:[#allocation148_spill] sm:$0xff] }
 0x58e   :  { %v3958_v47 = vadd.f32 %v3957_v53, %v3956_v58  ;;  %v11711_v58 = vld [vmem:[#allocation87_spill] sm:$0xff] }
 0x58f   :  { %5036 = vxpose.xlu2.b32.cont [15/16] (narrow) %v5035_v32, 8  ;;  %v3979_v53 = vsel %vm271_vm6, %v11711_v58, 0.0  ;;  %v11724_v58 = vld [vmem:[#allocation16_spill] sm:$0xff] }
 0x590   :  { %v3960_v59 = vadd.f32 %v3959_v21, %v3958_v47  ;;  %v11712_v47 = vld [vmem:[#allocation93_spill] sm:$0xff] }
 0x591   :  { %v3981_v21 = vsel %vm271_vm6, %v11712_v47, 0.0  ;;  %v11725_v47 = vld [vmem:[#allocation63_spill] sm:$0xff] }
 0x592   :  { %v3962_v37 = vadd.f32 %v3961_v50, %v3960_v59  ;;  %v11713_v59 = vld [vmem:[#allocation32_spill] sm:$0xff] }
 0x593   :  { %v3983_v33 = vsel %vm271_vm6, %v11713_v59, 0.0  ;;  %v11726_v59 = vld [vmem:[#allocation115_spill] sm:$0xff] }
 0x594   :  { %v3964_v14 = vadd.f32 %v3963_v25, %v3962_v37  ;;  %v11714_v37 = vld [vmem:[#allocation151_spill] sm:$0xff] }
 0x595   :  { %5075 = vxpose.xlu0.b32.end [16/16] (narrow) %v5074_v31, 8  ;;  %v3985_v51 = vsel %vm271_vm6, %v11714_v37, 0.0  ;;  %v11716_v31 = vld [vmem:[#allocation149_spill] sm:$0xff] }
 0x596   :  { %v3966_v63 = vadd.f32 %v3965_v57, %v3964_v14  ;;  %v11715_v14 = vld [vmem:[#allocation56_spill] sm:$0xff] }
 0x597   :  { %5038 = vxpose.xlu2.b32.end [16/16] (narrow) %v5037_v6, 8  ;;  %v3987_v36 = vsel %vm271_vm6, %v11715_v14, 0.0 }
 0x598   :  { %v3968_v44 = vadd.f32 %v3967_v23, %v3966_v63  ;;  %v3989_v63 = vsel %vm271_vm6, %v11716_v31, 0.0  ;;  %v11717_v23 = vld [vmem:[#allocation34_spill] sm:$0xff] }
 0x599   :  { %v3991_v20 = vsel %vm271_vm6, %v11717_v23, 0.0 }
 0x59a   :  { %v3970_v5 = vadd.f32 %v3969_v11, %v3968_v44  ;;  %v11718_v44 = vld [vmem:[#allocation35_spill] sm:$0xff] }
 0x59b   :  { %v3993_v24 = vsel %vm271_vm6, %v11718_v44, 0.0 }
 0x59c   :  { %v3972_v60 = vadd.f32 %v3971_v48, %v3970_v5  ;;  %v11719_v5 = vld [vmem:[#allocation182_spill] sm:$0xff] }
 0x59d   :  { %v3995_v0 = vsel %vm271_vm6, %v11719_v5, 0.0 }
 0x59e   :  { %v3974_v40 = vadd.f32 %v3973_v28, %v3972_v60  ;;  %v11720_v60 = vld [vmem:[#allocation13_spill] sm:$0xff] }
 0x59f   :  { %v3997_v46 = vsel %vm271_vm6, %v11720_v60, 0.0  ;;  %v4021_v60 = vsel %vm271_vm6, %v9857_v41, 0.0  ;;  %v11734_v41 = vld [vmem:[#allocation145_spill] sm:$0xff] }
 0x5a0   :  { %v3976_v29 = vadd.f32 %v3975_v56, %v3974_v40  ;;  %v11721_v40 = vld [vmem:[#allocation95_spill] sm:$0xff]  ;;  %v3999_v56 = vsel %vm271_vm6, %v11722_v19, 0.0 }
 0x5a2   :  { %v3978_v27 = vadd.f32 %v3977_v49, %v3976_v29  ;;  %v4001_v49 = vsel %vm271_vm6, %v11723_v52, 0.0 }
 0x5a4   :  { %v3980_v3 = vadd.f32 %v3979_v53, %v3978_v27  ;;  %v4003_v53 = vsel %vm271_vm6, %v11724_v58, 0.0 }
 0x5a6   :  { %v3982_v32 = vadd.f32 %v3981_v21, %v3980_v3  ;;  %v4005_v21 = vsel %vm271_vm6, %v11725_v47, 0.0 }
 0x5a8   :  { %v3984_v50 = vadd.f32 %v3983_v33, %v3982_v32  ;;  %v11727_v33 = vld [vmem:[#allocation153_spill] sm:$0xff] }
 0x5aa   :  { %v3986_v25 = vadd.f32 %v3985_v51, %v3984_v50  ;;  %v4007_v50 = vsel %vm271_vm6, %v11727_v33, 0.0  ;;  %v11728_v51 = vld [vmem:[#allocation21_spill] sm:$0xff] }
 0x5ac   :  { %v3988_v57 = vadd.f32 %v3987_v36, %v3986_v25  ;;  %v4009_v25 = vsel %vm271_vm6, %v11728_v51, 0.0  ;;  %v11729_v36 = vld [vmem:[#allocation88_spill] sm:$0xff] }
 0x5ae   :  { %v3990_v30 = vadd.f32 %v3989_v63, %v3988_v57  ;;  %v4011_v57 = vsel %vm271_vm6, %v11729_v36, 0.0  ;;  %v11730_v63 = vld [vmem:[#allocation104_spill] sm:$0xff] }
 0x5b0   :  { %v3992_v6 = vadd.f32 %v3991_v20, %v3990_v30  ;;  %v4013_v30 = vsel %vm271_vm6, %v11730_v63, 0.0  ;;  %v11731_v20 = vld [vmem:[#allocation128_spill] sm:$0xff] }
 0x5b2   :  { %v3994_v11 = vadd.f32 %v3993_v24, %v3992_v6  ;;  %v11732_v6 = vld [vmem:[#allocation62_spill] sm:$0xff] }
 0x5b3   :  { %v4015_v44 = vsel %vm271_vm6, %v11732_v6, 0.0  ;;  %v11742_v6 = vld [vmem:[#allocation171_spill] sm:$0xff] }
 0x5b4   :  { %v3996_v48 = vadd.f32 %v3995_v0, %v3994_v11  ;;  %2580 = vmax.xlane.f32.xlu1 %v11721_v40  ;;  %v4017_v11 = vsel %vm271_vm6, %v9749_v16, 0.0  ;;  %v4019_v0 = vsel %vm271_vm6, %v9800_v45, 0.0  ;;  %v4023_v40 = vsel %vm271_vm6, %v9901_v7, 0.0 }
 0x5b5   :  { %v4027_v16 = vsel %vm271_vm6, %v9976_v55, 0.0  ;;  %v4029_v45 = vsel %vm271_vm6, %v10006_v1, 0.0  ;;  %v4033_v7 = vsel %vm271_vm6, %v10058_v35, 0.0  ;;  %v4037_v55 = vsel %vm271_vm6, %v10097_v4, 0.0  ;;  %v11735_v1 = vld [vmem:[#allocation61_spill] sm:$0xff]  ;;  %v11736_v4 = vld [vmem:[#allocation64_spill] sm:$0xff] }
 0x5b6   :  { %v3998_v28 = vadd.f32 %v3997_v46, %v3996_v48  ;;  %v4043_v35 = vsel %vm271_vm6, %v10157_v34, 0.0  ;;  %v11739_v34 = vld [vmem:[#allocation65_spill] sm:$0xff] }
 0x5b8   :  { %v4000_v29 = vadd.f32 %v3999_v56, %v3998_v28  ;;  %v11733_v28 = vld [vmem:[#allocation140_spill] sm:$0xff]  ;;  %v4025_v56 = vsel %vm271_vm6, %v9942_v61, 0.0  ;;  %v4035_v61 = vsel %vm271_vm6, %v10077_v62, 0.0  ;;  %v4045_v62 = vsel %vm271_vm6, %v10173_v18, 0.0  ;;  %v11740_v18 = vld [vmem:[#allocation67_spill] sm:$0xff] }
 0x5ba   :  { %v4002_v27 = vadd.f32 %v4001_v49, %v4000_v29 }
 0x5bc   :  { %v4004_v3 = vadd.f32 %v4003_v53, %v4002_v27  ;;  %2592 = vmax.xlane.f32.xlu1 %v11726_v59  ;;  %v4031_v27 = vsel %vm271_vm6, %v10032_v26, 0.0  ;;  %v4041_v26 = vsel %vm271_vm6, %v10137_v15, 0.0  ;;  %v4051_v15 = vsel %vm271_vm6, %v9807_v2, 0.0 }
 0x5bd   :  { %v4061_v2 = vsel %vm271_vm6, %v10011_v8, 0.0  ;;  %v11744_v8 = vld [vmem:[#allocation54_spill] sm:$0xff] }
 0x5be   :  { %v4006_v32 = vadd.f32 %v4005_v21, %v4004_v3  ;;  %v4039_v21 = vsel %vm271_vm6, %v10117_v42, 0.0  ;;  %v11738_v42 = vld [vmem:[#allocation73_spill] sm:$0xff] }
 0x5c0   :  { %v4008_v37 = vadd.f32 %v4007_v50, %v4006_v32 }
 0x5c2   :  { %v4010_v14 = vadd.f32 %v4009_v25, %v4008_v37  ;;  %v11737_v37 = vld [vmem:[#allocation74_spill] sm:$0xff] }
 0x5c3   :  { %v4047_v51 = vsel %vm271_vm6, %v11737_v37, 0.0 }
 0x5c4   :  { %v4012_v31 = vadd.f32 %v4011_v57, %v4010_v14  ;;  %2601 = vmax.xlane.f32.xlu1 %v11731_v20  ;;  %v4049_v14 = vsel %vm271_vm6, %v11738_v42, 0.0  ;;  %v5442_v42 = vld [vmem:[%s10946_s0 + $0x150] sm:$0xff] }
 0x5c6   :  { %v4014_v23 = vadd.f32 %v4013_v30, %v4012_v31  ;;  %v4053_v31 = vsel %vm271_vm6, %v11739_v34, 0.0  ;;  %v11741_v30 = vld [vmem:[#allocation167_spill] sm:$0xff] }
 0x5c7   :  { %v5444_v34 = vld [vmem:[%s10946_s0 + $0x140] sm:$0xff] }
 0x5c8   :  { %v4016_v24 = vadd.f32 %v4015_v44, %v4014_v23  ;;  %v4055_v23 = vsel %vm271_vm6, %v11741_v30, 0.0  ;;  %v4057_v44 = vsel %vm271_vm6, %v11742_v6, 0.0 }
 0x5ca   :  { %v4018_v5 = vadd.f32 %v4017_v11, %v4016_v24  ;;  %v4059_v11 = vsel %vm271_vm6, %v9982_v17, 0.0  ;;  %v4069_v17 = vsel %vm271_vm6, %v10101_v43, 0.0  ;;  %v4077_v43 = vsel %vm271_vm6, %v10177_v9, 0.0  ;;  %v11748_v9 = vld [vmem:[#allocation75_spill] sm:$0xff] }
 0x5cc   :  { %v4020_v48 = vadd.f32 %v4019_v0, %v4018_v5  ;;  %2610 = vmax.xlane.f32.xlu1 %v11733_v28  ;;  %v4065_v28 = vsel %vm271_vm6, %v10062_v54, 0.0  ;;  %v10305_v54 = vpop.trf.xlu2 }
 0x5ce   :  { %v4022_v46 = vadd.f32 %v4021_v60, %v4020_v48  ;;  %v11743_v48 = vld [vmem:[#allocation70_spill] sm:$0xff]  ;;  %v4063_v60 = vsel %vm271_vm6, %v10035_v10, 0.0  ;;  %v4073_v10 = vsel %vm271_vm6, %v10141_v38, 0.0  ;;  %v11746_v38 = vld [vmem:[#allocation160_spill] sm:$0xff] }
 0x5d0   :  { %v4024_v19 = vadd.f32 %v4023_v40, %v4022_v46 }
 0x5d2   :  { %v4026_v29 = vadd.f32 %v4025_v56, %v4024_v19  ;;  %v4067_v19 = vsel %vm271_vm6, %v10081_v22, 0.0  ;;  %v4075_v22 = vsel %vm271_vm6, %v10161_v39, 0.0  ;;  %v11747_v39 = vld [vmem:[#allocation175_spill] sm:$0xff] }
 0x5d4   :  { %v4028_v52 = vadd.f32 %v4027_v16, %v4026_v29  ;;  %2619 = vmax.xlane.f32.xlu1 %v11734_v41  ;;  %v4071_v16 = vsel %vm271_vm6, %v10121_v13, 0.0  ;;  %v5437_v13 = vld [vmem:[%s10946_s0 + $0x178] sm:$0xff] }
 0x5d6   :  { %v4030_v49 = vadd.f32 %v4029_v45, %v4028_v52 }
 0x5d8   :  { %v4032_v58 = vadd.f32 %v4031_v27, %v4030_v49  ;;  %v5040_v49 = vunpack.i.l.bf16 %v10305_v54 }
 0x5da   :  { %v4034_v53 = vadd.f32 %v4033_v7, %v4032_v58  ;;  %4460 = vmatmul.f32.vlgmr.msra.gmra.mxu3 %v5040_v49  ;;  %v11745_v58 = vld [vmem:[#allocation55_spill] sm:$0xff]  ;;  %v4079_v7 = vsel %vm271_vm6, %v11746_v38, 0.0  ;;  %v5459_v38 = vld [vmem:[%s10946_s0 + $0x1c8] sm:$0xff] }
 0x5db   :  { %4464 = vmatpush.msra.mxu3 %v5437_v13  ;;  %v5456_v49 = vld [vmem:[%s10946_s0 + $0x1e0] sm:$0xff] }
 0x5dc   :  { %v4036_v3 = vadd.f32 %v4035_v61, %v4034_v53  ;;  %2628 = vmax.xlane.f32.xlu1 %v11735_v1  ;;  %v5438_v61 = vld [vmem:[%s10946_s0 + $0x170] sm:$0xff] }
 0x5dd   :  { %4465 = vmatpush.msra.mxu3 %v5438_v61  ;;  %v11749_v1 = vld [vmem:[#allocation165_spill] sm:$0xff]  ;;  %v11764_v61 = vld [vmem:[#allocation82_spill] sm:$0xff] }
 0x5de   :  { %v4038_v47 = vadd.f32 %v4037_v55, %v4036_v3  ;;  %v4081_v3 = vsel %vm271_vm6, %v11748_v9, 0.0  ;;  %v5462_v9 = vld [vmem:[%s10946_s0 + $0x1b0] sm:$0xff] }
 0x5e0   :  { %v4040_v32 = vadd.f32 %v4039_v21, %v4038_v47  ;;  %v5439_v47 = vld [vmem:[%s10946_s0 + $0x168] sm:$0xff]  ;;  %v4083_v21 = vsel %vm271_vm6, %v11749_v1, 0.0  ;;  %v11765_v1 = vld [vmem:[#allocation19_spill] sm:$0xff] }
 0x5e1   :  { %4466 = vmatpush.msra.mxu3 %v5439_v47  ;;  %v5464_v47 = vld [vmem:[%s10946_s0 + $0x1a0] sm:$0xff] }
 0x5e2   :  { %v4042_v59 = vadd.f32 %v4041_v26, %v4040_v32  ;;  %v5440_v26 = vld [vmem:[%s10946_s0 + $0x160] sm:$0xff] }
 0x5e3   :  { %4467 = vmatpush.msra.mxu3 %v5440_v26  ;;  %v5466_v26 = vld [vmem:[%s10946_s0 + $0x190] sm:$0xff] }
 0x5e4   :  { %v4044_v33 = vadd.f32 %v4043_v35, %v4042_v59  ;;  %2637 = vmax.xlane.f32.xlu1 %v11736_v4  ;;  %v11750_v59 = vld [vmem:[#allocation68_spill] sm:$0xff]  ;;  %v11752_v4 = vld [vmem:[#allocation173_spill] sm:$0xff] }
 0x5e5   :  { %v4085_v35 = vsel %vm271_vm6, %v11750_v59, 0.0  ;;  %v4087_v37 = vsel %vm271_vm6, %v11752_v4, 0.0  ;;  %v5043_v59 = vunpack.i.h.bf16 %v10305_v54  ;;  %v5469_v54 = vld [vmem:[%s10946_s0 + $0x378] sm:$0xff] }
 0x5e6   :  { %v4046_v50 = vadd.f32 %v4045_v62, %v4044_v33  ;;  %v11751_v62 = vld [vmem:[#allocation90_spill] sm:$0xff] }
 0x5e7   :  { %v11768_v4 = vld [vmem:[#allocation190_spill] sm:$0xff] }
 0x5e8   :  { %v4048_v25 = vadd.f32 %v4047_v51, %v4046_v50  ;;  %v5441_v50 = vld [vmem:[%s10946_s0 + $0x158] sm:$0xff] }
 0x5e9   :  { %4468 = vmatpush.msra.mxu3 %v5441_v50  ;;  %v11767_v50 = vld [vmem:[#allocation22_spill] sm:$0xff] }
 0x5ea   :  { %v4050_v36 = vadd.f32 %v4049_v14, %v4048_v25  ;;  %v11753_v25 = vld [vmem:[#allocation53_spill] sm:$0xff]  ;;  %v4089_v14 = vsel %vm271_vm6, %v9992_v12, 0.0  ;;  %v5445_v12 = vld [vmem:[%s10946_s0 + $0x138] sm:$0xff]  ;;  %vm4420_vm6 = vcmask 392192  }
 0x5eb   :  { %4469 = vmatpush.msra.mxu3 %v5442_v42  ;;  %v5472_v42 = vld [vmem:[%s10946_s0 + $0x360] sm:$0xff] }
 0x5ec   :  { %v4052_v57 = vadd.f32 %v4051_v15, %v4050_v36  ;;  %2646 = vmax.xlane.f32.xlu1 %v11740_v18  ;;  %v5443_v15 = vld [vmem:[%s10946_s0 + $0x148] sm:$0xff] }
 0x5ed   :  { %4470 = vmatpush.msra.mxu3 %v5443_v15  ;;  %v11754_v18 = vld [vmem:[#allocation105_spill] sm:$0xff] }
 0x5ee   :  { %v4054_v63 = vadd.f32 %v4053_v31, %v4052_v57  ;;  %v10352_v31 = vpop.trf.xlu1  ;;  %v11770_v15 = vld [vmem:[#allocation193_spill] sm:$0xff] }
 0x5ef   :  { %4471 = vmatpush.msra.mxu3 %v5444_v34 }
 0x5f0   :  { %v4056_v20 = vadd.f32 %v4055_v23, %v4054_v63  ;;  %v11755_v23 = vld [vmem:[#allocation76_spill] sm:$0xff] }
 0x5f1   :  { %4472 = vmatpush.msra.mxu3 %v5445_v12  ;;  %v5476_v12 = vld [vmem:[%s10946_s0 + $0x340] sm:$0xff] }
 0x5f2   :  { %v4058_v24 = vadd.f32 %v4057_v44, %v4056_v20  ;;  %v5446_v20 = vld [vmem:[%s10946_s0 + $0x130] sm:$0xff]  ;;  %v5447_v44 = vld [vmem:[%s10946_s0 + $0x128] sm:$0xff] }
 0x5f3   :  { %4473 = vmatpush.msra.mxu3 %v5446_v20  ;;  %v11772_v20 = vld [vmem:[#allocation195_spill] sm:$0xff] }
 0x5f4   :  { %v4060_v5 = vadd.f32 %v4059_v11, %v4058_v24  ;;  %2655 = vmax.xlane.f32.xlu1 %v11743_v48  ;;  %v3790_v24 = vld [vmem:[#allocation4] sm:$0x1] }
 0x5f5   :  { %4474 = vmatpush.msra.mxu3 %v5447_v44 }
 0x5f6   :  { %v4062_v0 = vadd.f32 %v4061_v2, %v4060_v5  ;;  %v5448_v5 = vld [vmem:[%s10946_s0 + $0x120] sm:$0xff] }
 0x5f7   :  { %4475 = vmatpush.msra.mxu3 %v5448_v5 }
 0x5f8   :  { %v4064_v46 = vadd.f32 %v4063_v60, %v4062_v0  ;;  %v11756_v0 = vld [vmem:[#allocation30_spill] sm:$0xff]  ;;  %v11757_v60 = vld [vmem:[#allocation121_spill] sm:$0xff] }
 0x5f9   :  { %v3791_v48 = vmul.f32 %v11756_v0, %v3790_v24  ;;  %v5479_v24 = vld [vmem:[%s10946_s0 + $0x328] sm:$0xff]  ;;  %v5480_v0 = vld [vmem:[%s10946_s0 + $0x320] sm:$0xff] }
 0x5fa   :  { %v4066_v40 = vadd.f32 %v4065_v28, %v4064_v46  ;;  %v5449_v46 = vld [vmem:[%s10946_s0 + $0x118] sm:$0xff]  ;;  %v10373_v28 = vpop.trf.xlu1 }
 0x5fb   :  { %4476 = vmatpush.msra.mxu3 %v5449_v46  ;;  %v11774_v46 = vld [vmem:[#allocation127_spill] sm:$0xff] }
 0x5fc   :  { %v4068_v56 = vadd.f32 %v4067_v19, %v4066_v40  ;;  %2664 = vmax.xlane.f32.xlu1 %v11744_v8  ;;  %v11758_v19 = vld [vmem:[#allocation183_spill] sm:$0xff]  ;;  %v11759_v8 = vld [vmem:[#allocation133_spill] sm:$0xff] }
 0x5fe   :  { %v4070_v29 = vadd.f32 %v4069_v17, %v4068_v56  ;;  %v5450_v56 = vld [vmem:[%s10946_s0 + $0x110] sm:$0xff]  ;;  %v5451_v17 = vld [vmem:[%s10946_s0 + $0x108] sm:$0xff] }
 0x5ff   :  { %4477 = vmatpush.msra.mxu3 %v5450_v56  ;;  %v5483_v56 = vld [vmem:[%s10946_s0 + $0x308] sm:$0xff] }
 0x600   :  { %v4072_v52 = vadd.f32 %v4071_v16, %v4070_v29  ;;  %v5452_v29 = vld [vmem:[%s10946_s0 + $0x100] sm:$0xff]  ;;  %v5453_v16 = vld [vmem:[%s10946_s0 + $0x1f8] sm:$0xff] }
 0x601   :  { %4478 = vmatpush.msra.mxu3 %v5451_v17  ;;  %v5484_v17 = vld [vmem:[%s10946_s0 + $0x300] sm:$0xff] }
 0x602   :  { %v4074_v45 = vadd.f32 %v4073_v10, %v4072_v52  ;;  %v11760_v52 = vld [vmem:[#allocation78_spill] sm:$0xff] }
 0x603   :  { %4479 = vmatpush.msra.mxu3 %v5452_v29  ;;  %v5454_v10 = vld [vmem:[%s10946_s0 + $0x1f0] sm:$0xff]  ;;  %v11775_v29 = vld [vmem:[#allocation91_spill] sm:$0xff] }
 0x604   :  { %v4076_v41 = vadd.f32 %v4075_v22, %v4074_v45  ;;  %2673 = vmax.xlane.f32.xlu1 %v11745_v58  ;;  %4979 = vmatmul.lmr.bf16.vlgmr.msra.gmra.1.mxu3  ;;  %v5455_v22 = vld [vmem:[%s10946_s0 + $0x1e8] sm:$0xff]  ;;  %v5458_v58 = vld [vmem:[%s10946_s0 + $0x1d0] sm:$0xff] }
 0x605   :  { %4484 = vmatpush.msra.mxu3 %v5453_v16  ;;  %v11776_v16 = vld [vmem:[#allocation137_spill] sm:$0xff] }
 0x606   :  { %v4078_v27 = vadd.f32 %v4077_v43, %v4076_v41  ;;  %2859 = vmax.xlane.f32.xlu0 %v11747_v39  ;;  %v11761_v41 = vld [vmem:[#allocation142_spill] sm:$0xff] }
 0x607   :  { %4485 = vmatpush.msra.mxu3 %v5454_v10  ;;  %v5457_v43 = vld [vmem:[%s10946_s0 + $0x1d8] sm:$0xff] }
 0x608   :  { %v4080_v53 = vadd.f32 %v4079_v7, %v4078_v27  ;;  %v11762_v27 = vld [vmem:[#allocation80_spill] sm:$0xff]  ;;  %v5461_v39 = vld [vmem:[%s10946_s0 + $0x1b8] sm:$0xff] }
 0x609   :  { %4486 = vmatpush.msra.mxu3 %v5455_v22  ;;  %v5460_v7 = vld [vmem:[%s10946_s0 + $0x1c0] sm:$0xff]  ;;  %v5488_v22 = vld [vmem:[%s10946_s0 + $0x490] sm:$0xff] }
 0x60a   :  { %v4082_v55 = vadd.f32 %v4081_v3, %v4080_v53  ;;  %v11763_v53 = vld [vmem:[#allocation147_spill] sm:$0xff] }
 0x60b   :  { %4487 = vmatpush.msra.mxu3 %v5456_v49  ;;  %v11777_v49 = vld [vmem:[#allocation109_spill] sm:$0xff] }
 0x60c   :  { %v4084_v32 = vadd.f32 %v4083_v21, %v4082_v55  ;;  %2682 = vmax.xlane.f32.xlu1 %v11751_v62  ;;  %4996 = vllmr.1.mxu3  ;;  %v5463_v55 = vld [vmem:[%s10946_s0 + $0x1a8] sm:$0xff]  ;;  %v5465_v21 = vld [vmem:[%s10946_s0 + $0x198] sm:$0xff]  ;;  %v5468_v62 = vld [vmem:[%s10946_s0 + $0x180] sm:$0xff] }
 0x60d   :  { %4488 = vmatpush.msra.mxu3 %v5457_v43  ;;  %v11778_v43 = vld [vmem:[#allocation141_spill] sm:$0xff] }
 0x60e   :  { %v4086_v33 = vadd.f32 %v4085_v35, %v4084_v32  ;;  %2868 = vmax.xlane.f32.xlu0 %v11753_v25  ;;  %v11766_v32 = vld [vmem:[#allocation84_spill] sm:$0xff] }
 0x60f   :  { %4489 = vmatpush.msra.mxu3 %v5458_v58  ;;  %v5471_v25 = vld [vmem:[%s10946_s0 + $0x368] sm:$0xff] }
 0x610   :  { %v4088_v51 = vadd.f32 %v4087_v37, %v4086_v33  ;;  %v5467_v33 = vld [vmem:[%s10946_s0 + $0x188] sm:$0xff]  ;;  %v5470_v37 = vld [vmem:[%s10946_s0 + $0x370] sm:$0xff] }
 0x611   :  { %4490 = vmatpush.msra.mxu3 %v5459_v38  ;;  %v11780_v38 = vld [vmem:[#allocation39_spill] sm:$0xff] }
 0x612   :  { %v4090_v36 = vadd.f32 %v4089_v14, %v4088_v51  ;;  %v11769_v14 = vld [vmem:[#allocation25_spill] sm:$0xff] }
 0x613   :  { %4491 = vmatpush.msra.mxu3 %v5460_v7 }
 0x614   :  { %v4091_v57 = vrot.slane %v4090_v36, 4  ;;  %2691 = vmax.xlane.f32.xlu1 %v11754_v18  ;;  %v5475_v18 = vld [vmem:[%s10946_s0 + $0x348] sm:$0xff] }
 0x615   :  { %4492 = vmatpush.msra.mxu3 %v5461_v39  ;;  %v11782_v39 = vld [vmem:[#allocation42_spill] sm:$0xff] }
 0x616   :  { %v4092_v63 = vadd.f32 %v4091_v57, %v4090_v36  ;;  %2877 = vmax.xlane.f32.xlu0 %v11755_v23  ;;  %v5473_v36 = vld [vmem:[%s10946_s0 + $0x358] sm:$0xff]  ;;  %v5474_v57 = vld [vmem:[%s10946_s0 + $0x350] sm:$0xff] }
 0x617   :  { %4493 = vmatpush.msra.mxu3 %v5462_v9  ;;  %v5477_v23 = vld [vmem:[%s10946_s0 + $0x338] sm:$0xff] }
 0x618   :  { %v4093_v30 = vrot.slane %v4092_v63, 2 }
 0x619   :  { %4494 = vmatpush.msra.mxu3 %v5463_v55  ;;  %v11784_v55 = vld [vmem:[#allocation45_spill] sm:$0xff] }
 0x61a   :  { %v4094_v6 = vadd.f32 %v4093_v30, %v4092_v63  ;;  %v11771_v30 = vld [vmem:[#allocation71_spill] sm:$0xff] }
 0x61b   :  { %4495 = vmatpush.msra.mxu3 %v5464_v47 }
 0x61c   :  { %v4095_v11 = vrot.slane %v4094_v6, 1  ;;  %2700 = vmax.xlane.f32.xlu1 %v11757_v60  ;;  %v5481_v60 = vld [vmem:[%s10946_s0 + $0x318] sm:$0xff] }
 0x61d   :  { %4496 = vmatpush.msra.mxu3 %v5465_v21  ;;  %v11785_v21 = vld [vmem:[#allocation18_spill] sm:$0xff] }
 0x61e   :  { %v4096_v2 = vadd.f32 %v4095_v11, %v4094_v6  ;;  %2886 = vmax.xlane.f32.xlu0 %v11758_v19  ;;  %v5478_v6 = vld [vmem:[%s10946_s0 + $0x330] sm:$0xff]  ;;  %v5076_v11 = vpop.trf.xlu0 }
 0x61f   :  { %4497 = vmatpush.msra.mxu3 %v5466_v26  ;;  %v5080_v5 = vunpack.i.h.bf16 %v5076_v11 }
 0x620   :  { %v4097_v40 = vadd.f32 %v4096_v2, %v3791_v48  ;;  %v5077_v2 = vunpack.i.l.bf16 %v5076_v11  ;;  %v11773_v48 = vld [vmem:[#allocation180_spill] sm:$0xff] }
 0x621   :  { %4498 = vmatpush.msra.mxu3 %v5467_v33  ;;  %4600 = vmatmul.f32.vlgmr.msra.gmra.mxu1 %v5080_v5  ;;  %v11788_v33 = vld [vmem:[#allocation51_spill] sm:$0xff] }
 0x622   :  { %4099 = vst.msk [vmem:[#allocation4] sm:$0x1] %vm288_vm15, %v4097_v40  ;;  %4580 = vmatmul.f32.vlgmr.msra.gmra.mxu0 %v5077_v2  ;;  %v5482_v40 = vld [vmem:[%s10946_s0 + $0x310] sm:$0xff]  ;;  %v11796_v2 = vld [vmem:[#allocation187_spill] sm:$0xff] }
 0x623   :  { %4499 = vmatpush.msra.mxu3 %v5468_v62 }
 0x624   :  { %2709 = vmax.xlane.f32.xlu1 %v11759_v8  ;;  %4500 = vmatmul.f32.vlgmr.msra.gmra.mxu3 %v5043_v59  ;;  %v5485_v8 = vld [vmem:[%s10946_s0 + $0x4a8] sm:$0xff] }
 0x625   :  { %4544 = vmatpush.msra.mxu3 %v5469_v54  ;;  %v11789_v54 = vld [vmem:[#allocation164_spill] sm:$0xff] }
 0x626   :  { %2895 = vmax.xlane.f32.xlu0 %v11760_v52  ;;  %v5486_v52 = vld [vmem:[%s10946_s0 + $0x4a0] sm:$0xff] }
 0x627   :  { %v2581_v45 = vpop.xlane.xlu1 %2580  ;;  %4545 = vmatpush.msra.mxu3 %v5470_v37 }
 0x628   :  { %3028 = vst.msk [vmem:[%s10953_s7 + $0x8] sm:$0xff] %vm3026_vm11, %v2581_v45  ;;  %v5487_v45 = vld [vmem:[%s10946_s0 + $0x498] sm:$0xff] }
 0x629   :  { %4546 = vmatpush.msra.mxu3 %v5471_v25  ;;  %v10485_v63 = vld [vmem:[#allocation4] sm:$0x1] }
 0x62a   :  { %4764 = vst.msk [vmem:[#allocation10] sm:$0x1] %vm288_vm15, %v10485_v63  ;;  %5383 = vrcp.f32 %v10485_v63  ;;  %vm4676_vm10 = vweird.f32 %v10485_v63 }
 0x62b   :  { %4547 = vmatpush.msra.mxu3 %v5472_v42  ;;  %4799 = dma.vmem_to_hbm [thread:$0]  %s4795_s25, 16, %s4797_s5, [#allocation9]  }
 0x62c   :  { %2718 = vmax.xlane.f32.xlu1 %v11761_v41  ;;  %v5489_v41 = vld [vmem:[%s10946_s0 + $0x488] sm:$0xff]  ;;  %s4774_s25 = sshll.u32 %s10954_s8, 4  ;;  %s4775_s25 = int_to_ptr.hbm [resolvable:$true] %s4774_s25 }
 0x62d   :  { %4548 = vmatpush.msra.mxu3 %v5473_v36 }
 0x62e   :  { %2904 = vmax.xlane.f32.xlu0 %v11762_v27  ;;  %v5490_v27 = vld [vmem:[%s10946_s0 + $0x480] sm:$0xff] }
 0x62f   :  { %v2593_v13 = vpop.xlane.xlu1 %2592  ;;  %4549 = vmatpush.msra.mxu3 %v5474_v57  ;;  %v11792_v57 = vld [vmem:[#allocation33_spill] sm:$0xff] }
 0x630   :  { %3032 = vst.msk [vmem:[%s10953_s7 + $0x28] sm:$0xff] %vm3026_vm11, %v2593_v13  ;;  %v11779_v13 = vld [vmem:[#allocation124_spill] sm:$0xff] }
 0x631   :  { %4550 = vmatpush.msra.mxu3 %v5475_v18 }
 0x633   :  { %4551 = vmatpush.msra.mxu3 %v5476_v12  ;;  %v11793_v12 = vld [vmem:[#allocation77_spill] sm:$0xff] }
 0x634   :  { %2727 = vmax.xlane.f32.xlu1 %v11763_v53 }
 0x635   :  { %4552 = vmatpush.msra.mxu3 %v5477_v23 }
 0x636   :  { %2913 = vmax.xlane.f32.xlu0 %v11764_v61 }
 0x637   :  { %v2602_v3 = vpop.xlane.xlu1 %2601  ;;  %4553 = vmatpush.msra.mxu3 %v5478_v6 }
 0x638   :  { %3035 = vst.msk [vmem:[%s10953_s7 + $0x40] sm:$0xff] %vm3026_vm11, %v2602_v3  ;;  %v11783_v3 = vld [vmem:[#allocation15_spill] sm:$0xff] }
 0x639   :  { %4554 = vmatpush.msra.mxu3 %v5479_v24  ;;  %v11795_v24 = vld [vmem:[#allocation185_spill] sm:$0xff] }
 0x63b   :  { %4555 = vmatpush.msra.mxu3 %v5480_v0 }
 0x63c   :  { %2736 = vmax.xlane.f32.xlu1 %v11765_v1 }
 0x63d   :  { %4556 = vmatpush.msra.mxu3 %v5481_v60  ;;  %v11797_v60 = vld [vmem:[#allocation81_spill] sm:$0xff] }
 0x63e   :  { %2922 = vmax.xlane.f32.xlu0 %v11766_v32  ;;  %v11786_v32 = vld [vmem:[#allocation48_spill] sm:$0xff] }
 0x63f   :  { %v2611_v35 = vpop.xlane.xlu1 %2610  ;;  %4557 = vmatpush.msra.mxu3 %v5482_v40 }
 0x640   :  { %3038 = vst.msk [vmem:[%s10953_s7 + $0x58] sm:$0xff] %vm3026_vm11, %v2611_v35  ;;  %v11787_v35 = vld [vmem:[#allocation157_spill] sm:$0xff] }
 0x641   :  { %4558 = vmatpush.msra.mxu3 %v5483_v56 }
 0x643   :  { %4559 = vmatpush.msra.mxu3 %v5484_v17 }
 0x644   :  { %2745 = vmax.xlane.f32.xlu1 %v11767_v50  ;;  %4997 = vmatmul.lmr.bf16.vlgmr.msra.gmra.1.mxu3 }
 0x645   :  { %4614 = vmatpush.msra.mxu3 %v5485_v8 }
 0x646   :  { %2931 = vmax.xlane.f32.xlu0 %v11768_v4 }
 0x647   :  { %v2620_v51 = vpop.xlane.xlu1 %2619  ;;  %4615 = vmatpush.msra.mxu3 %v5486_v52 }
 0x648   :  { %3041 = vst.msk [vmem:[%s10953_s7 + $0x70] sm:$0xff] %vm3026_vm11, %v2620_v51  ;;  %v11790_v51 = vld [vmem:[#allocation170_spill] sm:$0xff] }
 0x649   :  { %4616 = vmatpush.msra.mxu3 %v5487_v45 }
 0x64b   :  { %4617 = vmatpush.msra.mxu3 %v5488_v22 }
 0x64c   :  { %2754 = vmax.xlane.f32.xlu1 %v11769_v14  ;;  %v11791_v14 = vld [vmem:[#allocation177_spill] sm:$0xff] }
 0x64d   :  { %4618 = vmatpush.msra.mxu3 %v5489_v41 }
 0x64e   :  { %2937 = vmax.xlane.f32.xlu0 %v11770_v15 }
 0x64f   :  { %v2629_v34 = vpop.xlane.xlu1 %2628  ;;  %4619 = vmatpush.msra.mxu3 %v5490_v27 }
 0x650   :  { %3044 = vst.msk [vmem:[%s10953_s7 + $0x88] sm:$0xff] %vm3026_vm11, %v2629_v34  ;;  %4832 = vmatmul.msk.f32.vlgmr.msra.gmra.mxu3 %vm4420_vm6, %v10352_v31  ;;  %v11781_v31 = vld [vmem:[#allocation136_spill] sm:$0xff] }
 0x654   :  { %2763 = vmax.xlane.f32.xlu1 %v11771_v30 }
 0x656   :  { %2940 = vmax.xlane.f32.xlu0 %v11772_v20  ;;  %v11794_v20 = vld [vmem:[#allocation184_spill] sm:$0xff] }
 0x657   :  { %v2638_v44 = vpop.xlane.xlu1 %2637 }
 0x658   :  { %3047 = vst.msk [vmem:[%s10953_s7 + $0xa0] sm:$0xff] %vm3026_vm11, %v2638_v44 }
 0x65c   :  { %2772 = vmax.xlane.f32.xlu1 %v11773_v48 }
 0x65e   :  { %2964 = vmax.xlane.f32.xlu0 %v11774_v46 }
 0x65f   :  { %v2647_v19 = vpop.xlane.xlu1 %2646 }
 0x660   :  { %3050 = vst.msk [vmem:[%s10953_s7 + $0xb8] sm:$0xff] %vm3026_vm11, %v2647_v19  ;;  %v11798_v19 = vld [vmem:[#allocation83_spill] sm:$0xff] }
 0x664   :  { %2781 = vmax.xlane.f32.xlu1 %v11775_v29  ;;  %v11799_v29 = vld [vmem:[#allocation192_spill] sm:$0xff] }
 0x666   :  { %2970 = vmax.xlane.f32.xlu0 %v11776_v16 }
 0x667   :  { %v2656_v10 = vpop.xlane.xlu1 %2655 }
 0x668   :  { %3053 = vst.msk [vmem:[%s10953_s7 + $0xd0] sm:$0xff] %vm3026_vm11, %v2656_v10 }
 0x66c   :  { %2790 = vmax.xlane.f32.xlu1 %v11777_v49 }
 0x66e   :  { %2976 = vmax.xlane.f32.xlu0 %v11778_v43 }
 0x66f   :  { %v2665_v58 = vpop.xlane.xlu1 %2664 }
 0x670   :  { %3056 = vst.msk [vmem:[%s10953_s7 + $0xe8] sm:$0xff] %vm3026_vm11, %v2665_v58  ;;  %v5384_v58 = vpop.eup %5383 }
 0x671   :  { %vm4677_vm15 = vweird.f32 %v5384_v58 }
 0x672   :  { %vm4678_vm12 = vmor %vm4676_vm10, %vm4677_vm15 }
 0x674   :  { %2799 = vmax.xlane.f32.xlu1 %v11779_v13  ;;  %v4672_v13 = vmul.f32 %v5384_v58, %v10485_v63 }
 0x676   :  { %2982 = vmax.xlane.f32.xlu0 %v11780_v38 }
 0x677   :  { %v2674_v7 = vpop.xlane.xlu1 %2673 }
 0x678   :  { %3059 = vst.msk [vmem:[%s10953_s7 + $0x100] sm:$0xff] %vm3026_vm11, %v2674_v7  ;;  %v4673_v7 = vsub.f32 1.0, %v4672_v13  ;;  %v4731_v13 = vld [vmem:[%s10952_s6 + $0x38] sm:$0xff] }
 0x679   :  { %v2860_v53 = vpop.xlane.xlu0 %2859 }
 0x67a   :  { %3121 = vst.msk [vmem:[%s10953_s7 + $0x2f0] sm:$0xff] %vm3026_vm11, %v2860_v53  ;;  %v4674_v53 = vmul.f32 %v5384_v58, %v4673_v7  ;;  %v4730_v7 = vld [vmem:[%s10952_s6 + $0x30] sm:$0xff] }
 0x67c   :  { %2808 = vmax.xlane.f32.xlu1 %v11781_v31 }
 0x67e   :  { %2991 = vmax.xlane.f32.xlu0 %v11782_v39  ;;  %v4675_v39 = vadd.f32 %v5384_v58, %v4674_v53  ;;  %v11815_v53 = vld [vmem:[#allocation38_spill] sm:$0xff] }
 0x67f   :  { %v2683_v61 = vpop.xlane.xlu1 %2682 }
 0x680   :  { %3062 = vst.msk [vmem:[%s10953_s7 + $0x118] sm:$0xff] %vm3026_vm11, %v2683_v61  ;;  %v4682_v61 = vand.u32 2147483648, %v10485_v63 }
 0x681   :  { %v2869_v9 = vpop.xlane.xlu0 %2868 }
 0x682   :  { %3124 = vst.msk [vmem:[%s10953_s7 + $0x308] sm:$0xff] %vm3026_vm11, %v2869_v9  ;;  %v4680_v9 = vand.u32 2147483647, %v10485_v63 }
 0x684   :  { %2817 = vmax.xlane.f32.xlu1 %v11783_v3  ;;  %v4679_v3 = vsel %vm4678_vm12, %v5384_v58, %v4675_v39  ;;  %vm4681_vm13 = vcmp.eq.f32.partialorder %v4680_v9, 8.507059e+37  ;;  %v4732_v58 = vld [vmem:[%s10952_s6 + $0x40] sm:$0xff] }
 0x685   :  { %v4728_v39 = vld [vmem:[%s10952_s6 + $0x20] sm:$0xff] }
 0x686   :  { %3000 = vmax.xlane.f32.xlu0 %v11784_v55 }
 0x687   :  { %v2692_v47 = vpop.xlane.xlu1 %2691 }
 0x688   :  { %3065 = vst.msk [vmem:[%s10953_s7 + $0x130] sm:$0xff] %vm3026_vm11, %v2692_v47  ;;  %v4683_v47 = vor.u32 1.1754944e-38, %v4682_v61  ;;  %v4727_v61 = vld [vmem:[%s10952_s6 + $0x18] sm:$0xff] }
 0x689   :  { %v2878_v1 = vpop.xlane.xlu0 %2877 }
 0x68a   :  { %3127 = vst.msk [vmem:[%s10953_s7 + $0x320] sm:$0xff] %vm3026_vm11, %v2878_v1  ;;  %v4684_v1 = vsel %vm4681_vm13, %v4683_v47, %v4679_v3  ;;  %v4726_v3 = vld [vmem:[%s10952_s6 + $0x10] sm:$0xff] }
 0x68b   :  { %v11816_v47 = vld [vmem:[#allocation154_spill] sm:$0xff] }
 0x68c   :  { %2826 = vmax.xlane.f32.xlu1 %v11785_v21 }
 0x68e   :  { %3009 = vmax.xlane.f32.xlu0 %v11786_v32  ;;  %v4441_v32 = vpop.f32.mrf.mxu3 }
 0x68f   :  { %v2701_v26 = vpop.xlane.xlu1 %2700 }
 0x690   :  { %3068 = vst.msk [vmem:[%s10953_s7 + $0x148] sm:$0xff] %vm3026_vm11, %v2701_v26 }
 0x691   :  { %v2887_v59 = vpop.xlane.xlu0 %2886 }
 0x692   :  { %3130 = vst.msk [vmem:[%s10953_s7 + $0x338] sm:$0xff] %vm3026_vm11, %v2887_v59 }
 0x694   :  { %2835 = vmax.xlane.f32.xlu1 %v11787_v35 }
 0x696   :  { %3018 = vmax.xlane.f32.xlu0 %v11788_v33  ;;  %v4461_v26 = vpop.f32.mrf.mxu3 }
 0x697   :  { %v2710_v62 = vpop.xlane.xlu1 %2709 }
 0x698   :  { %3071 = vst.msk [vmem:[%s10953_s7 + $0x160] sm:$0xff] %vm3026_vm11, %v2710_v62  ;;  %v4462_v62 = vadd.f32 %v4461_v26, %v4441_v32  ;;  %v11817_v32 = vld [vmem:[#allocation162_spill] sm:$0xff]  ;;  %v11818_v26 = vld [vmem:[#allocation47_spill] sm:$0xff] }
 0x699   :  { %v2896_v50 = vpop.xlane.xlu0 %2895 }
 0x69a   :  { %3133 = vst.msk [vmem:[%s10953_s7 + $0x350] sm:$0xff] %vm3026_vm11, %v2896_v50 }
 0x69c   :  { %2844 = vmax.xlane.f32.xlu1 %v11789_v54 }
 0x69e   :  { %v4481_v35 = vpop.f32.mrf.mxu3 }
 0x69f   :  { %v2719_v4 = vpop.xlane.xlu1 %2718  ;;  %v4482_v50 = vadd.f32 %v4481_v35, %v4462_v62  ;;  %v11819_v35 = vld [vmem:[#allocation50_spill] sm:$0xff] }
 0x6a0   :  { %3074 = vst.msk [vmem:[%s10953_s7 + $0x178] sm:$0xff] %vm3026_vm11, %v2719_v4 }
 0x6a1   :  { %v2905_v37 = vpop.xlane.xlu0 %2904 }
 0x6a2   :  { %3136 = vst.msk [vmem:[%s10953_s7 + $0x368] sm:$0xff] %vm3026_vm11, %v2905_v37 }
 0x6a4   :  { %2853 = vmax.xlane.f32.xlu1 %v11790_v51  ;;  %v4521_v51 = vpop.f32.mrf.mxu0 }
 0x6a7   :  { %v2728_v25 = vpop.xlane.xlu1 %2727  ;;  %v4501_v54 = vpop.f32.mrf.mxu3 }
 0x6a8   :  { %3077 = vst.msk [vmem:[%s10953_s7 + $0x190] sm:$0xff] %vm3026_vm11, %v2728_v25  ;;  %v4502_v37 = vadd.f32 %v4501_v54, %v4482_v50 }
 0x6a9   :  { %v2914_v42 = vpop.xlane.xlu0 %2913 }
 0x6aa   :  { %3139 = vst.msk [vmem:[%s10953_s7 + $0x380] sm:$0xff] %vm3026_vm11, %v2914_v42  ;;  %v4522_v25 = vadd.f32 %v4521_v51, %v4502_v37  ;;  %v4541_v42 = vpop.f32.mrf.mxu1 }
 0x6ac   :  { %2862 = vmax.xlane.f32.xlu1 %v11791_v14  ;;  %v4542_v14 = vadd.f32 %v4541_v42, %v4522_v25 }
 0x6af   :  { %v2737_v36 = vpop.xlane.xlu1 %2736 }
 0x6b0   :  { %3080 = vst.msk [vmem:[%s10953_s7 + $0x1a8] sm:$0xff] %vm3026_vm11, %v2737_v36 }
 0x6b1   :  { %v2923_v15 = vpop.xlane.xlu0 %2922 }
 0x6b2   :  { %3142 = vst.msk [vmem:[%s10953_s7 + $0x398] sm:$0xff] %vm3026_vm11, %v2923_v15 }
 0x6b4   :  { %2871 = vmax.xlane.f32.xlu1 %v11792_v57  ;;  %v4581_v57 = vpop.f32.mrf.mxu0 }
 0x6b7   :  { %v2746_v34 = vpop.xlane.xlu1 %2745 }
 0x6b8   :  { %3083 = vst.msk [vmem:[%s10953_s7 + $0x1c0] sm:$0xff] %vm3026_vm11, %v2746_v34 }
 0x6b9   :  { %v2932_v18 = vpop.xlane.xlu0 %2931 }
 0x6ba   :  { %3145 = vst.msk [vmem:[%s10953_s7 + $0x3b0] sm:$0xff] %vm3026_vm11, %v2932_v18  ;;  %v4601_v18 = vpop.f32.mrf.mxu1 }
 0x6bc   :  { %2880 = vmax.xlane.f32.xlu1 %v11793_v12 }
 0x6bf   :  { %v2755_v30 = vpop.xlane.xlu1 %2754 }
 0x6c0   :  { %3086 = vst.msk [vmem:[%s10953_s7 + $0x1d8] sm:$0xff] %vm3026_vm11, %v2755_v30 }
 0x6c1   :  { %v2938_v23 = vpop.xlane.xlu0 %2937 }
 0x6c2   :  { %3147 = vst.msk [vmem:[%s10953_s7 + $0x3c0] sm:$0xff] %vm3026_vm11, %v2938_v23  ;;  %v4656_v23 = vld [vmem:[#allocation5] sm:$0xf] }
 0x6c4   :  { %2889 = vmax.xlane.f32.xlu1 %v11794_v20 }
 0x6c7   :  { %v2764_v6 = vpop.xlane.xlu1 %2763  ;;  %v4561_v36 = vpop.f32.mrf.mxu3 }
 0x6c8   :  { %3089 = vst.msk [vmem:[%s10953_s7 + $0x1f0] sm:$0xff] %vm3026_vm11, %v2764_v6  ;;  %v4562_v15 = vadd.f32 %v4561_v36, %v4542_v14 }
 0x6c9   :  { %v2941_v44 = vpop.xlane.xlu0 %2940 }
 0x6ca   :  { %3148 = vst.msk [vmem:[%s10953_s7 + $0x3c8] sm:$0xff] %vm3026_vm11, %v2941_v44  ;;  %v4582_v34 = vadd.f32 %v4581_v57, %v4562_v15 }
 0x6cc   :  { %2898 = vmax.xlane.f32.xlu1 %v11795_v24  ;;  %v4602_v12 = vadd.f32 %v4601_v18, %v4582_v34 }
 0x6cf   :  { %v2773_v11 = vpop.xlane.xlu1 %2772 }
 0x6d0   :  { %3092 = vst.msk [vmem:[%s10953_s7 + $0x208] sm:$0xff] %vm3026_vm11, %v2773_v11  ;;  %v11800_v11 = vld [vmem:[#allocation94_spill] sm:$0xff] }
 0x6d1   :  { %v2965_v5 = vpop.xlane.xlu0 %2964 }
 0x6d2   :  { %3156 = vst.msk [vmem:[%s10953_s7 + $0x408] sm:$0xff] %vm3026_vm11, %v2965_v5  ;;  %v11801_v5 = vld [vmem:[#allocation99_spill] sm:$0xff] }
 0x6d3   :  { %v4621_v30 = vpop.f32.mrf.mxu3 }
 0x6d4   :  { %2907 = vmax.xlane.f32.xlu1 %v11796_v2  ;;  %v4622_v6 = vadd.f32 %v4621_v30, %v4602_v12  ;;  %v11802_v2 = vld [vmem:[#allocation102_spill] sm:$0xff] }
 0x6d7   :  { %v2782_v0 = vpop.xlane.xlu1 %2781 }
 0x6d8   :  { %3095 = vst.msk [vmem:[%s10953_s7 + $0x220] sm:$0xff] %vm3026_vm11, %v2782_v0  ;;  %v11803_v0 = vld [vmem:[#allocation110_spill] sm:$0xff] }
 0x6d9   :  { %v2971_v48 = vpop.xlane.xlu0 %2970 }
 0x6da   :  { %3158 = vst.msk [vmem:[%s10953_s7 + $0x418] sm:$0xff] %vm3026_vm11, %v2971_v48  ;;  %v11804_v48 = vld [vmem:[#allocation118_spill] sm:$0xff] }
 0x6dc   :  { %2916 = vmax.xlane.f32.xlu1 %v11797_v60  ;;  %v11805_v60 = vld [vmem:[#allocation125_spill] sm:$0xff] }
 0x6df   :  { %v2791_v46 = vpop.xlane.xlu1 %2790 }
 0x6e0   :  { %3098 = vst.msk [vmem:[%s10953_s7 + $0x238] sm:$0xff] %vm3026_vm11, %v2791_v46  ;;  %v11806_v46 = vld [vmem:[#allocation131_spill] sm:$0xff] }
 0x6e1   :  { %v2977_v40 = vpop.xlane.xlu0 %2976 }
 0x6e2   :  { %3160 = vst.msk [vmem:[%s10953_s7 + $0x428] sm:$0xff] %vm3026_vm11, %v2977_v40  ;;  %v11807_v40 = vld [vmem:[#allocation139_spill] sm:$0xff] }
 0x6e4   :  { %2925 = vmax.xlane.f32.xlu1 %v11798_v19  ;;  %v11808_v19 = vld [vmem:[#allocation143_spill] sm:$0xff] }
 0x6e7   :  { %v2800_v56 = vpop.xlane.xlu1 %2799 }
 0x6e8   :  { %3101 = vst.msk [vmem:[%s10953_s7 + $0x250] sm:$0xff] %vm3026_vm11, %v2800_v56 }
 0x6e9   :  { %v2983_v17 = vpop.xlane.xlu0 %2982 }
 0x6ea   :  { %3162 = vst.msk [vmem:[%s10953_s7 + $0x438] sm:$0xff] %vm3026_vm11, %v2983_v17  ;;  %v11809_v17 = vld [vmem:[#allocation150_spill] sm:$0xff] }
 0x6ec   :  { %2934 = vmax.xlane.f32.xlu1 %v11799_v29  ;;  %v11810_v29 = vld [vmem:[#allocation159_spill] sm:$0xff] }
 0x6ef   :  { %v2809_v8 = vpop.xlane.xlu1 %2808 }
 0x6f0   :  { %3104 = vst.msk [vmem:[%s10953_s7 + $0x268] sm:$0xff] %vm3026_vm11, %v2809_v8  ;;  %v11811_v8 = vld [vmem:[#allocation166_spill] sm:$0xff] }
 0x6f1   :  { %v2992_v16 = vpop.xlane.xlu0 %2991 }
 0x6f2   :  { %3165 = vst.msk [vmem:[%s10953_s7 + $0x450] sm:$0xff] %vm3026_vm11, %v2992_v16  ;;  %v4739_v16 = vld [vmem:[%s10952_s6 + $0x78] sm:$0xff] }
 0x6f3   :  { %4740 = vmatpush.msra.mxu3 %v4739_v16 }
 0x6f7   :  { %v2818_v52 = vpop.xlane.xlu1 %2817 }
 0x6f8   :  { %3107 = vst.msk [vmem:[%s10953_s7 + $0x280] sm:$0xff] %vm3026_vm11, %v2818_v52  ;;  %v11812_v52 = vld [vmem:[#allocation172_spill] sm:$0xff] }
 0x6f9   :  { %v3001_v10 = vpop.xlane.xlu0 %3000 }
 0x6fa   :  { %3168 = vst.msk [vmem:[%s10953_s7 + $0x468] sm:$0xff] %vm3026_vm11, %v3001_v10  ;;  %v4738_v10 = vld [vmem:[%s10952_s6 + $0x70] sm:$0xff] }
 0x6fb   :  { %4741 = vmatpush.msra.mxu3 %v4738_v10 }
 0x6ff   :  { %v2827_v45 = vpop.xlane.xlu1 %2826 }
 0x700   :  { %3110 = vst.msk [vmem:[%s10953_s7 + $0x298] sm:$0xff] %vm3026_vm11, %v2827_v45  ;;  %v4737_v45 = vld [vmem:[%s10952_s6 + $0x68] sm:$0xff] }
 0x701   :  { %v3010_v22 = vpop.xlane.xlu0 %3009  ;;  %4742 = vmatpush.msra.mxu3 %v4737_v45 }
 0x702   :  { %3171 = vst.msk [vmem:[%s10953_s7 + $0x480] sm:$0xff] %vm3026_vm11, %v3010_v22  ;;  %v4736_v22 = vld [vmem:[%s10952_s6 + $0x60] sm:$0xff] }
 0x703   :  { %4743 = vmatpush.msra.mxu3 %v4736_v22 }
 0x705   :  { %4659 = vperm.xlu1 %5005, %v10373_v28  }
 0x707   :  { %v2836_v49 = vpop.xlane.xlu1 %2835 }
 0x708   :  { %3113 = vst.msk [vmem:[%s10953_s7 + $0x2b0] sm:$0xff] %vm3026_vm11, %v2836_v49  ;;  %v11813_v49 = vld [vmem:[#allocation179_spill] sm:$0xff] }
 0x709   :  { %v3019_v41 = vpop.xlane.xlu0 %3018 }
 0x70a   :  { %3174 = vst.msk [vmem:[%s10953_s7 + $0x498] sm:$0xff] %vm3026_vm11, %v3019_v41  ;;  %v4735_v41 = vld [vmem:[%s10952_s6 + $0x58] sm:$0xff] }
 0x70b   :  { %4744 = vmatpush.msra.mxu3 %v4735_v41 }
 0x70f   :  { %v2845_v43 = vpop.xlane.xlu1 %2844 }
 0x710   :  { %3116 = vst.msk [vmem:[%s10953_s7 + $0x2c8] sm:$0xff] %vm3026_vm11, %v2845_v43  ;;  %v4734_v43 = vld [vmem:[%s10952_s6 + $0x50] sm:$0xff] }
 0x711   :  { %4745 = vmatpush.msra.mxu3 %v4734_v43 }
 0x717   :  { %v2854_v27 = vpop.xlane.xlu1 %2853 }
 0x718   :  { %3119 = vst.msk [vmem:[%s10953_s7 + $0x2e0] sm:$0xff] %vm3026_vm11, %v2854_v27  ;;  %v11814_v27 = vld [vmem:[#allocation113_spill] sm:$0xff] }
 0x71f   :  { %v2863_v28 = vpop.xlane.xlu1 %2862 }
 0x720   :  { %3122 = vst.msk [vmem:[%s10953_s7 + $0x2f8] sm:$0xff] %vm3026_vm11, %v2863_v28  ;;  %v4733_v28 = vld [vmem:[%s10952_s6 + $0x48] sm:$0xff] }
 0x721   :  { %4746 = vmatpush.msra.mxu3 %v4733_v28 }
 0x723   :  { %4747 = vmatpush.msra.mxu3 %v4732_v58 }
 0x725   :  { %4748 = vmatpush.msra.mxu3 %v4731_v13 }
 0x727   :  { %v2872_v38 = vpop.xlane.xlu1 %2871  ;;  %4749 = vmatpush.msra.mxu3 %v4730_v7 }
 0x728   :  { %3125 = vst.msk [vmem:[%s10953_s7 + $0x310] sm:$0xff] %vm3026_vm11, %v2872_v38 }
 0x72f   :  { %v2881_v31 = vpop.xlane.xlu1 %2880 }
 0x730   :  { %3128 = vst.msk [vmem:[%s10953_s7 + $0x328] sm:$0xff] %vm3026_vm11, %v2881_v31  ;;  %v4729_v31 = vld [vmem:[%s10952_s6 + $0x28] sm:$0xff] }
 0x731   :  { %4750 = vmatpush.msra.mxu3 %v4729_v31 }
 0x733   :  { %4751 = vmatpush.msra.mxu3 %v4728_v39 }
 0x735   :  { %4752 = vmatpush.msra.mxu3 %v4727_v61 }
 0x737   :  { %v2890_v55 = vpop.xlane.xlu1 %2889  ;;  %4753 = vmatpush.msra.mxu3 %v4726_v3 }
 0x738   :  { %3131 = vst.msk [vmem:[%s10953_s7 + $0x340] sm:$0xff] %vm3026_vm11, %v2890_v55  ;;  %v4725_v55 = vld [vmem:[%s10952_s6 + $0x8] sm:$0xff] }
 0x739   :  { %4754 = vmatpush.msra.mxu3 %v4725_v55 }
 0x73a   :  { %4686 = vxpose.xlu1.b32.start.end [1/1] (short) (narrow) %v4684_v1, 8  ;;  %v4724_v1 = vld [vmem:[%s10952_s6] sm:$0xff] }
 0x73b   :  { %4755 = vmatpush.msra.mxu3 %v4724_v1 }
 0x73f   :  { %v2899_v21 = vpop.xlane.xlu1 %2898 }
 0x740   :  { %3134 = vst.msk [vmem:[%s10953_s7 + $0x358] sm:$0xff] %vm3026_vm11, %v2899_v21 }
 0x747   :  { %v2908_v63 = vpop.xlane.xlu1 %2907 }
 0x748   :  { %3137 = vst.msk [vmem:[%s10953_s7 + $0x370] sm:$0xff] %vm3026_vm11, %v2908_v63 }
 0x74f   :  { %v2917_v59 = vpop.xlane.xlu1 %2916 }
 0x750   :  { %3140 = vst.msk [vmem:[%s10953_s7 + $0x388] sm:$0xff] %vm3026_vm11, %v2917_v59 }
 0x757   :  { %v2926_v33 = vpop.xlane.xlu1 %2925 }
 0x758   :  { %3143 = vst.msk [vmem:[%s10953_s7 + $0x3a0] sm:$0xff] %vm3026_vm11, %v2926_v33 }
 0x75f   :  { %v2935_v4 = vpop.xlane.xlu1 %2934 }
 0x760   :  { %3146 = vst.msk [vmem:[%s10953_s7 + $0x3b8] sm:$0xff] %vm3026_vm11, %v2935_v4 }
 0x777   :  { %v4660_v20 = vpop.permute.xlu1 %4659 }
 0x778   :  { %v4662_v44 = vmul.f32 %v4660_v20, %v4656_v23 }
 0x77a   :  { %v4663_v24 = vadd.f32 %v4662_v44, %v4622_v6 }
 0x77c   :  { %4664 = vst [vmem:[#allocation5] sm:$0xf] %v4663_v24 }
 0x783   :  { %v4670_v62 = vld [vmem:[#allocation5] sm:$0xf] }
 0x79a   :  { %2943 = vmax.xlane.f32.xlu1 %v11800_v11 }
 0x7a2   :  { %2946 = vmax.xlane.f32.xlu1 %v11801_v5 }
 0x7aa   :  { %2949 = vmax.xlane.f32.xlu1 %v11802_v2 }
 0x7b2   :  { %2952 = vmax.xlane.f32.xlu1 %v11803_v0 }
 0x7ba   :  { %2958 = vmax.xlane.f32.xlu1 %v11804_v48 }
 0x7c2   :  { %2961 = vmax.xlane.f32.xlu1 %v11805_v60 }
 0x7ca   :  { %2967 = vmax.xlane.f32.xlu1 %v11806_v46 }
 0x7d2   :  { %2973 = vmax.xlane.f32.xlu1 %v11807_v40 }
 0x7da   :  { %2979 = vmax.xlane.f32.xlu1 %v11808_v19 }
 0x7de   :  { %v4702_v56 = vpop.trf.xlu1 }
 0x7df   :  { %4720 = vperm.xlu2 %5006, %v4702_v56  }
 0x7e2   :  { %2988 = vmax.xlane.f32.xlu1 %v11809_v17 }
 0x7ea   :  { %2997 = vmax.xlane.f32.xlu1 %v11810_v29 }
 0x7f2   :  { %3006 = vmax.xlane.f32.xlu1 %v11811_v8 }
 0x7fa   :  { %3015 = vmax.xlane.f32.xlu1 %v11812_v52 }
 0x802   :  { %3024 = vmax.xlane.f32.xlu1 %v11813_v49 }
 0x808   :  { %2955 = vmax.xlane.f32.xlu2 %v11814_v27 }
 0x80d   :  { %v2944_v38 = vpop.xlane.xlu1 %2943 }
 0x80e   :  { %3149 = vst.msk [vmem:[%s10953_s7 + $0x3d0] sm:$0xff] %vm3026_vm11, %v2944_v38 }
 0x810   :  { %2985 = vmax.xlane.f32.xlu2 %v11815_v53 }
 0x815   :  { %v2947_v9 = vpop.xlane.xlu1 %2946 }
 0x816   :  { %3150 = vst.msk [vmem:[%s10953_s7 + $0x3d8] sm:$0xff] %vm3026_vm11, %v2947_v9 }
 0x818   :  { %2994 = vmax.xlane.f32.xlu2 %v11816_v47 }
 0x81d   :  { %v2950_v21 = vpop.xlane.xlu1 %2949 }
 0x81e   :  { %3151 = vst.msk [vmem:[%s10953_s7 + $0x3e0] sm:$0xff] %vm3026_vm11, %v2950_v21 }
 0x820   :  { %3003 = vmax.xlane.f32.xlu2 %v11817_v32 }
 0x825   :  { %v2953_v63 = vpop.xlane.xlu1 %2952 }
 0x826   :  { %3152 = vst.msk [vmem:[%s10953_s7 + $0x3e8] sm:$0xff] %vm3026_vm11, %v2953_v63 }
 0x828   :  { %3012 = vmax.xlane.f32.xlu2 %v11818_v26 }
 0x82d   :  { %v2959_v59 = vpop.xlane.xlu1 %2958 }
 0x82e   :  { %3154 = vst.msk [vmem:[%s10953_s7 + $0x3f8] sm:$0xff] %vm3026_vm11, %v2959_v59 }
 0x830   :  { %3021 = vmax.xlane.f32.xlu2 %v11819_v35 }
 0x835   :  { %v2962_v33 = vpop.xlane.xlu1 %2961 }
 0x836   :  { %3155 = vst.msk [vmem:[%s10953_s7 + $0x400] sm:$0xff] %vm3026_vm11, %v2962_v33 }
 0x839   :  { %v4721_v50 = vpop.permute.xlu2 %4720 }
 0x83a   :  { %v4723_v54 = vmul.f32 %v4721_v50, %v4670_v62 }
 0x83c   :  { %4756 = vmatmul.f32.vlgmr.msra.gmra.mxu3 %v4723_v54 }
 0x83d   :  { %v2968_v4 = vpop.xlane.xlu1 %2967 }
 0x83e   :  { %3157 = vst.msk [vmem:[%s10953_s7 + $0x410] sm:$0xff] %vm3026_vm11, %v2968_v4 }
 0x845   :  { %v2974_v37 = vpop.xlane.xlu1 %2973 }
 0x846   :  { %3159 = vst.msk [vmem:[%s10953_s7 + $0x420] sm:$0xff] %vm3026_vm11, %v2974_v37 }
 0x84d   :  { %v2980_v51 = vpop.xlane.xlu1 %2979 }
 0x84e   :  { %3161 = vst.msk [vmem:[%s10953_s7 + $0x430] sm:$0xff] %vm3026_vm11, %v2980_v51 }
 0x855   :  { %v2989_v25 = vpop.xlane.xlu1 %2988 }
 0x856   :  { %3164 = vst.msk [vmem:[%s10953_s7 + $0x448] sm:$0xff] %vm3026_vm11, %v2989_v25 }
 0x85d   :  { %v2998_v42 = vpop.xlane.xlu1 %2997 }
 0x85e   :  { %3167 = vst.msk [vmem:[%s10953_s7 + $0x460] sm:$0xff] %vm3026_vm11, %v2998_v42 }
 0x865   :  { %v3007_v14 = vpop.xlane.xlu1 %3006 }
 0x866   :  { %3170 = vst.msk [vmem:[%s10953_s7 + $0x478] sm:$0xff] %vm3026_vm11, %v3007_v14 }
 0x86d   :  { %v3016_v36 = vpop.xlane.xlu1 %3015 }
 0x86e   :  { %3173 = vst.msk [vmem:[%s10953_s7 + $0x490] sm:$0xff] %vm3026_vm11, %v3016_v36 }
 0x875   :  { %v3025_v15 = vpop.xlane.xlu1 %3024 }
 0x876   :  { %3176 = vst.msk [vmem:[%s10953_s7 + $0x4a8] sm:$0xff] %vm3026_vm11, %v3025_v15 }
 0x87b   :  { %v2956_v57 = vpop.xlane.xlu2 %2955 }
 0x87c   :  { %3153 = vst.msk [vmem:[%s10953_s7 + $0x3f0] sm:$0xff] %vm3026_vm11, %v2956_v57 }
 0x883   :  { %v2986_v34 = vpop.xlane.xlu2 %2985 }
 0x884   :  { %3163 = vst.msk [vmem:[%s10953_s7 + $0x440] sm:$0xff] %vm3026_vm11, %v2986_v34 }
 0x88b   :  { %v2995_v18 = vpop.xlane.xlu2 %2994 }
 0x88c   :  { %3166 = vst.msk [vmem:[%s10953_s7 + $0x458] sm:$0xff] %vm3026_vm11, %v2995_v18 }
 0x893   :  { %v3004_v12 = vpop.xlane.xlu2 %3003 }
 0x894   :  { %3169 = vst.msk [vmem:[%s10953_s7 + $0x470] sm:$0xff] %vm3026_vm11, %v3004_v12 }
 0x89b   :  { %v3013_v30 = vpop.xlane.xlu2 %3012 }
 0x89c   :  { %3172 = vst.msk [vmem:[%s10953_s7 + $0x488] sm:$0xff] %vm3026_vm11, %v3013_v30 }
 0x8a3   :  { %v3022_v23 = vpop.xlane.xlu2 %3021 }
 0x8a4   :  { %3175 = vst.msk [vmem:[%s10953_s7 + $0x4a0] sm:$0xff] %vm3026_vm11, %v3022_v23 }
 0x8bf   :  { %v4757_v20 = vpop.f32.mrf.mxu3 }
 0x8c0   :  { %4761 = vst.msk [vmem:[#allocation6] sm:$0xf] %vm4760_vm14, %v4757_v20 }
 0x8c1   :  { %4777 = dma.vmem_to_hbm [thread:$0]  %s4773_s24, 64, %s4775_s25, [#allocation7]  }
 0x8c2   :  { %5563 = dma.done.wait [#allocation7], 64  }
 0x8c3   :  { %5564 = vsyncadd [#allocation7], 4294967232 }
 0x8c4   :  { %5565 = dma.done.wait [#allocation9], 32  }
 0x8c5   :  { %5566 = vsyncadd [#allocation9], 4294967264 }
 0x8c6   :  { %4814 = vsyncpa [#allocation7], 1 }
 0x8c7   :  { %4815 = vsyncpa [#allocation9], 1 }

</bundles_post_ra>
